<compile_context>
chip_gen: v7x
topology: tpu7x:2x2x1
jax: 0.10.0
libtpu: 0.0.40
codegen_flags: <defaults>
</compile_context>

<pallas_src>
import functools

import jax
import jax.numpy as jnp
import numpy as np
from jax import lax
from jax.experimental import pallas as pl
from jax.experimental.pallas import tpu as pltpu

VMEM_LIMIT = 32 * 1024 * 1024


# ------------------------------ Pallas kernels ------------------------------ #

def _conv_fused_kernel(a1_ref, w1_ref, b1_ref, w2_ref, b2_ref, o_ref, g_ref):
    """Fused conv1+relu+pool -> conv2+relu+pool for ONE image.

    a1_ref: (1024, 27)  stage-1 im2col rows ordered (pool-slab i,j ; parity a,b ; h',w')
    w1_ref: (27, 16)    conv1 weights, rows (dy,dx,cin)
    b1_ref: (1, 16)     conv1 bias (f32)
    w2_ref: (9, 16, 32) conv2 weights per tap (dy*3+dx, cin, cout)
    b2_ref: (1, 32)     conv2 bias (f32)
    o_ref : (64, 32)    pooled conv2 output, rows (ho,wo), cols cout (NHWC flatten)
    g_ref : (4, 10, 10, 16) f32 scratch: zero-padded parity grids of pooled conv1
            g = 2a+b, G[a][b][m+1, n+1, :] == pooledconv1[2m+a, 2n+b, :]
    """
    P = 256
    # ---- stage 1: four pool-slab matmuls with running max, bias+ReLU once ----
    w1 = w1_ref[...]
    m = jnp.dot(a1_ref[0:P, :], w1, preferred_element_type=jnp.float32)
    for s in range(1, 4):
        y = jnp.dot(a1_ref[s * P:(s + 1) * P, :], w1,
                    preferred_element_type=jnp.float32)
        m = jnp.maximum(m, y)
    p1 = jnp.maximum(m + b1_ref[...], 0.0)            # (256, 16) f32, rows (a,b,h',w')

    # ---- scatter pooled conv1 output into zero-padded parity grids (VMEM) ----
    g_ref[...] = jnp.zeros_like(g_ref)                 # SAME-padding ring must be zero
    for g in range(4):                                 # g = 2*a + b
        g_ref[g, 1:9, 1:9, :] = p1[g * 64:(g + 1) * 64, :].reshape(8, 8, 16)

    # ---- stage 2: conv2 straight from VMEM (9 taps x 4 pool slabs) ----------
    # For slab (i,j), tap (dy,dx): need pooledconv1[2ho+s, 2wo+t] with
    # s = i+dy-1, t = j+dx-1.  Writing s = 2q + a (a parity, q in {-1,0,1})
    # turns the stride-2 access into a contiguous (8,8) window of Gpad[a][b].
    tap_cache = {}

    def tap(s, t):
        if (s, t) not in tap_cache:
            a, q = s % 2, (s - s % 2) // 2             # python ints; s,t in {-1,0,1,2}
            b, r = t % 2, (t - t % 2) // 2
            v = g_ref[2 * a + b, 1 + q:9 + q, 1 + r:9 + r, :]   # (8, 8, 16)
            tap_cache[(s, t)] = v.reshape(64, 16).astype(w2_ref.dtype)
        return tap_cache[(s, t)]

    acc = [None] * 4                                   # one accumulator per pool slab
    for dy in range(3):
        for dx in range(3):
            wt = w2_ref[3 * dy + dx]                   # (16, 32)
            for i in range(2):
                for j in range(2):
                    d = jnp.dot(tap(i + dy - 1, j + dx - 1), wt,
                                preferred_element_type=jnp.float32)   # (64, 32)
                    si = 2 * i + j
                    acc[si] = d if acc[si] is None else acc[si] + d
    m2 = jnp.maximum(jnp.maximum(acc[0], acc[1]), jnp.maximum(acc[2], acc[3]))
    o_ref[...] = jnp.maximum(m2 + b2_ref[...], 0.0).astype(o_ref.dtype)


def _fc_fused_kernel(x_ref, w1_ref, b1_ref, w2_ref, b2_ref, o_ref):
    """Fused fc1(+ReLU)+fc2; grid axis tiles fc1's N (= fc2's K), out accumulates."""
    j = pl.program_id(0)
    h = jnp.dot(x_ref[...], w1_ref[...], preferred_element_type=jnp.float32)
    h = jnp.maximum(h + b1_ref[...], 0.0)              # (B, 256) f32, stays on-chip
    part = jnp.dot(h.astype(w2_ref.dtype), w2_ref[...],
                   preferred_element_type=jnp.float32)  # (B, 128) f32

    @pl.when(j == 0)
    def _():
        o_ref[...] = part + b2_ref[...]

    @pl.when(j != 0)
    def _():
        o_ref[...] = o_ref[...] + part


# ------------------------------ kernel wrappers ------------------------------ #

def conv_stage(a1, w1, b1, w2, b2, *, batch, out_dtype):
    """a1: (batch*1024, 27) grouped im2col; returns (batch*64, 32) pooled conv2."""
    rows, k = a1.shape
    assert rows == batch * 1024 and k == 27
    a1 = a1.astype(w1.dtype)
    n2 = w2.shape[-1]                                   # 32
    cost = pl.CostEstimate(
        flops=2 * batch * (1024 * k * 16 + 36 * 64 * 16 * n2),
        transcendentals=0,
        bytes_accessed=(a1.size * a1.dtype.itemsize + w1.size * w1.dtype.itemsize
                        + w2.size * w2.dtype.itemsize + (16 + n2) * 4
                        + batch * 64 * n2 * np.dtype(out_dtype).itemsize))
    return pl.pallas_call(
        _conv_fused_kernel,
        out_shape=jax.ShapeDtypeStruct((batch * 64, n2), out_dtype),
        grid=(batch,),            # 1 image / step; block several per step at large batch
        in_specs=[
            pl.BlockSpec((1024, k), lambda i: (i, 0)),
            pl.BlockSpec((27, 16), lambda i: (0, 0)),
            pl.BlockSpec((1, 16), lambda i: (0, 0)),
            pl.BlockSpec((9, 16, 32), lambda i: (0, 0, 0)),
            pl.BlockSpec((1, 32), lambda i: (0, 0)),
        ],
        out_specs=pl.BlockSpec((64, n2), lambda i: (i, 0)),
        scratch_shapes=[pltpu.VMEM((4, 10, 10, 16), jnp.float32)],
        compiler_params=pltpu.CompilerParams(
            dimension_semantics=("parallel",),
            vmem_limit_bytes=VMEM_LIMIT),
        cost_estimate=cost,
    )(a1, w1, b1, w2, b2)


def fc_fused(x, w1, b1, w2, b2, *, out_dtype):
    """logits = relu(x@W1+b1) @ W2 + b2, fused; hidden never leaves the chip."""
    m, k = x.shape                                      # (B, 2048)
    nh = w1.shape[1]                                    # 512
    n2 = w2.shape[1]                                    # 128 (10 valid)
    th = nh // 2                                        # 2 grid steps over hidden dim
    x = x.astype(w1.dtype)
    cost = pl.CostEstimate(
        flops=2 * m * k * nh + 2 * m * nh * n2,
        transcendentals=0,
        bytes_accessed=(x.size * x.dtype.itemsize + w1.size * w1.dtype.itemsize
                        + w2.size * w2.dtype.itemsize + (nh + n2) * 4 + m * n2 * 4))
    return pl.pallas_call(
        _fc_fused_kernel,
        out_shape=jax.ShapeDtypeStruct((m, n2), out_dtype),
        grid=(nh // th,),
        in_specs=[
            pl.BlockSpec((m, k), lambda j: (0, 0)),
            pl.BlockSpec((k, th), lambda j: (0, j)),
            pl.BlockSpec((1, th), lambda j: (0, j)),
            pl.BlockSpec((th, n2), lambda j: (j, 0)),
            pl.BlockSpec((1, n2), lambda j: (0, 0)),
        ],
        out_specs=pl.BlockSpec((m, n2), lambda j: (0, 0)),   # resident accumulator
        compiler_params=pltpu.CompilerParams(
            dimension_semantics=("arbitrary",),
            vmem_limit_bytes=VMEM_LIMIT),
        cost_estimate=cost,
    )(x, w1, b1, w2, b2)


# --------------------------------- JAX glue ---------------------------------- #

def im2col_conv1_grouped(x_nhwc):
    """3x3 SAME im2col for conv1 with rows grouped (pool-slab i,j ; parity a,b ; h',w').

    Conv1 output position H = 4h' + 2a + i, W = 4w' + 2b + j, so that
      * the 2x2 max-pool is a max over four contiguous 256-row slabs, and
      * the pooled rows come out parity-grouped, matching the in-kernel
        parity-grid scratch used to feed conv2.
    Columns are (dy, dx, cin), matching w1.reshape(27, 16).
    """
    bsz, h, w, c = x_nhwc.shape                         # (B, 32, 32, 3)
    xp = jnp.pad(x_nhwc, ((0, 0), (1, 1), (1, 1), (0, 0)))
    taps = [xp[:, dy:dy + h, dx:dx + w, :] for dy in range(3) for dx in range(3)]
    cols = jnp.stack(taps, axis=3)                      # (B, H, W, 9, C)
    cols = cols.reshape(bsz, h // 4, 2, 2, w // 4, 2, 2, 9 * c)
    cols = cols.transpose(0, 3, 6, 2, 5, 1, 4, 7)       # (B, i, j, a, b, h', w', 9C)
    return cols.reshape(bsz * 4 * (h // 2) * (w // 2), 9 * c)


def init_params(key):
    ks = jax.random.split(key, 8)
    return {
        # conv weights HWIO; fc1_w rows in torch NCHW-flatten order (the
        # nn.Module parameterization).
        "w1": jax.random.normal(ks[0], (3, 3, 3, 16), jnp.float32) * 0.1,
        "b1": jax.random.normal(ks[1], (16,), jnp.float32) * 0.01,
        "w2": jax.random.normal(ks[2], (3, 3, 16, 32), jnp.float32) * 0.05,
        "b2": jax.random.normal(ks[3], (32,), jnp.float32) * 0.01,
        "fc1_w": jax.random.normal(ks[4], (32 * 8 * 8, 512), jnp.float32) * 0.02,
        "fc1_b": jax.random.normal(ks[5], (512,), jnp.float32) * 0.01,
        "fc2_w": jax.random.normal(ks[6], (512, 10), jnp.float32) * 0.05,
        "fc2_b": jax.random.normal(ks[7], (10,), jnp.float32) * 0.01,
    }


def prepare_params(p, compute_dtype):
    """One-time weight re-layout (outside the hot path).

    * conv weights reshaped to matmul form at true channel width (no 128 pad),
    * conv2 weights split per tap,
    * fc1 rows permuted from torch NCHW-flatten to NHWC-flatten order,
    * fc2 zero-padded to a lane-dense 128-wide output,
    * matmul operands cast to `compute_dtype` (biases stay f32).
    """
    fc1_w_nhwc = (p["fc1_w"].reshape(32, 8, 8, 512)
                  .transpose(1, 2, 0, 3).reshape(32 * 8 * 8, 512))
    return {
        "w1": p["w1"].reshape(27, 16).astype(compute_dtype),
        "b1": p["b1"].reshape(1, 16),
        "w2": p["w2"].reshape(9, 16, 32).astype(compute_dtype),
        "b2": p["b2"].reshape(1, 32),
        "fc1_w": fc1_w_nhwc.astype(compute_dtype),
        "fc1_b": p["fc1_b"].reshape(1, 512),
        "fc2_w": jnp.pad(p["fc2_w"], ((0, 0), (0, 118))).astype(compute_dtype),
        "fc2_b": jnp.pad(p["fc2_b"], (0, 118)).reshape(1, 128),
    }


def simple_cnn_forward(x_nchw, q, compute_dtype=jnp.bfloat16):
    batch = x_nchw.shape[0]
    x = jnp.transpose(x_nchw, (0, 2, 3, 1)).astype(compute_dtype)    # NHWC

    # Fused conv1 -> relu -> pool -> conv2 -> relu -> pool (one pallas_call).
    a1 = im2col_conv1_grouped(x)                                     # (B*1024, 27)
    y = conv_stage(a1, q["w1"], q["b1"], q["w2"], q["b2"],
                   batch=batch, out_dtype=compute_dtype)             # (B*64, 32) NHWC rows

    # NHWC flatten; fc1_w rows were pre-permuted to match (no runtime transpose).
    feat = y.reshape(batch, 32 * 8 * 8)

    # Fused fc1(+ReLU)+fc2 (one pallas_call); logits in f32, lane padding sliced off.
    logits = fc_fused(feat, q["fc1_w"], q["fc1_b"], q["fc2_w"], q["fc2_b"],
                      out_dtype=jnp.float32)                         # (B, 128)
    return logits[:, :10]


def reference_forward(x_nchw, p):
    """Pure-JAX reference with the exact torch-module semantics."""
    x = jnp.transpose(x_nchw, (0, 2, 3, 1))
    dn = lax.conv_dimension_numbers(x.shape, p["w1"].shape, ("NHWC", "HWIO", "NHWC"))
    y = lax.conv_general_dilated(x, p["w1"], (1, 1), "SAME", dimension_numbers=dn) + p["b1"]
    y = jax.nn.relu(y)
    y = lax.reduce_window(y, -jnp.inf, lax.max, (1, 2, 2, 1), (1, 2, 2, 1), "VALID")
    dn2 = lax.conv_dimension_numbers(y.shape, p["w2"].shape, ("NHWC", "HWIO", "NHWC"))
    y = lax.conv_general_dilated(y, p["w2"], (1, 1), "SAME", dimension_numbers=dn2) + p["b2"]
    y = jax.nn.relu(y)
    y = lax.reduce_window(y, -jnp.inf, lax.max, (1, 2, 2, 1), (1, 2, 2, 1), "VALID")
    feat = jnp.transpose(y, (0, 3, 1, 2)).reshape(x.shape[0], 32 * 8 * 8)  # NCHW flatten
    h = jax.nn.relu(feat @ p["fc1_w"] + p["fc1_b"])
    return h @ p["fc2_w"] + p["fc2_b"]


if __name__ == "__main__":
    key = jax.random.PRNGKey(0)
    k_in, k_par = jax.random.split(key)
    # Module requires 32x32 spatial so that the 32*8*8 flatten matches.
    x = jax.random.normal(k_in, (2, 3, 32, 32), jnp.float32)
    params = init_params(k_par)

    ref = jax.block_until_ready(reference_forward(x, params))

    # f32 path: tight numerical check of the fused-kernel structure.
    q32 = prepare_params(params, jnp.float32)
    fwd32 = jax.jit(functools.partial(simple_cnn_forward, compute_dtype=jnp.float32))
    out32 = jax.block_until_ready(fwd32(x, q32))
    np.testing.assert_allclose(np.asarray(out32), np.asarray(ref), rtol=1e-3, atol=1e-3)

    # bf16-MXU path (f32 accumulation): the performance configuration.
    qbf = prepare_params(params, jnp.bfloat16)
    fwd = jax.jit(functools.partial(simple_cnn_forward, compute_dtype=jnp.bfloat16))
    out = jax.block_until_ready(fwd(x, qbf))
    assert out.shape == (2, 10) and out.dtype == jnp.float32
    np.testing.assert_allclose(np.asarray(out), np.asarray(ref), rtol=5e-2, atol=5e-2)

    print("KERNEL_OK")
</pallas_src>

<mosaic_0001>
module attributes {stable_mosaic.version = 11 : i64} {
  func.func @_conv_fused_kernel(%arg0: i32, %arg1: memref<1024x27xf32, #tpu.memory_space<vmem>>, %arg2: memref<27x16xf32, #tpu.memory_space<vmem>>, %arg3: memref<1x16xf32, #tpu.memory_space<vmem>>, %arg4: memref<9x16x32xf32, #tpu.memory_space<vmem>>, %arg5: memref<1x32xf32, #tpu.memory_space<vmem>>, %arg6: memref<64x32xf32, #tpu.memory_space<vmem>>, %arg7: memref<4x10x10x16xf32, #tpu.memory_space<vmem>>) attributes {dimension_semantics = [#tpu.dimension_semantics<parallel>], iteration_bounds = array<i64: 2>, scalar_prefetch = 0 : i64, scratch_operands = 1 : i64, tpu.core_type = #tpu.core_type<tc>, window_params = [{transform_indices = @transform_0, window_bounds = array<i64: 1024, 27>}, {pipeline_mode = #tpu.pipeline_mode<synchronous>, transform_indices = @transform_1, window_bounds = array<i64: 27, 16>}, {pipeline_mode = #tpu.pipeline_mode<synchronous>, transform_indices = @transform_2, window_bounds = array<i64: 1, 16>}, {pipeline_mode = #tpu.pipeline_mode<synchronous>, transform_indices = @transform_3, window_bounds = array<i64: 9, 16, 32>}, {pipeline_mode = #tpu.pipeline_mode<synchronous>, transform_indices = @transform_4, window_bounds = array<i64: 1, 32>}, {transform_indices = @transform_5, window_bounds = array<i64: 64, 32>}]} {
    %c0 = arith.constant 0 : index
    %c0_0 = arith.constant 0 : index
    %0 = vector.load %arg2[%c0, %c0_0] : memref<27x16xf32, #tpu.memory_space<vmem>>, vector<27x16xf32>
    %c0_1 = arith.constant 0 : index
    %c0_2 = arith.constant 0 : index
    %1 = vector.load %arg1[%c0_1, %c0_2] : memref<1024x27xf32, #tpu.memory_space<vmem>>, vector<256x27xf32>
    %cst = arith.constant dense<0.000000e+00> : vector<256x16xf32>
    %2 = tpu.matmul %1, %0, %cst {dimension_numbers = #tpu.dot_dimension_numbers<[1], [0], [0], [1], [0, 0, 1, 1], [], []>} : vector<256x27xf32>, vector<27x16xf32>, vector<256x16xf32> -> vector<256x16xf32>
    %c256 = arith.constant 256 : index
    %c0_3 = arith.constant 0 : index
    %3 = vector.load %arg1[%c256, %c0_3] : memref<1024x27xf32, #tpu.memory_space<vmem>>, vector<256x27xf32>
    %cst_4 = arith.constant dense<0.000000e+00> : vector<256x16xf32>
    %4 = tpu.matmul %3, %0, %cst_4 {dimension_numbers = #tpu.dot_dimension_numbers<[1], [0], [0], [1], [0, 0, 1, 1], [], []>} : vector<256x27xf32>, vector<27x16xf32>, vector<256x16xf32> -> vector<256x16xf32>
    %5 = arith.maximumf %2, %4 : vector<256x16xf32>
    %c512 = arith.constant 512 : index
    %c0_5 = arith.constant 0 : index
    %6 = vector.load %arg1[%c512, %c0_5] : memref<1024x27xf32, #tpu.memory_space<vmem>>, vector<256x27xf32>
    %cst_6 = arith.constant dense<0.000000e+00> : vector<256x16xf32>
    %7 = tpu.matmul %6, %0, %cst_6 {dimension_numbers = #tpu.dot_dimension_numbers<[1], [0], [0], [1], [0, 0, 1, 1], [], []>} : vector<256x27xf32>, vector<27x16xf32>, vector<256x16xf32> -> vector<256x16xf32>
    %8 = arith.maximumf %5, %7 : vector<256x16xf32>
    %c768 = arith.constant 768 : index
    %c0_7 = arith.constant 0 : index
    %9 = vector.load %arg1[%c768, %c0_7] : memref<1024x27xf32, #tpu.memory_space<vmem>>, vector<256x27xf32>
    %cst_8 = arith.constant dense<0.000000e+00> : vector<256x16xf32>
    %10 = tpu.matmul %9, %0, %cst_8 {dimension_numbers = #tpu.dot_dimension_numbers<[1], [0], [0], [1], [0, 0, 1, 1], [], []>} : vector<256x27xf32>, vector<27x16xf32>, vector<256x16xf32> -> vector<256x16xf32>
    %11 = arith.maximumf %8, %10 : vector<256x16xf32>
    %c0_9 = arith.constant 0 : index
    %c0_10 = arith.constant 0 : index
    %12 = vector.load %arg3[%c0_9, %c0_10] : memref<1x16xf32, #tpu.memory_space<vmem>>, vector<1x16xf32>
    %13 = vector.broadcast %12 : vector<1x16xf32> to vector<256x16xf32>
    %14 = arith.addf %11, %13 : vector<256x16xf32>
    %cst_11 = arith.constant 0.000000e+00 : f32
    %15 = vector.broadcast %cst_11 : f32 to vector<256x16xf32>
    %16 = arith.maximumf %14, %15 : vector<256x16xf32>
    %cst_12 = arith.constant 0.000000e+00 : f32
    %17 = vector.broadcast %cst_12 : f32 to vector<4x10x10x16xf32>
    %c0_13 = arith.constant 0 : index
    %c0_14 = arith.constant 0 : index
    %c0_15 = arith.constant 0 : index
    %c0_16 = arith.constant 0 : index
    %18 = vector.load %arg7[%c0_13, %c0_14, %c0_15, %c0_16] : memref<4x10x10x16xf32, #tpu.memory_space<vmem>>, vector<4x10x10x16xf32>
    tpu.vector_store %arg7[%c0_13, %c0_14, %c0_15, %c0_16], %17 {strides = array<i32>} : memref<4x10x10x16xf32, #tpu.memory_space<vmem>>, vector<4x10x10x16xf32>,
    %19 = vector.extract_strided_slice %16 {offsets = [0, 0], sizes = [64, 16], strides = [1, 1]} : vector<256x16xf32> to vector<64x16xf32>
    %20 = vector.shape_cast %19 : vector<64x16xf32> to vector<8x8x16xf32>
    %c0_17 = arith.constant 0 : index
    %c1 = arith.constant 1 : index
    %c1_18 = arith.constant 1 : index
    %c0_19 = arith.constant 0 : index
    %21 = vector.load %arg7[%c0_17, %c1, %c1_18, %c0_19] : memref<4x10x10x16xf32, #tpu.memory_space<vmem>>, vector<1x8x8x16xf32>
    %22 = vector.shape_cast %21 : vector<1x8x8x16xf32> to vector<8x8x16xf32>
    %23 = vector.shape_cast %20 : vector<8x8x16xf32> to vector<1x8x8x16xf32>
    tpu.vector_store %arg7[%c0_17, %c1, %c1_18, %c0_19], %23 {strides = array<i32>} : memref<4x10x10x16xf32, #tpu.memory_space<vmem>>, vector<1x8x8x16xf32>,
    %24 = vector.extract_strided_slice %16 {offsets = [64, 0], sizes = [64, 16], strides = [1, 1]} : vector<256x16xf32> to vector<64x16xf32>
    %25 = vector.shape_cast %24 : vector<64x16xf32> to vector<8x8x16xf32>
    %c1_20 = arith.constant 1 : index
    %c1_21 = arith.constant 1 : index
    %c1_22 = arith.constant 1 : index
    %c0_23 = arith.constant 0 : index
    %26 = vector.load %arg7[%c1_20, %c1_21, %c1_22, %c0_23] : memref<4x10x10x16xf32, #tpu.memory_space<vmem>>, vector<1x8x8x16xf32>
    %27 = vector.shape_cast %26 : vector<1x8x8x16xf32> to vector<8x8x16xf32>
    %28 = vector.shape_cast %25 : vector<8x8x16xf32> to vector<1x8x8x16xf32>
    tpu.vector_store %arg7[%c1_20, %c1_21, %c1_22, %c0_23], %28 {strides = array<i32>} : memref<4x10x10x16xf32, #tpu.memory_space<vmem>>, vector<1x8x8x16xf32>,
    %29 = vector.extract_strided_slice %16 {offsets = [128, 0], sizes = [64, 16], strides = [1, 1]} : vector<256x16xf32> to vector<64x16xf32>
    %30 = vector.shape_cast %29 : vector<64x16xf32> to vector<8x8x16xf32>
    %c2 = arith.constant 2 : index
    %c1_24 = arith.constant 1 : index
    %c1_25 = arith.constant 1 : index
    %c0_26 = arith.constant 0 : index
    %31 = vector.load %arg7[%c2, %c1_24, %c1_25, %c0_26] : memref<4x10x10x16xf32, #tpu.memory_space<vmem>>, vector<1x8x8x16xf32>
    %32 = vector.shape_cast %31 : vector<1x8x8x16xf32> to vector<8x8x16xf32>
    %33 = vector.shape_cast %30 : vector<8x8x16xf32> to vector<1x8x8x16xf32>
    tpu.vector_store %arg7[%c2, %c1_24, %c1_25, %c0_26], %33 {strides = array<i32>} : memref<4x10x10x16xf32, #tpu.memory_space<vmem>>, vector<1x8x8x16xf32>,
    %34 = vector.extract_strided_slice %16 {offsets = [192, 0], sizes = [64, 16], strides = [1, 1]} : vector<256x16xf32> to vector<64x16xf32>
    %35 = vector.shape_cast %34 : vector<64x16xf32> to vector<8x8x16xf32>
    %c3 = arith.constant 3 : index
    %c1_27 = arith.constant 1 : index
    %c1_28 = arith.constant 1 : index
    %c0_29 = arith.constant 0 : index
    %36 = vector.load %arg7[%c3, %c1_27, %c1_28, %c0_29] : memref<4x10x10x16xf32, #tpu.memory_space<vmem>>, vector<1x8x8x16xf32>
    %37 = vector.shape_cast %36 : vector<1x8x8x16xf32> to vector<8x8x16xf32>
    %38 = vector.shape_cast %35 : vector<8x8x16xf32> to vector<1x8x8x16xf32>
    tpu.vector_store %arg7[%c3, %c1_27, %c1_28, %c0_29], %38 {strides = array<i32>} : memref<4x10x10x16xf32, #tpu.memory_space<vmem>>, vector<1x8x8x16xf32>,
    %c0_30 = arith.constant 0 : index
    %c0_31 = arith.constant 0 : index
    %c0_32 = arith.constant 0 : index
    %39 = vector.load %arg4[%c0_30, %c0_31, %c0_32] : memref<9x16x32xf32, #tpu.memory_space<vmem>>, vector<1x16x32xf32>
    %40 = vector.shape_cast %39 : vector<1x16x32xf32> to vector<16x32xf32>
    %c3_33 = arith.constant 3 : index
    %c0_34 = arith.constant 0 : index
    %c0_35 = arith.constant 0 : index
    %c0_36 = arith.constant 0 : index
    %41 = vector.load %arg7[%c3_33, %c0_34, %c0_35, %c0_36] : memref<4x10x10x16xf32, #tpu.memory_space<vmem>>, vector<1x8x8x16xf32>
    %42 = vector.shape_cast %41 : vector<1x8x8x16xf32> to vector<8x8x16xf32>
    %43 = vector.shape_cast %42 : vector<8x8x16xf32> to vector<64x16xf32>
    %cst_37 = arith.constant dense<0.000000e+00> : vector<64x32xf32>
    %44 = tpu.matmul %43, %40, %cst_37 {dimension_numbers = #tpu.dot_dimension_numbers<[1], [0], [0], [1], [0, 0, 1, 1], [], []>} : vector<64x16xf32>, vector<16x32xf32>, vector<64x32xf32> -> vector<64x32xf32>
    %c2_38 = arith.constant 2 : index
    %c0_39 = arith.constant 0 : index
    %c1_40 = arith.constant 1 : index
    %c0_41 = arith.constant 0 : index
    %45 = vector.load %arg7[%c2_38, %c0_39, %c1_40, %c0_41] : memref<4x10x10x16xf32, #tpu.memory_space<vmem>>, vector<1x8x8x16xf32>
    %46 = vector.shape_cast %45 : vector<1x8x8x16xf32> to vector<8x8x16xf32>
    %47 = vector.shape_cast %46 : vector<8x8x16xf32> to vector<64x16xf32>
    %cst_42 = arith.constant dense<0.000000e+00> : vector<64x32xf32>
    %48 = tpu.matmul %47, %40, %cst_42 {dimension_numbers = #tpu.dot_dimension_numbers<[1], [0], [0], [1], [0, 0, 1, 1], [], []>} : vector<64x16xf32>, vector<16x32xf32>, vector<64x32xf32> -> vector<64x32xf32>
    %c1_43 = arith.constant 1 : index
    %c1_44 = arith.constant 1 : index
    %c0_45 = arith.constant 0 : index
    %c0_46 = arith.constant 0 : index
    %49 = vector.load %arg7[%c1_43, %c1_44, %c0_45, %c0_46] : memref<4x10x10x16xf32, #tpu.memory_space<vmem>>, vector<1x8x8x16xf32>
    %50 = vector.shape_cast %49 : vector<1x8x8x16xf32> to vector<8x8x16xf32>
    %51 = vector.shape_cast %50 : vector<8x8x16xf32> to vector<64x16xf32>
    %cst_47 = arith.constant dense<0.000000e+00> : vector<64x32xf32>
    %52 = tpu.matmul %51, %40, %cst_47 {dimension_numbers = #tpu.dot_dimension_numbers<[1], [0], [0], [1], [0, 0, 1, 1], [], []>} : vector<64x16xf32>, vector<16x32xf32>, vector<64x32xf32> -> vector<64x32xf32>
    %c0_48 = arith.constant 0 : index
    %c1_49 = arith.constant 1 : index
    %c1_50 = arith.constant 1 : index
    %c0_51 = arith.constant 0 : index
    %53 = vector.load %arg7[%c0_48, %c1_49, %c1_50, %c0_51] : memref<4x10x10x16xf32, #tpu.memory_space<vmem>>, vector<1x8x8x16xf32>
    %54 = vector.shape_cast %53 : vector<1x8x8x16xf32> to vector<8x8x16xf32>
    %55 = vector.shape_cast %54 : vector<8x8x16xf32> to vector<64x16xf32>
    %cst_52 = arith.constant dense<0.000000e+00> : vector<64x32xf32>
    %56 = tpu.matmul %55, %40, %cst_52 {dimension_numbers = #tpu.dot_dimension_numbers<[1], [0], [0], [1], [0, 0, 1, 1], [], []>} : vector<64x16xf32>, vector<16x32xf32>, vector<64x32xf32> -> vector<64x32xf32>
    %c1_53 = arith.constant 1 : index
    %c0_54 = arith.constant 0 : index
    %c0_55 = arith.constant 0 : index
    %57 = vector.load %arg4[%c1_53, %c0_54, %c0_55] : memref<9x16x32xf32, #tpu.memory_space<vmem>>, vector<1x16x32xf32>
    %58 = vector.shape_cast %57 : vector<1x16x32xf32> to vector<16x32xf32>
    %cst_56 = arith.constant dense<0.000000e+00> : vector<64x32xf32>
    %59 = tpu.matmul %47, %58, %cst_56 {dimension_numbers = #tpu.dot_dimension_numbers<[1], [0], [0], [1], [0, 0, 1, 1], [], []>} : vector<64x16xf32>, vector<16x32xf32>, vector<64x32xf32> -> vector<64x32xf32>
    %60 = arith.addf %44, %59 : vector<64x32xf32>
    %c3_57 = arith.constant 3 : index
    %c0_58 = arith.constant 0 : index
    %c1_59 = arith.constant 1 : index
    %c0_60 = arith.constant 0 : index
    %61 = vector.load %arg7[%c3_57, %c0_58, %c1_59, %c0_60] : memref<4x10x10x16xf32, #tpu.memory_space<vmem>>, vector<1x8x8x16xf32>
    %62 = vector.shape_cast %61 : vector<1x8x8x16xf32> to vector<8x8x16xf32>
    %63 = vector.shape_cast %62 : vector<8x8x16xf32> to vector<64x16xf32>
    %cst_61 = arith.constant dense<0.000000e+00> : vector<64x32xf32>
    %64 = tpu.matmul %63, %58, %cst_61 {dimension_numbers = #tpu.dot_dimension_numbers<[1], [0], [0], [1], [0, 0, 1, 1], [], []>} : vector<64x16xf32>, vector<16x32xf32>, vector<64x32xf32> -> vector<64x32xf32>
    %65 = arith.addf %48, %64 : vector<64x32xf32>
    %cst_62 = arith.constant dense<0.000000e+00> : vector<64x32xf32>
    %66 = tpu.matmul %55, %58, %cst_62 {dimension_numbers = #tpu.dot_dimension_numbers<[1], [0], [0], [1], [0, 0, 1, 1], [], []>} : vector<64x16xf32>, vector<16x32xf32>, vector<64x32xf32> -> vector<64x32xf32>
    %67 = arith.addf %52, %66 : vector<64x32xf32>
    %c1_63 = arith.constant 1 : index
    %c1_64 = arith.constant 1 : index
    %c1_65 = arith.constant 1 : index
    %c0_66 = arith.constant 0 : index
    %68 = vector.load %arg7[%c1_63, %c1_64, %c1_65, %c0_66] : memref<4x10x10x16xf32, #tpu.memory_space<vmem>>, vector<1x8x8x16xf32>
    %69 = vector.shape_cast %68 : vector<1x8x8x16xf32> to vector<8x8x16xf32>
    %70 = vector.shape_cast %69 : vector<8x8x16xf32> to vector<64x16xf32>
    %cst_67 = arith.constant dense<0.000000e+00> : vector<64x32xf32>
    %71 = tpu.matmul %70, %58, %cst_67 {dimension_numbers = #tpu.dot_dimension_numbers<[1], [0], [0], [1], [0, 0, 1, 1], [], []>} : vector<64x16xf32>, vector<16x32xf32>, vector<64x32xf32> -> vector<64x32xf32>
    %72 = arith.addf %56, %71 : vector<64x32xf32>
    %c2_68 = arith.constant 2 : index
    %c0_69 = arith.constant 0 : index
    %c0_70 = arith.constant 0 : index
    %73 = vector.load %arg4[%c2_68, %c0_69, %c0_70] : memref<9x16x32xf32, #tpu.memory_space<vmem>>, vector<1x16x32xf32>
    %74 = vector.shape_cast %73 : vector<1x16x32xf32> to vector<16x32xf32>
    %cst_71 = arith.constant dense<0.000000e+00> : vector<64x32xf32>
    %75 = tpu.matmul %63, %74, %cst_71 {dimension_numbers = #tpu.dot_dimension_numbers<[1], [0], [0], [1], [0, 0, 1, 1], [], []>} : vector<64x16xf32>, vector<16x32xf32>, vector<64x32xf32> -> vector<64x32xf32>
    %76 = arith.addf %60, %75 : vector<64x32xf32>
    %c2_72 = arith.constant 2 : index
    %c0_73 = arith.constant 0 : index
    %c2_74 = arith.constant 2 : index
    %c0_75 = arith.constant 0 : index
    %77 = vector.load %arg7[%c2_72, %c0_73, %c2_74, %c0_75] : memref<4x10x10x16xf32, #tpu.memory_space<vmem>>, vector<1x8x8x16xf32>
    %78 = vector.shape_cast %77 : vector<1x8x8x16xf32> to vector<8x8x16xf32>
    %79 = vector.shape_cast %78 : vector<8x8x16xf32> to vector<64x16xf32>
    %cst_76 = arith.constant dense<0.000000e+00> : vector<64x32xf32>
    %80 = tpu.matmul %79, %74, %cst_76 {dimension_numbers = #tpu.dot_dimension_numbers<[1], [0], [0], [1], [0, 0, 1, 1], [], []>} : vector<64x16xf32>, vector<16x32xf32>, vector<64x32xf32> -> vector<64x32xf32>
    %81 = arith.addf %65, %80 : vector<64x32xf32>
    %cst_77 = arith.constant dense<0.000000e+00> : vector<64x32xf32>
    %82 = tpu.matmul %70, %74, %cst_77 {dimension_numbers = #tpu.dot_dimension_numbers<[1], [0], [0], [1], [0, 0, 1, 1], [], []>} : vector<64x16xf32>, vector<16x32xf32>, vector<64x32xf32> -> vector<64x32xf32>
    %83 = arith.addf %67, %82 : vector<64x32xf32>
    %c0_78 = arith.constant 0 : index
    %c1_79 = arith.constant 1 : index
    %c2_80 = arith.constant 2 : index
    %c0_81 = arith.constant 0 : index
    %84 = vector.load %arg7[%c0_78, %c1_79, %c2_80, %c0_81] : memref<4x10x10x16xf32, #tpu.memory_space<vmem>>, vector<1x8x8x16xf32>
    %85 = vector.shape_cast %84 : vector<1x8x8x16xf32> to vector<8x8x16xf32>
    %86 = vector.shape_cast %85 : vector<8x8x16xf32> to vector<64x16xf32>
    %cst_82 = arith.constant dense<0.000000e+00> : vector<64x32xf32>
    %87 = tpu.matmul %86, %74, %cst_82 {dimension_numbers = #tpu.dot_dimension_numbers<[1], [0], [0], [1], [0, 0, 1, 1], [], []>} : vector<64x16xf32>, vector<16x32xf32>, vector<64x32xf32> -> vector<64x32xf32>
    %88 = arith.addf %72, %87 : vector<64x32xf32>
    %c3_83 = arith.constant 3 : index
    %c0_84 = arith.constant 0 : index
    %c0_85 = arith.constant 0 : index
    %89 = vector.load %arg4[%c3_83, %c0_84, %c0_85] : memref<9x16x32xf32, #tpu.memory_space<vmem>>, vector<1x16x32xf32>
    %90 = vector.shape_cast %89 : vector<1x16x32xf32> to vector<16x32xf32>
    %cst_86 = arith.constant dense<0.000000e+00> : vector<64x32xf32>
    %91 = tpu.matmul %51, %90, %cst_86 {dimension_numbers = #tpu.dot_dimension_numbers<[1], [0], [0], [1], [0, 0, 1, 1], [], []>} : vector<64x16xf32>, vector<16x32xf32>, vector<64x32xf32> -> vector<64x32xf32>
    %92 = arith.addf %76, %91 : vector<64x32xf32>
    %cst_87 = arith.constant dense<0.000000e+00> : vector<64x32xf32>
    %93 = tpu.matmul %55, %90, %cst_87 {dimension_numbers = #tpu.dot_dimension_numbers<[1], [0], [0], [1], [0, 0, 1, 1], [], []>} : vector<64x16xf32>, vector<16x32xf32>, vector<64x32xf32> -> vector<64x32xf32>
    %94 = arith.addf %81, %93 : vector<64x32xf32>
    %c3_88 = arith.constant 3 : index
    %c1_89 = arith.constant 1 : index
    %c0_90 = arith.constant 0 : index
    %c0_91 = arith.constant 0 : index
    %95 = vector.load %arg7[%c3_88, %c1_89, %c0_90, %c0_91] : memref<4x10x10x16xf32, #tpu.memory_space<vmem>>, vector<1x8x8x16xf32>
    %96 = vector.shape_cast %95 : vector<1x8x8x16xf32> to vector<8x8x16xf32>
    %97 = vector.shape_cast %96 : vector<8x8x16xf32> to vector<64x16xf32>
    %cst_92 = arith.constant dense<0.000000e+00> : vector<64x32xf32>
    %98 = tpu.matmul %97, %90, %cst_92 {dimension_numbers = #tpu.dot_dimension_numbers<[1], [0], [0], [1], [0, 0, 1, 1], [], []>} : vector<64x16xf32>, vector<16x32xf32>, vector<64x32xf32> -> vector<64x32xf32>
    %99 = arith.addf %83, %98 : vector<64x32xf32>
    %c2_93 = arith.constant 2 : index
    %c1_94 = arith.constant 1 : index
    %c1_95 = arith.constant 1 : index
    %c0_96 = arith.constant 0 : index
    %100 = vector.load %arg7[%c2_93, %c1_94, %c1_95, %c0_96] : memref<4x10x10x16xf32, #tpu.memory_space<vmem>>, vector<1x8x8x16xf32>
    %101 = vector.shape_cast %100 : vector<1x8x8x16xf32> to vector<8x8x16xf32>
    %102 = vector.shape_cast %101 : vector<8x8x16xf32> to vector<64x16xf32>
    %cst_97 = arith.constant dense<0.000000e+00> : vector<64x32xf32>
    %103 = tpu.matmul %102, %90, %cst_97 {dimension_numbers = #tpu.dot_dimension_numbers<[1], [0], [0], [1], [0, 0, 1, 1], [], []>} : vector<64x16xf32>, vector<16x32xf32>, vector<64x32xf32> -> vector<64x32xf32>
    %104 = arith.addf %88, %103 : vector<64x32xf32>
    %c4 = arith.constant 4 : index
    %c0_98 = arith.constant 0 : index
    %c0_99 = arith.constant 0 : index
    %105 = vector.load %arg4[%c4, %c0_98, %c0_99] : memref<9x16x32xf32, #tpu.memory_space<vmem>>, vector<1x16x32xf32>
    %106 = vector.shape_cast %105 : vector<1x16x32xf32> to vector<16x32xf32>
    %cst_100 = arith.constant dense<0.000000e+00> : vector<64x32xf32>
    %107 = tpu.matmul %55, %106, %cst_100 {dimension_numbers = #tpu.dot_dimension_numbers<[1], [0], [0], [1], [0, 0, 1, 1], [], []>} : vector<64x16xf32>, vector<16x32xf32>, vector<64x32xf32> -> vector<64x32xf32>
    %108 = arith.addf %92, %107 : vector<64x32xf32>
    %cst_101 = arith.constant dense<0.000000e+00> : vector<64x32xf32>
    %109 = tpu.matmul %70, %106, %cst_101 {dimension_numbers = #tpu.dot_dimension_numbers<[1], [0], [0], [1], [0, 0, 1, 1], [], []>} : vector<64x16xf32>, vector<16x32xf32>, vector<64x32xf32> -> vector<64x32xf32>
    %110 = arith.addf %94, %109 : vector<64x32xf32>
    %cst_102 = arith.constant dense<0.000000e+00> : vector<64x32xf32>
    %111 = tpu.matmul %102, %106, %cst_102 {dimension_numbers = #tpu.dot_dimension_numbers<[1], [0], [0], [1], [0, 0, 1, 1], [], []>} : vector<64x16xf32>, vector<16x32xf32>, vector<64x32xf32> -> vector<64x32xf32>
    %112 = arith.addf %99, %111 : vector<64x32xf32>
    %c3_103 = arith.constant 3 : index
    %c1_104 = arith.constant 1 : index
    %c1_105 = arith.constant 1 : index
    %c0_106 = arith.constant 0 : index
    %113 = vector.load %arg7[%c3_103, %c1_104, %c1_105, %c0_106] : memref<4x10x10x16xf32, #tpu.memory_space<vmem>>, vector<1x8x8x16xf32>
    %114 = vector.shape_cast %113 : vector<1x8x8x16xf32> to vector<8x8x16xf32>
    %115 = vector.shape_cast %114 : vector<8x8x16xf32> to vector<64x16xf32>
    %cst_107 = arith.constant dense<0.000000e+00> : vector<64x32xf32>
    %116 = tpu.matmul %115, %106, %cst_107 {dimension_numbers = #tpu.dot_dimension_numbers<[1], [0], [0], [1], [0, 0, 1, 1], [], []>} : vector<64x16xf32>, vector<16x32xf32>, vector<64x32xf32> -> vector<64x32xf32>
    %117 = arith.addf %104, %116 : vector<64x32xf32>
    %c5 = arith.constant 5 : index
    %c0_108 = arith.constant 0 : index
    %c0_109 = arith.constant 0 : index
    %118 = vector.load %arg4[%c5, %c0_108, %c0_109] : memref<9x16x32xf32, #tpu.memory_space<vmem>>, vector<1x16x32xf32>
    %119 = vector.shape_cast %118 : vector<1x16x32xf32> to vector<16x32xf32>
    %cst_110 = arith.constant dense<0.000000e+00> : vector<64x32xf32>
    %120 = tpu.matmul %70, %119, %cst_110 {dimension_numbers = #tpu.dot_dimension_numbers<[1], [0], [0], [1], [0, 0, 1, 1], [], []>} : vector<64x16xf32>, vector<16x32xf32>, vector<64x32xf32> -> vector<64x32xf32>
    %121 = arith.addf %108, %120 : vector<64x32xf32>
    %cst_111 = arith.constant dense<0.000000e+00> : vector<64x32xf32>
    %122 = tpu.matmul %86, %119, %cst_111 {dimension_numbers = #tpu.dot_dimension_numbers<[1], [0], [0], [1], [0, 0, 1, 1], [], []>} : vector<64x16xf32>, vector<16x32xf32>, vector<64x32xf32> -> vector<64x32xf32>
    %123 = arith.addf %110, %122 : vector<64x32xf32>
    %cst_112 = arith.constant dense<0.000000e+00> : vector<64x32xf32>
    %124 = tpu.matmul %115, %119, %cst_112 {dimension_numbers = #tpu.dot_dimension_numbers<[1], [0], [0], [1], [0, 0, 1, 1], [], []>} : vector<64x16xf32>, vector<16x32xf32>, vector<64x32xf32> -> vector<64x32xf32>
    %125 = arith.addf %112, %124 : vector<64x32xf32>
    %c2_113 = arith.constant 2 : index
    %c1_114 = arith.constant 1 : index
    %c2_115 = arith.constant 2 : index
    %c0_116 = arith.constant 0 : index
    %126 = vector.load %arg7[%c2_113, %c1_114, %c2_115, %c0_116] : memref<4x10x10x16xf32, #tpu.memory_space<vmem>>, vector<1x8x8x16xf32>
    %127 = vector.shape_cast %126 : vector<1x8x8x16xf32> to vector<8x8x16xf32>
    %128 = vector.shape_cast %127 : vector<8x8x16xf32> to vector<64x16xf32>
    %cst_117 = arith.constant dense<0.000000e+00> : vector<64x32xf32>
    %129 = tpu.matmul %128, %119, %cst_117 {dimension_numbers = #tpu.dot_dimension_numbers<[1], [0], [0], [1], [0, 0, 1, 1], [], []>} : vector<64x16xf32>, vector<16x32xf32>, vector<64x32xf32> -> vector<64x32xf32>
    %130 = arith.addf %117, %129 : vector<64x32xf32>
    %c6 = arith.constant 6 : index
    %c0_118 = arith.constant 0 : index
    %c0_119 = arith.constant 0 : index
    %131 = vector.load %arg4[%c6, %c0_118, %c0_119] : memref<9x16x32xf32, #tpu.memory_space<vmem>>, vector<1x16x32xf32>
    %132 = vector.shape_cast %131 : vector<1x16x32xf32> to vector<16x32xf32>
    %cst_120 = arith.constant dense<0.000000e+00> : vector<64x32xf32>
    %133 = tpu.matmul %97, %132, %cst_120 {dimension_numbers = #tpu.dot_dimension_numbers<[1], [0], [0], [1], [0, 0, 1, 1], [], []>} : vector<64x16xf32>, vector<16x32xf32>, vector<64x32xf32> -> vector<64x32xf32>
    %134 = arith.addf %121, %133 : vector<64x32xf32>
    %cst_121 = arith.constant dense<0.000000e+00> : vector<64x32xf32>
    %135 = tpu.matmul %102, %132, %cst_121 {dimension_numbers = #tpu.dot_dimension_numbers<[1], [0], [0], [1], [0, 0, 1, 1], [], []>} : vector<64x16xf32>, vector<16x32xf32>, vector<64x32xf32> -> vector<64x32xf32>
    %136 = arith.addf %123, %135 : vector<64x32xf32>
    %c1_122 = arith.constant 1 : index
    %c2_123 = arith.constant 2 : index
    %c0_124 = arith.constant 0 : index
    %c0_125 = arith.constant 0 : index
    %137 = vector.load %arg7[%c1_122, %c2_123, %c0_124, %c0_125] : memref<4x10x10x16xf32, #tpu.memory_space<vmem>>, vector<1x8x8x16xf32>
    %138 = vector.shape_cast %137 : vector<1x8x8x16xf32> to vector<8x8x16xf32>
    %139 = vector.shape_cast %138 : vector<8x8x16xf32> to vector<64x16xf32>
    %cst_126 = arith.constant dense<0.000000e+00> : vector<64x32xf32>
    %140 = tpu.matmul %139, %132, %cst_126 {dimension_numbers = #tpu.dot_dimension_numbers<[1], [0], [0], [1], [0, 0, 1, 1], [], []>} : vector<64x16xf32>, vector<16x32xf32>, vector<64x32xf32> -> vector<64x32xf32>
    %141 = arith.addf %125, %140 : vector<64x32xf32>
    %c0_127 = arith.constant 0 : index
    %c2_128 = arith.constant 2 : index
    %c1_129 = arith.constant 1 : index
    %c0_130 = arith.constant 0 : index
    %142 = vector.load %arg7[%c0_127, %c2_128, %c1_129, %c0_130] : memref<4x10x10x16xf32, #tpu.memory_space<vmem>>, vector<1x8x8x16xf32>
    %143 = vector.shape_cast %142 : vector<1x8x8x16xf32> to vector<8x8x16xf32>
    %144 = vector.shape_cast %143 : vector<8x8x16xf32> to vector<64x16xf32>
    %cst_131 = arith.constant dense<0.000000e+00> : vector<64x32xf32>
    %145 = tpu.matmul %144, %132, %cst_131 {dimension_numbers = #tpu.dot_dimension_numbers<[1], [0], [0], [1], [0, 0, 1, 1], [], []>} : vector<64x16xf32>, vector<16x32xf32>, vector<64x32xf32> -> vector<64x32xf32>
    %146 = arith.addf %130, %145 : vector<64x32xf32>
    %c7 = arith.constant 7 : index
    %c0_132 = arith.constant 0 : index
    %c0_133 = arith.constant 0 : index
    %147 = vector.load %arg4[%c7, %c0_132, %c0_133] : memref<9x16x32xf32, #tpu.memory_space<vmem>>, vector<1x16x32xf32>
    %148 = vector.shape_cast %147 : vector<1x16x32xf32> to vector<16x32xf32>
    %cst_134 = arith.constant dense<0.000000e+00> : vector<64x32xf32>
    %149 = tpu.matmul %102, %148, %cst_134 {dimension_numbers = #tpu.dot_dimension_numbers<[1], [0], [0], [1], [0, 0, 1, 1], [], []>} : vector<64x16xf32>, vector<16x32xf32>, vector<64x32xf32> -> vector<64x32xf32>
    %150 = arith.addf %134, %149 : vector<64x32xf32>
    %cst_135 = arith.constant dense<0.000000e+00> : vector<64x32xf32>
    %151 = tpu.matmul %115, %148, %cst_135 {dimension_numbers = #tpu.dot_dimension_numbers<[1], [0], [0], [1], [0, 0, 1, 1], [], []>} : vector<64x16xf32>, vector<16x32xf32>, vector<64x32xf32> -> vector<64x32xf32>
    %152 = arith.addf %136, %151 : vector<64x32xf32>
    %cst_136 = arith.constant dense<0.000000e+00> : vector<64x32xf32>
    %153 = tpu.matmul %144, %148, %cst_136 {dimension_numbers = #tpu.dot_dimension_numbers<[1], [0], [0], [1], [0, 0, 1, 1], [], []>} : vector<64x16xf32>, vector<16x32xf32>, vector<64x32xf32> -> vector<64x32xf32>
    %154 = arith.addf %141, %153 : vector<64x32xf32>
    %c1_137 = arith.constant 1 : index
    %c2_138 = arith.constant 2 : index
    %c1_139 = arith.constant 1 : index
    %c0_140 = arith.constant 0 : index
    %155 = vector.load %arg7[%c1_137, %c2_138, %c1_139, %c0_140] : memref<4x10x10x16xf32, #tpu.memory_space<vmem>>, vector<1x8x8x16xf32>
    %156 = vector.shape_cast %155 : vector<1x8x8x16xf32> to vector<8x8x16xf32>
    %157 = vector.shape_cast %156 : vector<8x8x16xf32> to vector<64x16xf32>
    %cst_141 = arith.constant dense<0.000000e+00> : vector<64x32xf32>
    %158 = tpu.matmul %157, %148, %cst_141 {dimension_numbers = #tpu.dot_dimension_numbers<[1], [0], [0], [1], [0, 0, 1, 1], [], []>} : vector<64x16xf32>, vector<16x32xf32>, vector<64x32xf32> -> vector<64x32xf32>
    %159 = arith.addf %146, %158 : vector<64x32xf32>
    %c8 = arith.constant 8 : index
    %c0_142 = arith.constant 0 : index
    %c0_143 = arith.constant 0 : index
    %160 = vector.load %arg4[%c8, %c0_142, %c0_143] : memref<9x16x32xf32, #tpu.memory_space<vmem>>, vector<1x16x32xf32>
    %161 = vector.shape_cast %160 : vector<1x16x32xf32> to vector<16x32xf32>
    %cst_144 = arith.constant dense<0.000000e+00> : vector<64x32xf32>
    %162 = tpu.matmul %115, %161, %cst_144 {dimension_numbers = #tpu.dot_dimension_numbers<[1], [0], [0], [1], [0, 0, 1, 1], [], []>} : vector<64x16xf32>, vector<16x32xf32>, vector<64x32xf32> -> vector<64x32xf32>
    %163 = arith.addf %150, %162 : vector<64x32xf32>
    %cst_145 = arith.constant dense<0.000000e+00> : vector<64x32xf32>
    %164 = tpu.matmul %128, %161, %cst_145 {dimension_numbers = #tpu.dot_dimension_numbers<[1], [0], [0], [1], [0, 0, 1, 1], [], []>} : vector<64x16xf32>, vector<16x32xf32>, vector<64x32xf32> -> vector<64x32xf32>
    %165 = arith.addf %152, %164 : vector<64x32xf32>
    %cst_146 = arith.constant dense<0.000000e+00> : vector<64x32xf32>
    %166 = tpu.matmul %157, %161, %cst_146 {dimension_numbers = #tpu.dot_dimension_numbers<[1], [0], [0], [1], [0, 0, 1, 1], [], []>} : vector<64x16xf32>, vector<16x32xf32>, vector<64x32xf32> -> vector<64x32xf32>
    %167 = arith.addf %154, %166 : vector<64x32xf32>
    %c0_147 = arith.constant 0 : index
    %c2_148 = arith.constant 2 : index
    %c2_149 = arith.constant 2 : index
    %c0_150 = arith.constant 0 : index
    %168 = vector.load %arg7[%c0_147, %c2_148, %c2_149, %c0_150] : memref<4x10x10x16xf32, #tpu.memory_space<vmem>>, vector<1x8x8x16xf32>
    %169 = vector.shape_cast %168 : vector<1x8x8x16xf32> to vector<8x8x16xf32>
    %170 = vector.shape_cast %169 : vector<8x8x16xf32> to vector<64x16xf32>
    %cst_151 = arith.constant dense<0.000000e+00> : vector<64x32xf32>
    %171 = tpu.matmul %170, %161, %cst_151 {dimension_numbers = #tpu.dot_dimension_numbers<[1], [0], [0], [1], [0, 0, 1, 1], [], []>} : vector<64x16xf32>, vector<16x32xf32>, vector<64x32xf32> -> vector<64x32xf32>
    %172 = arith.addf %159, %171 : vector<64x32xf32>
    %173 = arith.maximumf %163, %165 : vector<64x32xf32>
    %174 = arith.maximumf %167, %172 : vector<64x32xf32>
    %175 = arith.maximumf %173, %174 : vector<64x32xf32>
    %c0_152 = arith.constant 0 : index
    %c0_153 = arith.constant 0 : index
    %176 = vector.load %arg5[%c0_152, %c0_153] : memref<1x32xf32, #tpu.memory_space<vmem>>, vector<1x32xf32>
    %177 = vector.broadcast %176 : vector<1x32xf32> to vector<64x32xf32>
    %178 = arith.addf %175, %177 : vector<64x32xf32>
    %cst_154 = arith.constant 0.000000e+00 : f32
    %179 = vector.broadcast %cst_154 : f32 to vector<64x32xf32>
    %180 = arith.maximumf %178, %179 : vector<64x32xf32>
    %c0_155 = arith.constant 0 : index
    %c0_156 = arith.constant 0 : index
    %181 = vector.load %arg6[%c0_155, %c0_156] : memref<64x32xf32, #tpu.memory_space<vmem>>, vector<64x32xf32>
    tpu.vector_store %arg6[%c0_155, %c0_156], %180 {strides = array<i32>} : memref<64x32xf32, #tpu.memory_space<vmem>>, vector<64x32xf32>,
    return
  }
  func.func @transform_0(%arg0: i32) -> (i32, i32) {
    %c0_i32 = arith.constant 0 : i32
    %c0_i32_0 = arith.constant 0 : i32
    return %arg0, %c0_i32 : i32, i32
  }
  func.func @transform_1(%arg0: i32) -> (i32, i32) {
    %c0_i32 = arith.constant 0 : i32
    %c0_i32_0 = arith.constant 0 : i32
    %c0_i32_1 = arith.constant 0 : i32
    return %c0_i32, %c0_i32_0 : i32, i32
  }
  func.func @transform_2(%arg0: i32) -> (i32, i32) {
    %c0_i32 = arith.constant 0 : i32
    %c0_i32_0 = arith.constant 0 : i32
    %c0_i32_1 = arith.constant 0 : i32
    return %c0_i32, %c0_i32_0 : i32, i32
  }
  func.func @transform_3(%arg0: i32) -> (i32, i32, i32) {
    %c0_i32 = arith.constant 0 : i32
    %c0_i32_0 = arith.constant 0 : i32
    %c0_i32_1 = arith.constant 0 : i32
    %c0_i32_2 = arith.constant 0 : i32
    return %c0_i32, %c0_i32_0, %c0_i32_1 : i32, i32, i32
  }
  func.func @transform_4(%arg0: i32) -> (i32, i32) {
    %c0_i32 = arith.constant 0 : i32
    %c0_i32_0 = arith.constant 0 : i32
    %c0_i32_1 = arith.constant 0 : i32
    return %c0_i32, %c0_i32_0 : i32, i32
  }
  func.func @transform_5(%arg0: i32) -> (i32, i32) {
    %c0_i32 = arith.constant 0 : i32
    %c0_i32_0 = arith.constant 0 : i32
    return %arg0, %c0_i32 : i32, i32
  }
}

module attributes {stable_mosaic.version = 11 : i64} {
  func.func @_fc_fused_kernel(%arg0: i32, %arg1: memref<2x2048xf32, #tpu.memory_space<vmem>>, %arg2: memref<2048x256xf32, #tpu.memory_space<vmem>>, %arg3: memref<1x256xf32, #tpu.memory_space<vmem>>, %arg4: memref<256x128xf32, #tpu.memory_space<vmem>>, %arg5: memref<1x128xf32, #tpu.memory_space<vmem>>, %arg6: memref<2x128xf32, #tpu.memory_space<vmem>>) attributes {dimension_semantics = [#tpu.dimension_semantics<arbitrary>], iteration_bounds = array<i64: 2>, scalar_prefetch = 0 : i64, scratch_operands = 0 : i64, tpu.core_type = #tpu.core_type<tc>, window_params = [{pipeline_mode = #tpu.pipeline_mode<synchronous>, transform_indices = @transform_0, window_bounds = array<i64: 2, 2048>}, {transform_indices = @transform_1, window_bounds = array<i64: 2048, 256>}, {transform_indices = @transform_2, window_bounds = array<i64: 1, 256>}, {transform_indices = @transform_3, window_bounds = array<i64: 256, 128>}, {pipeline_mode = #tpu.pipeline_mode<synchronous>, transform_indices = @transform_4, window_bounds = array<i64: 1, 128>}, {pipeline_mode = #tpu.pipeline_mode<synchronous>, transform_indices = @transform_5, window_bounds = array<i64: 2, 128>}]} {
    %c0 = arith.constant 0 : index
    %c0_0 = arith.constant 0 : index
    %0 = vector.load %arg1[%c0, %c0_0] : memref<2x2048xf32, #tpu.memory_space<vmem>>, vector<2x2048xf32>
    %c0_1 = arith.constant 0 : index
    %c0_2 = arith.constant 0 : index
    %1 = vector.load %arg2[%c0_1, %c0_2] : memref<2048x256xf32, #tpu.memory_space<vmem>>, vector<2048x256xf32>
    %cst = arith.constant dense<0.000000e+00> : vector<2x256xf32>
    %2 = tpu.matmul %0, %1, %cst {dimension_numbers = #tpu.dot_dimension_numbers<[1], [0], [0], [1], [0, 0, 1, 1], [], []>} : vector<2x2048xf32>, vector<2048x256xf32>, vector<2x256xf32> -> vector<2x256xf32>
    %c0_3 = arith.constant 0 : index
    %c0_4 = arith.constant 0 : index
    %3 = vector.load %arg3[%c0_3, %c0_4] : memref<1x256xf32, #tpu.memory_space<vmem>>, vector<1x256xf32>
    %4 = vector.broadcast %3 : vector<1x256xf32> to vector<2x256xf32>
    %5 = arith.addf %2, %4 : vector<2x256xf32>
    %cst_5 = arith.constant 0.000000e+00 : f32
    %6 = vector.broadcast %cst_5 : f32 to vector<2x256xf32>
    %7 = arith.maximumf %5, %6 : vector<2x256xf32>
    %c0_6 = arith.constant 0 : index
    %c0_7 = arith.constant 0 : index
    %8 = vector.load %arg4[%c0_6, %c0_7] : memref<256x128xf32, #tpu.memory_space<vmem>>, vector<256x128xf32>
    %cst_8 = arith.constant dense<0.000000e+00> : vector<2x128xf32>
    %9 = tpu.matmul %7, %8, %cst_8 {dimension_numbers = #tpu.dot_dimension_numbers<[1], [0], [0], [1], [0, 0, 1, 1], [], []>} : vector<2x256xf32>, vector<256x128xf32>, vector<2x128xf32> -> vector<2x128xf32>
    %c0_i32 = arith.constant 0 : i32
    %10 = arith.cmpi eq, %arg0, %c0_i32 : i32
    %11 = arith.extui %10 : i1 to i32
    %c0_i32_9 = arith.constant 0 : i32
    %12 = arith.cmpi ne, %11, %c0_i32_9 : i32
    scf.if %12 {
      %c0_12 = arith.constant 0 : index
      %c0_13 = arith.constant 0 : index
      %16 = vector.load %arg5[%c0_12, %c0_13] : memref<1x128xf32, #tpu.memory_space<vmem>>, vector<1x128xf32>
      %17 = vector.broadcast %16 : vector<1x128xf32> to vector<2x128xf32>
      %18 = arith.addf %9, %17 : vector<2x128xf32>
      %c0_14 = arith.constant 0 : index
      %c0_15 = arith.constant 0 : index
      %19 = vector.load %arg6[%c0_14, %c0_15] : memref<2x128xf32, #tpu.memory_space<vmem>>, vector<2x128xf32>
      tpu.vector_store %arg6[%c0_14, %c0_15], %18 {strides = array<i32>} : memref<2x128xf32, #tpu.memory_space<vmem>>, vector<2x128xf32>,
    } else {
    }
    %c0_i32_10 = arith.constant 0 : i32
    %13 = arith.cmpi ne, %arg0, %c0_i32_10 : i32
    %14 = arith.extui %13 : i1 to i32
    %c0_i32_11 = arith.constant 0 : i32
    %15 = arith.cmpi ne, %14, %c0_i32_11 : i32
    scf.if %15 {
      %c0_12 = arith.constant 0 : index
      %c0_13 = arith.constant 0 : index
      %16 = vector.load %arg6[%c0_12, %c0_13] : memref<2x128xf32, #tpu.memory_space<vmem>>, vector<2x128xf32>
      %17 = arith.addf %16, %9 : vector<2x128xf32>
      %c0_14 = arith.constant 0 : index
      %c0_15 = arith.constant 0 : index
      %18 = vector.load %arg6[%c0_14, %c0_15] : memref<2x128xf32, #tpu.memory_space<vmem>>, vector<2x128xf32>
      tpu.vector_store %arg6[%c0_14, %c0_15], %17 {strides = array<i32>} : memref<2x128xf32, #tpu.memory_space<vmem>>, vector<2x128xf32>,
    } else {
    }
    return
  }
  func.func @transform_0(%arg0: i32) -> (i32, i32) {
    %c0_i32 = arith.constant 0 : i32
    %c0_i32_0 = arith.constant 0 : i32
    %c0_i32_1 = arith.constant 0 : i32
    return %c0_i32, %c0_i32_0 : i32, i32
  }
  func.func @transform_1(%arg0: i32) -> (i32, i32) {
    %c0_i32 = arith.constant 0 : i32
    %c0_i32_0 = arith.constant 0 : i32
    return %c0_i32, %arg0 : i32, i32
  }
  func.func @transform_2(%arg0: i32) -> (i32, i32) {
    %c0_i32 = arith.constant 0 : i32
    %c0_i32_0 = arith.constant 0 : i32
    return %c0_i32, %arg0 : i32, i32
  }
  func.func @transform_3(%arg0: i32) -> (i32, i32) {
    %c0_i32 = arith.constant 0 : i32
    %c0_i32_0 = arith.constant 0 : i32
    return %arg0, %c0_i32 : i32, i32
  }
  func.func @transform_4(%arg0: i32) -> (i32, i32) {
    %c0_i32 = arith.constant 0 : i32
    %c0_i32_0 = arith.constant 0 : i32
    %c0_i32_1 = arith.constant 0 : i32
    return %c0_i32, %c0_i32_0 : i32, i32
  }
  func.func @transform_5(%arg0: i32) -> (i32, i32) {
    %c0_i32 = arith.constant 0 : i32
    %c0_i32_0 = arith.constant 0 : i32
    %c0_i32_1 = arith.constant 0 : i32
    return %c0_i32, %c0_i32_0 : i32, i32
  }
}

</mosaic_0001>

<bundles_post_ra>
// kernel: simple_cnn_forward.3
= control target key start
LH: loop header
LB: loop body
LE: loop exit
PB: predicated region body
PF: predicated region fallthrough
CT: control target
= control target key end

     0   :  { %10 = vsyncpa [#allocation4], 0  ;;  %s3412_s18 = smov 0   ;;  %s3414_s19 = smov 0   ;;  %s5169_s0 = inlined_call_operand.vmem [shape: f32[2,2048], index: 0, kind: input, shape index: {}]   ;;  %s5170_s1 = inlined_call_operand.vmem [shape: f32[2048,512], index: 1, kind: input, shape index: {}]   ;;  %s5171_s2 = inlined_call_operand.vmem [shape: f32[1,512], index: 2, kind: input, shape index: {}]   ;;  %s5172_s3 = inlined_call_operand.vmem [shape: f32[512,128], index: 3, kind: input, shape index: {}]   ;;  %s5173_s4 = inlined_call_operand.vmem [shape: f32[1,128], index: 4, kind: input, shape index: {}]   ;;  %s5174_s5 = inlined_call_operand.hbm [shape: f32[2,128], index: 5, kind: output, shape index: {}]  }
   0x1   :  { %s3416_s20 = smov 0  }
   0x2 LB: > { %s3428_s21 = sadd.s32 4294967295, %s3378_s20   ;;  %s3431_s22 = sadd.s32 1, %s3378_s20   ;;  %s3378_s20 = sphi %s3416_s20, %s5178_s20   ;;  %s3374_s19 = sphi %s3414_s19, %s5177_s19   ;;  %s3370_s18 = sphi %s3412_s18, %s5176_s18  }
   0x3   : > { %s41_s23 = ssub.s32 %s3378_s20, %s3431_s22  ;;  %s44_s24 = sadd.s32 1, %s3374_s19 }
   0x4   : > { %p42_p0 = scmp.eq.s32.totalorder %s41_s23, 0  ;;  %p51_p1 = scmp.ne.s32.totalorder %s3374_s19, %s3370_s18 }
   0x5   : > { %p52_p2 = scmp.eq.s32.totalorder %s3378_s20, 0  ;;  %p2678_p4 = scmp.ge.s32.totalorder %s3378_s20, 2 }
   0x6   : > { %s3440_s25 = scalar_select %p42_p0, %s3374_s19, %s44_s24  }
   0x7   : > { %p53_p3 = por %p52_p2, %p51_p1  ;;  %177 = sbr.rel (%p2678_p4) target bundleno = 274 (0x112), region = 24 }
   0xe   : > { %180 = sbr.rel (!%p53_p3) target bundleno = 274 (0x112), region = 28  ;;  %s182_s26 = sand.u32 (%p53_p3), 1, %s3374_s19  }
   0xf   : > { %s2694_s27 = sshll.u32 (%p53_p3), %s3378_s20, 4  ;;  %s2679_s28 = sshll.u32 (%p53_p3), %s182_s26, 12 }
  0x10   : > { %s3448_s6 = scalar_lea.vmem (%p53_p3), %s5170_s1, %s2694_s27  ;;  %s3453_s7 = scalar_lea.vmem (%p53_p3), [#allocation2], %s2679_s28 }
  0x11   : > { %v200_v0 = vld [vmem:[%s3448_s6] sm:$0xff] (%p53_p3)  ;;  %v202_v1 = vld [vmem:[%s3448_s6 + $0x8] sm:$0xff] (%p53_p3) }
  0x12   : > { %v204_v2 = vld [vmem:[%s3448_s6 + $0x20] sm:$0xff] (%p53_p3)  ;;  %201 = vst [vmem:[%s3453_s7] sm:$0xff] (%p53_p3), %v200_v0  ;;  %203 = vst [vmem:[%s3453_s7 + $0x8] sm:$0xff] (%p53_p3), %v202_v1  ;;  %v206_v3 = vld [vmem:[%s3448_s6 + $0x28] sm:$0xff] (%p53_p3) }
  0x13   : > { %205 = vst [vmem:[%s3453_s7 + $0x10] sm:$0xff] (%p53_p3), %v204_v2  ;;  %v208_v4 = vld [vmem:[%s3448_s6 + $0x40] sm:$0xff] (%p53_p3)  ;;  %v210_v5 = vld [vmem:[%s3448_s6 + $0x48] sm:$0xff] (%p53_p3)  ;;  %207 = vst [vmem:[%s3453_s7 + $0x18] sm:$0xff] (%p53_p3), %v206_v3 }
  0x14   : > { %209 = vst [vmem:[%s3453_s7 + $0x20] sm:$0xff] (%p53_p3), %v208_v4  ;;  %211 = vst [vmem:[%s3453_s7 + $0x28] sm:$0xff] (%p53_p3), %v210_v5  ;;  %v212_v6 = vld [vmem:[%s3448_s6 + $0x60] sm:$0xff] (%p53_p3)  ;;  %v214_v7 = vld [vmem:[%s3448_s6 + $0x68] sm:$0xff] (%p53_p3) }
  0x15   : > { %v216_v8 = vld [vmem:[%s3448_s6 + $0x80] sm:$0xff]  ;;  %213 = vst [vmem:[%s3453_s7 + $0x30] sm:$0xff] %v212_v6  ;;  %215 = vst [vmem:[%s3453_s7 + $0x38] sm:$0xff] %v214_v7  ;;  %v218_v9 = vld [vmem:[%s3448_s6 + $0x88] sm:$0xff] }
  0x16   : > { %217 = vst [vmem:[%s3453_s7 + $0x40] sm:$0xff] %v216_v8  ;;  %v220_v10 = vld [vmem:[%s3448_s6 + $0xa0] sm:$0xff]  ;;  %v222_v11 = vld [vmem:[%s3448_s6 + $0xa8] sm:$0xff]  ;;  %219 = vst [vmem:[%s3453_s7 + $0x48] sm:$0xff] %v218_v9 }
  0x17   : > { %221 = vst [vmem:[%s3453_s7 + $0x50] sm:$0xff] %v220_v10  ;;  %223 = vst [vmem:[%s3453_s7 + $0x58] sm:$0xff] %v222_v11  ;;  %v224_v12 = vld [vmem:[%s3448_s6 + $0xc0] sm:$0xff]  ;;  %v226_v13 = vld [vmem:[%s3448_s6 + $0xc8] sm:$0xff] }
  0x18   : > { %v228_v14 = vld [vmem:[%s3448_s6 + $0xe0] sm:$0xff]  ;;  %225 = vst [vmem:[%s3453_s7 + $0x60] sm:$0xff] %v224_v12  ;;  %227 = vst [vmem:[%s3453_s7 + $0x68] sm:$0xff] %v226_v13  ;;  %v230_v15 = vld [vmem:[%s3448_s6 + $0xe8] sm:$0xff] }
  0x19   : > { %229 = vst [vmem:[%s3453_s7 + $0x70] sm:$0xff] %v228_v14  ;;  %v232_v16 = vld [vmem:[%s3448_s6 + $0x100] sm:$0xff]  ;;  %v234_v17 = vld [vmem:[%s3448_s6 + $0x108] sm:$0xff]  ;;  %231 = vst [vmem:[%s3453_s7 + $0x78] sm:$0xff] %v230_v15 }
  0x1a   : > { %233 = vst [vmem:[%s3453_s7 + $0x80] sm:$0xff] %v232_v16  ;;  %235 = vst [vmem:[%s3453_s7 + $0x88] sm:$0xff] %v234_v17  ;;  %v236_v18 = vld [vmem:[%s3448_s6 + $0x120] sm:$0xff]  ;;  %v238_v19 = vld [vmem:[%s3448_s6 + $0x128] sm:$0xff] }
  0x1b   : > { %v240_v20 = vld [vmem:[%s3448_s6 + $0x140] sm:$0xff]  ;;  %237 = vst [vmem:[%s3453_s7 + $0x90] sm:$0xff] %v236_v18  ;;  %239 = vst [vmem:[%s3453_s7 + $0x98] sm:$0xff] %v238_v19  ;;  %v242_v21 = vld [vmem:[%s3448_s6 + $0x148] sm:$0xff] }
  0x1c   : > { %241 = vst [vmem:[%s3453_s7 + $0xa0] sm:$0xff] %v240_v20  ;;  %v244_v22 = vld [vmem:[%s3448_s6 + $0x160] sm:$0xff]  ;;  %v246_v23 = vld [vmem:[%s3448_s6 + $0x168] sm:$0xff]  ;;  %243 = vst [vmem:[%s3453_s7 + $0xa8] sm:$0xff] %v242_v21 }
  0x1d   : > { %245 = vst [vmem:[%s3453_s7 + $0xb0] sm:$0xff] %v244_v22  ;;  %247 = vst [vmem:[%s3453_s7 + $0xb8] sm:$0xff] %v246_v23  ;;  %v248_v24 = vld [vmem:[%s3448_s6 + $0x180] sm:$0xff]  ;;  %v250_v25 = vld [vmem:[%s3448_s6 + $0x188] sm:$0xff] }
  0x1e   : > { %v252_v26 = vld [vmem:[%s3448_s6 + $0x1a0] sm:$0xff]  ;;  %249 = vst [vmem:[%s3453_s7 + $0xc0] sm:$0xff] %v248_v24  ;;  %251 = vst [vmem:[%s3453_s7 + $0xc8] sm:$0xff] %v250_v25  ;;  %v254_v27 = vld [vmem:[%s3448_s6 + $0x1a8] sm:$0xff] }
  0x1f   : > { %253 = vst [vmem:[%s3453_s7 + $0xd0] sm:$0xff] %v252_v26  ;;  %v256_v28 = vld [vmem:[%s3448_s6 + $0x1c0] sm:$0xff]  ;;  %v258_v29 = vld [vmem:[%s3448_s6 + $0x1c8] sm:$0xff]  ;;  %255 = vst [vmem:[%s3453_s7 + $0xd8] sm:$0xff] %v254_v27 }
  0x20   : > { %257 = vst [vmem:[%s3453_s7 + $0xe0] sm:$0xff] %v256_v28  ;;  %259 = vst [vmem:[%s3453_s7 + $0xe8] sm:$0xff] %v258_v29  ;;  %v260_v30 = vld [vmem:[%s3448_s6 + $0x1e0] sm:$0xff]  ;;  %v262_v31 = vld [vmem:[%s3448_s6 + $0x1e8] sm:$0xff] }
  0x21   : > { %v264_v32 = vld [vmem:[%s3448_s6 + $0x200] sm:$0xff]  ;;  %261 = vst [vmem:[%s3453_s7 + $0xf0] sm:$0xff] %v260_v30  ;;  %263 = vst [vmem:[%s3453_s7 + $0xf8] sm:$0xff] %v262_v31  ;;  %v266_v33 = vld [vmem:[%s3448_s6 + $0x208] sm:$0xff] }
  0x22   : > { %265 = vst [vmem:[%s3453_s7 + $0x100] sm:$0xff] %v264_v32  ;;  %v268_v34 = vld [vmem:[%s3448_s6 + $0x220] sm:$0xff]  ;;  %v270_v35 = vld [vmem:[%s3448_s6 + $0x228] sm:$0xff]  ;;  %267 = vst [vmem:[%s3453_s7 + $0x108] sm:$0xff] %v266_v33 }
  0x23   : > { %269 = vst [vmem:[%s3453_s7 + $0x110] sm:$0xff] %v268_v34  ;;  %271 = vst [vmem:[%s3453_s7 + $0x118] sm:$0xff] %v270_v35  ;;  %v272_v36 = vld [vmem:[%s3448_s6 + $0x240] sm:$0xff]  ;;  %v274_v37 = vld [vmem:[%s3448_s6 + $0x248] sm:$0xff] }
  0x24   : > { %v276_v38 = vld [vmem:[%s3448_s6 + $0x260] sm:$0xff]  ;;  %273 = vst [vmem:[%s3453_s7 + $0x120] sm:$0xff] %v272_v36  ;;  %275 = vst [vmem:[%s3453_s7 + $0x128] sm:$0xff] %v274_v37  ;;  %v278_v39 = vld [vmem:[%s3448_s6 + $0x268] sm:$0xff] }
  0x25   : > { %277 = vst [vmem:[%s3453_s7 + $0x130] sm:$0xff] %v276_v38  ;;  %v280_v40 = vld [vmem:[%s3448_s6 + $0x280] sm:$0xff]  ;;  %v282_v41 = vld [vmem:[%s3448_s6 + $0x288] sm:$0xff]  ;;  %279 = vst [vmem:[%s3453_s7 + $0x138] sm:$0xff] %v278_v39 }
  0x26   : > { %281 = vst [vmem:[%s3453_s7 + $0x140] sm:$0xff] %v280_v40  ;;  %283 = vst [vmem:[%s3453_s7 + $0x148] sm:$0xff] %v282_v41  ;;  %v284_v42 = vld [vmem:[%s3448_s6 + $0x2a0] sm:$0xff]  ;;  %v286_v43 = vld [vmem:[%s3448_s6 + $0x2a8] sm:$0xff] }
  0x27   : > { %v288_v44 = vld [vmem:[%s3448_s6 + $0x2c0] sm:$0xff]  ;;  %285 = vst [vmem:[%s3453_s7 + $0x150] sm:$0xff] %v284_v42  ;;  %287 = vst [vmem:[%s3453_s7 + $0x158] sm:$0xff] %v286_v43  ;;  %v290_v45 = vld [vmem:[%s3448_s6 + $0x2c8] sm:$0xff] }
  0x28   : > { %289 = vst [vmem:[%s3453_s7 + $0x160] sm:$0xff] %v288_v44  ;;  %v292_v46 = vld [vmem:[%s3448_s6 + $0x2e0] sm:$0xff]  ;;  %v294_v47 = vld [vmem:[%s3448_s6 + $0x2e8] sm:$0xff]  ;;  %291 = vst [vmem:[%s3453_s7 + $0x168] sm:$0xff] %v290_v45 }
  0x29   : > { %293 = vst [vmem:[%s3453_s7 + $0x170] sm:$0xff] %v292_v46  ;;  %295 = vst [vmem:[%s3453_s7 + $0x178] sm:$0xff] %v294_v47  ;;  %v296_v48 = vld [vmem:[%s3448_s6 + $0x300] sm:$0xff]  ;;  %v298_v49 = vld [vmem:[%s3448_s6 + $0x308] sm:$0xff] }
  0x2a   : > { %v300_v50 = vld [vmem:[%s3448_s6 + $0x320] sm:$0xff]  ;;  %297 = vst [vmem:[%s3453_s7 + $0x180] sm:$0xff] %v296_v48  ;;  %299 = vst [vmem:[%s3453_s7 + $0x188] sm:$0xff] %v298_v49  ;;  %v302_v51 = vld [vmem:[%s3448_s6 + $0x328] sm:$0xff] }
  0x2b   : > { %301 = vst [vmem:[%s3453_s7 + $0x190] sm:$0xff] %v300_v50  ;;  %v304_v52 = vld [vmem:[%s3448_s6 + $0x340] sm:$0xff]  ;;  %v306_v53 = vld [vmem:[%s3448_s6 + $0x348] sm:$0xff]  ;;  %303 = vst [vmem:[%s3453_s7 + $0x198] sm:$0xff] %v302_v51 }
  0x2c   : > { %305 = vst [vmem:[%s3453_s7 + $0x1a0] sm:$0xff] %v304_v52  ;;  %307 = vst [vmem:[%s3453_s7 + $0x1a8] sm:$0xff] %v306_v53  ;;  %v308_v54 = vld [vmem:[%s3448_s6 + $0x360] sm:$0xff]  ;;  %v310_v55 = vld [vmem:[%s3448_s6 + $0x368] sm:$0xff] }
  0x2d   : > { %v312_v56 = vld [vmem:[%s3448_s6 + $0x380] sm:$0xff]  ;;  %309 = vst [vmem:[%s3453_s7 + $0x1b0] sm:$0xff] %v308_v54  ;;  %311 = vst [vmem:[%s3453_s7 + $0x1b8] sm:$0xff] %v310_v55  ;;  %v314_v57 = vld [vmem:[%s3448_s6 + $0x388] sm:$0xff] }
  0x2e   : > { %313 = vst [vmem:[%s3453_s7 + $0x1c0] sm:$0xff] %v312_v56  ;;  %v316_v58 = vld [vmem:[%s3448_s6 + $0x3a0] sm:$0xff]  ;;  %v318_v59 = vld [vmem:[%s3448_s6 + $0x3a8] sm:$0xff]  ;;  %315 = vst [vmem:[%s3453_s7 + $0x1c8] sm:$0xff] %v314_v57 }
  0x2f   : > { %317 = vst [vmem:[%s3453_s7 + $0x1d0] sm:$0xff] %v316_v58  ;;  %319 = vst [vmem:[%s3453_s7 + $0x1d8] sm:$0xff] %v318_v59  ;;  %v320_v60 = vld [vmem:[%s3448_s6 + $0x3c0] sm:$0xff]  ;;  %v322_v61 = vld [vmem:[%s3448_s6 + $0x3c8] sm:$0xff] }
  0x30   : > { %v324_v62 = vld [vmem:[%s3448_s6 + $0x3e0] sm:$0xff]  ;;  %321 = vst [vmem:[%s3453_s7 + $0x1e0] sm:$0xff] %v320_v60  ;;  %323 = vst [vmem:[%s3453_s7 + $0x1e8] sm:$0xff] %v322_v61  ;;  %v326_v63 = vld [vmem:[%s3448_s6 + $0x3e8] sm:$0xff] }
  0x31   : > { %325 = vst [vmem:[%s3453_s7 + $0x1f0] sm:$0xff] %v324_v62  ;;  %v328_v0 = vld [vmem:[%s3448_s6 + $0x400] sm:$0xff]  ;;  %v330_v1 = vld [vmem:[%s3448_s6 + $0x408] sm:$0xff]  ;;  %327 = vst [vmem:[%s3453_s7 + $0x1f8] sm:$0xff] %v326_v63 }
  0x32   : > { %329 = vst [vmem:[%s3453_s7 + $0x200] sm:$0xff] %v328_v0  ;;  %331 = vst [vmem:[%s3453_s7 + $0x208] sm:$0xff] %v330_v1  ;;  %v332_v2 = vld [vmem:[%s3448_s6 + $0x420] sm:$0xff]  ;;  %v334_v3 = vld [vmem:[%s3448_s6 + $0x428] sm:$0xff] }
  0x33   : > { %v336_v4 = vld [vmem:[%s3448_s6 + $0x440] sm:$0xff]  ;;  %333 = vst [vmem:[%s3453_s7 + $0x210] sm:$0xff] %v332_v2  ;;  %335 = vst [vmem:[%s3453_s7 + $0x218] sm:$0xff] %v334_v3  ;;  %v338_v5 = vld [vmem:[%s3448_s6 + $0x448] sm:$0xff] }
  0x34   : > { %337 = vst [vmem:[%s3453_s7 + $0x220] sm:$0xff] %v336_v4  ;;  %v340_v6 = vld [vmem:[%s3448_s6 + $0x460] sm:$0xff]  ;;  %v342_v7 = vld [vmem:[%s3448_s6 + $0x468] sm:$0xff]  ;;  %339 = vst [vmem:[%s3453_s7 + $0x228] sm:$0xff] %v338_v5 }
  0x35   : > { %341 = vst [vmem:[%s3453_s7 + $0x230] sm:$0xff] %v340_v6  ;;  %343 = vst [vmem:[%s3453_s7 + $0x238] sm:$0xff] %v342_v7  ;;  %v344_v8 = vld [vmem:[%s3448_s6 + $0x480] sm:$0xff]  ;;  %v346_v9 = vld [vmem:[%s3448_s6 + $0x488] sm:$0xff] }
  0x36   : > { %v348_v10 = vld [vmem:[%s3448_s6 + $0x4a0] sm:$0xff]  ;;  %345 = vst [vmem:[%s3453_s7 + $0x240] sm:$0xff] %v344_v8  ;;  %347 = vst [vmem:[%s3453_s7 + $0x248] sm:$0xff] %v346_v9  ;;  %v350_v11 = vld [vmem:[%s3448_s6 + $0x4a8] sm:$0xff] }
  0x37   : > { %349 = vst [vmem:[%s3453_s7 + $0x250] sm:$0xff] %v348_v10  ;;  %v352_v12 = vld [vmem:[%s3448_s6 + $0x4c0] sm:$0xff]  ;;  %v354_v13 = vld [vmem:[%s3448_s6 + $0x4c8] sm:$0xff]  ;;  %351 = vst [vmem:[%s3453_s7 + $0x258] sm:$0xff] %v350_v11 }
  0x38   : > { %353 = vst [vmem:[%s3453_s7 + $0x260] sm:$0xff] %v352_v12  ;;  %355 = vst [vmem:[%s3453_s7 + $0x268] sm:$0xff] %v354_v13  ;;  %v356_v14 = vld [vmem:[%s3448_s6 + $0x4e0] sm:$0xff]  ;;  %v358_v15 = vld [vmem:[%s3448_s6 + $0x4e8] sm:$0xff] }
  0x39   : > { %v360_v16 = vld [vmem:[%s3448_s6 + $0x500] sm:$0xff]  ;;  %357 = vst [vmem:[%s3453_s7 + $0x270] sm:$0xff] %v356_v14  ;;  %359 = vst [vmem:[%s3453_s7 + $0x278] sm:$0xff] %v358_v15  ;;  %v362_v17 = vld [vmem:[%s3448_s6 + $0x508] sm:$0xff] }
  0x3a   : > { %361 = vst [vmem:[%s3453_s7 + $0x280] sm:$0xff] %v360_v16  ;;  %v364_v18 = vld [vmem:[%s3448_s6 + $0x520] sm:$0xff]  ;;  %v366_v19 = vld [vmem:[%s3448_s6 + $0x528] sm:$0xff]  ;;  %363 = vst [vmem:[%s3453_s7 + $0x288] sm:$0xff] %v362_v17 }
  0x3b   : > { %365 = vst [vmem:[%s3453_s7 + $0x290] sm:$0xff] %v364_v18  ;;  %367 = vst [vmem:[%s3453_s7 + $0x298] sm:$0xff] %v366_v19  ;;  %v368_v20 = vld [vmem:[%s3448_s6 + $0x540] sm:$0xff]  ;;  %v370_v21 = vld [vmem:[%s3448_s6 + $0x548] sm:$0xff] }
  0x3c   : > { %v372_v22 = vld [vmem:[%s3448_s6 + $0x560] sm:$0xff]  ;;  %369 = vst [vmem:[%s3453_s7 + $0x2a0] sm:$0xff] %v368_v20  ;;  %371 = vst [vmem:[%s3453_s7 + $0x2a8] sm:$0xff] %v370_v21  ;;  %v374_v23 = vld [vmem:[%s3448_s6 + $0x568] sm:$0xff] }
  0x3d   : > { %373 = vst [vmem:[%s3453_s7 + $0x2b0] sm:$0xff] %v372_v22  ;;  %v376_v24 = vld [vmem:[%s3448_s6 + $0x580] sm:$0xff]  ;;  %v378_v25 = vld [vmem:[%s3448_s6 + $0x588] sm:$0xff]  ;;  %375 = vst [vmem:[%s3453_s7 + $0x2b8] sm:$0xff] %v374_v23 }
  0x3e   : > { %377 = vst [vmem:[%s3453_s7 + $0x2c0] sm:$0xff] %v376_v24  ;;  %379 = vst [vmem:[%s3453_s7 + $0x2c8] sm:$0xff] %v378_v25  ;;  %v380_v26 = vld [vmem:[%s3448_s6 + $0x5a0] sm:$0xff]  ;;  %v382_v27 = vld [vmem:[%s3448_s6 + $0x5a8] sm:$0xff] }
  0x3f   : > { %v384_v28 = vld [vmem:[%s3448_s6 + $0x5c0] sm:$0xff]  ;;  %381 = vst [vmem:[%s3453_s7 + $0x2d0] sm:$0xff] %v380_v26  ;;  %383 = vst [vmem:[%s3453_s7 + $0x2d8] sm:$0xff] %v382_v27  ;;  %v386_v29 = vld [vmem:[%s3448_s6 + $0x5c8] sm:$0xff] }
  0x40   : > { %385 = vst [vmem:[%s3453_s7 + $0x2e0] sm:$0xff] %v384_v28  ;;  %v388_v30 = vld [vmem:[%s3448_s6 + $0x5e0] sm:$0xff]  ;;  %v390_v31 = vld [vmem:[%s3448_s6 + $0x5e8] sm:$0xff]  ;;  %387 = vst [vmem:[%s3453_s7 + $0x2e8] sm:$0xff] %v386_v29 }
  0x41   : > { %389 = vst [vmem:[%s3453_s7 + $0x2f0] sm:$0xff] %v388_v30  ;;  %391 = vst [vmem:[%s3453_s7 + $0x2f8] sm:$0xff] %v390_v31  ;;  %v392_v32 = vld [vmem:[%s3448_s6 + $0x600] sm:$0xff]  ;;  %v394_v33 = vld [vmem:[%s3448_s6 + $0x608] sm:$0xff] }
  0x42   : > { %v396_v34 = vld [vmem:[%s3448_s6 + $0x620] sm:$0xff]  ;;  %393 = vst [vmem:[%s3453_s7 + $0x300] sm:$0xff] %v392_v32  ;;  %395 = vst [vmem:[%s3453_s7 + $0x308] sm:$0xff] %v394_v33  ;;  %v398_v35 = vld [vmem:[%s3448_s6 + $0x628] sm:$0xff] }
  0x43   : > { %397 = vst [vmem:[%s3453_s7 + $0x310] sm:$0xff] %v396_v34  ;;  %v400_v36 = vld [vmem:[%s3448_s6 + $0x640] sm:$0xff]  ;;  %v402_v37 = vld [vmem:[%s3448_s6 + $0x648] sm:$0xff]  ;;  %399 = vst [vmem:[%s3453_s7 + $0x318] sm:$0xff] %v398_v35 }
  0x44   : > { %401 = vst [vmem:[%s3453_s7 + $0x320] sm:$0xff] %v400_v36  ;;  %403 = vst [vmem:[%s3453_s7 + $0x328] sm:$0xff] %v402_v37  ;;  %v404_v38 = vld [vmem:[%s3448_s6 + $0x660] sm:$0xff]  ;;  %v406_v39 = vld [vmem:[%s3448_s6 + $0x668] sm:$0xff] }
  0x45   : > { %v408_v40 = vld [vmem:[%s3448_s6 + $0x680] sm:$0xff]  ;;  %405 = vst [vmem:[%s3453_s7 + $0x330] sm:$0xff] %v404_v38  ;;  %407 = vst [vmem:[%s3453_s7 + $0x338] sm:$0xff] %v406_v39  ;;  %v410_v41 = vld [vmem:[%s3448_s6 + $0x688] sm:$0xff] }
  0x46   : > { %409 = vst [vmem:[%s3453_s7 + $0x340] sm:$0xff] %v408_v40  ;;  %v412_v42 = vld [vmem:[%s3448_s6 + $0x6a0] sm:$0xff]  ;;  %v414_v43 = vld [vmem:[%s3448_s6 + $0x6a8] sm:$0xff]  ;;  %411 = vst [vmem:[%s3453_s7 + $0x348] sm:$0xff] %v410_v41 }
  0x47   : > { %413 = vst [vmem:[%s3453_s7 + $0x350] sm:$0xff] %v412_v42  ;;  %415 = vst [vmem:[%s3453_s7 + $0x358] sm:$0xff] %v414_v43  ;;  %v416_v44 = vld [vmem:[%s3448_s6 + $0x6c0] sm:$0xff]  ;;  %v418_v45 = vld [vmem:[%s3448_s6 + $0x6c8] sm:$0xff] }
  0x48   : > { %v420_v46 = vld [vmem:[%s3448_s6 + $0x6e0] sm:$0xff]  ;;  %417 = vst [vmem:[%s3453_s7 + $0x360] sm:$0xff] %v416_v44  ;;  %419 = vst [vmem:[%s3453_s7 + $0x368] sm:$0xff] %v418_v45  ;;  %v422_v47 = vld [vmem:[%s3448_s6 + $0x6e8] sm:$0xff] }
  0x49   : > { %421 = vst [vmem:[%s3453_s7 + $0x370] sm:$0xff] %v420_v46  ;;  %v424_v48 = vld [vmem:[%s3448_s6 + $0x700] sm:$0xff]  ;;  %v426_v49 = vld [vmem:[%s3448_s6 + $0x708] sm:$0xff]  ;;  %423 = vst [vmem:[%s3453_s7 + $0x378] sm:$0xff] %v422_v47 }
  0x4a   : > { %425 = vst [vmem:[%s3453_s7 + $0x380] sm:$0xff] %v424_v48  ;;  %427 = vst [vmem:[%s3453_s7 + $0x388] sm:$0xff] %v426_v49  ;;  %v428_v50 = vld [vmem:[%s3448_s6 + $0x720] sm:$0xff]  ;;  %v430_v51 = vld [vmem:[%s3448_s6 + $0x728] sm:$0xff] }
  0x4b   : > { %v432_v52 = vld [vmem:[%s3448_s6 + $0x740] sm:$0xff]  ;;  %429 = vst [vmem:[%s3453_s7 + $0x390] sm:$0xff] %v428_v50  ;;  %431 = vst [vmem:[%s3453_s7 + $0x398] sm:$0xff] %v430_v51  ;;  %v434_v53 = vld [vmem:[%s3448_s6 + $0x748] sm:$0xff] }
  0x4c   : > { %433 = vst [vmem:[%s3453_s7 + $0x3a0] sm:$0xff] %v432_v52  ;;  %v436_v54 = vld [vmem:[%s3448_s6 + $0x760] sm:$0xff]  ;;  %v438_v55 = vld [vmem:[%s3448_s6 + $0x768] sm:$0xff]  ;;  %435 = vst [vmem:[%s3453_s7 + $0x3a8] sm:$0xff] %v434_v53 }
  0x4d   : > { %437 = vst [vmem:[%s3453_s7 + $0x3b0] sm:$0xff] %v436_v54  ;;  %439 = vst [vmem:[%s3453_s7 + $0x3b8] sm:$0xff] %v438_v55  ;;  %v440_v56 = vld [vmem:[%s3448_s6 + $0x780] sm:$0xff]  ;;  %v442_v57 = vld [vmem:[%s3448_s6 + $0x788] sm:$0xff] }
  0x4e   : > { %v444_v58 = vld [vmem:[%s3448_s6 + $0x7a0] sm:$0xff]  ;;  %441 = vst [vmem:[%s3453_s7 + $0x3c0] sm:$0xff] %v440_v56  ;;  %443 = vst [vmem:[%s3453_s7 + $0x3c8] sm:$0xff] %v442_v57  ;;  %v446_v59 = vld [vmem:[%s3448_s6 + $0x7a8] sm:$0xff] }
  0x4f   : > { %445 = vst [vmem:[%s3453_s7 + $0x3d0] sm:$0xff] %v444_v58  ;;  %v448_v60 = vld [vmem:[%s3448_s6 + $0x7c0] sm:$0xff]  ;;  %v450_v61 = vld [vmem:[%s3448_s6 + $0x7c8] sm:$0xff]  ;;  %447 = vst [vmem:[%s3453_s7 + $0x3d8] sm:$0xff] %v446_v59 }
  0x50   : > { %449 = vst [vmem:[%s3453_s7 + $0x3e0] sm:$0xff] %v448_v60  ;;  %451 = vst [vmem:[%s3453_s7 + $0x3e8] sm:$0xff] %v450_v61  ;;  %v452_v62 = vld [vmem:[%s3448_s6 + $0x7e0] sm:$0xff]  ;;  %v454_v63 = vld [vmem:[%s3448_s6 + $0x7e8] sm:$0xff] }
  0x51   : > { %v456_v0 = vld [vmem:[%s3448_s6 + $0x800] sm:$0xff]  ;;  %453 = vst [vmem:[%s3453_s7 + $0x3f0] sm:$0xff] %v452_v62  ;;  %455 = vst [vmem:[%s3453_s7 + $0x3f8] sm:$0xff] %v454_v63  ;;  %v458_v1 = vld [vmem:[%s3448_s6 + $0x808] sm:$0xff] }
  0x52   : > { %457 = vst [vmem:[%s3453_s7 + $0x400] sm:$0xff] %v456_v0  ;;  %v460_v2 = vld [vmem:[%s3448_s6 + $0x820] sm:$0xff]  ;;  %v462_v3 = vld [vmem:[%s3448_s6 + $0x828] sm:$0xff]  ;;  %459 = vst [vmem:[%s3453_s7 + $0x408] sm:$0xff] %v458_v1 }
  0x53   : > { %461 = vst [vmem:[%s3453_s7 + $0x410] sm:$0xff] %v460_v2  ;;  %463 = vst [vmem:[%s3453_s7 + $0x418] sm:$0xff] %v462_v3  ;;  %v464_v4 = vld [vmem:[%s3448_s6 + $0x840] sm:$0xff]  ;;  %v466_v5 = vld [vmem:[%s3448_s6 + $0x848] sm:$0xff] }
  0x54   : > { %v468_v6 = vld [vmem:[%s3448_s6 + $0x860] sm:$0xff]  ;;  %465 = vst [vmem:[%s3453_s7 + $0x420] sm:$0xff] %v464_v4  ;;  %467 = vst [vmem:[%s3453_s7 + $0x428] sm:$0xff] %v466_v5  ;;  %v470_v7 = vld [vmem:[%s3448_s6 + $0x868] sm:$0xff] }
  0x55   : > { %469 = vst [vmem:[%s3453_s7 + $0x430] sm:$0xff] %v468_v6  ;;  %v472_v8 = vld [vmem:[%s3448_s6 + $0x880] sm:$0xff]  ;;  %v474_v9 = vld [vmem:[%s3448_s6 + $0x888] sm:$0xff]  ;;  %471 = vst [vmem:[%s3453_s7 + $0x438] sm:$0xff] %v470_v7 }
  0x56   : > { %473 = vst [vmem:[%s3453_s7 + $0x440] sm:$0xff] %v472_v8  ;;  %475 = vst [vmem:[%s3453_s7 + $0x448] sm:$0xff] %v474_v9  ;;  %v476_v10 = vld [vmem:[%s3448_s6 + $0x8a0] sm:$0xff]  ;;  %v478_v11 = vld [vmem:[%s3448_s6 + $0x8a8] sm:$0xff] }
  0x57   : > { %v480_v12 = vld [vmem:[%s3448_s6 + $0x8c0] sm:$0xff]  ;;  %477 = vst [vmem:[%s3453_s7 + $0x450] sm:$0xff] %v476_v10  ;;  %479 = vst [vmem:[%s3453_s7 + $0x458] sm:$0xff] %v478_v11  ;;  %v482_v13 = vld [vmem:[%s3448_s6 + $0x8c8] sm:$0xff] }
  0x58   : > { %481 = vst [vmem:[%s3453_s7 + $0x460] sm:$0xff] %v480_v12  ;;  %v484_v14 = vld [vmem:[%s3448_s6 + $0x8e0] sm:$0xff]  ;;  %v486_v15 = vld [vmem:[%s3448_s6 + $0x8e8] sm:$0xff]  ;;  %483 = vst [vmem:[%s3453_s7 + $0x468] sm:$0xff] %v482_v13 }
  0x59   : > { %485 = vst [vmem:[%s3453_s7 + $0x470] sm:$0xff] %v484_v14  ;;  %487 = vst [vmem:[%s3453_s7 + $0x478] sm:$0xff] %v486_v15  ;;  %v488_v16 = vld [vmem:[%s3448_s6 + $0x900] sm:$0xff]  ;;  %v490_v17 = vld [vmem:[%s3448_s6 + $0x908] sm:$0xff] }
  0x5a   : > { %v492_v18 = vld [vmem:[%s3448_s6 + $0x920] sm:$0xff]  ;;  %489 = vst [vmem:[%s3453_s7 + $0x480] sm:$0xff] %v488_v16  ;;  %491 = vst [vmem:[%s3453_s7 + $0x488] sm:$0xff] %v490_v17  ;;  %v494_v19 = vld [vmem:[%s3448_s6 + $0x928] sm:$0xff] }
  0x5b   : > { %493 = vst [vmem:[%s3453_s7 + $0x490] sm:$0xff] %v492_v18  ;;  %v496_v20 = vld [vmem:[%s3448_s6 + $0x940] sm:$0xff]  ;;  %v498_v21 = vld [vmem:[%s3448_s6 + $0x948] sm:$0xff]  ;;  %495 = vst [vmem:[%s3453_s7 + $0x498] sm:$0xff] %v494_v19 }
  0x5c   : > { %497 = vst [vmem:[%s3453_s7 + $0x4a0] sm:$0xff] %v496_v20  ;;  %499 = vst [vmem:[%s3453_s7 + $0x4a8] sm:$0xff] %v498_v21  ;;  %v500_v22 = vld [vmem:[%s3448_s6 + $0x960] sm:$0xff]  ;;  %v502_v23 = vld [vmem:[%s3448_s6 + $0x968] sm:$0xff] }
  0x5d   : > { %v504_v24 = vld [vmem:[%s3448_s6 + $0x980] sm:$0xff]  ;;  %501 = vst [vmem:[%s3453_s7 + $0x4b0] sm:$0xff] %v500_v22  ;;  %503 = vst [vmem:[%s3453_s7 + $0x4b8] sm:$0xff] %v502_v23  ;;  %v506_v25 = vld [vmem:[%s3448_s6 + $0x988] sm:$0xff] }
  0x5e   : > { %505 = vst [vmem:[%s3453_s7 + $0x4c0] sm:$0xff] %v504_v24  ;;  %v508_v26 = vld [vmem:[%s3448_s6 + $0x9a0] sm:$0xff]  ;;  %v510_v27 = vld [vmem:[%s3448_s6 + $0x9a8] sm:$0xff]  ;;  %507 = vst [vmem:[%s3453_s7 + $0x4c8] sm:$0xff] %v506_v25 }
  0x5f   : > { %509 = vst [vmem:[%s3453_s7 + $0x4d0] sm:$0xff] %v508_v26  ;;  %511 = vst [vmem:[%s3453_s7 + $0x4d8] sm:$0xff] %v510_v27  ;;  %v512_v28 = vld [vmem:[%s3448_s6 + $0x9c0] sm:$0xff]  ;;  %v514_v29 = vld [vmem:[%s3448_s6 + $0x9c8] sm:$0xff] }
  0x60   : > { %v516_v30 = vld [vmem:[%s3448_s6 + $0x9e0] sm:$0xff]  ;;  %513 = vst [vmem:[%s3453_s7 + $0x4e0] sm:$0xff] %v512_v28  ;;  %515 = vst [vmem:[%s3453_s7 + $0x4e8] sm:$0xff] %v514_v29  ;;  %v518_v31 = vld [vmem:[%s3448_s6 + $0x9e8] sm:$0xff] }
  0x61   : > { %517 = vst [vmem:[%s3453_s7 + $0x4f0] sm:$0xff] %v516_v30  ;;  %v520_v32 = vld [vmem:[%s3448_s6 + $0xa00] sm:$0xff]  ;;  %v522_v33 = vld [vmem:[%s3448_s6 + $0xa08] sm:$0xff]  ;;  %519 = vst [vmem:[%s3453_s7 + $0x4f8] sm:$0xff] %v518_v31 }
  0x62   : > { %521 = vst [vmem:[%s3453_s7 + $0x500] sm:$0xff] %v520_v32  ;;  %523 = vst [vmem:[%s3453_s7 + $0x508] sm:$0xff] %v522_v33  ;;  %v524_v34 = vld [vmem:[%s3448_s6 + $0xa20] sm:$0xff]  ;;  %v526_v35 = vld [vmem:[%s3448_s6 + $0xa28] sm:$0xff] }
  0x63   : > { %v528_v36 = vld [vmem:[%s3448_s6 + $0xa40] sm:$0xff]  ;;  %525 = vst [vmem:[%s3453_s7 + $0x510] sm:$0xff] %v524_v34  ;;  %527 = vst [vmem:[%s3453_s7 + $0x518] sm:$0xff] %v526_v35  ;;  %v530_v37 = vld [vmem:[%s3448_s6 + $0xa48] sm:$0xff] }
  0x64   : > { %529 = vst [vmem:[%s3453_s7 + $0x520] sm:$0xff] %v528_v36  ;;  %v532_v38 = vld [vmem:[%s3448_s6 + $0xa60] sm:$0xff]  ;;  %v534_v39 = vld [vmem:[%s3448_s6 + $0xa68] sm:$0xff]  ;;  %531 = vst [vmem:[%s3453_s7 + $0x528] sm:$0xff] %v530_v37 }
  0x65   : > { %533 = vst [vmem:[%s3453_s7 + $0x530] sm:$0xff] %v532_v38  ;;  %535 = vst [vmem:[%s3453_s7 + $0x538] sm:$0xff] %v534_v39  ;;  %v536_v40 = vld [vmem:[%s3448_s6 + $0xa80] sm:$0xff]  ;;  %v538_v41 = vld [vmem:[%s3448_s6 + $0xa88] sm:$0xff] }
  0x66   : > { %v540_v42 = vld [vmem:[%s3448_s6 + $0xaa0] sm:$0xff]  ;;  %537 = vst [vmem:[%s3453_s7 + $0x540] sm:$0xff] %v536_v40  ;;  %539 = vst [vmem:[%s3453_s7 + $0x548] sm:$0xff] %v538_v41  ;;  %v542_v43 = vld [vmem:[%s3448_s6 + $0xaa8] sm:$0xff] }
  0x67   : > { %541 = vst [vmem:[%s3453_s7 + $0x550] sm:$0xff] %v540_v42  ;;  %v544_v44 = vld [vmem:[%s3448_s6 + $0xac0] sm:$0xff]  ;;  %v546_v45 = vld [vmem:[%s3448_s6 + $0xac8] sm:$0xff]  ;;  %543 = vst [vmem:[%s3453_s7 + $0x558] sm:$0xff] %v542_v43 }
  0x68   : > { %545 = vst [vmem:[%s3453_s7 + $0x560] sm:$0xff] %v544_v44  ;;  %547 = vst [vmem:[%s3453_s7 + $0x568] sm:$0xff] %v546_v45  ;;  %v548_v46 = vld [vmem:[%s3448_s6 + $0xae0] sm:$0xff]  ;;  %v550_v47 = vld [vmem:[%s3448_s6 + $0xae8] sm:$0xff] }
  0x69   : > { %v552_v48 = vld [vmem:[%s3448_s6 + $0xb00] sm:$0xff]  ;;  %549 = vst [vmem:[%s3453_s7 + $0x570] sm:$0xff] %v548_v46  ;;  %551 = vst [vmem:[%s3453_s7 + $0x578] sm:$0xff] %v550_v47  ;;  %v554_v49 = vld [vmem:[%s3448_s6 + $0xb08] sm:$0xff] }
  0x6a   : > { %553 = vst [vmem:[%s3453_s7 + $0x580] sm:$0xff] %v552_v48  ;;  %v556_v50 = vld [vmem:[%s3448_s6 + $0xb20] sm:$0xff]  ;;  %v558_v51 = vld [vmem:[%s3448_s6 + $0xb28] sm:$0xff]  ;;  %555 = vst [vmem:[%s3453_s7 + $0x588] sm:$0xff] %v554_v49 }
  0x6b   : > { %557 = vst [vmem:[%s3453_s7 + $0x590] sm:$0xff] %v556_v50  ;;  %559 = vst [vmem:[%s3453_s7 + $0x598] sm:$0xff] %v558_v51  ;;  %v560_v52 = vld [vmem:[%s3448_s6 + $0xb40] sm:$0xff]  ;;  %v562_v53 = vld [vmem:[%s3448_s6 + $0xb48] sm:$0xff] }
  0x6c   : > { %v564_v54 = vld [vmem:[%s3448_s6 + $0xb60] sm:$0xff]  ;;  %561 = vst [vmem:[%s3453_s7 + $0x5a0] sm:$0xff] %v560_v52  ;;  %563 = vst [vmem:[%s3453_s7 + $0x5a8] sm:$0xff] %v562_v53  ;;  %v566_v55 = vld [vmem:[%s3448_s6 + $0xb68] sm:$0xff] }
  0x6d   : > { %565 = vst [vmem:[%s3453_s7 + $0x5b0] sm:$0xff] %v564_v54  ;;  %v568_v56 = vld [vmem:[%s3448_s6 + $0xb80] sm:$0xff]  ;;  %v570_v57 = vld [vmem:[%s3448_s6 + $0xb88] sm:$0xff]  ;;  %567 = vst [vmem:[%s3453_s7 + $0x5b8] sm:$0xff] %v566_v55 }
  0x6e   : > { %569 = vst [vmem:[%s3453_s7 + $0x5c0] sm:$0xff] %v568_v56  ;;  %571 = vst [vmem:[%s3453_s7 + $0x5c8] sm:$0xff] %v570_v57  ;;  %v572_v58 = vld [vmem:[%s3448_s6 + $0xba0] sm:$0xff]  ;;  %v574_v59 = vld [vmem:[%s3448_s6 + $0xba8] sm:$0xff] }
  0x6f   : > { %v576_v60 = vld [vmem:[%s3448_s6 + $0xbc0] sm:$0xff]  ;;  %573 = vst [vmem:[%s3453_s7 + $0x5d0] sm:$0xff] %v572_v58  ;;  %575 = vst [vmem:[%s3453_s7 + $0x5d8] sm:$0xff] %v574_v59  ;;  %v578_v61 = vld [vmem:[%s3448_s6 + $0xbc8] sm:$0xff] }
  0x70   : > { %577 = vst [vmem:[%s3453_s7 + $0x5e0] sm:$0xff] %v576_v60  ;;  %v580_v62 = vld [vmem:[%s3448_s6 + $0xbe0] sm:$0xff]  ;;  %v582_v63 = vld [vmem:[%s3448_s6 + $0xbe8] sm:$0xff]  ;;  %579 = vst [vmem:[%s3453_s7 + $0x5e8] sm:$0xff] %v578_v61 }
  0x71   : > { %581 = vst [vmem:[%s3453_s7 + $0x5f0] sm:$0xff] %v580_v62  ;;  %583 = vst [vmem:[%s3453_s7 + $0x5f8] sm:$0xff] %v582_v63  ;;  %v584_v0 = vld [vmem:[%s3448_s6 + $0xc00] sm:$0xff]  ;;  %v586_v1 = vld [vmem:[%s3448_s6 + $0xc08] sm:$0xff] }
  0x72   : > { %v588_v2 = vld [vmem:[%s3448_s6 + $0xc20] sm:$0xff]  ;;  %585 = vst [vmem:[%s3453_s7 + $0x600] sm:$0xff] %v584_v0  ;;  %587 = vst [vmem:[%s3453_s7 + $0x608] sm:$0xff] %v586_v1  ;;  %v590_v3 = vld [vmem:[%s3448_s6 + $0xc28] sm:$0xff] }
  0x73   : > { %589 = vst [vmem:[%s3453_s7 + $0x610] sm:$0xff] %v588_v2  ;;  %v592_v4 = vld [vmem:[%s3448_s6 + $0xc40] sm:$0xff]  ;;  %v594_v5 = vld [vmem:[%s3448_s6 + $0xc48] sm:$0xff]  ;;  %591 = vst [vmem:[%s3453_s7 + $0x618] sm:$0xff] %v590_v3 }
  0x74   : > { %593 = vst [vmem:[%s3453_s7 + $0x620] sm:$0xff] %v592_v4  ;;  %595 = vst [vmem:[%s3453_s7 + $0x628] sm:$0xff] %v594_v5  ;;  %v596_v6 = vld [vmem:[%s3448_s6 + $0xc60] sm:$0xff]  ;;  %v598_v7 = vld [vmem:[%s3448_s6 + $0xc68] sm:$0xff] }
  0x75   : > { %v600_v8 = vld [vmem:[%s3448_s6 + $0xc80] sm:$0xff]  ;;  %597 = vst [vmem:[%s3453_s7 + $0x630] sm:$0xff] %v596_v6  ;;  %599 = vst [vmem:[%s3453_s7 + $0x638] sm:$0xff] %v598_v7  ;;  %v602_v9 = vld [vmem:[%s3448_s6 + $0xc88] sm:$0xff] }
  0x76   : > { %601 = vst [vmem:[%s3453_s7 + $0x640] sm:$0xff] %v600_v8  ;;  %v604_v10 = vld [vmem:[%s3448_s6 + $0xca0] sm:$0xff]  ;;  %v606_v11 = vld [vmem:[%s3448_s6 + $0xca8] sm:$0xff]  ;;  %603 = vst [vmem:[%s3453_s7 + $0x648] sm:$0xff] %v602_v9 }
  0x77   : > { %605 = vst [vmem:[%s3453_s7 + $0x650] sm:$0xff] %v604_v10  ;;  %607 = vst [vmem:[%s3453_s7 + $0x658] sm:$0xff] %v606_v11  ;;  %v608_v12 = vld [vmem:[%s3448_s6 + $0xcc0] sm:$0xff]  ;;  %v610_v13 = vld [vmem:[%s3448_s6 + $0xcc8] sm:$0xff] }
  0x78   : > { %v612_v14 = vld [vmem:[%s3448_s6 + $0xce0] sm:$0xff]  ;;  %609 = vst [vmem:[%s3453_s7 + $0x660] sm:$0xff] %v608_v12  ;;  %611 = vst [vmem:[%s3453_s7 + $0x668] sm:$0xff] %v610_v13  ;;  %v614_v15 = vld [vmem:[%s3448_s6 + $0xce8] sm:$0xff] }
  0x79   : > { %613 = vst [vmem:[%s3453_s7 + $0x670] sm:$0xff] %v612_v14  ;;  %v616_v16 = vld [vmem:[%s3448_s6 + $0xd00] sm:$0xff]  ;;  %v618_v17 = vld [vmem:[%s3448_s6 + $0xd08] sm:$0xff]  ;;  %615 = vst [vmem:[%s3453_s7 + $0x678] sm:$0xff] %v614_v15 }
  0x7a   : > { %617 = vst [vmem:[%s3453_s7 + $0x680] sm:$0xff] %v616_v16  ;;  %619 = vst [vmem:[%s3453_s7 + $0x688] sm:$0xff] %v618_v17  ;;  %v620_v18 = vld [vmem:[%s3448_s6 + $0xd20] sm:$0xff]  ;;  %v622_v19 = vld [vmem:[%s3448_s6 + $0xd28] sm:$0xff] }
  0x7b   : > { %v624_v20 = vld [vmem:[%s3448_s6 + $0xd40] sm:$0xff]  ;;  %621 = vst [vmem:[%s3453_s7 + $0x690] sm:$0xff] %v620_v18  ;;  %623 = vst [vmem:[%s3453_s7 + $0x698] sm:$0xff] %v622_v19  ;;  %v626_v21 = vld [vmem:[%s3448_s6 + $0xd48] sm:$0xff] }
  0x7c   : > { %625 = vst [vmem:[%s3453_s7 + $0x6a0] sm:$0xff] %v624_v20  ;;  %v628_v22 = vld [vmem:[%s3448_s6 + $0xd60] sm:$0xff]  ;;  %v630_v23 = vld [vmem:[%s3448_s6 + $0xd68] sm:$0xff]  ;;  %627 = vst [vmem:[%s3453_s7 + $0x6a8] sm:$0xff] %v626_v21 }
  0x7d   : > { %629 = vst [vmem:[%s3453_s7 + $0x6b0] sm:$0xff] %v628_v22  ;;  %631 = vst [vmem:[%s3453_s7 + $0x6b8] sm:$0xff] %v630_v23  ;;  %v632_v24 = vld [vmem:[%s3448_s6 + $0xd80] sm:$0xff]  ;;  %v634_v25 = vld [vmem:[%s3448_s6 + $0xd88] sm:$0xff] }
  0x7e   : > { %v636_v26 = vld [vmem:[%s3448_s6 + $0xda0] sm:$0xff]  ;;  %633 = vst [vmem:[%s3453_s7 + $0x6c0] sm:$0xff] %v632_v24  ;;  %635 = vst [vmem:[%s3453_s7 + $0x6c8] sm:$0xff] %v634_v25  ;;  %v638_v27 = vld [vmem:[%s3448_s6 + $0xda8] sm:$0xff] }
  0x7f   : > { %637 = vst [vmem:[%s3453_s7 + $0x6d0] sm:$0xff] %v636_v26  ;;  %v640_v28 = vld [vmem:[%s3448_s6 + $0xdc0] sm:$0xff]  ;;  %v642_v29 = vld [vmem:[%s3448_s6 + $0xdc8] sm:$0xff]  ;;  %639 = vst [vmem:[%s3453_s7 + $0x6d8] sm:$0xff] %v638_v27 }
  0x80   : > { %641 = vst [vmem:[%s3453_s7 + $0x6e0] sm:$0xff] %v640_v28  ;;  %643 = vst [vmem:[%s3453_s7 + $0x6e8] sm:$0xff] %v642_v29  ;;  %v644_v30 = vld [vmem:[%s3448_s6 + $0xde0] sm:$0xff]  ;;  %v646_v31 = vld [vmem:[%s3448_s6 + $0xde8] sm:$0xff] }
  0x81   : > { %v648_v32 = vld [vmem:[%s3448_s6 + $0xe00] sm:$0xff]  ;;  %645 = vst [vmem:[%s3453_s7 + $0x6f0] sm:$0xff] %v644_v30  ;;  %647 = vst [vmem:[%s3453_s7 + $0x6f8] sm:$0xff] %v646_v31  ;;  %v650_v33 = vld [vmem:[%s3448_s6 + $0xe08] sm:$0xff] }
  0x82   : > { %649 = vst [vmem:[%s3453_s7 + $0x700] sm:$0xff] %v648_v32  ;;  %v652_v34 = vld [vmem:[%s3448_s6 + $0xe20] sm:$0xff]  ;;  %v654_v35 = vld [vmem:[%s3448_s6 + $0xe28] sm:$0xff]  ;;  %651 = vst [vmem:[%s3453_s7 + $0x708] sm:$0xff] %v650_v33 }
  0x83   : > { %653 = vst [vmem:[%s3453_s7 + $0x710] sm:$0xff] %v652_v34  ;;  %655 = vst [vmem:[%s3453_s7 + $0x718] sm:$0xff] %v654_v35  ;;  %v656_v36 = vld [vmem:[%s3448_s6 + $0xe40] sm:$0xff]  ;;  %v658_v37 = vld [vmem:[%s3448_s6 + $0xe48] sm:$0xff] }
  0x84   : > { %v660_v38 = vld [vmem:[%s3448_s6 + $0xe60] sm:$0xff]  ;;  %657 = vst [vmem:[%s3453_s7 + $0x720] sm:$0xff] %v656_v36  ;;  %659 = vst [vmem:[%s3453_s7 + $0x728] sm:$0xff] %v658_v37  ;;  %v662_v39 = vld [vmem:[%s3448_s6 + $0xe68] sm:$0xff] }
  0x85   : > { %661 = vst [vmem:[%s3453_s7 + $0x730] sm:$0xff] %v660_v38  ;;  %v664_v40 = vld [vmem:[%s3448_s6 + $0xe80] sm:$0xff]  ;;  %v666_v41 = vld [vmem:[%s3448_s6 + $0xe88] sm:$0xff]  ;;  %663 = vst [vmem:[%s3453_s7 + $0x738] sm:$0xff] %v662_v39 }
  0x86   : > { %665 = vst [vmem:[%s3453_s7 + $0x740] sm:$0xff] %v664_v40  ;;  %667 = vst [vmem:[%s3453_s7 + $0x748] sm:$0xff] %v666_v41  ;;  %v668_v42 = vld [vmem:[%s3448_s6 + $0xea0] sm:$0xff]  ;;  %v670_v43 = vld [vmem:[%s3448_s6 + $0xea8] sm:$0xff] }
  0x87   : > { %v672_v44 = vld [vmem:[%s3448_s6 + $0xec0] sm:$0xff]  ;;  %669 = vst [vmem:[%s3453_s7 + $0x750] sm:$0xff] %v668_v42  ;;  %671 = vst [vmem:[%s3453_s7 + $0x758] sm:$0xff] %v670_v43  ;;  %v674_v45 = vld [vmem:[%s3448_s6 + $0xec8] sm:$0xff] }
  0x88   : > { %673 = vst [vmem:[%s3453_s7 + $0x760] sm:$0xff] %v672_v44  ;;  %v676_v46 = vld [vmem:[%s3448_s6 + $0xee0] sm:$0xff]  ;;  %v678_v47 = vld [vmem:[%s3448_s6 + $0xee8] sm:$0xff]  ;;  %675 = vst [vmem:[%s3453_s7 + $0x768] sm:$0xff] %v674_v45 }
  0x89   : > { %677 = vst [vmem:[%s3453_s7 + $0x770] sm:$0xff] %v676_v46  ;;  %679 = vst [vmem:[%s3453_s7 + $0x778] sm:$0xff] %v678_v47  ;;  %v680_v48 = vld [vmem:[%s3448_s6 + $0xf00] sm:$0xff]  ;;  %v682_v49 = vld [vmem:[%s3448_s6 + $0xf08] sm:$0xff] }
  0x8a   : > { %v684_v50 = vld [vmem:[%s3448_s6 + $0xf20] sm:$0xff]  ;;  %681 = vst [vmem:[%s3453_s7 + $0x780] sm:$0xff] %v680_v48  ;;  %683 = vst [vmem:[%s3453_s7 + $0x788] sm:$0xff] %v682_v49  ;;  %v686_v51 = vld [vmem:[%s3448_s6 + $0xf28] sm:$0xff] }
  0x8b   : > { %685 = vst [vmem:[%s3453_s7 + $0x790] sm:$0xff] %v684_v50  ;;  %v688_v52 = vld [vmem:[%s3448_s6 + $0xf40] sm:$0xff]  ;;  %v690_v53 = vld [vmem:[%s3448_s6 + $0xf48] sm:$0xff]  ;;  %687 = vst [vmem:[%s3453_s7 + $0x798] sm:$0xff] %v686_v51 }
  0x8c   : > { %689 = vst [vmem:[%s3453_s7 + $0x7a0] sm:$0xff] %v688_v52  ;;  %691 = vst [vmem:[%s3453_s7 + $0x7a8] sm:$0xff] %v690_v53  ;;  %v692_v54 = vld [vmem:[%s3448_s6 + $0xf60] sm:$0xff]  ;;  %v694_v55 = vld [vmem:[%s3448_s6 + $0xf68] sm:$0xff] }
  0x8d   : > { %v696_v56 = vld [vmem:[%s3448_s6 + $0xf80] sm:$0xff]  ;;  %693 = vst [vmem:[%s3453_s7 + $0x7b0] sm:$0xff] %v692_v54  ;;  %695 = vst [vmem:[%s3453_s7 + $0x7b8] sm:$0xff] %v694_v55  ;;  %v698_v57 = vld [vmem:[%s3448_s6 + $0xf88] sm:$0xff] }
  0x8e   : > { %697 = vst [vmem:[%s3453_s7 + $0x7c0] sm:$0xff] %v696_v56  ;;  %v700_v58 = vld [vmem:[%s3448_s6 + $0xfa0] sm:$0xff]  ;;  %v702_v59 = vld [vmem:[%s3448_s6 + $0xfa8] sm:$0xff]  ;;  %699 = vst [vmem:[%s3453_s7 + $0x7c8] sm:$0xff] %v698_v57 }
  0x8f   : > { %701 = vst [vmem:[%s3453_s7 + $0x7d0] sm:$0xff] %v700_v58  ;;  %703 = vst [vmem:[%s3453_s7 + $0x7d8] sm:$0xff] %v702_v59  ;;  %v704_v60 = vld [vmem:[%s3448_s6 + $0xfc0] sm:$0xff]  ;;  %v706_v61 = vld [vmem:[%s3448_s6 + $0xfc8] sm:$0xff] }
  0x90   : > { %v708_v62 = vld [vmem:[%s3448_s6 + $0xfe0] sm:$0xff]  ;;  %705 = vst [vmem:[%s3453_s7 + $0x7e0] sm:$0xff] %v704_v60  ;;  %707 = vst [vmem:[%s3453_s7 + $0x7e8] sm:$0xff] %v706_v61  ;;  %v710_v63 = vld [vmem:[%s3448_s6 + $0xfe8] sm:$0xff] }
  0x91   : > { %709 = vst [vmem:[%s3453_s7 + $0x7f0] sm:$0xff] %v708_v62  ;;  %v712_v0 = vld [vmem:[%s3448_s6 + $0x1000] sm:$0xff]  ;;  %v714_v1 = vld [vmem:[%s3448_s6 + $0x1008] sm:$0xff]  ;;  %711 = vst [vmem:[%s3453_s7 + $0x7f8] sm:$0xff] %v710_v63 }
  0x92   : > { %713 = vst [vmem:[%s3453_s7 + $0x800] sm:$0xff] %v712_v0  ;;  %715 = vst [vmem:[%s3453_s7 + $0x808] sm:$0xff] %v714_v1  ;;  %v716_v2 = vld [vmem:[%s3448_s6 + $0x1020] sm:$0xff]  ;;  %v718_v3 = vld [vmem:[%s3448_s6 + $0x1028] sm:$0xff] }
  0x93   : > { %v720_v4 = vld [vmem:[%s3448_s6 + $0x1040] sm:$0xff]  ;;  %717 = vst [vmem:[%s3453_s7 + $0x810] sm:$0xff] %v716_v2  ;;  %719 = vst [vmem:[%s3453_s7 + $0x818] sm:$0xff] %v718_v3  ;;  %v722_v5 = vld [vmem:[%s3448_s6 + $0x1048] sm:$0xff] }
  0x94   : > { %721 = vst [vmem:[%s3453_s7 + $0x820] sm:$0xff] %v720_v4  ;;  %v724_v6 = vld [vmem:[%s3448_s6 + $0x1060] sm:$0xff]  ;;  %v726_v7 = vld [vmem:[%s3448_s6 + $0x1068] sm:$0xff]  ;;  %723 = vst [vmem:[%s3453_s7 + $0x828] sm:$0xff] %v722_v5 }
  0x95   : > { %725 = vst [vmem:[%s3453_s7 + $0x830] sm:$0xff] %v724_v6  ;;  %727 = vst [vmem:[%s3453_s7 + $0x838] sm:$0xff] %v726_v7  ;;  %v728_v8 = vld [vmem:[%s3448_s6 + $0x1080] sm:$0xff]  ;;  %v730_v9 = vld [vmem:[%s3448_s6 + $0x1088] sm:$0xff] }
  0x96   : > { %v732_v10 = vld [vmem:[%s3448_s6 + $0x10a0] sm:$0xff]  ;;  %729 = vst [vmem:[%s3453_s7 + $0x840] sm:$0xff] %v728_v8  ;;  %731 = vst [vmem:[%s3453_s7 + $0x848] sm:$0xff] %v730_v9  ;;  %v734_v11 = vld [vmem:[%s3448_s6 + $0x10a8] sm:$0xff] }
  0x97   : > { %733 = vst [vmem:[%s3453_s7 + $0x850] sm:$0xff] %v732_v10  ;;  %v736_v12 = vld [vmem:[%s3448_s6 + $0x10c0] sm:$0xff]  ;;  %v738_v13 = vld [vmem:[%s3448_s6 + $0x10c8] sm:$0xff]  ;;  %735 = vst [vmem:[%s3453_s7 + $0x858] sm:$0xff] %v734_v11 }
  0x98   : > { %737 = vst [vmem:[%s3453_s7 + $0x860] sm:$0xff] %v736_v12  ;;  %739 = vst [vmem:[%s3453_s7 + $0x868] sm:$0xff] %v738_v13  ;;  %v740_v14 = vld [vmem:[%s3448_s6 + $0x10e0] sm:$0xff]  ;;  %v742_v15 = vld [vmem:[%s3448_s6 + $0x10e8] sm:$0xff] }
  0x99   : > { %v744_v16 = vld [vmem:[%s3448_s6 + $0x1100] sm:$0xff]  ;;  %741 = vst [vmem:[%s3453_s7 + $0x870] sm:$0xff] %v740_v14  ;;  %743 = vst [vmem:[%s3453_s7 + $0x878] sm:$0xff] %v742_v15  ;;  %v746_v17 = vld [vmem:[%s3448_s6 + $0x1108] sm:$0xff] }
  0x9a   : > { %745 = vst [vmem:[%s3453_s7 + $0x880] sm:$0xff] %v744_v16  ;;  %v748_v18 = vld [vmem:[%s3448_s6 + $0x1120] sm:$0xff]  ;;  %v750_v19 = vld [vmem:[%s3448_s6 + $0x1128] sm:$0xff]  ;;  %747 = vst [vmem:[%s3453_s7 + $0x888] sm:$0xff] %v746_v17 }
  0x9b   : > { %749 = vst [vmem:[%s3453_s7 + $0x890] sm:$0xff] %v748_v18  ;;  %751 = vst [vmem:[%s3453_s7 + $0x898] sm:$0xff] %v750_v19  ;;  %v752_v20 = vld [vmem:[%s3448_s6 + $0x1140] sm:$0xff]  ;;  %v754_v21 = vld [vmem:[%s3448_s6 + $0x1148] sm:$0xff] }
  0x9c   : > { %v756_v22 = vld [vmem:[%s3448_s6 + $0x1160] sm:$0xff]  ;;  %753 = vst [vmem:[%s3453_s7 + $0x8a0] sm:$0xff] %v752_v20  ;;  %755 = vst [vmem:[%s3453_s7 + $0x8a8] sm:$0xff] %v754_v21  ;;  %v758_v23 = vld [vmem:[%s3448_s6 + $0x1168] sm:$0xff] }
  0x9d   : > { %757 = vst [vmem:[%s3453_s7 + $0x8b0] sm:$0xff] %v756_v22  ;;  %v760_v24 = vld [vmem:[%s3448_s6 + $0x1180] sm:$0xff]  ;;  %v762_v25 = vld [vmem:[%s3448_s6 + $0x1188] sm:$0xff]  ;;  %759 = vst [vmem:[%s3453_s7 + $0x8b8] sm:$0xff] %v758_v23 }
  0x9e   : > { %761 = vst [vmem:[%s3453_s7 + $0x8c0] sm:$0xff] %v760_v24  ;;  %763 = vst [vmem:[%s3453_s7 + $0x8c8] sm:$0xff] %v762_v25  ;;  %v764_v26 = vld [vmem:[%s3448_s6 + $0x11a0] sm:$0xff]  ;;  %v766_v27 = vld [vmem:[%s3448_s6 + $0x11a8] sm:$0xff] }
  0x9f   : > { %v768_v28 = vld [vmem:[%s3448_s6 + $0x11c0] sm:$0xff]  ;;  %765 = vst [vmem:[%s3453_s7 + $0x8d0] sm:$0xff] %v764_v26  ;;  %767 = vst [vmem:[%s3453_s7 + $0x8d8] sm:$0xff] %v766_v27  ;;  %v770_v29 = vld [vmem:[%s3448_s6 + $0x11c8] sm:$0xff] }
  0xa0   : > { %769 = vst [vmem:[%s3453_s7 + $0x8e0] sm:$0xff] %v768_v28  ;;  %v772_v30 = vld [vmem:[%s3448_s6 + $0x11e0] sm:$0xff]  ;;  %v774_v31 = vld [vmem:[%s3448_s6 + $0x11e8] sm:$0xff]  ;;  %771 = vst [vmem:[%s3453_s7 + $0x8e8] sm:$0xff] %v770_v29 }
  0xa1   : > { %773 = vst [vmem:[%s3453_s7 + $0x8f0] sm:$0xff] %v772_v30  ;;  %775 = vst [vmem:[%s3453_s7 + $0x8f8] sm:$0xff] %v774_v31  ;;  %v776_v32 = vld [vmem:[%s3448_s6 + $0x1200] sm:$0xff]  ;;  %v778_v33 = vld [vmem:[%s3448_s6 + $0x1208] sm:$0xff] }
  0xa2   : > { %v780_v34 = vld [vmem:[%s3448_s6 + $0x1220] sm:$0xff]  ;;  %777 = vst [vmem:[%s3453_s7 + $0x900] sm:$0xff] %v776_v32  ;;  %779 = vst [vmem:[%s3453_s7 + $0x908] sm:$0xff] %v778_v33  ;;  %v782_v35 = vld [vmem:[%s3448_s6 + $0x1228] sm:$0xff] }
  0xa3   : > { %781 = vst [vmem:[%s3453_s7 + $0x910] sm:$0xff] %v780_v34  ;;  %v784_v36 = vld [vmem:[%s3448_s6 + $0x1240] sm:$0xff]  ;;  %v786_v37 = vld [vmem:[%s3448_s6 + $0x1248] sm:$0xff]  ;;  %783 = vst [vmem:[%s3453_s7 + $0x918] sm:$0xff] %v782_v35 }
  0xa4   : > { %785 = vst [vmem:[%s3453_s7 + $0x920] sm:$0xff] %v784_v36  ;;  %787 = vst [vmem:[%s3453_s7 + $0x928] sm:$0xff] %v786_v37  ;;  %v788_v38 = vld [vmem:[%s3448_s6 + $0x1260] sm:$0xff]  ;;  %v790_v39 = vld [vmem:[%s3448_s6 + $0x1268] sm:$0xff] }
  0xa5   : > { %v792_v40 = vld [vmem:[%s3448_s6 + $0x1280] sm:$0xff]  ;;  %789 = vst [vmem:[%s3453_s7 + $0x930] sm:$0xff] %v788_v38  ;;  %791 = vst [vmem:[%s3453_s7 + $0x938] sm:$0xff] %v790_v39  ;;  %v794_v41 = vld [vmem:[%s3448_s6 + $0x1288] sm:$0xff] }
  0xa6   : > { %793 = vst [vmem:[%s3453_s7 + $0x940] sm:$0xff] %v792_v40  ;;  %v796_v42 = vld [vmem:[%s3448_s6 + $0x12a0] sm:$0xff]  ;;  %v798_v43 = vld [vmem:[%s3448_s6 + $0x12a8] sm:$0xff]  ;;  %795 = vst [vmem:[%s3453_s7 + $0x948] sm:$0xff] %v794_v41 }
  0xa7   : > { %797 = vst [vmem:[%s3453_s7 + $0x950] sm:$0xff] %v796_v42  ;;  %799 = vst [vmem:[%s3453_s7 + $0x958] sm:$0xff] %v798_v43  ;;  %v800_v44 = vld [vmem:[%s3448_s6 + $0x12c0] sm:$0xff]  ;;  %v802_v45 = vld [vmem:[%s3448_s6 + $0x12c8] sm:$0xff] }
  0xa8   : > { %v804_v46 = vld [vmem:[%s3448_s6 + $0x12e0] sm:$0xff]  ;;  %801 = vst [vmem:[%s3453_s7 + $0x960] sm:$0xff] %v800_v44  ;;  %803 = vst [vmem:[%s3453_s7 + $0x968] sm:$0xff] %v802_v45  ;;  %v806_v47 = vld [vmem:[%s3448_s6 + $0x12e8] sm:$0xff] }
  0xa9   : > { %805 = vst [vmem:[%s3453_s7 + $0x970] sm:$0xff] %v804_v46  ;;  %v808_v48 = vld [vmem:[%s3448_s6 + $0x1300] sm:$0xff]  ;;  %v810_v49 = vld [vmem:[%s3448_s6 + $0x1308] sm:$0xff]  ;;  %807 = vst [vmem:[%s3453_s7 + $0x978] sm:$0xff] %v806_v47 }
  0xaa   : > { %809 = vst [vmem:[%s3453_s7 + $0x980] sm:$0xff] %v808_v48  ;;  %811 = vst [vmem:[%s3453_s7 + $0x988] sm:$0xff] %v810_v49  ;;  %v812_v50 = vld [vmem:[%s3448_s6 + $0x1320] sm:$0xff]  ;;  %v814_v51 = vld [vmem:[%s3448_s6 + $0x1328] sm:$0xff] }
  0xab   : > { %v816_v52 = vld [vmem:[%s3448_s6 + $0x1340] sm:$0xff]  ;;  %813 = vst [vmem:[%s3453_s7 + $0x990] sm:$0xff] %v812_v50  ;;  %815 = vst [vmem:[%s3453_s7 + $0x998] sm:$0xff] %v814_v51  ;;  %v818_v53 = vld [vmem:[%s3448_s6 + $0x1348] sm:$0xff] }
  0xac   : > { %817 = vst [vmem:[%s3453_s7 + $0x9a0] sm:$0xff] %v816_v52  ;;  %v820_v54 = vld [vmem:[%s3448_s6 + $0x1360] sm:$0xff]  ;;  %v822_v55 = vld [vmem:[%s3448_s6 + $0x1368] sm:$0xff]  ;;  %819 = vst [vmem:[%s3453_s7 + $0x9a8] sm:$0xff] %v818_v53 }
  0xad   : > { %821 = vst [vmem:[%s3453_s7 + $0x9b0] sm:$0xff] %v820_v54  ;;  %823 = vst [vmem:[%s3453_s7 + $0x9b8] sm:$0xff] %v822_v55  ;;  %v824_v56 = vld [vmem:[%s3448_s6 + $0x1380] sm:$0xff]  ;;  %v826_v57 = vld [vmem:[%s3448_s6 + $0x1388] sm:$0xff] }
  0xae   : > { %v828_v58 = vld [vmem:[%s3448_s6 + $0x13a0] sm:$0xff]  ;;  %825 = vst [vmem:[%s3453_s7 + $0x9c0] sm:$0xff] %v824_v56  ;;  %827 = vst [vmem:[%s3453_s7 + $0x9c8] sm:$0xff] %v826_v57  ;;  %v830_v59 = vld [vmem:[%s3448_s6 + $0x13a8] sm:$0xff] }
  0xaf   : > { %829 = vst [vmem:[%s3453_s7 + $0x9d0] sm:$0xff] %v828_v58  ;;  %v832_v60 = vld [vmem:[%s3448_s6 + $0x13c0] sm:$0xff]  ;;  %v834_v61 = vld [vmem:[%s3448_s6 + $0x13c8] sm:$0xff]  ;;  %831 = vst [vmem:[%s3453_s7 + $0x9d8] sm:$0xff] %v830_v59 }
  0xb0   : > { %833 = vst [vmem:[%s3453_s7 + $0x9e0] sm:$0xff] %v832_v60  ;;  %835 = vst [vmem:[%s3453_s7 + $0x9e8] sm:$0xff] %v834_v61  ;;  %v836_v62 = vld [vmem:[%s3448_s6 + $0x13e0] sm:$0xff]  ;;  %v838_v63 = vld [vmem:[%s3448_s6 + $0x13e8] sm:$0xff] }
  0xb1   : > { %v840_v0 = vld [vmem:[%s3448_s6 + $0x1400] sm:$0xff]  ;;  %837 = vst [vmem:[%s3453_s7 + $0x9f0] sm:$0xff] %v836_v62  ;;  %839 = vst [vmem:[%s3453_s7 + $0x9f8] sm:$0xff] %v838_v63  ;;  %v842_v1 = vld [vmem:[%s3448_s6 + $0x1408] sm:$0xff] }
  0xb2   : > { %841 = vst [vmem:[%s3453_s7 + $0xa00] sm:$0xff] %v840_v0  ;;  %v844_v2 = vld [vmem:[%s3448_s6 + $0x1420] sm:$0xff]  ;;  %v846_v3 = vld [vmem:[%s3448_s6 + $0x1428] sm:$0xff]  ;;  %843 = vst [vmem:[%s3453_s7 + $0xa08] sm:$0xff] %v842_v1 }
  0xb3   : > { %845 = vst [vmem:[%s3453_s7 + $0xa10] sm:$0xff] %v844_v2  ;;  %847 = vst [vmem:[%s3453_s7 + $0xa18] sm:$0xff] %v846_v3  ;;  %v848_v4 = vld [vmem:[%s3448_s6 + $0x1440] sm:$0xff]  ;;  %v850_v5 = vld [vmem:[%s3448_s6 + $0x1448] sm:$0xff] }
  0xb4   : > { %v852_v6 = vld [vmem:[%s3448_s6 + $0x1460] sm:$0xff]  ;;  %849 = vst [vmem:[%s3453_s7 + $0xa20] sm:$0xff] %v848_v4  ;;  %851 = vst [vmem:[%s3453_s7 + $0xa28] sm:$0xff] %v850_v5  ;;  %v854_v7 = vld [vmem:[%s3448_s6 + $0x1468] sm:$0xff] }
  0xb5   : > { %853 = vst [vmem:[%s3453_s7 + $0xa30] sm:$0xff] %v852_v6  ;;  %v856_v8 = vld [vmem:[%s3448_s6 + $0x1480] sm:$0xff]  ;;  %v858_v9 = vld [vmem:[%s3448_s6 + $0x1488] sm:$0xff]  ;;  %855 = vst [vmem:[%s3453_s7 + $0xa38] sm:$0xff] %v854_v7 }
  0xb6   : > { %857 = vst [vmem:[%s3453_s7 + $0xa40] sm:$0xff] %v856_v8  ;;  %859 = vst [vmem:[%s3453_s7 + $0xa48] sm:$0xff] %v858_v9  ;;  %v860_v10 = vld [vmem:[%s3448_s6 + $0x14a0] sm:$0xff]  ;;  %v862_v11 = vld [vmem:[%s3448_s6 + $0x14a8] sm:$0xff] }
  0xb7   : > { %v864_v12 = vld [vmem:[%s3448_s6 + $0x14c0] sm:$0xff]  ;;  %861 = vst [vmem:[%s3453_s7 + $0xa50] sm:$0xff] %v860_v10  ;;  %863 = vst [vmem:[%s3453_s7 + $0xa58] sm:$0xff] %v862_v11  ;;  %v866_v13 = vld [vmem:[%s3448_s6 + $0x14c8] sm:$0xff] }
  0xb8   : > { %865 = vst [vmem:[%s3453_s7 + $0xa60] sm:$0xff] %v864_v12  ;;  %v868_v14 = vld [vmem:[%s3448_s6 + $0x14e0] sm:$0xff]  ;;  %v870_v15 = vld [vmem:[%s3448_s6 + $0x14e8] sm:$0xff]  ;;  %867 = vst [vmem:[%s3453_s7 + $0xa68] sm:$0xff] %v866_v13 }
  0xb9   : > { %869 = vst [vmem:[%s3453_s7 + $0xa70] sm:$0xff] %v868_v14  ;;  %871 = vst [vmem:[%s3453_s7 + $0xa78] sm:$0xff] %v870_v15  ;;  %v872_v16 = vld [vmem:[%s3448_s6 + $0x1500] sm:$0xff]  ;;  %v874_v17 = vld [vmem:[%s3448_s6 + $0x1508] sm:$0xff] }
  0xba   : > { %v876_v18 = vld [vmem:[%s3448_s6 + $0x1520] sm:$0xff]  ;;  %873 = vst [vmem:[%s3453_s7 + $0xa80] sm:$0xff] %v872_v16  ;;  %875 = vst [vmem:[%s3453_s7 + $0xa88] sm:$0xff] %v874_v17  ;;  %v878_v19 = vld [vmem:[%s3448_s6 + $0x1528] sm:$0xff] }
  0xbb   : > { %877 = vst [vmem:[%s3453_s7 + $0xa90] sm:$0xff] %v876_v18  ;;  %v880_v20 = vld [vmem:[%s3448_s6 + $0x1540] sm:$0xff]  ;;  %v882_v21 = vld [vmem:[%s3448_s6 + $0x1548] sm:$0xff]  ;;  %879 = vst [vmem:[%s3453_s7 + $0xa98] sm:$0xff] %v878_v19 }
  0xbc   : > { %881 = vst [vmem:[%s3453_s7 + $0xaa0] sm:$0xff] %v880_v20  ;;  %883 = vst [vmem:[%s3453_s7 + $0xaa8] sm:$0xff] %v882_v21  ;;  %v884_v22 = vld [vmem:[%s3448_s6 + $0x1560] sm:$0xff]  ;;  %v886_v23 = vld [vmem:[%s3448_s6 + $0x1568] sm:$0xff] }
  0xbd   : > { %v888_v24 = vld [vmem:[%s3448_s6 + $0x1580] sm:$0xff]  ;;  %885 = vst [vmem:[%s3453_s7 + $0xab0] sm:$0xff] %v884_v22  ;;  %887 = vst [vmem:[%s3453_s7 + $0xab8] sm:$0xff] %v886_v23  ;;  %v890_v25 = vld [vmem:[%s3448_s6 + $0x1588] sm:$0xff] }
  0xbe   : > { %889 = vst [vmem:[%s3453_s7 + $0xac0] sm:$0xff] %v888_v24  ;;  %v892_v26 = vld [vmem:[%s3448_s6 + $0x15a0] sm:$0xff]  ;;  %v894_v27 = vld [vmem:[%s3448_s6 + $0x15a8] sm:$0xff]  ;;  %891 = vst [vmem:[%s3453_s7 + $0xac8] sm:$0xff] %v890_v25 }
  0xbf   : > { %893 = vst [vmem:[%s3453_s7 + $0xad0] sm:$0xff] %v892_v26  ;;  %895 = vst [vmem:[%s3453_s7 + $0xad8] sm:$0xff] %v894_v27  ;;  %v896_v28 = vld [vmem:[%s3448_s6 + $0x15c0] sm:$0xff]  ;;  %v898_v29 = vld [vmem:[%s3448_s6 + $0x15c8] sm:$0xff] }
  0xc0   : > { %v900_v30 = vld [vmem:[%s3448_s6 + $0x15e0] sm:$0xff]  ;;  %897 = vst [vmem:[%s3453_s7 + $0xae0] sm:$0xff] %v896_v28  ;;  %899 = vst [vmem:[%s3453_s7 + $0xae8] sm:$0xff] %v898_v29  ;;  %v902_v31 = vld [vmem:[%s3448_s6 + $0x15e8] sm:$0xff] }
  0xc1   : > { %901 = vst [vmem:[%s3453_s7 + $0xaf0] sm:$0xff] %v900_v30  ;;  %v904_v32 = vld [vmem:[%s3448_s6 + $0x1600] sm:$0xff]  ;;  %v906_v33 = vld [vmem:[%s3448_s6 + $0x1608] sm:$0xff]  ;;  %903 = vst [vmem:[%s3453_s7 + $0xaf8] sm:$0xff] %v902_v31 }
  0xc2   : > { %905 = vst [vmem:[%s3453_s7 + $0xb00] sm:$0xff] %v904_v32  ;;  %907 = vst [vmem:[%s3453_s7 + $0xb08] sm:$0xff] %v906_v33  ;;  %v908_v34 = vld [vmem:[%s3448_s6 + $0x1620] sm:$0xff]  ;;  %v910_v35 = vld [vmem:[%s3448_s6 + $0x1628] sm:$0xff] }
  0xc3   : > { %v912_v36 = vld [vmem:[%s3448_s6 + $0x1640] sm:$0xff]  ;;  %909 = vst [vmem:[%s3453_s7 + $0xb10] sm:$0xff] %v908_v34  ;;  %911 = vst [vmem:[%s3453_s7 + $0xb18] sm:$0xff] %v910_v35  ;;  %v914_v37 = vld [vmem:[%s3448_s6 + $0x1648] sm:$0xff] }
  0xc4   : > { %913 = vst [vmem:[%s3453_s7 + $0xb20] sm:$0xff] %v912_v36  ;;  %v916_v38 = vld [vmem:[%s3448_s6 + $0x1660] sm:$0xff]  ;;  %v918_v39 = vld [vmem:[%s3448_s6 + $0x1668] sm:$0xff]  ;;  %915 = vst [vmem:[%s3453_s7 + $0xb28] sm:$0xff] %v914_v37 }
  0xc5   : > { %917 = vst [vmem:[%s3453_s7 + $0xb30] sm:$0xff] %v916_v38  ;;  %919 = vst [vmem:[%s3453_s7 + $0xb38] sm:$0xff] %v918_v39  ;;  %v920_v40 = vld [vmem:[%s3448_s6 + $0x1680] sm:$0xff]  ;;  %v922_v41 = vld [vmem:[%s3448_s6 + $0x1688] sm:$0xff] }
  0xc6   : > { %v924_v42 = vld [vmem:[%s3448_s6 + $0x16a0] sm:$0xff]  ;;  %921 = vst [vmem:[%s3453_s7 + $0xb40] sm:$0xff] %v920_v40  ;;  %923 = vst [vmem:[%s3453_s7 + $0xb48] sm:$0xff] %v922_v41  ;;  %v926_v43 = vld [vmem:[%s3448_s6 + $0x16a8] sm:$0xff] }
  0xc7   : > { %925 = vst [vmem:[%s3453_s7 + $0xb50] sm:$0xff] %v924_v42  ;;  %v928_v44 = vld [vmem:[%s3448_s6 + $0x16c0] sm:$0xff]  ;;  %v930_v45 = vld [vmem:[%s3448_s6 + $0x16c8] sm:$0xff]  ;;  %927 = vst [vmem:[%s3453_s7 + $0xb58] sm:$0xff] %v926_v43 }
  0xc8   : > { %929 = vst [vmem:[%s3453_s7 + $0xb60] sm:$0xff] %v928_v44  ;;  %931 = vst [vmem:[%s3453_s7 + $0xb68] sm:$0xff] %v930_v45  ;;  %v932_v46 = vld [vmem:[%s3448_s6 + $0x16e0] sm:$0xff]  ;;  %v934_v47 = vld [vmem:[%s3448_s6 + $0x16e8] sm:$0xff] }
  0xc9   : > { %v936_v48 = vld [vmem:[%s3448_s6 + $0x1700] sm:$0xff]  ;;  %933 = vst [vmem:[%s3453_s7 + $0xb70] sm:$0xff] %v932_v46  ;;  %935 = vst [vmem:[%s3453_s7 + $0xb78] sm:$0xff] %v934_v47  ;;  %v938_v49 = vld [vmem:[%s3448_s6 + $0x1708] sm:$0xff] }
  0xca   : > { %937 = vst [vmem:[%s3453_s7 + $0xb80] sm:$0xff] %v936_v48  ;;  %v940_v50 = vld [vmem:[%s3448_s6 + $0x1720] sm:$0xff]  ;;  %v942_v51 = vld [vmem:[%s3448_s6 + $0x1728] sm:$0xff]  ;;  %939 = vst [vmem:[%s3453_s7 + $0xb88] sm:$0xff] %v938_v49 }
  0xcb   : > { %941 = vst [vmem:[%s3453_s7 + $0xb90] sm:$0xff] %v940_v50  ;;  %943 = vst [vmem:[%s3453_s7 + $0xb98] sm:$0xff] %v942_v51  ;;  %v944_v52 = vld [vmem:[%s3448_s6 + $0x1740] sm:$0xff]  ;;  %v946_v53 = vld [vmem:[%s3448_s6 + $0x1748] sm:$0xff] }
  0xcc   : > { %v948_v54 = vld [vmem:[%s3448_s6 + $0x1760] sm:$0xff]  ;;  %945 = vst [vmem:[%s3453_s7 + $0xba0] sm:$0xff] %v944_v52  ;;  %947 = vst [vmem:[%s3453_s7 + $0xba8] sm:$0xff] %v946_v53  ;;  %v950_v55 = vld [vmem:[%s3448_s6 + $0x1768] sm:$0xff] }
  0xcd   : > { %949 = vst [vmem:[%s3453_s7 + $0xbb0] sm:$0xff] %v948_v54  ;;  %v952_v56 = vld [vmem:[%s3448_s6 + $0x1780] sm:$0xff]  ;;  %v954_v57 = vld [vmem:[%s3448_s6 + $0x1788] sm:$0xff]  ;;  %951 = vst [vmem:[%s3453_s7 + $0xbb8] sm:$0xff] %v950_v55 }
  0xce   : > { %953 = vst [vmem:[%s3453_s7 + $0xbc0] sm:$0xff] %v952_v56  ;;  %955 = vst [vmem:[%s3453_s7 + $0xbc8] sm:$0xff] %v954_v57  ;;  %v956_v58 = vld [vmem:[%s3448_s6 + $0x17a0] sm:$0xff]  ;;  %v958_v59 = vld [vmem:[%s3448_s6 + $0x17a8] sm:$0xff] }
  0xcf   : > { %v960_v60 = vld [vmem:[%s3448_s6 + $0x17c0] sm:$0xff]  ;;  %957 = vst [vmem:[%s3453_s7 + $0xbd0] sm:$0xff] %v956_v58  ;;  %959 = vst [vmem:[%s3453_s7 + $0xbd8] sm:$0xff] %v958_v59  ;;  %v962_v61 = vld [vmem:[%s3448_s6 + $0x17c8] sm:$0xff] }
  0xd0   : > { %961 = vst [vmem:[%s3453_s7 + $0xbe0] sm:$0xff] %v960_v60  ;;  %v964_v62 = vld [vmem:[%s3448_s6 + $0x17e0] sm:$0xff]  ;;  %v966_v63 = vld [vmem:[%s3448_s6 + $0x17e8] sm:$0xff]  ;;  %963 = vst [vmem:[%s3453_s7 + $0xbe8] sm:$0xff] %v962_v61 }
  0xd1   : > { %965 = vst [vmem:[%s3453_s7 + $0xbf0] sm:$0xff] %v964_v62  ;;  %967 = vst [vmem:[%s3453_s7 + $0xbf8] sm:$0xff] %v966_v63  ;;  %v968_v0 = vld [vmem:[%s3448_s6 + $0x1800] sm:$0xff]  ;;  %v970_v1 = vld [vmem:[%s3448_s6 + $0x1808] sm:$0xff] }
  0xd2   : > { %v972_v2 = vld [vmem:[%s3448_s6 + $0x1820] sm:$0xff]  ;;  %969 = vst [vmem:[%s3453_s7 + $0xc00] sm:$0xff] %v968_v0  ;;  %971 = vst [vmem:[%s3453_s7 + $0xc08] sm:$0xff] %v970_v1  ;;  %v974_v3 = vld [vmem:[%s3448_s6 + $0x1828] sm:$0xff] }
  0xd3   : > { %973 = vst [vmem:[%s3453_s7 + $0xc10] sm:$0xff] %v972_v2  ;;  %v976_v4 = vld [vmem:[%s3448_s6 + $0x1840] sm:$0xff]  ;;  %v978_v5 = vld [vmem:[%s3448_s6 + $0x1848] sm:$0xff]  ;;  %975 = vst [vmem:[%s3453_s7 + $0xc18] sm:$0xff] %v974_v3 }
  0xd4   : > { %977 = vst [vmem:[%s3453_s7 + $0xc20] sm:$0xff] %v976_v4  ;;  %979 = vst [vmem:[%s3453_s7 + $0xc28] sm:$0xff] %v978_v5  ;;  %v980_v6 = vld [vmem:[%s3448_s6 + $0x1860] sm:$0xff]  ;;  %v982_v7 = vld [vmem:[%s3448_s6 + $0x1868] sm:$0xff] }
  0xd5   : > { %v984_v8 = vld [vmem:[%s3448_s6 + $0x1880] sm:$0xff]  ;;  %981 = vst [vmem:[%s3453_s7 + $0xc30] sm:$0xff] %v980_v6  ;;  %983 = vst [vmem:[%s3453_s7 + $0xc38] sm:$0xff] %v982_v7  ;;  %v986_v9 = vld [vmem:[%s3448_s6 + $0x1888] sm:$0xff] }
  0xd6   : > { %985 = vst [vmem:[%s3453_s7 + $0xc40] sm:$0xff] %v984_v8  ;;  %v988_v10 = vld [vmem:[%s3448_s6 + $0x18a0] sm:$0xff]  ;;  %v990_v11 = vld [vmem:[%s3448_s6 + $0x18a8] sm:$0xff]  ;;  %987 = vst [vmem:[%s3453_s7 + $0xc48] sm:$0xff] %v986_v9 }
  0xd7   : > { %989 = vst [vmem:[%s3453_s7 + $0xc50] sm:$0xff] %v988_v10  ;;  %991 = vst [vmem:[%s3453_s7 + $0xc58] sm:$0xff] %v990_v11  ;;  %v992_v12 = vld [vmem:[%s3448_s6 + $0x18c0] sm:$0xff]  ;;  %v994_v13 = vld [vmem:[%s3448_s6 + $0x18c8] sm:$0xff] }
  0xd8   : > { %v996_v14 = vld [vmem:[%s3448_s6 + $0x18e0] sm:$0xff]  ;;  %993 = vst [vmem:[%s3453_s7 + $0xc60] sm:$0xff] %v992_v12  ;;  %995 = vst [vmem:[%s3453_s7 + $0xc68] sm:$0xff] %v994_v13  ;;  %v998_v15 = vld [vmem:[%s3448_s6 + $0x18e8] sm:$0xff] }
  0xd9   : > { %997 = vst [vmem:[%s3453_s7 + $0xc70] sm:$0xff] %v996_v14  ;;  %v1000_v16 = vld [vmem:[%s3448_s6 + $0x1900] sm:$0xff]  ;;  %v1002_v17 = vld [vmem:[%s3448_s6 + $0x1908] sm:$0xff]  ;;  %999 = vst [vmem:[%s3453_s7 + $0xc78] sm:$0xff] %v998_v15 }
  0xda   : > { %1001 = vst [vmem:[%s3453_s7 + $0xc80] sm:$0xff] %v1000_v16  ;;  %1003 = vst [vmem:[%s3453_s7 + $0xc88] sm:$0xff] %v1002_v17  ;;  %v1004_v18 = vld [vmem:[%s3448_s6 + $0x1920] sm:$0xff]  ;;  %v1006_v19 = vld [vmem:[%s3448_s6 + $0x1928] sm:$0xff] }
  0xdb   : > { %v1008_v20 = vld [vmem:[%s3448_s6 + $0x1940] sm:$0xff]  ;;  %1005 = vst [vmem:[%s3453_s7 + $0xc90] sm:$0xff] %v1004_v18  ;;  %1007 = vst [vmem:[%s3453_s7 + $0xc98] sm:$0xff] %v1006_v19  ;;  %v1010_v21 = vld [vmem:[%s3448_s6 + $0x1948] sm:$0xff] }
  0xdc   : > { %1009 = vst [vmem:[%s3453_s7 + $0xca0] sm:$0xff] %v1008_v20  ;;  %v1012_v22 = vld [vmem:[%s3448_s6 + $0x1960] sm:$0xff]  ;;  %v1014_v23 = vld [vmem:[%s3448_s6 + $0x1968] sm:$0xff]  ;;  %1011 = vst [vmem:[%s3453_s7 + $0xca8] sm:$0xff] %v1010_v21 }
  0xdd   : > { %1013 = vst [vmem:[%s3453_s7 + $0xcb0] sm:$0xff] %v1012_v22  ;;  %1015 = vst [vmem:[%s3453_s7 + $0xcb8] sm:$0xff] %v1014_v23  ;;  %v1016_v24 = vld [vmem:[%s3448_s6 + $0x1980] sm:$0xff]  ;;  %v1018_v25 = vld [vmem:[%s3448_s6 + $0x1988] sm:$0xff] }
  0xde   : > { %v1020_v26 = vld [vmem:[%s3448_s6 + $0x19a0] sm:$0xff]  ;;  %1017 = vst [vmem:[%s3453_s7 + $0xcc0] sm:$0xff] %v1016_v24  ;;  %1019 = vst [vmem:[%s3453_s7 + $0xcc8] sm:$0xff] %v1018_v25  ;;  %v1022_v27 = vld [vmem:[%s3448_s6 + $0x19a8] sm:$0xff] }
  0xdf   : > { %1021 = vst [vmem:[%s3453_s7 + $0xcd0] sm:$0xff] %v1020_v26  ;;  %v1024_v28 = vld [vmem:[%s3448_s6 + $0x19c0] sm:$0xff]  ;;  %v1026_v29 = vld [vmem:[%s3448_s6 + $0x19c8] sm:$0xff]  ;;  %1023 = vst [vmem:[%s3453_s7 + $0xcd8] sm:$0xff] %v1022_v27 }
  0xe0   : > { %1025 = vst [vmem:[%s3453_s7 + $0xce0] sm:$0xff] %v1024_v28  ;;  %1027 = vst [vmem:[%s3453_s7 + $0xce8] sm:$0xff] %v1026_v29  ;;  %v1028_v30 = vld [vmem:[%s3448_s6 + $0x19e0] sm:$0xff]  ;;  %v1030_v31 = vld [vmem:[%s3448_s6 + $0x19e8] sm:$0xff] }
  0xe1   : > { %v1032_v32 = vld [vmem:[%s3448_s6 + $0x1a00] sm:$0xff]  ;;  %1029 = vst [vmem:[%s3453_s7 + $0xcf0] sm:$0xff] %v1028_v30  ;;  %1031 = vst [vmem:[%s3453_s7 + $0xcf8] sm:$0xff] %v1030_v31  ;;  %v1034_v33 = vld [vmem:[%s3448_s6 + $0x1a08] sm:$0xff] }
  0xe2   : > { %1033 = vst [vmem:[%s3453_s7 + $0xd00] sm:$0xff] %v1032_v32  ;;  %v1036_v34 = vld [vmem:[%s3448_s6 + $0x1a20] sm:$0xff]  ;;  %v1038_v35 = vld [vmem:[%s3448_s6 + $0x1a28] sm:$0xff]  ;;  %1035 = vst [vmem:[%s3453_s7 + $0xd08] sm:$0xff] %v1034_v33 }
  0xe3   : > { %1037 = vst [vmem:[%s3453_s7 + $0xd10] sm:$0xff] %v1036_v34  ;;  %1039 = vst [vmem:[%s3453_s7 + $0xd18] sm:$0xff] %v1038_v35  ;;  %v1040_v36 = vld [vmem:[%s3448_s6 + $0x1a40] sm:$0xff]  ;;  %v1042_v37 = vld [vmem:[%s3448_s6 + $0x1a48] sm:$0xff] }
  0xe4   : > { %v1044_v38 = vld [vmem:[%s3448_s6 + $0x1a60] sm:$0xff]  ;;  %1041 = vst [vmem:[%s3453_s7 + $0xd20] sm:$0xff] %v1040_v36  ;;  %1043 = vst [vmem:[%s3453_s7 + $0xd28] sm:$0xff] %v1042_v37  ;;  %v1046_v39 = vld [vmem:[%s3448_s6 + $0x1a68] sm:$0xff] }
  0xe5   : > { %1045 = vst [vmem:[%s3453_s7 + $0xd30] sm:$0xff] %v1044_v38  ;;  %v1048_v40 = vld [vmem:[%s3448_s6 + $0x1a80] sm:$0xff]  ;;  %v1050_v41 = vld [vmem:[%s3448_s6 + $0x1a88] sm:$0xff]  ;;  %1047 = vst [vmem:[%s3453_s7 + $0xd38] sm:$0xff] %v1046_v39 }
  0xe6   : > { %1049 = vst [vmem:[%s3453_s7 + $0xd40] sm:$0xff] %v1048_v40  ;;  %1051 = vst [vmem:[%s3453_s7 + $0xd48] sm:$0xff] %v1050_v41  ;;  %v1052_v42 = vld [vmem:[%s3448_s6 + $0x1aa0] sm:$0xff]  ;;  %v1054_v43 = vld [vmem:[%s3448_s6 + $0x1aa8] sm:$0xff] }
  0xe7   : > { %v1056_v44 = vld [vmem:[%s3448_s6 + $0x1ac0] sm:$0xff]  ;;  %1053 = vst [vmem:[%s3453_s7 + $0xd50] sm:$0xff] %v1052_v42  ;;  %1055 = vst [vmem:[%s3453_s7 + $0xd58] sm:$0xff] %v1054_v43  ;;  %v1058_v45 = vld [vmem:[%s3448_s6 + $0x1ac8] sm:$0xff] }
  0xe8   : > { %1057 = vst [vmem:[%s3453_s7 + $0xd60] sm:$0xff] %v1056_v44  ;;  %v1060_v46 = vld [vmem:[%s3448_s6 + $0x1ae0] sm:$0xff]  ;;  %v1062_v47 = vld [vmem:[%s3448_s6 + $0x1ae8] sm:$0xff]  ;;  %1059 = vst [vmem:[%s3453_s7 + $0xd68] sm:$0xff] %v1058_v45 }
  0xe9   : > { %1061 = vst [vmem:[%s3453_s7 + $0xd70] sm:$0xff] %v1060_v46  ;;  %1063 = vst [vmem:[%s3453_s7 + $0xd78] sm:$0xff] %v1062_v47  ;;  %v1064_v48 = vld [vmem:[%s3448_s6 + $0x1b00] sm:$0xff]  ;;  %v1066_v49 = vld [vmem:[%s3448_s6 + $0x1b08] sm:$0xff] }
  0xea   : > { %v1068_v50 = vld [vmem:[%s3448_s6 + $0x1b20] sm:$0xff]  ;;  %1065 = vst [vmem:[%s3453_s7 + $0xd80] sm:$0xff] %v1064_v48  ;;  %1067 = vst [vmem:[%s3453_s7 + $0xd88] sm:$0xff] %v1066_v49  ;;  %v1070_v51 = vld [vmem:[%s3448_s6 + $0x1b28] sm:$0xff] }
  0xeb   : > { %1069 = vst [vmem:[%s3453_s7 + $0xd90] sm:$0xff] %v1068_v50  ;;  %v1072_v52 = vld [vmem:[%s3448_s6 + $0x1b40] sm:$0xff]  ;;  %v1074_v53 = vld [vmem:[%s3448_s6 + $0x1b48] sm:$0xff]  ;;  %1071 = vst [vmem:[%s3453_s7 + $0xd98] sm:$0xff] %v1070_v51 }
  0xec   : > { %1073 = vst [vmem:[%s3453_s7 + $0xda0] sm:$0xff] %v1072_v52  ;;  %1075 = vst [vmem:[%s3453_s7 + $0xda8] sm:$0xff] %v1074_v53  ;;  %v1076_v54 = vld [vmem:[%s3448_s6 + $0x1b60] sm:$0xff]  ;;  %v1078_v55 = vld [vmem:[%s3448_s6 + $0x1b68] sm:$0xff] }
  0xed   : > { %v1080_v56 = vld [vmem:[%s3448_s6 + $0x1b80] sm:$0xff]  ;;  %1077 = vst [vmem:[%s3453_s7 + $0xdb0] sm:$0xff] %v1076_v54  ;;  %1079 = vst [vmem:[%s3453_s7 + $0xdb8] sm:$0xff] %v1078_v55  ;;  %v1082_v57 = vld [vmem:[%s3448_s6 + $0x1b88] sm:$0xff] }
  0xee   : > { %1081 = vst [vmem:[%s3453_s7 + $0xdc0] sm:$0xff] %v1080_v56  ;;  %v1084_v58 = vld [vmem:[%s3448_s6 + $0x1ba0] sm:$0xff]  ;;  %v1086_v59 = vld [vmem:[%s3448_s6 + $0x1ba8] sm:$0xff]  ;;  %1083 = vst [vmem:[%s3453_s7 + $0xdc8] sm:$0xff] %v1082_v57 }
  0xef   : > { %1085 = vst [vmem:[%s3453_s7 + $0xdd0] sm:$0xff] %v1084_v58  ;;  %1087 = vst [vmem:[%s3453_s7 + $0xdd8] sm:$0xff] %v1086_v59  ;;  %v1088_v60 = vld [vmem:[%s3448_s6 + $0x1bc0] sm:$0xff]  ;;  %v1090_v61 = vld [vmem:[%s3448_s6 + $0x1bc8] sm:$0xff] }
  0xf0   : > { %v1092_v62 = vld [vmem:[%s3448_s6 + $0x1be0] sm:$0xff]  ;;  %1089 = vst [vmem:[%s3453_s7 + $0xde0] sm:$0xff] %v1088_v60  ;;  %1091 = vst [vmem:[%s3453_s7 + $0xde8] sm:$0xff] %v1090_v61  ;;  %v1094_v63 = vld [vmem:[%s3448_s6 + $0x1be8] sm:$0xff] }
  0xf1   : > { %1093 = vst [vmem:[%s3453_s7 + $0xdf0] sm:$0xff] %v1092_v62  ;;  %v1096_v0 = vld [vmem:[%s3448_s6 + $0x1c00] sm:$0xff]  ;;  %v1098_v1 = vld [vmem:[%s3448_s6 + $0x1c08] sm:$0xff]  ;;  %1095 = vst [vmem:[%s3453_s7 + $0xdf8] sm:$0xff] %v1094_v63 }
  0xf2   : > { %1097 = vst [vmem:[%s3453_s7 + $0xe00] sm:$0xff] %v1096_v0  ;;  %1099 = vst [vmem:[%s3453_s7 + $0xe08] sm:$0xff] %v1098_v1  ;;  %v1100_v2 = vld [vmem:[%s3448_s6 + $0x1c20] sm:$0xff]  ;;  %v1102_v3 = vld [vmem:[%s3448_s6 + $0x1c28] sm:$0xff] }
  0xf3   : > { %v1104_v4 = vld [vmem:[%s3448_s6 + $0x1c40] sm:$0xff]  ;;  %1101 = vst [vmem:[%s3453_s7 + $0xe10] sm:$0xff] %v1100_v2  ;;  %1103 = vst [vmem:[%s3453_s7 + $0xe18] sm:$0xff] %v1102_v3  ;;  %v1106_v5 = vld [vmem:[%s3448_s6 + $0x1c48] sm:$0xff] }
  0xf4   : > { %1105 = vst [vmem:[%s3453_s7 + $0xe20] sm:$0xff] %v1104_v4  ;;  %v1108_v6 = vld [vmem:[%s3448_s6 + $0x1c60] sm:$0xff]  ;;  %v1110_v7 = vld [vmem:[%s3448_s6 + $0x1c68] sm:$0xff]  ;;  %1107 = vst [vmem:[%s3453_s7 + $0xe28] sm:$0xff] %v1106_v5 }
  0xf5   : > { %1109 = vst [vmem:[%s3453_s7 + $0xe30] sm:$0xff] %v1108_v6  ;;  %1111 = vst [vmem:[%s3453_s7 + $0xe38] sm:$0xff] %v1110_v7  ;;  %v1112_v8 = vld [vmem:[%s3448_s6 + $0x1c80] sm:$0xff]  ;;  %v1114_v9 = vld [vmem:[%s3448_s6 + $0x1c88] sm:$0xff] }
  0xf6   : > { %v1116_v10 = vld [vmem:[%s3448_s6 + $0x1ca0] sm:$0xff]  ;;  %1113 = vst [vmem:[%s3453_s7 + $0xe40] sm:$0xff] %v1112_v8  ;;  %1115 = vst [vmem:[%s3453_s7 + $0xe48] sm:$0xff] %v1114_v9  ;;  %v1118_v11 = vld [vmem:[%s3448_s6 + $0x1ca8] sm:$0xff] }
  0xf7   : > { %1117 = vst [vmem:[%s3453_s7 + $0xe50] sm:$0xff] %v1116_v10  ;;  %v1120_v12 = vld [vmem:[%s3448_s6 + $0x1cc0] sm:$0xff]  ;;  %v1122_v13 = vld [vmem:[%s3448_s6 + $0x1cc8] sm:$0xff]  ;;  %1119 = vst [vmem:[%s3453_s7 + $0xe58] sm:$0xff] %v1118_v11 }
  0xf8   : > { %1121 = vst [vmem:[%s3453_s7 + $0xe60] sm:$0xff] %v1120_v12  ;;  %1123 = vst [vmem:[%s3453_s7 + $0xe68] sm:$0xff] %v1122_v13  ;;  %v1124_v14 = vld [vmem:[%s3448_s6 + $0x1ce0] sm:$0xff]  ;;  %v1126_v15 = vld [vmem:[%s3448_s6 + $0x1ce8] sm:$0xff] }
  0xf9   : > { %v1128_v16 = vld [vmem:[%s3448_s6 + $0x1d00] sm:$0xff]  ;;  %1125 = vst [vmem:[%s3453_s7 + $0xe70] sm:$0xff] %v1124_v14  ;;  %1127 = vst [vmem:[%s3453_s7 + $0xe78] sm:$0xff] %v1126_v15  ;;  %v1130_v17 = vld [vmem:[%s3448_s6 + $0x1d08] sm:$0xff] }
  0xfa   : > { %1129 = vst [vmem:[%s3453_s7 + $0xe80] sm:$0xff] %v1128_v16  ;;  %v1132_v18 = vld [vmem:[%s3448_s6 + $0x1d20] sm:$0xff]  ;;  %v1134_v19 = vld [vmem:[%s3448_s6 + $0x1d28] sm:$0xff]  ;;  %1131 = vst [vmem:[%s3453_s7 + $0xe88] sm:$0xff] %v1130_v17 }
  0xfb   : > { %1133 = vst [vmem:[%s3453_s7 + $0xe90] sm:$0xff] %v1132_v18  ;;  %1135 = vst [vmem:[%s3453_s7 + $0xe98] sm:$0xff] %v1134_v19  ;;  %v1136_v20 = vld [vmem:[%s3448_s6 + $0x1d40] sm:$0xff]  ;;  %v1138_v21 = vld [vmem:[%s3448_s6 + $0x1d48] sm:$0xff] }
  0xfc   : > { %v1140_v22 = vld [vmem:[%s3448_s6 + $0x1d60] sm:$0xff]  ;;  %1137 = vst [vmem:[%s3453_s7 + $0xea0] sm:$0xff] %v1136_v20  ;;  %1139 = vst [vmem:[%s3453_s7 + $0xea8] sm:$0xff] %v1138_v21  ;;  %v1142_v23 = vld [vmem:[%s3448_s6 + $0x1d68] sm:$0xff] }
  0xfd   : > { %1141 = vst [vmem:[%s3453_s7 + $0xeb0] sm:$0xff] %v1140_v22  ;;  %v1144_v24 = vld [vmem:[%s3448_s6 + $0x1d80] sm:$0xff]  ;;  %v1146_v25 = vld [vmem:[%s3448_s6 + $0x1d88] sm:$0xff]  ;;  %1143 = vst [vmem:[%s3453_s7 + $0xeb8] sm:$0xff] %v1142_v23 }
  0xfe   : > { %1145 = vst [vmem:[%s3453_s7 + $0xec0] sm:$0xff] %v1144_v24  ;;  %1147 = vst [vmem:[%s3453_s7 + $0xec8] sm:$0xff] %v1146_v25  ;;  %v1148_v26 = vld [vmem:[%s3448_s6 + $0x1da0] sm:$0xff]  ;;  %v1150_v27 = vld [vmem:[%s3448_s6 + $0x1da8] sm:$0xff] }
  0xff   : > { %v1152_v28 = vld [vmem:[%s3448_s6 + $0x1dc0] sm:$0xff]  ;;  %1149 = vst [vmem:[%s3453_s7 + $0xed0] sm:$0xff] %v1148_v26  ;;  %1151 = vst [vmem:[%s3453_s7 + $0xed8] sm:$0xff] %v1150_v27  ;;  %v1154_v29 = vld [vmem:[%s3448_s6 + $0x1dc8] sm:$0xff] }
 0x100   : > { %1153 = vst [vmem:[%s3453_s7 + $0xee0] sm:$0xff] %v1152_v28  ;;  %v1156_v30 = vld [vmem:[%s3448_s6 + $0x1de0] sm:$0xff]  ;;  %v1158_v31 = vld [vmem:[%s3448_s6 + $0x1de8] sm:$0xff]  ;;  %1155 = vst [vmem:[%s3453_s7 + $0xee8] sm:$0xff] %v1154_v29 }
 0x101   : > { %1157 = vst [vmem:[%s3453_s7 + $0xef0] sm:$0xff] %v1156_v30  ;;  %1159 = vst [vmem:[%s3453_s7 + $0xef8] sm:$0xff] %v1158_v31  ;;  %v1160_v32 = vld [vmem:[%s3448_s6 + $0x1e00] sm:$0xff]  ;;  %v1162_v33 = vld [vmem:[%s3448_s6 + $0x1e08] sm:$0xff] }
 0x102   : > { %v1164_v34 = vld [vmem:[%s3448_s6 + $0x1e20] sm:$0xff]  ;;  %1161 = vst [vmem:[%s3453_s7 + $0xf00] sm:$0xff] %v1160_v32  ;;  %1163 = vst [vmem:[%s3453_s7 + $0xf08] sm:$0xff] %v1162_v33  ;;  %v1166_v35 = vld [vmem:[%s3448_s6 + $0x1e28] sm:$0xff] }
 0x103   : > { %1165 = vst [vmem:[%s3453_s7 + $0xf10] sm:$0xff] %v1164_v34  ;;  %v1168_v36 = vld [vmem:[%s3448_s6 + $0x1e40] sm:$0xff]  ;;  %v1170_v37 = vld [vmem:[%s3448_s6 + $0x1e48] sm:$0xff]  ;;  %1167 = vst [vmem:[%s3453_s7 + $0xf18] sm:$0xff] %v1166_v35 }
 0x104   : > { %1169 = vst [vmem:[%s3453_s7 + $0xf20] sm:$0xff] %v1168_v36  ;;  %1171 = vst [vmem:[%s3453_s7 + $0xf28] sm:$0xff] %v1170_v37  ;;  %v1172_v38 = vld [vmem:[%s3448_s6 + $0x1e60] sm:$0xff]  ;;  %v1174_v39 = vld [vmem:[%s3448_s6 + $0x1e68] sm:$0xff] }
 0x105   : > { %v1176_v40 = vld [vmem:[%s3448_s6 + $0x1e80] sm:$0xff]  ;;  %1173 = vst [vmem:[%s3453_s7 + $0xf30] sm:$0xff] %v1172_v38  ;;  %1175 = vst [vmem:[%s3453_s7 + $0xf38] sm:$0xff] %v1174_v39  ;;  %v1178_v41 = vld [vmem:[%s3448_s6 + $0x1e88] sm:$0xff] }
 0x106   : > { %1177 = vst [vmem:[%s3453_s7 + $0xf40] sm:$0xff] %v1176_v40  ;;  %v1180_v42 = vld [vmem:[%s3448_s6 + $0x1ea0] sm:$0xff]  ;;  %v1182_v43 = vld [vmem:[%s3448_s6 + $0x1ea8] sm:$0xff]  ;;  %1179 = vst [vmem:[%s3453_s7 + $0xf48] sm:$0xff] %v1178_v41 }
 0x107   : > { %1181 = vst [vmem:[%s3453_s7 + $0xf50] sm:$0xff] %v1180_v42  ;;  %1183 = vst [vmem:[%s3453_s7 + $0xf58] sm:$0xff] %v1182_v43  ;;  %v1184_v44 = vld [vmem:[%s3448_s6 + $0x1ec0] sm:$0xff]  ;;  %v1186_v45 = vld [vmem:[%s3448_s6 + $0x1ec8] sm:$0xff] }
 0x108   : > { %v1188_v46 = vld [vmem:[%s3448_s6 + $0x1ee0] sm:$0xff]  ;;  %1185 = vst [vmem:[%s3453_s7 + $0xf60] sm:$0xff] %v1184_v44  ;;  %1187 = vst [vmem:[%s3453_s7 + $0xf68] sm:$0xff] %v1186_v45  ;;  %v1190_v47 = vld [vmem:[%s3448_s6 + $0x1ee8] sm:$0xff] }
 0x109   : > { %1189 = vst [vmem:[%s3453_s7 + $0xf70] sm:$0xff] %v1188_v46  ;;  %v1192_v48 = vld [vmem:[%s3448_s6 + $0x1f00] sm:$0xff]  ;;  %v1194_v49 = vld [vmem:[%s3448_s6 + $0x1f08] sm:$0xff]  ;;  %1191 = vst [vmem:[%s3453_s7 + $0xf78] sm:$0xff] %v1190_v47 }
 0x10a   : > { %1193 = vst [vmem:[%s3453_s7 + $0xf80] sm:$0xff] %v1192_v48  ;;  %1195 = vst [vmem:[%s3453_s7 + $0xf88] sm:$0xff] %v1194_v49  ;;  %v1196_v50 = vld [vmem:[%s3448_s6 + $0x1f20] sm:$0xff]  ;;  %v1198_v51 = vld [vmem:[%s3448_s6 + $0x1f28] sm:$0xff] }
 0x10b   : > { %v1200_v52 = vld [vmem:[%s3448_s6 + $0x1f40] sm:$0xff]  ;;  %1197 = vst [vmem:[%s3453_s7 + $0xf90] sm:$0xff] %v1196_v50  ;;  %1199 = vst [vmem:[%s3453_s7 + $0xf98] sm:$0xff] %v1198_v51  ;;  %v1202_v53 = vld [vmem:[%s3448_s6 + $0x1f48] sm:$0xff] }
 0x10c   : > { %1201 = vst [vmem:[%s3453_s7 + $0xfa0] sm:$0xff] %v1200_v52  ;;  %v1204_v54 = vld [vmem:[%s3448_s6 + $0x1f60] sm:$0xff]  ;;  %v1206_v55 = vld [vmem:[%s3448_s6 + $0x1f68] sm:$0xff]  ;;  %1203 = vst [vmem:[%s3453_s7 + $0xfa8] sm:$0xff] %v1202_v53 }
 0x10d   : > { %1205 = vst [vmem:[%s3453_s7 + $0xfb0] sm:$0xff] %v1204_v54  ;;  %1207 = vst [vmem:[%s3453_s7 + $0xfb8] sm:$0xff] %v1206_v55  ;;  %v1208_v56 = vld [vmem:[%s3448_s6 + $0x1f80] sm:$0xff]  ;;  %v1210_v57 = vld [vmem:[%s3448_s6 + $0x1f88] sm:$0xff] }
 0x10e   : > { %v1212_v58 = vld [vmem:[%s3448_s6 + $0x1fa0] sm:$0xff]  ;;  %1209 = vst [vmem:[%s3453_s7 + $0xfc0] sm:$0xff] %v1208_v56  ;;  %1211 = vst [vmem:[%s3453_s7 + $0xfc8] sm:$0xff] %v1210_v57  ;;  %v1214_v59 = vld [vmem:[%s3448_s6 + $0x1fa8] sm:$0xff] }
 0x10f   : > { %1213 = vst [vmem:[%s3453_s7 + $0xfd0] sm:$0xff] %v1212_v58  ;;  %v1216_v60 = vld [vmem:[%s3448_s6 + $0x1fc0] sm:$0xff]  ;;  %v1218_v61 = vld [vmem:[%s3448_s6 + $0x1fc8] sm:$0xff]  ;;  %1215 = vst [vmem:[%s3453_s7 + $0xfd8] sm:$0xff] %v1214_v59 }
 0x110   : > { %1217 = vst [vmem:[%s3453_s7 + $0xfe0] sm:$0xff] %v1216_v60  ;;  %1219 = vst [vmem:[%s3453_s7 + $0xfe8] sm:$0xff] %v1218_v61  ;;  %v1220_v62 = vld [vmem:[%s3448_s6 + $0x1fe0] sm:$0xff]  ;;  %v1222_v63 = vld [vmem:[%s3448_s6 + $0x1fe8] sm:$0xff] }
 0x111   : > { %1221 = vst [vmem:[%s3453_s7 + $0xff0] sm:$0xff] %v1220_v62  ;;  %1223 = vst [vmem:[%s3453_s7 + $0xff8] sm:$0xff] %v1222_v63 }
 0x112 PF: > { %p2682_p5 = scmp.ge.s32.totalorder %s3378_s20, 1  ;;  %p1245_p6 = scmp.lt.s32.totalorder %s3378_s20, 3 }
 0x114   : > { %p1246_p7 = pnand %p2682_p5, %p1245_p6 }
 0x115   : > { %s1252_s8 = sand.u32 (!%p1246_p7), 1, %s3370_s18   ;;  %v1813_v0 = vlaneseq (!%p1246_p7)  ;;  %v3380_v1 = vmov (!%p1246_p7), 1983009808   ;;  %v4482_v3 = vld [vmem:[%s5169_s0] sm:$0xff] (!%p1246_p7)  ;;  %v4494_v9 = vld [vmem:[%s5169_s0 + $0x10] sm:$0xff] (!%p1246_p7)  ;;  %s2685_s20 = sshll.u32 (!%p1246_p7), %s3428_s21, 5 }
 0x116   : > { %1249 = sbr.rel (%p1246_p7) target bundleno = 1012 (0x3f4), region = 59  ;;  %s2683_s9 = sshll.u32 (!%p1246_p7), %s1252_s8, 12  ;;  %v1829_v2 = vunpack.c.l.s4 (!%p1246_p7), %v3380_v1 }
 0x117   : > { %v4484_v4 = vshrl.u32 (!%p1246_p7), %v1813_v0, 7  ;;  %s4486_s12 = scalar_lea.vmem (!%p1246_p7), [#allocation2], %s2683_s9  ;;  %p5049_p8 = scmp.lt.s32.totalorder (!%p1246_p7), %s2685_s20, 63 }
 0x118   : > { %v1300_v5 = vld [vmem:[%s4486_s12 + $0x8] sm:$0xff] (!%p1246_p7)  ;;  %v1302_v6 = vld [vmem:[%s4486_s12 + $0x18] sm:$0xff] (!%p1246_p7)  ;;  %v1830_v8 = vunpack.c.0.s8 (!%p1246_p7), %v1829_v2  ;;  %v1299_v12 = vld [vmem:[%s4486_s12] sm:$0xff] (!%p1246_p7)  ;;  %s2684_s29 = sshll.u32 (!%p1246_p7), %s3428_s21, 1  ;;  %p2687_p10 = scmp.ne.s32.totalorder (!%p1246_p7), %s3428_s21, 0 }
 0x119   : > { %v1556_v7 = vld [vmem:[%s4486_s12 + $0x808] sm:$0xff] (!%p1246_p7)  ;;  %v2730_v10 = vpack.c.bf16 (!%p1246_p7), %v1302_v6, %v1300_v5  ;;  %v1558_v11 = vld [vmem:[%s4486_s12 + $0x818] sm:$0xff] (!%p1246_p7)  ;;  %v1301_v13 = vld [vmem:[%s4486_s12 + $0x10] sm:$0xff] (!%p1246_p7)  ;;  %p1285_p9 = scmp.lt.s32.totalorder (!%p1246_p7), %s2684_s29, 3 }
 0x11a   : > { %v2986_v14 = vpack.c.bf16 (!%p1246_p7), %v1558_v11, %v1556_v7  ;;  %v2732_v15 = vpack.c.bf16 (!%p1246_p7), %v1301_v13, %v1299_v12  ;;  %v1555_v16 = vld [vmem:[%s4486_s12 + $0x800] sm:$0xff] (!%p1246_p7)  ;;  %v1557_v17 = vld [vmem:[%s4486_s12 + $0x810] sm:$0xff] (!%p1246_p7)  ;;  %v1304_v18 = vld [vmem:[%s4486_s12 + $0x28] sm:$0xff] (!%p1246_p7)  ;;  %v4503_v19 = vsub.s32 (!%p1246_p7), %v1830_v8, %v4484_v4 }
 0x11b   : > { %2731 = vmatprep.subr.bf16.mxu1 (!%p1246_p7), %v2730_v10  ;;  %v2988_v20 = vpack.c.bf16 (!%p1246_p7), %v1557_v17, %v1555_v16  ;;  %v1306_v21 = vld [vmem:[%s4486_s12 + $0x38] sm:$0xff] (!%p1246_p7)  ;;  %v1560_v22 = vld [vmem:[%s4486_s12 + $0x828] sm:$0xff] (!%p1246_p7)  ;;  %v1303_v26 = vld [vmem:[%s4486_s12 + $0x20] sm:$0xff] (!%p1246_p7) }
 0x11c   : > { %v1562_v23 = vld [vmem:[%s4486_s12 + $0x838] sm:$0xff] (!%p1246_p7)  ;;  %2987 = vmatprep.subr.bf16.mxu0 (!%p1246_p7), %v2986_v14  ;;  %2733 = vmatpush1.bf16.msra.mxu1 (!%p1246_p7), %v2732_v15  ;;  %v2734_v24 = vpack.c.bf16 (!%p1246_p7), %v1306_v21, %v1304_v18  ;;  %v1305_v27 = vld [vmem:[%s4486_s12 + $0x30] sm:$0xff] (!%p1246_p7)  ;;  %v1559_v28 = vld [vmem:[%s4486_s12 + $0x820] sm:$0xff] (!%p1246_p7)  ;;  %v4513_v29 = vrot.slane (!%p1246_p7), %v4482_v3, %v4503_v19  ;;  %v4520_v34 = vrot.slane (!%p1246_p7), %v4494_v9, %v4503_v19 }
 0x11d   : > { %v2990_v25 = vpack.c.bf16 %v1562_v23, %v1560_v22  ;;  %2989 = vmatpush1.bf16.msra.mxu0 %v2988_v20  ;;  %v2736_v30 = vpack.c.bf16 %v1305_v27, %v1303_v26  ;;  %v1561_v31 = vld [vmem:[%s4486_s12 + $0x830] sm:$0xff]  ;;  %v1308_v32 = vld [vmem:[%s4486_s12 + $0x48] sm:$0xff]  ;;  %v1310_v33 = vld [vmem:[%s4486_s12 + $0x58] sm:$0xff]  ;;  %s5180_s20 = smov (!%p5049_p8, %s2685_s20), 63  ;;  %s5182_s29 = smov (!%p1285_p9, %s2684_s29), 3 }
 0x11e   : > { %2735 = vmatprep.subr.bf16.mxu1 %v2734_v24  ;;  %v2992_v35 = vpack.c.bf16 %v1561_v31, %v1559_v28  ;;  %v2738_v36 = vpack.c.bf16 %v1310_v33, %v1308_v32  ;;  %v1564_v37 = vld [vmem:[%s4486_s12 + $0x848] sm:$0xff]  ;;  %v1566_v38 = vld [vmem:[%s4486_s12 + $0x858] sm:$0xff]  ;;  %v1307_v39 = vld [vmem:[%s4486_s12 + $0x40] sm:$0xff]  ;;  %v1842_v40 = vcombine.high %v4513_v29, %v4513_v29  ;;  %v1876_v45 = vcombine.high %v4520_v34, %v4520_v34  ;;  %s2686_s24 = sshll.u32 %s5180_s20, 3  ;;  %s1287_s7 = scalar_lea.vmem %s5171_s2, %s5182_s29 }
 0x11f   : > { %2991 = vmatprep.subr.bf16.mxu0 %v2990_v25  ;;  %v2994_v41 = vpack.c.bf16 %v1566_v38, %v1564_v37  ;;  %v1309_v42 = vld [vmem:[%s4486_s12 + $0x50] sm:$0xff]  ;;  %v1563_v43 = vld [vmem:[%s4486_s12 + $0x840] sm:$0xff]  ;;  %v1312_v47 = vld [vmem:[%s4486_s12 + $0x68] sm:$0xff]  ;;  %s5085_s28 = scalar_lea.vmem %s5172_s3, %s2686_s24 }
 0x120   : > { %v1565_v44 = vld [vmem:[%s4486_s12 + $0x850] sm:$0xff]  ;;  %2737 = vmatpush1.bf16.msra.mxu1 %v2736_v30  ;;  %v2740_v46 = vpack.c.bf16 %v1309_v42, %v1307_v39  ;;  %v1314_v48 = vld [vmem:[%s4486_s12 + $0x78] sm:$0xff]  ;;  %v1568_v49 = vld [vmem:[%s4486_s12 + $0x868] sm:$0xff]  ;;  %1975 = vmatprep.mubr.f32.mxu1 %v1842_v40 }
 0x121   : > { %2993 = vmatpush1.bf16.msra.mxu0 %v2992_v35  ;;  %2739 = vmatprep.subr.bf16.mxu1 %v2738_v36  ;;  %v2996_v50 = vpack.c.bf16 %v1565_v44, %v1563_v43  ;;  %v2742_v51 = vpack.c.bf16 %v1314_v48, %v1312_v47  ;;  %v1570_v52 = vld [vmem:[%s4486_s12 + $0x878] sm:$0xff]  ;;  %v1311_v53 = vld [vmem:[%s4486_s12 + $0x60] sm:$0xff]  ;;  %v1313_v54 = vld [vmem:[%s4486_s12 + $0x70] sm:$0xff] }
 0x122   : > { %2995 = vmatprep.subr.bf16.mxu0 %v2994_v41  ;;  %v2998_v55 = vpack.c.bf16 %v1570_v52, %v1568_v49  ;;  %v1567_v56 = vld [vmem:[%s4486_s12 + $0x860] sm:$0xff]  ;;  %v1569_v57 = vld [vmem:[%s4486_s12 + $0x870] sm:$0xff]  ;;  %v1316_v58 = vld [vmem:[%s4486_s12 + $0x88] sm:$0xff]  ;;  %2259 = vmatprep.mubr.f32.mxu0 %v1876_v45  ;;  %v2744_v62 = vpack.c.bf16 %v1313_v54, %v1311_v53 }
 0x123   : > { %v1318_v59 = vld [vmem:[%s4486_s12 + $0x98] sm:$0xff]  ;;  %v1572_v60 = vld [vmem:[%s4486_s12 + $0x888] sm:$0xff]  ;;  %v3000_v63 = vpack.c.bf16 %v1569_v57, %v1567_v56  ;;  %v1315_v1 = vld [vmem:[%s4486_s12 + $0x80] sm:$0xff] }
 0x124   : > { %v1574_v61 = vld [vmem:[%s4486_s12 + $0x898] sm:$0xff]  ;;  %2741 = vmatpush1.bf16.msra.mxu1 %v2740_v46  ;;  %v2746_v0 = vpack.c.bf16 %v1318_v59, %v1316_v58  ;;  %v1317_v2 = vld [vmem:[%s4486_s12 + $0x90] sm:$0xff]  ;;  %v1571_v5 = vld [vmem:[%s4486_s12 + $0x880] sm:$0xff] }
 0x125   : > { %2997 = vmatpush1.bf16.msra.mxu0 %v2996_v50  ;;  %2743 = vmatprep.subr.bf16.mxu1 %v2742_v51  ;;  %v3002_v6 = vpack.c.bf16 %v1574_v61, %v1572_v60  ;;  %v1573_v7 = vld [vmem:[%s4486_s12 + $0x890] sm:$0xff]  ;;  %v1320_v8 = vld [vmem:[%s4486_s12 + $0xa8] sm:$0xff]  ;;  %v1322_v10 = vld [vmem:[%s4486_s12 + $0xb8] sm:$0xff]  ;;  %v2748_v13 = vpack.c.bf16 %v1317_v2, %v1315_v1 }
 0x126   : > { %2999 = vmatprep.subr.bf16.mxu0 %v2998_v55  ;;  %v1576_v11 = vld [vmem:[%s4486_s12 + $0x8a8] sm:$0xff]  ;;  %v1578_v12 = vld [vmem:[%s4486_s12 + $0x8b8] sm:$0xff]  ;;  %v3004_v14 = vpack.c.bf16 %v1573_v7, %v1571_v5  ;;  %v2750_v15 = vpack.c.bf16 %v1322_v10, %v1320_v8  ;;  %v1319_v16 = vld [vmem:[%s4486_s12 + $0xa0] sm:$0xff] }
 0x127   : > { %v1321_v17 = vld [vmem:[%s4486_s12 + $0xb0] sm:$0xff]  ;;  %v1575_v18 = vld [vmem:[%s4486_s12 + $0x8a0] sm:$0xff]  ;;  %v3006_v20 = vpack.c.bf16 %v1578_v12, %v1576_v11  ;;  %v1324_v22 = vld [vmem:[%s4486_s12 + $0xc8] sm:$0xff] }
 0x128   : > { %2745 = vmatpush1.bf16.msra.mxu1 %v2744_v62  ;;  %v1577_v21 = vld [vmem:[%s4486_s12 + $0x8b0] sm:$0xff]  ;;  %v1326_v23 = vld [vmem:[%s4486_s12 + $0xd8] sm:$0xff]  ;;  %v1580_v24 = vld [vmem:[%s4486_s12 + $0x8c8] sm:$0xff]  ;;  %v2752_v26 = vpack.c.bf16 %v1321_v17, %v1319_v16 }
 0x129   : > { %3001 = vmatpush1.bf16.msra.mxu0 %v3000_v63  ;;  %2747 = vmatprep.subr.bf16.mxu1 %v2746_v0  ;;  %v1582_v25 = vld [vmem:[%s4486_s12 + $0x8d8] sm:$0xff]  ;;  %v3008_v27 = vpack.c.bf16 %v1577_v21, %v1575_v18  ;;  %v2754_v28 = vpack.c.bf16 %v1326_v23, %v1324_v22  ;;  %v1323_v30 = vld [vmem:[%s4486_s12 + $0xc0] sm:$0xff]  ;;  %v1325_v31 = vld [vmem:[%s4486_s12 + $0xd0] sm:$0xff] }
 0x12a   : > { %3003 = vmatprep.subr.bf16.mxu0 %v3002_v6  ;;  %v1579_v32 = vld [vmem:[%s4486_s12 + $0x8c0] sm:$0xff]  ;;  %v3010_v33 = vpack.c.bf16 %v1582_v25, %v1580_v24  ;;  %v1581_v35 = vld [vmem:[%s4486_s12 + $0x8d0] sm:$0xff]  ;;  %v1328_v36 = vld [vmem:[%s4486_s12 + $0xe8] sm:$0xff]  ;;  %v2756_v40 = vpack.c.bf16 %v1325_v31, %v1323_v30 }
 0x12b   : > { %v1330_v37 = vld [vmem:[%s4486_s12 + $0xf8] sm:$0xff]  ;;  %v1584_v38 = vld [vmem:[%s4486_s12 + $0x8e8] sm:$0xff]  ;;  %v3012_v41 = vpack.c.bf16 %v1581_v35, %v1579_v32  ;;  %v1327_v43 = vld [vmem:[%s4486_s12 + $0xe0] sm:$0xff] }
 0x12c   : > { %2749 = vmatpush1.bf16.msra.mxu1 %v2748_v13  ;;  %v1586_v39 = vld [vmem:[%s4486_s12 + $0x8f8] sm:$0xff]  ;;  %v2758_v42 = vpack.c.bf16 %v1330_v37, %v1328_v36  ;;  %v1329_v44 = vld [vmem:[%s4486_s12 + $0xf0] sm:$0xff]  ;;  %v1583_v45 = vld [vmem:[%s4486_s12 + $0x8e0] sm:$0xff] }
 0x12d   : > { %3005 = vmatpush1.bf16.msra.mxu0 %v3004_v14  ;;  %2751 = vmatprep.subr.bf16.mxu1 %v2750_v15  ;;  %v3014_v46 = vpack.c.bf16 %v1586_v39, %v1584_v38  ;;  %v1585_v47 = vld [vmem:[%s4486_s12 + $0x8f0] sm:$0xff]  ;;  %v1332_v48 = vld [vmem:[%s4486_s12 + $0x108] sm:$0xff]  ;;  %v1334_v49 = vld [vmem:[%s4486_s12 + $0x118] sm:$0xff]  ;;  %v2760_v52 = vpack.c.bf16 %v1329_v44, %v1327_v43 }
 0x12e   : > { %3007 = vmatprep.subr.bf16.mxu0 %v3006_v20  ;;  %v1588_v50 = vld [vmem:[%s4486_s12 + $0x908] sm:$0xff]  ;;  %v1590_v51 = vld [vmem:[%s4486_s12 + $0x918] sm:$0xff]  ;;  %v3016_v53 = vpack.c.bf16 %v1585_v47, %v1583_v45  ;;  %v2762_v54 = vpack.c.bf16 %v1334_v49, %v1332_v48  ;;  %v1331_v55 = vld [vmem:[%s4486_s12 + $0x100] sm:$0xff] }
 0x12f   : > { %v1333_v56 = vld [vmem:[%s4486_s12 + $0x110] sm:$0xff]  ;;  %v1587_v57 = vld [vmem:[%s4486_s12 + $0x900] sm:$0xff]  ;;  %v3018_v58 = vpack.c.bf16 %v1590_v51, %v1588_v50  ;;  %v1336_v60 = vld [vmem:[%s4486_s12 + $0x128] sm:$0xff] }
 0x130   : > { %2753 = vmatpush1.bf16.msra.mxu1 %v2752_v26  ;;  %v1589_v59 = vld [vmem:[%s4486_s12 + $0x910] sm:$0xff]  ;;  %v1338_v61 = vld [vmem:[%s4486_s12 + $0x138] sm:$0xff]  ;;  %v1592_v62 = vld [vmem:[%s4486_s12 + $0x928] sm:$0xff]  ;;  %v2764_v0 = vpack.c.bf16 %v1333_v56, %v1331_v55 }
 0x131   : > { %3009 = vmatpush1.bf16.msra.mxu0 %v3008_v27  ;;  %2755 = vmatprep.subr.bf16.mxu1 %v2754_v28  ;;  %v1594_v63 = vld [vmem:[%s4486_s12 + $0x938] sm:$0xff]  ;;  %v3020_v1 = vpack.c.bf16 %v1589_v59, %v1587_v57  ;;  %v2766_v2 = vpack.c.bf16 %v1338_v61, %v1336_v60  ;;  %v1335_v5 = vld [vmem:[%s4486_s12 + $0x120] sm:$0xff]  ;;  %v1337_v6 = vld [vmem:[%s4486_s12 + $0x130] sm:$0xff] }
 0x132   : > { %3011 = vmatprep.subr.bf16.mxu0 %v3010_v33  ;;  %v1591_v7 = vld [vmem:[%s4486_s12 + $0x920] sm:$0xff]  ;;  %v3022_v8 = vpack.c.bf16 %v1594_v63, %v1592_v62  ;;  %v1593_v10 = vld [vmem:[%s4486_s12 + $0x930] sm:$0xff]  ;;  %v1340_v11 = vld [vmem:[%s4486_s12 + $0x148] sm:$0xff]  ;;  %v2768_v15 = vpack.c.bf16 %v1337_v6, %v1335_v5 }
 0x133   : > { %v1342_v12 = vld [vmem:[%s4486_s12 + $0x158] sm:$0xff]  ;;  %v1596_v13 = vld [vmem:[%s4486_s12 + $0x948] sm:$0xff]  ;;  %v3024_v16 = vpack.c.bf16 %v1593_v10, %v1591_v7  ;;  %v1339_v18 = vld [vmem:[%s4486_s12 + $0x140] sm:$0xff] }
 0x134   : > { %2757 = vmatpush1.bf16.msra.mxu1 %v2756_v40  ;;  %v1598_v14 = vld [vmem:[%s4486_s12 + $0x958] sm:$0xff]  ;;  %v2770_v17 = vpack.c.bf16 %v1342_v12, %v1340_v11  ;;  %v1341_v20 = vld [vmem:[%s4486_s12 + $0x150] sm:$0xff]  ;;  %v1595_v21 = vld [vmem:[%s4486_s12 + $0x940] sm:$0xff] }
 0x135   : > { %3013 = vmatpush1.bf16.msra.mxu0 %v3012_v41  ;;  %2759 = vmatprep.subr.bf16.mxu1 %v2758_v42  ;;  %v3026_v22 = vpack.c.bf16 %v1598_v14, %v1596_v13  ;;  %v1597_v23 = vld [vmem:[%s4486_s12 + $0x950] sm:$0xff]  ;;  %v1344_v24 = vld [vmem:[%s4486_s12 + $0x168] sm:$0xff]  ;;  %v1346_v25 = vld [vmem:[%s4486_s12 + $0x178] sm:$0xff]  ;;  %v2772_v28 = vpack.c.bf16 %v1341_v20, %v1339_v18 }
 0x136   : > { %3015 = vmatprep.subr.bf16.mxu0 %v3014_v46  ;;  %v1600_v26 = vld [vmem:[%s4486_s12 + $0x968] sm:$0xff]  ;;  %v1602_v27 = vld [vmem:[%s4486_s12 + $0x978] sm:$0xff]  ;;  %v3028_v30 = vpack.c.bf16 %v1597_v23, %v1595_v21  ;;  %v2774_v31 = vpack.c.bf16 %v1346_v25, %v1344_v24  ;;  %v1343_v32 = vld [vmem:[%s4486_s12 + $0x160] sm:$0xff] }
 0x137   : > { %v1345_v33 = vld [vmem:[%s4486_s12 + $0x170] sm:$0xff]  ;;  %v1599_v35 = vld [vmem:[%s4486_s12 + $0x960] sm:$0xff]  ;;  %v3030_v36 = vpack.c.bf16 %v1602_v27, %v1600_v26  ;;  %v1348_v38 = vld [vmem:[%s4486_s12 + $0x188] sm:$0xff]  ;;  %v1827_v26 = vcombine.high %v4482_v3, %v4482_v3 }
 0x138   : > { %2761 = vmatpush1.bf16.msra.mxu1 %v2760_v52  ;;  %v1601_v37 = vld [vmem:[%s4486_s12 + $0x970] sm:$0xff]  ;;  %v1350_v39 = vld [vmem:[%s4486_s12 + $0x198] sm:$0xff]  ;;  %v1604_v40 = vld [vmem:[%s4486_s12 + $0x988] sm:$0xff]  ;;  %v2776_v42 = vpack.c.bf16 %v1345_v33, %v1343_v32 }
 0x139   : > { %3017 = vmatpush1.bf16.msra.mxu0 %v3016_v53  ;;  %2763 = vmatprep.subr.bf16.mxu1 %v2762_v54  ;;  %v1606_v41 = vld [vmem:[%s4486_s12 + $0x998] sm:$0xff]  ;;  %v3032_v43 = vpack.c.bf16 %v1601_v37, %v1599_v35  ;;  %v2778_v44 = vpack.c.bf16 %v1350_v39, %v1348_v38  ;;  %v1347_v45 = vld [vmem:[%s4486_s12 + $0x180] sm:$0xff]  ;;  %v1349_v46 = vld [vmem:[%s4486_s12 + $0x190] sm:$0xff] }
 0x13a   : > { %3019 = vmatprep.subr.bf16.mxu0 %v3018_v58  ;;  %v1603_v47 = vld [vmem:[%s4486_s12 + $0x980] sm:$0xff]  ;;  %v3034_v48 = vpack.c.bf16 %v1606_v41, %v1604_v40  ;;  %v1605_v49 = vld [vmem:[%s4486_s12 + $0x990] sm:$0xff]  ;;  %v1352_v50 = vld [vmem:[%s4486_s12 + $0x1a8] sm:$0xff]  ;;  %v2780_v54 = vpack.c.bf16 %v1349_v46, %v1347_v45 }
 0x13b   : > { %v1354_v51 = vld [vmem:[%s4486_s12 + $0x1b8] sm:$0xff]  ;;  %v1608_v52 = vld [vmem:[%s4486_s12 + $0x9a8] sm:$0xff]  ;;  %v3036_v55 = vpack.c.bf16 %v1605_v49, %v1603_v47  ;;  %v1351_v57 = vld [vmem:[%s4486_s12 + $0x1a0] sm:$0xff] }
 0x13c   : > { %2765 = vmatpush1.bf16.msra.mxu1 %v2764_v0  ;;  %v1610_v53 = vld [vmem:[%s4486_s12 + $0x9b8] sm:$0xff]  ;;  %v2782_v56 = vpack.c.bf16 %v1354_v51, %v1352_v50  ;;  %v1353_v58 = vld [vmem:[%s4486_s12 + $0x1b0] sm:$0xff]  ;;  %v1607_v59 = vld [vmem:[%s4486_s12 + $0x9a0] sm:$0xff] }
 0x13d   : > { %3021 = vmatpush1.bf16.msra.mxu0 %v3020_v1  ;;  %2767 = vmatprep.subr.bf16.mxu1 %v2766_v2  ;;  %v3038_v60 = vpack.c.bf16 %v1610_v53, %v1608_v52  ;;  %v1609_v61 = vld [vmem:[%s4486_s12 + $0x9b0] sm:$0xff]  ;;  %v1356_v62 = vld [vmem:[%s4486_s12 + $0x1c8] sm:$0xff]  ;;  %v1358_v63 = vld [vmem:[%s4486_s12 + $0x1d8] sm:$0xff]  ;;  %v2784_v2 = vpack.c.bf16 %v1353_v58, %v1351_v57 }
 0x13e   : > { %3023 = vmatprep.subr.bf16.mxu0 %v3022_v8  ;;  %v1612_v0 = vld [vmem:[%s4486_s12 + $0x9c8] sm:$0xff]  ;;  %v1614_v1 = vld [vmem:[%s4486_s12 + $0x9d8] sm:$0xff]  ;;  %v3040_v5 = vpack.c.bf16 %v1609_v61, %v1607_v59  ;;  %v2786_v6 = vpack.c.bf16 %v1358_v63, %v1356_v62  ;;  %v1355_v7 = vld [vmem:[%s4486_s12 + $0x1c0] sm:$0xff] }
 0x13f   : > { %v1357_v8 = vld [vmem:[%s4486_s12 + $0x1d0] sm:$0xff]  ;;  %v1611_v10 = vld [vmem:[%s4486_s12 + $0x9c0] sm:$0xff]  ;;  %v3042_v11 = vpack.c.bf16 %v1614_v1, %v1612_v0  ;;  %v1360_v13 = vld [vmem:[%s4486_s12 + $0x1e8] sm:$0xff] }
 0x140   : > { %2769 = vmatpush1.bf16.msra.mxu1 %v2768_v15  ;;  %v1613_v12 = vld [vmem:[%s4486_s12 + $0x9d0] sm:$0xff]  ;;  %v1362_v14 = vld [vmem:[%s4486_s12 + $0x1f8] sm:$0xff]  ;;  %v1616_v15 = vld [vmem:[%s4486_s12 + $0x9e8] sm:$0xff] }
 0x141   : > { %3025 = vmatpush1.bf16.msra.mxu0 %v3024_v16  ;;  %2771 = vmatprep.subr.bf16.mxu1 %v2770_v17  ;;  %v1618_v16 = vld [vmem:[%s4486_s12 + $0x9f8] sm:$0xff]  ;;  %v2788_v17 = vpack.c.bf16 %v1357_v8, %v1355_v7  ;;  %v3044_v18 = vpack.c.bf16 %v1613_v12, %v1611_v10  ;;  %v2790_v20 = vpack.c.bf16 %v1362_v14, %v1360_v13  ;;  %v1359_v21 = vld [vmem:[%s4486_s12 + $0x1e0] sm:$0xff]  ;;  %v1617_v25 = vld [vmem:[%s4486_s12 + $0x9f0] sm:$0xff] }
 0x142   : > { %3027 = vmatprep.subr.bf16.mxu0 %v3026_v22  ;;  %v1361_v22 = vld [vmem:[%s4486_s12 + $0x1f0] sm:$0xff]  ;;  %v1615_v23 = vld [vmem:[%s4486_s12 + $0x9e0] sm:$0xff]  ;;  %v3046_v24 = vpack.c.bf16 %v1618_v16, %v1616_v15  ;;  %v1364_v27 = vld [vmem:[%s4486_s12 + $0x208] sm:$0xff] }
 0x143   : > { %v1622_v32 = vld [vmem:[%s4486_s12 + $0xa18] sm:$0xff]  ;;  %v2792_v33 = vpack.c.bf16 %v1361_v22, %v1359_v21  ;;  %v3048_v35 = vpack.c.bf16 %v1617_v25, %v1615_v23  ;;  %v1363_v37 = vld [vmem:[%s4486_s12 + $0x200] sm:$0xff]  ;;  %v1365_v3 = vld [vmem:[%s4486_s12 + $0x210] sm:$0xff] }
 0x144   : > { %2773 = vmatpush1.bf16.msra.mxu1 %v2772_v28  ;;  %v1366_v28 = vld [vmem:[%s4486_s12 + $0x218] sm:$0xff]  ;;  %v1619_v38 = vld [vmem:[%s4486_s12 + $0xa00] sm:$0xff]  ;;  %v1368_v40 = vld [vmem:[%s4486_s12 + $0x228] sm:$0xff]  ;;  %v2796_v46 = vpack.c.bf16 %v1365_v3, %v1363_v37 }
 0x145   : > { %3029 = vmatpush1.bf16.msra.mxu0 %v3028_v30  ;;  %2775 = vmatprep.subr.bf16.mxu1 %v2774_v31  ;;  %v1861_v30 = vcombine.high %v4494_v9, %v4494_v9  ;;  %v1620_v31 = vld [vmem:[%s4486_s12 + $0xa08] sm:$0xff]  ;;  %v1621_v9 = vld [vmem:[%s4486_s12 + $0xa10] sm:$0xff]  ;;  %v1370_v41 = vld [vmem:[%s4486_s12 + $0x238] sm:$0xff] }
 0x146   : > { %3031 = vmatprep.subr.bf16.mxu0 %v3030_v36  ;;  %v2794_v36 = vpack.c.bf16 %v1366_v28, %v1364_v27  ;;  %v3050_v39 = vpack.c.bf16 %v1622_v32, %v1620_v31  ;;  %v3052_v47 = vpack.c.bf16 %v1621_v9, %v1619_v38  ;;  %v1367_v49 = vld [vmem:[%s4486_s12 + $0x220] sm:$0xff]  ;;  %v1369_v50 = vld [vmem:[%s4486_s12 + $0x230] sm:$0xff]  ;;  %v1628_v57 = vld [vmem:[%s4486_s12 + $0xa48] sm:$0xff] }
 0x147   : > { %v4656_v45 = vrot.slane %v1861_v30, %v4503_v19  ;;  %v1623_v51 = vld [vmem:[%s4486_s12 + $0xa20] sm:$0xff]  ;;  %v1625_v53 = vld [vmem:[%s4486_s12 + $0xa30] sm:$0xff]  ;;  %v1630_v58 = vld [vmem:[%s4486_s12 + $0xa58] sm:$0xff] }
 0x148   : > { %2777 = vmatpush1.bf16.msra.mxu1 %v2776_v42  ;;  %v4651_v42 = vrot.slane %v1827_v26, %v4503_v19  ;;  %v3056_v61 = vpack.c.bf16 %v1625_v53, %v1623_v51  ;;  %v1371_v63 = vld [vmem:[%s4486_s12 + $0x240] sm:$0xff]  ;;  %v3058_v1 = vpack.c.bf16 %v1630_v58, %v1628_v57  ;;  %v1634_v7 = vld [vmem:[%s4486_s12 + $0xa78] sm:$0xff]  ;;  %v1377_v13 = vld [vmem:[%s4486_s12 + $0x270] sm:$0xff] }
 0x149   : > { %3033 = vmatpush1.bf16.msra.mxu0 %v3032_v43  ;;  %2779 = vmatprep.subr.bf16.mxu1 %v2778_v44  ;;  %v1624_v43 = vld [vmem:[%s4486_s12 + $0xa28] sm:$0xff]  ;;  %v1626_v44 = vld [vmem:[%s4486_s12 + $0xa38] sm:$0xff]  ;;  %v1877_v59 = vcombine.high %v4656_v45, %v4656_v45  ;;  %v1627_v0 = vld [vmem:[%s4486_s12 + $0xa40] sm:$0xff] }
 0x14a   : > { %3035 = vmatprep.subr.bf16.mxu0 %v3034_v48  ;;  %v2798_v48 = vpack.c.bf16 %v1370_v41, %v1368_v40  ;;  %v3054_v52 = vpack.c.bf16 %v1626_v44, %v1624_v43  ;;  %v1375_v12 = vld [vmem:[%s4486_s12 + $0x260] sm:$0xff]  ;;  %v1633_v16 = vld [vmem:[%s4486_s12 + $0xa70] sm:$0xff]  ;;  %v1638_v21 = vld [vmem:[%s4486_s12 + $0xa98] sm:$0xff] }
 0x14b   : > { %v1631_v14 = vld [vmem:[%s4486_s12 + $0xa60] sm:$0xff]  ;;  %v2808_v22 = vpack.c.bf16 %v1377_v13, %v1375_v12  ;;  %v1381_v26 = vld [vmem:[%s4486_s12 + $0x290] sm:$0xff]  ;;  %v1384_v31 = vld [vmem:[%s4486_s12 + $0x2a8] sm:$0xff] }
 0x14c   : > { %2781 = vmatpush1.bf16.msra.mxu1 %v2780_v54  ;;  %v1372_v54 = vld [vmem:[%s4486_s12 + $0x248] sm:$0xff]  ;;  %v3064_v23 = vpack.c.bf16 %v1633_v16, %v1631_v14  ;;  %v1379_v25 = vld [vmem:[%s4486_s12 + $0x280] sm:$0xff]  ;;  %v1637_v30 = vld [vmem:[%s4486_s12 + $0xa90] sm:$0xff] }
 0x14d   : > { %3037 = vmatpush1.bf16.msra.mxu0 %v3036_v55  ;;  %2783 = vmatprep.subr.bf16.mxu1 %v2782_v56  ;;  %v1374_v55 = vld [vmem:[%s4486_s12 + $0x258] sm:$0xff]  ;;  %v1843_v56 = vcombine.high %v4651_v42, %v4651_v42  ;;  %v1635_v27 = vld [vmem:[%s4486_s12 + $0xa80] sm:$0xff]  ;;  %v1641_v41 = vld [vmem:[%s4486_s12 + $0xab0] sm:$0xff] }
 0x14e   : > { %3039 = vmatprep.subr.bf16.mxu0 %v3038_v60  ;;  %v2800_v60 = vpack.c.bf16 %v1369_v50, %v1367_v49  ;;  %v2802_v62 = vpack.c.bf16 %v1374_v55, %v1372_v54  ;;  %v1386_v32 = vld [vmem:[%s4486_s12 + $0x2b8] sm:$0xff]  ;;  %v3068_v37 = vpack.c.bf16 %v1637_v30, %v1635_v27  ;;  %v1383_v38 = vld [vmem:[%s4486_s12 + $0x2a0] sm:$0xff]  ;;  %v1388_v43 = vld [vmem:[%s4486_s12 + $0x2c8] sm:$0xff] }
 0x14f   : > { %v2814_v3 = vpack.c.bf16 %v1386_v32, %v1384_v31  ;;  %v1639_v9 = vld [vmem:[%s4486_s12 + $0xaa0] sm:$0xff]  ;;  %v1390_v44 = vld [vmem:[%s4486_s12 + $0x2d8] sm:$0xff]  ;;  %v1645_v55 = vld [vmem:[%s4486_s12 + $0xad0] sm:$0xff] }
 0x150   : > { %2785 = vmatpush1.bf16.msra.mxu1 %v2784_v2  ;;  %v1629_v2 = vld [vmem:[%s4486_s12 + $0xa50] sm:$0xff]  ;;  %v3072_v49 = vpack.c.bf16 %v1641_v41, %v1639_v9  ;;  %v2818_v50 = vpack.c.bf16 %v1390_v44, %v1388_v43  ;;  %v1387_v51 = vld [vmem:[%s4486_s12 + $0x2c0] sm:$0xff]  ;;  %v1394_v57 = vld [vmem:[%s4486_s12 + $0x2f8] sm:$0xff] }
 0x151   : > { %3041 = vmatpush1.bf16.msra.mxu0 %v3040_v5  ;;  %2787 = vmatprep.subr.bf16.mxu1 %v2786_v6  ;;  %v1376_v5 = vld [vmem:[%s4486_s12 + $0x268] sm:$0xff]  ;;  %v1378_v6 = vld [vmem:[%s4486_s12 + $0x278] sm:$0xff]  ;;  %v3060_v10 = vpack.c.bf16 %v1629_v2, %v1627_v0  ;;  %v1643_v53 = vld [vmem:[%s4486_s12 + $0xac0] sm:$0xff] }
 0x152   : > { %3043 = vmatprep.subr.bf16.mxu0 %v3042_v11  ;;  %v2806_v11 = vpack.c.bf16 %v1378_v6, %v1376_v5  ;;  %v1648_v58 = vld [vmem:[%s4486_s12 + $0xae8] sm:$0xff]  ;;  %v1647_v0 = vld [vmem:[%s4486_s12 + $0xae0] sm:$0xff]  ;;  %v1649_v2 = vld [vmem:[%s4486_s12 + $0xaf0] sm:$0xff] }
 0x153   : > { %v1396_v5 = vld [vmem:[%s4486_s12 + $0x308] sm:$0xff]  ;;  %v1398_v6 = vld [vmem:[%s4486_s12 + $0x318] sm:$0xff]  ;;  %v1395_v12 = vld [vmem:[%s4486_s12 + $0x300] sm:$0xff] }
 0x154   : > { %2789 = vmatpush1.bf16.msra.mxu1 %v2788_v17  ;;  %v1380_v17 = vld [vmem:[%s4486_s12 + $0x288] sm:$0xff]  ;;  %v1397_v13 = vld [vmem:[%s4486_s12 + $0x310] sm:$0xff]  ;;  %v1651_v14 = vld [vmem:[%s4486_s12 + $0xb00] sm:$0xff] }
 0x155   : > { %3045 = vmatpush1.bf16.msra.mxu0 %v3044_v18  ;;  %2791 = vmatprep.subr.bf16.mxu1 %v2790_v20  ;;  %v1382_v18 = vld [vmem:[%s4486_s12 + $0x298] sm:$0xff]  ;;  %v1636_v20 = vld [vmem:[%s4486_s12 + $0xa88] sm:$0xff]  ;;  %v1653_v16 = vld [vmem:[%s4486_s12 + $0xb10] sm:$0xff] }
 0x156   : > { %3047 = vmatprep.subr.bf16.mxu0 %v3046_v24  ;;  %v2810_v24 = vpack.c.bf16 %v1382_v18, %v1380_v17  ;;  %v3066_v28 = vpack.c.bf16 %v1638_v21, %v1636_v20  ;;  %v1400_v17 = vld [vmem:[%s4486_s12 + $0x328] sm:$0xff]  ;;  %v1402_v18 = vld [vmem:[%s4486_s12 + $0x338] sm:$0xff]  ;;  %v1655_v27 = vld [vmem:[%s4486_s12 + $0xb20] sm:$0xff] }
 0x157   : > { %v1656_v20 = vld [vmem:[%s4486_s12 + $0xb28] sm:$0xff]  ;;  %v1658_v21 = vld [vmem:[%s4486_s12 + $0xb38] sm:$0xff]  ;;  %v1657_v30 = vld [vmem:[%s4486_s12 + $0xb30] sm:$0xff] }
 0x158   : > { %2793 = vmatpush1.bf16.msra.mxu1 %v2792_v33  ;;  %v1640_v33 = vld [vmem:[%s4486_s12 + $0xaa8] sm:$0xff]  ;;  %v1406_v32 = vld [vmem:[%s4486_s12 + $0x358] sm:$0xff]  ;;  %v1659_v9 = vld [vmem:[%s4486_s12 + $0xb40] sm:$0xff] }
 0x159   : > { %3049 = vmatpush1.bf16.msra.mxu0 %v3048_v35  ;;  %2795 = vmatprep.subr.bf16.mxu1 %v2794_v36  ;;  %v1642_v35 = vld [vmem:[%s4486_s12 + $0xab8] sm:$0xff]  ;;  %v2812_v36 = vpack.c.bf16 %v1381_v26, %v1379_v25  ;;  %v1399_v25 = vld [vmem:[%s4486_s12 + $0x320] sm:$0xff]  ;;  %v1401_v26 = vld [vmem:[%s4486_s12 + $0x330] sm:$0xff] }
 0x15a   : > { %3051 = vmatprep.subr.bf16.mxu0 %v3050_v39  ;;  %v1385_v39 = vld [vmem:[%s4486_s12 + $0x2b0] sm:$0xff]  ;;  %v3070_v40 = vpack.c.bf16 %v1642_v35, %v1640_v33  ;;  %v1404_v31 = vld [vmem:[%s4486_s12 + $0x348] sm:$0xff]  ;;  %v1662_v35 = vld [vmem:[%s4486_s12 + $0xb58] sm:$0xff] }
 0x15b   : > { %1976 = vmatmul.mubr.f32.vlgmr.msra.gmra.mrb[0].mxu1 %v4513_v29  ;;  %v1373_v29 = vld [vmem:[%s4486_s12 + $0x250] sm:$0xff]  ;;  %v1660_v33 = vld [vmem:[%s4486_s12 + $0xb48] sm:$0xff]  ;;  %v1410_v44 = vld [vmem:[%s4486_s12 + $0x378] sm:$0xff] }
 0x15c   : > { %2797 = vmatpush1.bf16.msra.mxu1 %v2796_v46  ;;  %2260 = vmatmul.mubr.f32.vlgmr.msra.gmra.mrb[0].mxu0 %v4520_v34  ;;  %v1632_v34 = vld [vmem:[%s4486_s12 + $0xa68] sm:$0xff]  ;;  %v2804_v8 = vpack.c.bf16 %v1373_v29, %v1371_v63  ;;  %v1391_v63 = vld [vmem:[%s4486_s12 + $0x2e0] sm:$0xff]  ;;  %v1393_v29 = vld [vmem:[%s4486_s12 + $0x2f0] sm:$0xff] }
 0x15d   : > { %3053 = vmatpush1.bf16.msra.mxu0 %v3052_v47  ;;  %2799 = vmatprep.subr.bf16.mxu1 %v2798_v48  ;;  %v3062_v15 = vpack.c.bf16 %v1634_v7, %v1632_v34  ;;  %v1644_v46 = vld [vmem:[%s4486_s12 + $0xac8] sm:$0xff]  ;;  %v1646_v47 = vld [vmem:[%s4486_s12 + $0xad8] sm:$0xff]  ;;  %v2816_v48 = vpack.c.bf16 %v1385_v39, %v1383_v38  ;;  %v1403_v38 = vld [vmem:[%s4486_s12 + $0x340] sm:$0xff] }
 0x15e   : > { %3055 = vmatprep.subr.bf16.mxu0 %v3054_v52  ;;  %2046 = vmatprep.mubr.f32.mxu1 %v1843_v56  ;;  %v1389_v52 = vld [vmem:[%s4486_s12 + $0x2d0] sm:$0xff]  ;;  %v3074_v54 = vpack.c.bf16 %v1646_v47, %v1644_v46  ;;  %v1392_v56 = vld [vmem:[%s4486_s12 + $0x2e8] sm:$0xff]  ;;  %v1654_v7 = vld [vmem:[%s4486_s12 + $0xb18] sm:$0xff] }
 0x15f   : > { %2330 = vmatprep.mubr.f32.mxu0 %v1877_v59  ;;  %v1650_v59 = vld [vmem:[%s4486_s12 + $0xaf8] sm:$0xff]  ;;  %v1652_v34 = vld [vmem:[%s4486_s12 + $0xb08] sm:$0xff]  ;;  %v1405_v39 = vld [vmem:[%s4486_s12 + $0x350] sm:$0xff] }
 0x160   : > { %2801 = vmatpush1.bf16.msra.mxu1 %v2800_v60  ;;  %v2820_v60 = vpack.c.bf16 %v1389_v52, %v1387_v51  ;;  %v1661_v41 = vld [vmem:[%s4486_s12 + $0xb50] sm:$0xff]  ;;  %v1408_v43 = vld [vmem:[%s4486_s12 + $0x368] sm:$0xff]  ;;  %v1666_v47 = vld [vmem:[%s4486_s12 + $0xb78] sm:$0xff] }
 0x161   : > { %3057 = vmatpush1.bf16.msra.mxu0 %v3056_v61  ;;  %2803 = vmatprep.subr.bf16.mxu1 %v2802_v62  ;;  %v3076_v61 = vpack.c.bf16 %v1645_v55, %v1643_v53  ;;  %v2822_v62 = vpack.c.bf16 %v1394_v57, %v1392_v56  ;;  %v1664_v46 = vld [vmem:[%s4486_s12 + $0xb68] sm:$0xff]  ;;  %v1407_v51 = vld [vmem:[%s4486_s12 + $0x360] sm:$0xff]  ;;  %v1409_v52 = vld [vmem:[%s4486_s12 + $0x370] sm:$0xff] }
 0x162   : > { %3059 = vmatprep.subr.bf16.mxu0 %v3058_v1  ;;  %v3078_v1 = vpack.c.bf16 %v1650_v59, %v1648_v58  ;;  %v1663_v53 = vld [vmem:[%s4486_s12 + $0xb60] sm:$0xff]  ;;  %v1665_v55 = vld [vmem:[%s4486_s12 + $0xb70] sm:$0xff]  ;;  %v1412_v56 = vld [vmem:[%s4486_s12 + $0x388] sm:$0xff] }
 0x163   : > { %v1414_v57 = vld [vmem:[%s4486_s12 + $0x398] sm:$0xff]  ;;  %v1668_v58 = vld [vmem:[%s4486_s12 + $0xb88] sm:$0xff] }
 0x164   : > { %2805 = vmatpush1.bf16.msra.mxu1 %v2804_v8  ;;  %v2824_v8 = vpack.c.bf16 %v1393_v29, %v1391_v63  ;;  %v1670_v59 = vld [vmem:[%s4486_s12 + $0xb98] sm:$0xff]  ;;  %v1411_v63 = vld [vmem:[%s4486_s12 + $0x380] sm:$0xff]  ;;  %v1413_v29 = vld [vmem:[%s4486_s12 + $0x390] sm:$0xff] }
 0x165   : > { %3061 = vmatpush1.bf16.msra.mxu0 %v3060_v10  ;;  %2807 = vmatprep.subr.bf16.mxu1 %v2806_v11  ;;  %v3080_v10 = vpack.c.bf16 %v1649_v2, %v1647_v0  ;;  %v2826_v11 = vpack.c.bf16 %v1398_v6, %v1396_v5  ;;  %v1667_v0 = vld [vmem:[%s4486_s12 + $0xb80] sm:$0xff]  ;;  %v1669_v2 = vld [vmem:[%s4486_s12 + $0xb90] sm:$0xff]  ;;  %v1416_v5 = vld [vmem:[%s4486_s12 + $0x3a8] sm:$0xff] }
 0x166   : > { %3063 = vmatprep.subr.bf16.mxu0 %v3062_v15  ;;  %v3082_v15 = vpack.c.bf16 %v1654_v7, %v1652_v34  ;;  %v1418_v6 = vld [vmem:[%s4486_s12 + $0x3b8] sm:$0xff]  ;;  %v1672_v34 = vld [vmem:[%s4486_s12 + $0xba8] sm:$0xff] }
 0x167   : > { %v1674_v7 = vld [vmem:[%s4486_s12 + $0xbb8] sm:$0xff] }
 0x168   : > { %2809 = vmatpush1.bf16.msra.mxu1 %v2808_v22  ;;  %v2828_v22 = vpack.c.bf16 %v1397_v13, %v1395_v12  ;;  %v1415_v12 = vld [vmem:[%s4486_s12 + $0x3a0] sm:$0xff]  ;;  %v1417_v13 = vld [vmem:[%s4486_s12 + $0x3b0] sm:$0xff] }
 0x169   : > { %3065 = vmatpush1.bf16.msra.mxu0 %v3064_v23  ;;  %2811 = vmatprep.subr.bf16.mxu1 %v2810_v24  ;;  %v3084_v23 = vpack.c.bf16 %v1653_v16, %v1651_v14  ;;  %v2830_v24 = vpack.c.bf16 %v1402_v18, %v1400_v17  ;;  %v1671_v14 = vld [vmem:[%s4486_s12 + $0xba0] sm:$0xff]  ;;  %v1673_v16 = vld [vmem:[%s4486_s12 + $0xbb0] sm:$0xff]  ;;  %v1420_v17 = vld [vmem:[%s4486_s12 + $0x3c8] sm:$0xff] }
 0x16a   : > { %3067 = vmatprep.subr.bf16.mxu0 %v3066_v28  ;;  %v3086_v28 = vpack.c.bf16 %v1658_v21, %v1656_v20  ;;  %v1422_v18 = vld [vmem:[%s4486_s12 + $0x3d8] sm:$0xff]  ;;  %v1676_v20 = vld [vmem:[%s4486_s12 + $0xbc8] sm:$0xff] }
 0x16b   : > { %v1678_v21 = vld [vmem:[%s4486_s12 + $0xbd8] sm:$0xff] }
 0x16c   : > { %2813 = vmatpush1.bf16.msra.mxu1 %v2812_v36  ;;  %v2832_v36 = vpack.c.bf16 %v1401_v26, %v1399_v25  ;;  %v1419_v25 = vld [vmem:[%s4486_s12 + $0x3c0] sm:$0xff]  ;;  %v1421_v26 = vld [vmem:[%s4486_s12 + $0x3d0] sm:$0xff] }
 0x16d   : > { %3069 = vmatpush1.bf16.msra.mxu0 %v3068_v37  ;;  %2815 = vmatprep.subr.bf16.mxu1 %v2814_v3  ;;  %v3088_v37 = vpack.c.bf16 %v1657_v30, %v1655_v27  ;;  %v2834_v3 = vpack.c.bf16 %v1406_v32, %v1404_v31  ;;  %v1675_v27 = vld [vmem:[%s4486_s12 + $0xbc0] sm:$0xff]  ;;  %v1677_v30 = vld [vmem:[%s4486_s12 + $0xbd0] sm:$0xff]  ;;  %v1424_v31 = vld [vmem:[%s4486_s12 + $0x3e8] sm:$0xff] }
 0x16e   : > { %3071 = vmatprep.subr.bf16.mxu0 %v3070_v40  ;;  %v3090_v40 = vpack.c.bf16 %v1662_v35, %v1660_v33  ;;  %v1426_v32 = vld [vmem:[%s4486_s12 + $0x3f8] sm:$0xff]  ;;  %v1680_v33 = vld [vmem:[%s4486_s12 + $0xbe8] sm:$0xff] }
 0x16f   : > { %v1682_v35 = vld [vmem:[%s4486_s12 + $0xbf8] sm:$0xff] }
 0x170   : > { %2817 = vmatpush1.bf16.msra.mxu1 %v2816_v48  ;;  %v2836_v48 = vpack.c.bf16 %v1405_v39, %v1403_v38  ;;  %v1423_v38 = vld [vmem:[%s4486_s12 + $0x3e0] sm:$0xff]  ;;  %v1425_v39 = vld [vmem:[%s4486_s12 + $0x3f0] sm:$0xff] }
 0x171   : > { %3073 = vmatpush1.bf16.msra.mxu0 %v3072_v49  ;;  %2819 = vmatprep.subr.bf16.mxu1 %v2818_v50  ;;  %v3092_v49 = vpack.c.bf16 %v1661_v41, %v1659_v9  ;;  %v2838_v50 = vpack.c.bf16 %v1410_v44, %v1408_v43  ;;  %v1679_v9 = vld [vmem:[%s4486_s12 + $0xbe0] sm:$0xff]  ;;  %v1681_v41 = vld [vmem:[%s4486_s12 + $0xbf0] sm:$0xff]  ;;  %v1428_v43 = vld [vmem:[%s4486_s12 + $0x408] sm:$0xff] }
 0x172   : > { %3075 = vmatprep.subr.bf16.mxu0 %v3074_v54  ;;  %v3094_v54 = vpack.c.bf16 %v1666_v47, %v1664_v46  ;;  %v1430_v44 = vld [vmem:[%s4486_s12 + $0x418] sm:$0xff]  ;;  %v1684_v46 = vld [vmem:[%s4486_s12 + $0xc08] sm:$0xff] }
 0x173   : > { %v1686_v47 = vld [vmem:[%s4486_s12 + $0xc18] sm:$0xff] }
 0x174   : > { %2821 = vmatpush1.bf16.msra.mxu1 %v2820_v60  ;;  %v2840_v60 = vpack.c.bf16 %v1409_v52, %v1407_v51  ;;  %v1427_v51 = vld [vmem:[%s4486_s12 + $0x400] sm:$0xff]  ;;  %v1429_v52 = vld [vmem:[%s4486_s12 + $0x410] sm:$0xff] }
 0x175   : > { %3077 = vmatpush1.bf16.msra.mxu0 %v3076_v61  ;;  %2823 = vmatprep.subr.bf16.mxu1 %v2822_v62  ;;  %v3096_v61 = vpack.c.bf16 %v1665_v55, %v1663_v53  ;;  %v2842_v62 = vpack.c.bf16 %v1414_v57, %v1412_v56  ;;  %v1683_v53 = vld [vmem:[%s4486_s12 + $0xc00] sm:$0xff]  ;;  %v1685_v55 = vld [vmem:[%s4486_s12 + $0xc10] sm:$0xff]  ;;  %v1432_v56 = vld [vmem:[%s4486_s12 + $0x428] sm:$0xff] }
 0x176   : > { %3079 = vmatprep.subr.bf16.mxu0 %v3078_v1  ;;  %v3098_v1 = vpack.c.bf16 %v1670_v59, %v1668_v58  ;;  %v1434_v57 = vld [vmem:[%s4486_s12 + $0x438] sm:$0xff]  ;;  %v1688_v58 = vld [vmem:[%s4486_s12 + $0xc28] sm:$0xff] }
 0x177   : > { %v1690_v59 = vld [vmem:[%s4486_s12 + $0xc38] sm:$0xff] }
 0x178   : > { %2825 = vmatpush1.bf16.msra.mxu1 %v2824_v8  ;;  %v2844_v8 = vpack.c.bf16 %v1413_v29, %v1411_v63  ;;  %v3116_v63 = vpack.c.bf16 %v1685_v55, %v1683_v53  ;;  %v2862_v29 = vpack.c.bf16 %v1434_v57, %v1432_v56  ;;  %v1447_v55 = vld [vmem:[%s4486_s12 + $0x4a0] sm:$0xff]  ;;  %v1449_v56 = vld [vmem:[%s4486_s12 + $0x4b0] sm:$0xff] }
 0x179   : > { %3081 = vmatpush1.bf16.msra.mxu0 %v3080_v10  ;;  %2827 = vmatprep.subr.bf16.mxu1 %v2826_v11  ;;  %v3100_v10 = vpack.c.bf16 %v1669_v2, %v1667_v0  ;;  %v2846_v11 = vpack.c.bf16 %v1418_v6, %v1416_v5  ;;  %v1433_v0 = vld [vmem:[%s4486_s12 + $0x430] sm:$0xff]  ;;  %v4807_v5 = vld [vmem:[%s5169_s0 + $0x18] sm:$0xff]  ;;  %v3118_v6 = vpack.c.bf16 %v1690_v59, %v1688_v58  ;;  %v1703_v57 = vld [vmem:[%s4486_s12 + $0xca0] sm:$0xff] }
 0x17a   : > { %3083 = vmatprep.subr.bf16.mxu0 %v3082_v15  ;;  %v3102_v15 = vpack.c.bf16 %v1674_v7, %v1672_v34  ;;  %v1689_v34 = vld [vmem:[%s4486_s12 + $0xc30] sm:$0xff]  ;;  %v1436_v7 = vld [vmem:[%s4486_s12 + $0x448] sm:$0xff] }
 0x17b   : > { %v1705_v59 = vld [vmem:[%s4486_s12 + $0xcb0] sm:$0xff] }
 0x17c   : > { %2829 = vmatpush1.bf16.msra.mxu1 %v2828_v22  ;;  %v2848_v22 = vpack.c.bf16 %v1417_v13, %v1415_v12  ;;  %v1694_v12 = vld [vmem:[%s4486_s12 + $0xc58] sm:$0xff] }
 0x17d   : > { %3085 = vmatpush1.bf16.msra.mxu0 %v3084_v23  ;;  %2831 = vmatprep.subr.bf16.mxu1 %v2830_v24  ;;  %v3104_v23 = vpack.c.bf16 %v1673_v16, %v1671_v14  ;;  %v2850_v24 = vpack.c.bf16 %v1422_v18, %v1420_v17  ;;  %v1435_v17 = vld [vmem:[%s4486_s12 + $0x440] sm:$0xff]  ;;  %v1437_v18 = vld [vmem:[%s4486_s12 + $0x450] sm:$0xff] }
 0x17e   : > { %3087 = vmatprep.subr.bf16.mxu0 %v3086_v28  ;;  %v3106_v28 = vpack.c.bf16 %v1678_v21, %v1676_v20  ;;  %v1691_v20 = vld [vmem:[%s4486_s12 + $0xc40] sm:$0xff] }
 0x180   : > { %2833 = vmatpush1.bf16.msra.mxu1 %v2832_v36  ;;  %v2852_v36 = vpack.c.bf16 %v1421_v26, %v1419_v25  ;;  %v1698_v25 = vld [vmem:[%s4486_s12 + $0xc78] sm:$0xff]  ;;  %v2868_v26 = vpack.c.bf16 %v1437_v18, %v1435_v17 }
 0x181   : > { %3089 = vmatpush1.bf16.msra.mxu0 %v3088_v37  ;;  %2835 = vmatprep.subr.bf16.mxu1 %v2834_v3  ;;  %v3108_v37 = vpack.c.bf16 %v1677_v30, %v1675_v27  ;;  %v2854_v3 = vpack.c.bf16 %v1426_v32, %v1424_v31  ;;  %v1439_v30 = vld [vmem:[%s4486_s12 + $0x460] sm:$0xff]  ;;  %v1441_v31 = vld [vmem:[%s4486_s12 + $0x470] sm:$0xff] }
 0x182   : > { %3091 = vmatprep.subr.bf16.mxu0 %v3090_v40  ;;  %v3110_v40 = vpack.c.bf16 %v1682_v35, %v1680_v33  ;;  %v1695_v32 = vld [vmem:[%s4486_s12 + $0xc60] sm:$0xff]  ;;  %v1697_v35 = vld [vmem:[%s4486_s12 + $0xc70] sm:$0xff] }
 0x184   : > { %2837 = vmatpush1.bf16.msra.mxu1 %v2836_v48  ;;  %v2856_v48 = vpack.c.bf16 %v1425_v39, %v1423_v38  ;;  %v1702_v38 = vld [vmem:[%s4486_s12 + $0xc98] sm:$0xff]  ;;  %v2872_v39 = vpack.c.bf16 %v1441_v31, %v1439_v30 }
 0x185   : > { %3093 = vmatpush1.bf16.msra.mxu0 %v3092_v49  ;;  %2839 = vmatprep.subr.bf16.mxu1 %v2838_v50  ;;  %v3112_v49 = vpack.c.bf16 %v1681_v41, %v1679_v9  ;;  %v2858_v50 = vpack.c.bf16 %v1430_v44, %v1428_v43  ;;  %v3128_v9 = vpack.c.bf16 %v1697_v35, %v1695_v32  ;;  %v1443_v41 = vld [vmem:[%s4486_s12 + $0x480] sm:$0xff]  ;;  %v1445_v43 = vld [vmem:[%s4486_s12 + $0x490] sm:$0xff] }
 0x186   : > { %3095 = vmatprep.subr.bf16.mxu0 %v3094_v54  ;;  %v3114_v54 = vpack.c.bf16 %v1686_v47, %v1684_v46  ;;  %v1699_v44 = vld [vmem:[%s4486_s12 + $0xc80] sm:$0xff]  ;;  %v1701_v47 = vld [vmem:[%s4486_s12 + $0xc90] sm:$0xff] }
 0x187   : > { %v3132_v53 = vpack.c.bf16 %v1701_v47, %v1699_v44  ;;  %v1459_v32 = vld [vmem:[%s4486_s12 + $0x500] sm:$0xff] }
 0x188   : > { %2841 = vmatpush1.bf16.msra.mxu1 %v2840_v60  ;;  %v2860_v60 = vpack.c.bf16 %v1429_v52, %v1427_v51  ;;  %v1706_v51 = vld [vmem:[%s4486_s12 + $0xcb8] sm:$0xff]  ;;  %v2876_v52 = vpack.c.bf16 %v1445_v43, %v1443_v41  ;;  %v1715_v35 = vld [vmem:[%s4486_s12 + $0xd00] sm:$0xff] }
 0x189   : > { %3097 = vmatpush1.bf16.msra.mxu0 %v3096_v61  ;;  %2843 = vmatprep.subr.bf16.mxu1 %v2842_v62  ;;  %v1431_v61 = vld [vmem:[%s4486_s12 + $0x420] sm:$0xff]  ;;  %v4796_v62 = vld [vmem:[%s5169_s0 + $0x8] sm:$0xff] }
 0x18a   : > { %3099 = vmatprep.subr.bf16.mxu0 %v3098_v1  ;;  %v1687_v1 = vld [vmem:[%s4486_s12 + $0xc20] sm:$0xff]  ;;  %v4802_v2 = vrot.slane %v4796_v62, %v4503_v19  ;;  %v2864_v14 = vpack.c.bf16 %v1433_v0, %v1431_v61  ;;  %v1454_v61 = vld [vmem:[%s4486_s12 + $0x4d8] sm:$0xff]  ;;  %v2880_v0 = vpack.c.bf16 %v1449_v56, %v1447_v55 }
 0x18b   : > { %v1463_v44 = vld [vmem:[%s4486_s12 + $0x520] sm:$0xff] }
 0x18c   : > { %2845 = vmatpush1.bf16.msra.mxu1 %v2844_v8  ;;  %v1438_v8 = vld [vmem:[%s4486_s12 + $0x458] sm:$0xff]  ;;  %v1859_v13 = vcombine.high %v4802_v2, %v4802_v2  ;;  %v1719_v47 = vld [vmem:[%s4486_s12 + $0xd20] sm:$0xff] }
 0x18d   : > { %3101 = vmatpush1.bf16.msra.mxu0 %v3100_v10  ;;  %2847 = vmatprep.subr.bf16.mxu1 %v2846_v11  ;;  %v4814_v10 = vrot.slane %v4807_v5, %v4503_v19  ;;  %v1692_v11 = vld [vmem:[%s4486_s12 + $0xc48] sm:$0xff]  ;;  %v2866_v16 = vpack.c.bf16 %v1438_v8, %v1436_v7  ;;  %v1453_v7 = vld [vmem:[%s4486_s12 + $0x4d0] sm:$0xff]  ;;  %v1707_v8 = vld [vmem:[%s4486_s12 + $0xcc0] sm:$0xff] }
 0x18e   : > { %3103 = vmatprep.subr.bf16.mxu0 %v3102_v15  ;;  %v3122_v21 = vpack.c.bf16 %v1694_v12, %v1692_v11  ;;  %v1709_v12 = vld [vmem:[%s4486_s12 + $0xcd0] sm:$0xff] }
 0x18f   : > { %v1893_v15 = vcombine.high %v4814_v10, %v4814_v10  ;;  %v3140_v17 = vpack.c.bf16 %v1709_v12, %v1707_v8  ;;  %v1471_v8 = vld [vmem:[%s4486_s12 + $0x560] sm:$0xff] }
 0x190   : > { %2849 = vmatpush1.bf16.msra.mxu1 %v2848_v22  ;;  %v1693_v22 = vld [vmem:[%s4486_s12 + $0xc50] sm:$0xff]  ;;  %v1727_v12 = vld [vmem:[%s4486_s12 + $0xd60] sm:$0xff] }
 0x191   : > { %3105 = vmatpush1.bf16.msra.mxu0 %v3104_v23  ;;  %2851 = vmatprep.subr.bf16.mxu1 %v2850_v24  ;;  %v1442_v23 = vld [vmem:[%s4486_s12 + $0x478] sm:$0xff]  ;;  %v1696_v24 = vld [vmem:[%s4486_s12 + $0xc68] sm:$0xff]  ;;  %v3124_v27 = vpack.c.bf16 %v1693_v22, %v1691_v20  ;;  %v1455_v20 = vld [vmem:[%s4486_s12 + $0x4e0] sm:$0xff] }
 0x192   : > { %3107 = vmatprep.subr.bf16.mxu0 %v3106_v28  ;;  %v3126_v33 = vpack.c.bf16 %v1698_v25, %v1696_v24  ;;  %v1711_v22 = vld [vmem:[%s4486_s12 + $0xce0] sm:$0xff]  ;;  %v1460_v24 = vld [vmem:[%s4486_s12 + $0x508] sm:$0xff]  ;;  %v1462_v25 = vld [vmem:[%s4486_s12 + $0x518] sm:$0xff] }
 0x193   : > { %v2890_v31 = vpack.c.bf16 %v1462_v25, %v1460_v24  ;;  %v1733_v25 = vld [vmem:[%s4486_s12 + $0xd90] sm:$0xff] }
 0x194   : > { %2853 = vmatpush1.bf16.msra.mxu1 %v2852_v36  ;;  %v1444_v36 = vld [vmem:[%s4486_s12 + $0x488] sm:$0xff] }
 0x195   : > { %3109 = vmatpush1.bf16.msra.mxu0 %v3108_v37  ;;  %2855 = vmatprep.subr.bf16.mxu1 %v2854_v3  ;;  %v1446_v37 = vld [vmem:[%s4486_s12 + $0x498] sm:$0xff]  ;;  %v1700_v3 = vld [vmem:[%s4486_s12 + $0xc88] sm:$0xff] }
 0x196   : > { %3111 = vmatprep.subr.bf16.mxu0 %v3110_v40  ;;  %v2874_v40 = vpack.c.bf16 %v1446_v37, %v1444_v36  ;;  %v3130_v46 = vpack.c.bf16 %v1702_v38, %v1700_v3  ;;  %v1717_v37 = vld [vmem:[%s4486_s12 + $0xd10] sm:$0xff]  ;;  %v1464_v3 = vld [vmem:[%s4486_s12 + $0x528] sm:$0xff]  ;;  %v1466_v38 = vld [vmem:[%s4486_s12 + $0x538] sm:$0xff] }
 0x197   : > { %v3148_v41 = vpack.c.bf16 %v1717_v37, %v1715_v35  ;;  %v2894_v43 = vpack.c.bf16 %v1466_v38, %v1464_v3  ;;  %v1479_v35 = vld [vmem:[%s4486_s12 + $0x5a0] sm:$0xff]  ;;  %v1737_v38 = vld [vmem:[%s4486_s12 + $0xdb0] sm:$0xff] }
 0x198   : > { %2857 = vmatpush1.bf16.msra.mxu1 %v2856_v48  ;;  %v1448_v48 = vld [vmem:[%s4486_s12 + $0x4a8] sm:$0xff]  ;;  %v1735_v37 = vld [vmem:[%s4486_s12 + $0xda0] sm:$0xff] }
 0x199   : > { %3113 = vmatpush1.bf16.msra.mxu0 %v3112_v49  ;;  %2859 = vmatprep.subr.bf16.mxu1 %v2858_v50  ;;  %v1450_v49 = vld [vmem:[%s4486_s12 + $0x4b8] sm:$0xff]  ;;  %v1704_v50 = vld [vmem:[%s4486_s12 + $0xca8] sm:$0xff] }
 0x19a   : > { %3115 = vmatprep.subr.bf16.mxu0 %v3114_v54  ;;  %v2878_v54 = vpack.c.bf16 %v1450_v49, %v1448_v48  ;;  %v3134_v58 = vpack.c.bf16 %v1706_v51, %v1704_v50  ;;  %v1721_v49 = vld [vmem:[%s4486_s12 + $0xd30] sm:$0xff]  ;;  %v1468_v50 = vld [vmem:[%s4486_s12 + $0x548] sm:$0xff]  ;;  %v1470_v51 = vld [vmem:[%s4486_s12 + $0x558] sm:$0xff] }
 0x19b   : > { %2047 = vmatmul.mubr.f32.vlgmr.msra.gmra.mrb[0].mxu1 %v4651_v42  ;;  %v3120_v42 = vpack.c.bf16 %v1689_v34, %v1687_v1  ;;  %v3136_v1 = vpack.c.bf16 %v1705_v59, %v1703_v57  ;;  %v1451_v34 = vld [vmem:[%s4486_s12 + $0x4c0] sm:$0xff]  ;;  %v3152_v55 = vpack.c.bf16 %v1721_v49, %v1719_v47  ;;  %v2898_v56 = vpack.c.bf16 %v1470_v51, %v1468_v50  ;;  %v1741_v51 = vld [vmem:[%s4486_s12 + $0xdd0] sm:$0xff] }
 0x19c   : > { %2861 = vmatpush1.bf16.msra.mxu1 %v2860_v60  ;;  %2331 = vmatmul.mubr.f32.vlgmr.msra.gmra.mrb[0].mxu0 %v4656_v45  ;;  %v1440_v45 = vld [vmem:[%s4486_s12 + $0x468] sm:$0xff]  ;;  %v1467_v57 = vld [vmem:[%s4486_s12 + $0x540] sm:$0xff] }
 0x19d   : > { %3117 = vmatpush1.bf16.msra.mxu0 %v3116_v63  ;;  %2863 = vmatprep.subr.bf16.mxu1 %v2862_v29  ;;  %v2870_v28 = vpack.c.bf16 %v1442_v23, %v1440_v45  ;;  %v1452_v60 = vld [vmem:[%s4486_s12 + $0x4c8] sm:$0xff]  ;;  %v1710_v29 = vld [vmem:[%s4486_s12 + $0xcd8] sm:$0xff]  ;;  %v1713_v23 = vld [vmem:[%s4486_s12 + $0xcf0] sm:$0xff] }
 0x19e   : > { %3119 = vmatprep.subr.bf16.mxu0 %v3118_v6  ;;  %2117 = vmatprep.mubr.f32.mxu1 %v1859_v13  ;;  %v1708_v63 = vld [vmem:[%s4486_s12 + $0xcc8] sm:$0xff]  ;;  %v2882_v6 = vpack.c.bf16 %v1454_v61, %v1452_v60  ;;  %v3144_v30 = vpack.c.bf16 %v1713_v23, %v1711_v22  ;;  %v1723_v59 = vld [vmem:[%s4486_s12 + $0xd40] sm:$0xff]  ;;  %v1725_v61 = vld [vmem:[%s4486_s12 + $0xd50] sm:$0xff] }
 0x19f   : > { %2401 = vmatprep.mubr.f32.mxu0 %v1893_v15  ;;  %v3138_v11 = vpack.c.bf16 %v1710_v29, %v1708_v63  ;;  %v1456_v13 = vld [vmem:[%s4486_s12 + $0x4e8] sm:$0xff]  ;;  %v1474_v29 = vld [vmem:[%s4486_s12 + $0x578] sm:$0xff]  ;;  %v1475_v22 = vld [vmem:[%s4486_s12 + $0x580] sm:$0xff] }
 0x1a0   : > { %2865 = vmatpush1.bf16.msra.mxu1 %v2864_v14  ;;  %v1458_v14 = vld [vmem:[%s4486_s12 + $0x4f8] sm:$0xff]  ;;  %v1712_v15 = vld [vmem:[%s4486_s12 + $0xce8] sm:$0xff]  ;;  %v1731_v23 = vld [vmem:[%s4486_s12 + $0xd80] sm:$0xff] }
 0x1a1   : > { %3121 = vmatpush1.bf16.msra.mxu0 %v3120_v42  ;;  %2867 = vmatprep.subr.bf16.mxu1 %v2866_v16  ;;  %v1714_v42 = vld [vmem:[%s4486_s12 + $0xcf8] sm:$0xff]  ;;  %v2884_v16 = vpack.c.bf16 %v1453_v7, %v1451_v34  ;;  %v2886_v18 = vpack.c.bf16 %v1458_v14, %v1456_v13  ;;  %v1472_v63 = vld [vmem:[%s4486_s12 + $0x568] sm:$0xff]  ;;  %v3156_v34 = vpack.c.bf16 %v1725_v61, %v1723_v59  ;;  %v1729_v14 = vld [vmem:[%s4486_s12 + $0xd70] sm:$0xff] }
 0x1a2   : > { %3123 = vmatprep.subr.bf16.mxu0 %v3122_v21  ;;  %v1457_v21 = vld [vmem:[%s4486_s12 + $0x4f0] sm:$0xff]  ;;  %v3142_v45 = vpack.c.bf16 %v1714_v42, %v1712_v15  ;;  %v2902_v7 = vpack.c.bf16 %v1474_v29, %v1472_v63  ;;  %v1476_v15 = vld [vmem:[%s4486_s12 + $0x588] sm:$0xff]  ;;  %v1478_v42 = vld [vmem:[%s4486_s12 + $0x598] sm:$0xff] }
 0x1a3   : > { %v1483_v47 = vld [vmem:[%s4486_s12 + $0x5c0] sm:$0xff]  ;;  %v1745_v29 = vld [vmem:[%s4486_s12 + $0xdf0] sm:$0xff] }
 0x1a4   : > { %2869 = vmatpush1.bf16.msra.mxu1 %v2868_v26  ;;  %v1716_v26 = vld [vmem:[%s4486_s12 + $0xd08] sm:$0xff]  ;;  %v1739_v49 = vld [vmem:[%s4486_s12 + $0xdc0] sm:$0xff] }
 0x1a5   : > { %3125 = vmatpush1.bf16.msra.mxu0 %v3124_v27  ;;  %2871 = vmatprep.subr.bf16.mxu1 %v2870_v28  ;;  %v1718_v27 = vld [vmem:[%s4486_s12 + $0xd18] sm:$0xff]  ;;  %v2888_v28 = vpack.c.bf16 %v1457_v21, %v1455_v20  ;;  %v3160_v20 = vpack.c.bf16 %v1729_v14, %v1727_v12  ;;  %v2906_v21 = vpack.c.bf16 %v1478_v42, %v1476_v15  ;;  %v1487_v59 = vld [vmem:[%s4486_s12 + $0x5e0] sm:$0xff]  ;;  %v1493_v15 = vld [vmem:[%s4486_s12 + $0x610] sm:$0xff] }
 0x1a6   : > { %3127 = vmatprep.subr.bf16.mxu0 %v3126_v33  ;;  %v1461_v33 = vld [vmem:[%s4486_s12 + $0x510] sm:$0xff]  ;;  %v3146_v36 = vpack.c.bf16 %v1718_v27, %v1716_v26  ;;  %v1480_v26 = vld [vmem:[%s4486_s12 + $0x5a8] sm:$0xff]  ;;  %v1482_v27 = vld [vmem:[%s4486_s12 + $0x5b8] sm:$0xff] }
 0x1a7   : > { %v1743_v61 = vld [vmem:[%s4486_s12 + $0xde0] sm:$0xff] }
 0x1a8   : > { %2873 = vmatpush1.bf16.msra.mxu1 %v2872_v39  ;;  %v1720_v39 = vld [vmem:[%s4486_s12 + $0xd28] sm:$0xff]  ;;  %v3176_v12 = vpack.c.bf16 %v1745_v29, %v1743_v61  ;;  %v1491_v14 = vld [vmem:[%s4486_s12 + $0x600] sm:$0xff]  ;;  %v1509_v29 = vld [vmem:[%s4486_s12 + $0x690] sm:$0xff] }
 0x1a9   : > { %3129 = vmatpush1.bf16.msra.mxu0 %v3128_v9  ;;  %2875 = vmatprep.subr.bf16.mxu1 %v2874_v40  ;;  %v1722_v9 = vld [vmem:[%s4486_s12 + $0xd38] sm:$0xff]  ;;  %v2892_v40 = vpack.c.bf16 %v1461_v33, %v1459_v32  ;;  %v3164_v32 = vpack.c.bf16 %v1733_v25, %v1731_v23  ;;  %v2910_v33 = vpack.c.bf16 %v1482_v27, %v1480_v26  ;;  %v1747_v42 = vld [vmem:[%s4486_s12 + $0xe00] sm:$0xff]  ;;  %v1497_v26 = vld [vmem:[%s4486_s12 + $0x630] sm:$0xff] }
 0x1aa   : > { %3131 = vmatprep.subr.bf16.mxu0 %v3130_v46  ;;  %v1465_v46 = vld [vmem:[%s4486_s12 + $0x530] sm:$0xff]  ;;  %v3150_v48 = vpack.c.bf16 %v1722_v9, %v1720_v39  ;;  %v1484_v39 = vld [vmem:[%s4486_s12 + $0x5c8] sm:$0xff]  ;;  %v1486_v9 = vld [vmem:[%s4486_s12 + $0x5d8] sm:$0xff] }
 0x1ab   : > { %v1495_v25 = vld [vmem:[%s4486_s12 + $0x620] sm:$0xff] }
 0x1ac   : > { %2877 = vmatpush1.bf16.msra.mxu1 %v2876_v52  ;;  %v1724_v52 = vld [vmem:[%s4486_s12 + $0xd48] sm:$0xff]  ;;  %v1751_v27 = vld [vmem:[%s4486_s12 + $0xe20] sm:$0xff] }
 0x1ad   : > { %3133 = vmatpush1.bf16.msra.mxu0 %v3132_v53  ;;  %2879 = vmatprep.subr.bf16.mxu1 %v2878_v54  ;;  %v1726_v53 = vld [vmem:[%s4486_s12 + $0xd58] sm:$0xff]  ;;  %v2896_v54 = vpack.c.bf16 %v1465_v46, %v1463_v44  ;;  %v3168_v44 = vpack.c.bf16 %v1737_v38, %v1735_v37  ;;  %v2914_v46 = vpack.c.bf16 %v1486_v9, %v1484_v39  ;;  %v1499_v39 = vld [vmem:[%s4486_s12 + $0x640] sm:$0xff] }
 0x1ae   : > { %3135 = vmatprep.subr.bf16.mxu0 %v3134_v58  ;;  %v1469_v58 = vld [vmem:[%s4486_s12 + $0x550] sm:$0xff]  ;;  %v3154_v60 = vpack.c.bf16 %v1726_v53, %v1724_v52  ;;  %v1488_v52 = vld [vmem:[%s4486_s12 + $0x5e8] sm:$0xff]  ;;  %v1490_v53 = vld [vmem:[%s4486_s12 + $0x5f8] sm:$0xff]  ;;  %v2928_v37 = vpack.c.bf16 %v1497_v26, %v1495_v25 }
 0x1af   : > { %v1755_v9 = vld [vmem:[%s4486_s12 + $0xe40] sm:$0xff] }
 0x1b0   : > { %2881 = vmatpush1.bf16.msra.mxu1 %v2880_v0  ;;  %v1728_v0 = vld [vmem:[%s4486_s12 + $0xd68] sm:$0xff]  ;;  %v1515_v26 = vld [vmem:[%s4486_s12 + $0x6c0] sm:$0xff] }
 0x1b1   : > { %3137 = vmatpush1.bf16.msra.mxu0 %v3136_v1  ;;  %2883 = vmatprep.subr.bf16.mxu1 %v2882_v6  ;;  %v1730_v1 = vld [vmem:[%s4486_s12 + $0xd78] sm:$0xff]  ;;  %v2900_v6 = vpack.c.bf16 %v1469_v58, %v1467_v57  ;;  %v3172_v57 = vpack.c.bf16 %v1741_v51, %v1739_v49  ;;  %v2918_v58 = vpack.c.bf16 %v1490_v53, %v1488_v52  ;;  %v1505_v51 = vld [vmem:[%s4486_s12 + $0x670] sm:$0xff]  ;;  %v1759_v52 = vld [vmem:[%s4486_s12 + $0xe60] sm:$0xff] }
 0x1b2   : > { %3139 = vmatprep.subr.bf16.mxu0 %v3138_v11  ;;  %v1473_v11 = vld [vmem:[%s4486_s12 + $0x570] sm:$0xff]  ;;  %v3158_v13 = vpack.c.bf16 %v1730_v1, %v1728_v0  ;;  %v1492_v0 = vld [vmem:[%s4486_s12 + $0x608] sm:$0xff]  ;;  %v1494_v1 = vld [vmem:[%s4486_s12 + $0x618] sm:$0xff] }
 0x1b4   : > { %2885 = vmatpush1.bf16.msra.mxu1 %v2884_v16  ;;  %v1732_v16 = vld [vmem:[%s4486_s12 + $0xd88] sm:$0xff] }
 0x1b5   : > { %3141 = vmatpush1.bf16.msra.mxu0 %v3140_v17  ;;  %2887 = vmatprep.subr.bf16.mxu1 %v2886_v18  ;;  %v1734_v17 = vld [vmem:[%s4486_s12 + $0xd98] sm:$0xff]  ;;  %v2904_v18 = vpack.c.bf16 %v1473_v11, %v1471_v8  ;;  %v1878_v8 = vcombine.high %v4807_v5, %v4807_v5 }
 0x1b6   : > { %3143 = vmatprep.subr.bf16.mxu0 %v3142_v45  ;;  %v1477_v45 = vld [vmem:[%s4486_s12 + $0x590] sm:$0xff]  ;;  %v3162_v24 = vpack.c.bf16 %v1734_v17, %v1732_v16  ;;  %v1496_v17 = vld [vmem:[%s4486_s12 + $0x628] sm:$0xff] }
 0x1b7   : > { %v1749_v16 = vld [vmem:[%s4486_s12 + $0xe10] sm:$0xff] }
 0x1b8   : > { %2889 = vmatpush1.bf16.msra.mxu1 %v2888_v28  ;;  %v1736_v28 = vld [vmem:[%s4486_s12 + $0xda8] sm:$0xff]  ;;  %v3180_v23 = vpack.c.bf16 %v1749_v16, %v1747_v42  ;;  %v1513_v42 = vld [vmem:[%s4486_s12 + $0x6b0] sm:$0xff] }
 0x1b9   : > { %3145 = vmatpush1.bf16.msra.mxu0 %v3144_v30  ;;  %2891 = vmatprep.subr.bf16.mxu1 %v2890_v31  ;;  %v1738_v30 = vld [vmem:[%s4486_s12 + $0xdb8] sm:$0xff]  ;;  %v2908_v31 = vpack.c.bf16 %v1477_v45, %v1475_v22  ;;  %v4952_v22 = vrot.slane %v1878_v8, %v4503_v19  ;;  %v2924_v45 = vpack.c.bf16 %v1493_v15, %v1491_v14  ;;  %v1768_v8 = vld [vmem:[%s4486_s12 + $0xea8] sm:$0xff]  ;;  %v1511_v15 = vld [vmem:[%s4486_s12 + $0x6a0] sm:$0xff] }
 0x1ba   : > { %3147 = vmatprep.subr.bf16.mxu0 %v3146_v36  ;;  %v1481_v36 = vld [vmem:[%s4486_s12 + $0x5b0] sm:$0xff]  ;;  %v3166_v3 = vpack.c.bf16 %v1738_v30, %v1736_v28 }
 0x1bb   : > { %v1753_v30 = vld [vmem:[%s4486_s12 + $0xe30] sm:$0xff] }
 0x1bc   : > { %2893 = vmatpush1.bf16.msra.mxu1 %v2892_v40  ;;  %v1740_v40 = vld [vmem:[%s4486_s12 + $0xdc8] sm:$0xff] }
 0x1bd   : > { %3149 = vmatpush1.bf16.msra.mxu0 %v3148_v41  ;;  %2895 = vmatprep.subr.bf16.mxu1 %v2894_v43  ;;  %v1742_v41 = vld [vmem:[%s4486_s12 + $0xdd8] sm:$0xff]  ;;  %v2912_v43 = vpack.c.bf16 %v1481_v36, %v1479_v35  ;;  %v1894_v36 = vcombine.high %v4952_v22, %v4952_v22 }
 0x1be   : > { %3151 = vmatprep.subr.bf16.mxu0 %v3150_v48  ;;  %v1485_v48 = vld [vmem:[%s4486_s12 + $0x5d0] sm:$0xff]  ;;  %v3170_v50 = vpack.c.bf16 %v1742_v41, %v1740_v40  ;;  %v1758_v35 = vld [vmem:[%s4486_s12 + $0xe58] sm:$0xff] }
 0x1bf   : > { %v1757_v41 = vld [vmem:[%s4486_s12 + $0xe50] sm:$0xff] }
 0x1c0   : > { %2897 = vmatpush1.bf16.msra.mxu1 %v2896_v54  ;;  %v1744_v54 = vld [vmem:[%s4486_s12 + $0xde8] sm:$0xff] }
 0x1c1   : > { %3153 = vmatpush1.bf16.msra.mxu0 %v3152_v55  ;;  %2899 = vmatprep.subr.bf16.mxu1 %v2898_v56  ;;  %v1746_v55 = vld [vmem:[%s4486_s12 + $0xdf8] sm:$0xff]  ;;  %v2916_v56 = vpack.c.bf16 %v1485_v48, %v1483_v47  ;;  %v3188_v48 = vpack.c.bf16 %v1757_v41, %v1755_v9  ;;  %v1524_v41 = vld [vmem:[%s4486_s12 + $0x708] sm:$0xff] }
 0x1c2   : > { %3155 = vmatprep.subr.bf16.mxu0 %v3154_v60  ;;  %v1489_v60 = vld [vmem:[%s4486_s12 + $0x5f0] sm:$0xff]  ;;  %v3174_v63 = vpack.c.bf16 %v1746_v55, %v1744_v54  ;;  %v1508_v55 = vld [vmem:[%s4486_s12 + $0x688] sm:$0xff] }
 0x1c3   : > { %v2920_v11 = vpack.c.bf16 %v1489_v60, %v1487_v59  ;;  %v1761_v54 = vld [vmem:[%s4486_s12 + $0xe70] sm:$0xff] }
 0x1c4   : > { %2901 = vmatpush1.bf16.msra.mxu1 %v2900_v6  ;;  %v1844_v6 = vcombine.high %v4796_v62, %v4796_v62  ;;  %v3192_v60 = vpack.c.bf16 %v1761_v54, %v1759_v52  ;;  %v1528_v54 = vld [vmem:[%s4486_s12 + $0x728] sm:$0xff] }
 0x1c5   : > { %3157 = vmatpush1.bf16.msra.mxu0 %v3156_v34  ;;  %2903 = vmatprep.subr.bf16.mxu1 %v2902_v7  ;;  %v1748_v34 = vld [vmem:[%s4486_s12 + $0xe08] sm:$0xff]  ;;  %v1750_v7 = vld [vmem:[%s4486_s12 + $0xe18] sm:$0xff] }
 0x1c6   : > { %3159 = vmatprep.subr.bf16.mxu0 %v3158_v13  ;;  %v2922_v13 = vpack.c.bf16 %v1494_v1, %v1492_v0  ;;  %v3178_v62 = vpack.c.bf16 %v1750_v7, %v1748_v34  ;;  %v4947_v5 = vrot.slane %v1844_v6, %v4503_v19  ;;  %v1502_v19 = vld [vmem:[%s4486_s12 + $0x658] sm:$0xff]  ;;  %v1763_v0 = vld [vmem:[%s4486_s12 + $0xe80] sm:$0xff]  ;;  %v1765_v6 = vld [vmem:[%s4486_s12 + $0xe90] sm:$0xff] }
 0x1c7   : > { %v1512_v34 = vld [vmem:[%s4486_s12 + $0x6a8] sm:$0xff]  ;;  %v1514_v7 = vld [vmem:[%s4486_s12 + $0x6b8] sm:$0xff] }
 0x1c8   : > { %2905 = vmatpush1.bf16.msra.mxu1 %v2904_v18  ;;  %v1498_v18 = vld [vmem:[%s4486_s12 + $0x638] sm:$0xff]  ;;  %v2942_v14 = vpack.c.bf16 %v1514_v7, %v1512_v34  ;;  %v1788_v7 = vld [vmem:[%s4486_s12 + $0xf48] sm:$0xff] }
 0x1c9   : > { %3161 = vmatpush1.bf16.msra.mxu0 %v3160_v20  ;;  %2907 = vmatprep.subr.bf16.mxu1 %v2906_v21  ;;  %v1752_v20 = vld [vmem:[%s4486_s12 + $0xe28] sm:$0xff]  ;;  %v1754_v21 = vld [vmem:[%s4486_s12 + $0xe38] sm:$0xff] }
 0x1ca   : > { %3163 = vmatprep.subr.bf16.mxu0 %v3162_v24  ;;  %v2926_v24 = vpack.c.bf16 %v1498_v18, %v1496_v17  ;;  %v3182_v28 = vpack.c.bf16 %v1754_v21, %v1752_v20  ;;  %v1769_v17 = vld [vmem:[%s4486_s12 + $0xeb0] sm:$0xff]  ;;  %v1516_v18 = vld [vmem:[%s4486_s12 + $0x6c8] sm:$0xff]  ;;  %v1518_v20 = vld [vmem:[%s4486_s12 + $0x6d8] sm:$0xff] }
 0x1cb   : > { %v1772_v21 = vld [vmem:[%s4486_s12 + $0xec8] sm:$0xff]  ;;  %v2946_v25 = vpack.c.bf16 %v1518_v20, %v1516_v18  ;;  %v1534_v34 = vld [vmem:[%s4486_s12 + $0x758] sm:$0xff] }
 0x1cc   : > { %2909 = vmatpush1.bf16.msra.mxu1 %v2908_v31  ;;  %v1500_v31 = vld [vmem:[%s4486_s12 + $0x648] sm:$0xff]  ;;  %v1538_v18 = vld [vmem:[%s4486_s12 + $0x778] sm:$0xff] }
 0x1cd   : > { %3165 = vmatpush1.bf16.msra.mxu0 %v3164_v32  ;;  %2911 = vmatprep.subr.bf16.mxu1 %v2910_v33  ;;  %v1860_v32 = vcombine.high %v4947_v5, %v4947_v5  ;;  %v1756_v33 = vld [vmem:[%s4486_s12 + $0xe48] sm:$0xff]  ;;  %v2930_v38 = vpack.c.bf16 %v1502_v19, %v1500_v31  ;;  %v1773_v31 = vld [vmem:[%s4486_s12 + $0xed0] sm:$0xff] }
 0x1ce   : > { %3167 = vmatprep.subr.bf16.mxu0 %v3166_v3  ;;  %v3184_v3 = vpack.c.bf16 %v1753_v30, %v1751_v27  ;;  %v3186_v40 = vpack.c.bf16 %v1758_v35, %v1756_v33  ;;  %v1517_v27 = vld [vmem:[%s4486_s12 + $0x6d0] sm:$0xff]  ;;  %v1520_v19 = vld [vmem:[%s4486_s12 + $0x6e8] sm:$0xff]  ;;  %v1778_v35 = vld [vmem:[%s4486_s12 + $0xef8] sm:$0xff] }
 0x1cf   : > { %v1776_v33 = vld [vmem:[%s4486_s12 + $0xee8] sm:$0xff] }
 0x1d0   : > { %2913 = vmatpush1.bf16.msra.mxu1 %v2912_v43  ;;  %v1504_v43 = vld [vmem:[%s4486_s12 + $0x668] sm:$0xff]  ;;  %v3206_v9 = vpack.c.bf16 %v1778_v35, %v1776_v33  ;;  %v1798_v33 = vld [vmem:[%s4486_s12 + $0xf98] sm:$0xff] }
 0x1d1   : > { %3169 = vmatpush1.bf16.msra.mxu0 %v3168_v44  ;;  %2915 = vmatprep.subr.bf16.mxu1 %v2914_v46  ;;  %v1506_v44 = vld [vmem:[%s4486_s12 + $0x678] sm:$0xff]  ;;  %v1792_v20 = vld [vmem:[%s4486_s12 + $0xf68] sm:$0xff] }
 0x1d2   : > { %3171 = vmatprep.subr.bf16.mxu0 %v3170_v50  ;;  %v1762_v46 = vld [vmem:[%s4486_s12 + $0xe78] sm:$0xff]  ;;  %v2934_v49 = vpack.c.bf16 %v1506_v44, %v1504_v43  ;;  %v1503_v50 = vld [vmem:[%s4486_s12 + $0x660] sm:$0xff]  ;;  %v1780_v44 = vld [vmem:[%s4486_s12 + $0xf08] sm:$0xff] }
 0x1d3   : > { %v2936_v59 = vpack.c.bf16 %v1505_v51, %v1503_v50  ;;  %v1526_v43 = vld [vmem:[%s4486_s12 + $0x718] sm:$0xff]  ;;  %v1525_v50 = vld [vmem:[%s4486_s12 + $0x710] sm:$0xff]  ;;  %v1779_v51 = vld [vmem:[%s4486_s12 + $0xf00] sm:$0xff] }
 0x1d4   : > { %2917 = vmatpush1.bf16.msra.mxu1 %v2916_v56  ;;  %v1510_v56 = vld [vmem:[%s4486_s12 + $0x698] sm:$0xff] }
 0x1d5   : > { %3173 = vmatpush1.bf16.msra.mxu0 %v3172_v57  ;;  %2919 = vmatprep.subr.bf16.mxu1 %v2918_v58  ;;  %v1764_v57 = vld [vmem:[%s4486_s12 + $0xe88] sm:$0xff]  ;;  %v1766_v58 = vld [vmem:[%s4486_s12 + $0xe98] sm:$0xff]  ;;  %v2938_v61 = vpack.c.bf16 %v1510_v56, %v1508_v55 }
 0x1d6   : > { %3175 = vmatprep.subr.bf16.mxu0 %v3174_v63  ;;  %v1507_v63 = vld [vmem:[%s4486_s12 + $0x680] sm:$0xff]  ;;  %v3194_v1 = vpack.c.bf16 %v1766_v58, %v1764_v57  ;;  %v1530_v55 = vld [vmem:[%s4486_s12 + $0x738] sm:$0xff]  ;;  %v1784_v56 = vld [vmem:[%s4486_s12 + $0xf28] sm:$0xff] }
 0x1d7   : > { %v1786_v57 = vld [vmem:[%s4486_s12 + $0xf38] sm:$0xff] }
 0x1d8   : > { %2921 = vmatpush1.bf16.msra.mxu1 %v2920_v11  ;;  %v1770_v11 = vld [vmem:[%s4486_s12 + $0xeb8] sm:$0xff] }
 0x1d9   : > { %3177 = vmatpush1.bf16.msra.mxu0 %v3176_v12  ;;  %2923 = vmatprep.subr.bf16.mxu1 %v2922_v13  ;;  %v2940_v12 = vpack.c.bf16 %v1509_v29, %v1507_v63  ;;  %v3196_v13 = vpack.c.bf16 %v1765_v6, %v1763_v0  ;;  %v3198_v16 = vpack.c.bf16 %v1770_v11, %v1768_v8  ;;  %v1529_v63 = vld [vmem:[%s4486_s12 + $0x730] sm:$0xff]  ;;  %v1783_v29 = vld [vmem:[%s4486_s12 + $0xf20] sm:$0xff]  ;;  %v1532_v6 = vld [vmem:[%s4486_s12 + $0x748] sm:$0xff] }
 0x1da   : > { %3179 = vmatprep.subr.bf16.mxu0 %v3178_v62  ;;  %v1767_v62 = vld [vmem:[%s4486_s12 + $0xea0] sm:$0xff]  ;;  %v3214_v0 = vpack.c.bf16 %v1786_v57, %v1784_v56  ;;  %v1790_v8 = vld [vmem:[%s4486_s12 + $0xf58] sm:$0xff] }
 0x1db   : > { %2118 = vmatmul.mubr.f32.vlgmr.msra.gmra.mrb[0].mxu1 %v4802_v2  ;;  %v1501_v2 = vld [vmem:[%s4486_s12 + $0x650] sm:$0xff]  ;;  %v1806_v56 = vld [vmem:[%s4486_s12 + $0xfd8] sm:$0xff] }
 0x1dc   : > { %2925 = vmatpush1.bf16.msra.mxu1 %v2924_v45  ;;  %2402 = vmatmul.mubr.f32.vlgmr.msra.gmra.mrb[0].mxu0 %v4814_v10  ;;  %v1760_v10 = vld [vmem:[%s4486_s12 + $0xe68] sm:$0xff]  ;;  %v2932_v47 = vpack.c.bf16 %v1501_v2, %v1499_v39  ;;  %v1774_v45 = vld [vmem:[%s4486_s12 + $0xed8] sm:$0xff]  ;;  %v1521_v39 = vld [vmem:[%s4486_s12 + $0x6f0] sm:$0xff] }
 0x1dd   : > { %3181 = vmatpush1.bf16.msra.mxu0 %v3180_v23  ;;  %2927 = vmatprep.subr.bf16.mxu1 %v2926_v24  ;;  %v3190_v53 = vpack.c.bf16 %v1762_v46, %v1760_v10  ;;  %v2944_v23 = vpack.c.bf16 %v1513_v42, %v1511_v15  ;;  %v3200_v24 = vpack.c.bf16 %v1769_v17, %v1767_v62  ;;  %v1775_v2 = vld [vmem:[%s4486_s12 + $0xee0] sm:$0xff]  ;;  %v1782_v10 = vld [vmem:[%s4486_s12 + $0xf18] sm:$0xff]  ;;  %v1533_v15 = vld [vmem:[%s4486_s12 + $0x750] sm:$0xff] }
 0x1de   : > { %3183 = vmatprep.subr.bf16.mxu0 %v3182_v28  ;;  %2188 = vmatprep.mubr.f32.mxu1 %v1860_v32  ;;  %v1771_v28 = vld [vmem:[%s4486_s12 + $0xec0] sm:$0xff]  ;;  %v3202_v30 = vpack.c.bf16 %v1774_v45, %v1772_v21  ;;  %v1522_v32 = vld [vmem:[%s4486_s12 + $0x6f8] sm:$0xff]  ;;  %v3210_v52 = vpack.c.bf16 %v1782_v10, %v1780_v44  ;;  %v3218_v62 = vpack.c.bf16 %v1790_v8, %v1788_v7  ;;  %v1536_v17 = vld [vmem:[%s4486_s12 + $0x768] sm:$0xff] }
 0x1df   : > { %2472 = vmatprep.mubr.f32.mxu0 %v1894_v36  ;;  %v2948_v36 = vpack.c.bf16 %v1517_v27, %v1515_v26  ;;  %v1787_v42 = vld [vmem:[%s4486_s12 + $0xf40] sm:$0xff]  ;;  %v1794_v21 = vld [vmem:[%s4486_s12 + $0xf78] sm:$0xff]  ;;  %v1537_v26 = vld [vmem:[%s4486_s12 + $0x770] sm:$0xff] }
 0x1e0   : > { %2929 = vmatpush1.bf16.msra.mxu1 %v2928_v37  ;;  %v3204_v37 = vpack.c.bf16 %v1773_v31, %v1771_v28  ;;  %v1791_v27 = vld [vmem:[%s4486_s12 + $0xf60] sm:$0xff]  ;;  %v3222_v28 = vpack.c.bf16 %v1794_v21, %v1792_v20  ;;  %v1540_v31 = vld [vmem:[%s4486_s12 + $0x788] sm:$0xff]  ;;  %v1802_v44 = vld [vmem:[%s4486_s12 + $0xfb8] sm:$0xff] }
 0x1e1   : > { %3185 = vmatpush1.bf16.msra.mxu0 %v3184_v3  ;;  %2931 = vmatprep.subr.bf16.mxu1 %v2930_v38  ;;  %v2950_v3 = vpack.c.bf16 %v1522_v32, %v1520_v19  ;;  %v1519_v38 = vld [vmem:[%s4486_s12 + $0x6e0] sm:$0xff]  ;;  %v1542_v19 = vld [vmem:[%s4486_s12 + $0x798] sm:$0xff]  ;;  %v1796_v32 = vld [vmem:[%s4486_s12 + $0xf88] sm:$0xff] }
 0x1e2   : > { %3187 = vmatprep.subr.bf16.mxu0 %v3186_v40  ;;  %v1777_v40 = vld [vmem:[%s4486_s12 + $0xef0] sm:$0xff]  ;;  %v2952_v46 = vpack.c.bf16 %v1521_v39, %v1519_v38  ;;  %v1795_v39 = vld [vmem:[%s4486_s12 + $0xf80] sm:$0xff]  ;;  %v1810_v7 = vld [vmem:[%s4486_s12 + $0xff8] sm:$0xff] }
 0x1e3   : > { %v1541_v38 = vld [vmem:[%s4486_s12 + $0x790] sm:$0xff] }
 0x1e4   : > { %2933 = vmatpush1.bf16.msra.mxu1 %v2932_v47  ;;  %v3208_v47 = vpack.c.bf16 %v1777_v40, %v1775_v2  ;;  %v3226_v2 = vpack.c.bf16 %v1798_v33, %v1796_v32  ;;  %v1544_v40 = vld [vmem:[%s4486_s12 + $0x7a8] sm:$0xff] }
 0x1e5   : > { %3189 = vmatpush1.bf16.msra.mxu0 %v3188_v48  ;;  %2935 = vmatprep.subr.bf16.mxu1 %v2934_v49  ;;  %v2954_v48 = vpack.c.bf16 %v1526_v43, %v1524_v41  ;;  %v1523_v49 = vld [vmem:[%s4486_s12 + $0x700] sm:$0xff]  ;;  %v1546_v41 = vld [vmem:[%s4486_s12 + $0x7b8] sm:$0xff]  ;;  %v1800_v43 = vld [vmem:[%s4486_s12 + $0xfa8] sm:$0xff] }
 0x1e6   : > { %3191 = vmatprep.subr.bf16.mxu0 %v3190_v53  ;;  %v1781_v53 = vld [vmem:[%s4486_s12 + $0xf10] sm:$0xff]  ;;  %v2956_v58 = vpack.c.bf16 %v1525_v50, %v1523_v49  ;;  %v1799_v50 = vld [vmem:[%s4486_s12 + $0xfa0] sm:$0xff] }
 0x1e7   : > { %v1545_v49 = vld [vmem:[%s4486_s12 + $0x7b0] sm:$0xff] }
 0x1e8   : > { %2937 = vmatpush1.bf16.msra.mxu1 %v2936_v59  ;;  %v3212_v59 = vpack.c.bf16 %v1781_v53, %v1779_v51  ;;  %v3230_v51 = vpack.c.bf16 %v1802_v44, %v1800_v43  ;;  %v1548_v53 = vld [vmem:[%s4486_s12 + $0x7c8] sm:$0xff]  ;;  %v2489_v43 = vld [vmem:[%s5085_s28 + $0x40] sm:$0xff] }
 0x1e9   : > { %3193 = vmatpush1.bf16.msra.mxu0 %v3192_v60  ;;  %2939 = vmatprep.subr.bf16.mxu1 %v2938_v61  ;;  %v2958_v60 = vpack.c.bf16 %v1530_v55, %v1528_v54  ;;  %v1527_v61 = vld [vmem:[%s4486_s12 + $0x720] sm:$0xff]  ;;  %v1550_v54 = vld [vmem:[%s4486_s12 + $0x7d8] sm:$0xff]  ;;  %v1804_v55 = vld [vmem:[%s4486_s12 + $0xfc8] sm:$0xff] }
 0x1ea   : > { %3195 = vmatprep.subr.bf16.mxu0 %v3194_v1  ;;  %v1785_v1 = vld [vmem:[%s4486_s12 + $0xf30] sm:$0xff]  ;;  %v2960_v11 = vpack.c.bf16 %v1529_v63, %v1527_v61  ;;  %v1803_v63 = vld [vmem:[%s4486_s12 + $0xfc0] sm:$0xff]  ;;  %v2490_v44 = vld [vmem:[%s5085_s28 + $0x48] sm:$0xff] }
 0x1eb   : > { %v1549_v61 = vld [vmem:[%s4486_s12 + $0x7d0] sm:$0xff] }
 0x1ec   : > { %2941 = vmatpush1.bf16.msra.mxu1 %v2940_v12  ;;  %v3216_v12 = vpack.c.bf16 %v1785_v1, %v1783_v29  ;;  %v3234_v29 = vpack.c.bf16 %v1806_v56, %v1804_v55  ;;  %v1552_v1 = vld [vmem:[%s4486_s12 + $0x7e8] sm:$0xff]  ;;  %v2493_v55 = vld [vmem:[%s5085_s28 + $0x60] sm:$0xff] }
 0x1ed   : > { %3197 = vmatpush1.bf16.msra.mxu0 %v3196_v13  ;;  %2943 = vmatprep.subr.bf16.mxu1 %v2942_v14  ;;  %v2962_v13 = vpack.c.bf16 %v1534_v34, %v1532_v6  ;;  %v1531_v14 = vld [vmem:[%s4486_s12 + $0x740] sm:$0xff]  ;;  %v1554_v6 = vld [vmem:[%s4486_s12 + $0x7f8] sm:$0xff]  ;;  %v1808_v34 = vld [vmem:[%s4486_s12 + $0xfe8] sm:$0xff] }
 0x1ee   : > { %3199 = vmatprep.subr.bf16.mxu0 %v3198_v16  ;;  %v1789_v16 = vld [vmem:[%s4486_s12 + $0xf50] sm:$0xff]  ;;  %v2964_v45 = vpack.c.bf16 %v1533_v15, %v1531_v14  ;;  %v1807_v15 = vld [vmem:[%s4486_s12 + $0xfe0] sm:$0xff]  ;;  %v2494_v56 = vld [vmem:[%s5085_s28 + $0x68] sm:$0xff] }
 0x1ef   : > { %v1553_v14 = vld [vmem:[%s4486_s12 + $0x7f0] sm:$0xff] }
 0x1f0   : > { %2945 = vmatpush1.bf16.msra.mxu1 %v2944_v23  ;;  %v3220_v23 = vpack.c.bf16 %v1789_v16, %v1787_v42  ;;  %v3238_v42 = vpack.c.bf16 %v1810_v7, %v1808_v34  ;;  %v2497_v16 = vld [vmem:[%s5085_s28 + $0x80] sm:$0xff] }
 0x1f1   : > { %3201 = vmatpush1.bf16.msra.mxu0 %v3200_v24  ;;  %2947 = vmatprep.subr.bf16.mxu1 %v2946_v25  ;;  %v2966_v24 = vpack.c.bf16 %v1538_v18, %v1536_v17  ;;  %v1535_v25 = vld [vmem:[%s4486_s12 + $0x760] sm:$0xff]  ;;  %v2498_v17 = vld [vmem:[%s5085_s28 + $0x88] sm:$0xff] }
 0x1f2   : > { %3203 = vmatprep.subr.bf16.mxu0 %v3202_v30  ;;  %v1793_v30 = vld [vmem:[%s4486_s12 + $0xf70] sm:$0xff]  ;;  %v2968_v35 = vpack.c.bf16 %v1537_v26, %v1535_v25  ;;  %v3242_v21 = vpack.c.bf16 %v2498_v17, %v2497_v16  ;;  %v2500_v25 = vld [vmem:[%s5085_s28 + $0x98] sm:$0xff] }
 0x1f4   : > { %2949 = vmatpush1.bf16.msra.mxu1 %v2948_v36  ;;  %v3224_v36 = vpack.c.bf16 %v1793_v30, %v1791_v27  ;;  %v2484_v30 = vld [vmem:[%s5085_s28 + $0x18] sm:$0xff] }
 0x1f5   : > { %3205 = vmatpush1.bf16.msra.mxu0 %v3204_v37  ;;  %2951 = vmatprep.subr.bf16.mxu1 %v2950_v3  ;;  %v2970_v37 = vpack.c.bf16 %v1542_v19, %v1540_v31  ;;  %v1539_v3 = vld [vmem:[%s4486_s12 + $0x780] sm:$0xff]  ;;  %v2502_v19 = vld [vmem:[%s5085_s28 + $0xa8] sm:$0xff] }
 0x1f6   : > { %3207 = vmatprep.subr.bf16.mxu0 %v3206_v9  ;;  %v1797_v9 = vld [vmem:[%s4486_s12 + $0xf90] sm:$0xff]  ;;  %v2972_v10 = vpack.c.bf16 %v1541_v38, %v1539_v3  ;;  %v2501_v31 = vld [vmem:[%s5085_s28 + $0xa0] sm:$0xff]  ;;  %v2504_v3 = vld [vmem:[%s5085_s28 + $0xb8] sm:$0xff] }
 0x1f7   : > { %v3250_v33 = vpack.c.bf16 %v2502_v19, %v2501_v31 }
 0x1f8   : > { %2953 = vmatpush1.bf16.msra.mxu1 %v2952_v46  ;;  %v3228_v46 = vpack.c.bf16 %v1797_v9, %v1795_v39  ;;  %v2487_v39 = vld [vmem:[%s5085_s28 + $0x30] sm:$0xff]  ;;  %v2506_v9 = vld [vmem:[%s5085_s28 + $0xc8] sm:$0xff] }
 0x1f9   : > { %3209 = vmatpush1.bf16.msra.mxu0 %v3208_v47  ;;  %2955 = vmatprep.subr.bf16.mxu1 %v2954_v48  ;;  %v2974_v47 = vpack.c.bf16 %v1546_v41, %v1544_v40  ;;  %v1543_v48 = vld [vmem:[%s4486_s12 + $0x7a0] sm:$0xff] }
 0x1fa   : > { %3211 = vmatprep.subr.bf16.mxu0 %v3210_v52  ;;  %v1801_v52 = vld [vmem:[%s4486_s12 + $0xfb0] sm:$0xff]  ;;  %v2976_v57 = vpack.c.bf16 %v1545_v49, %v1543_v48 }
 0x1fb   : > { %v2491_v49 = vld [vmem:[%s5085_s28 + $0x50] sm:$0xff] }
 0x1fc   : > { %2957 = vmatpush1.bf16.msra.mxu1 %v2956_v58  ;;  %v3232_v58 = vpack.c.bf16 %v1801_v52, %v1799_v50  ;;  %v2492_v50 = vld [vmem:[%s5085_s28 + $0x58] sm:$0xff]  ;;  %v2509_v52 = vld [vmem:[%s5085_s28 + $0xe0] sm:$0xff] }
 0x1fd   : > { %3213 = vmatpush1.bf16.msra.mxu0 %v3212_v59  ;;  %2959 = vmatprep.subr.bf16.mxu1 %v2958_v60  ;;  %v2978_v59 = vpack.c.bf16 %v1550_v54, %v1548_v53  ;;  %v1547_v60 = vld [vmem:[%s4486_s12 + $0x7c0] sm:$0xff]  ;;  %v2510_v53 = vld [vmem:[%s5085_s28 + $0xe8] sm:$0xff] }
 0x1fe   : > { %3215 = vmatprep.subr.bf16.mxu0 %v3214_v0  ;;  %v1805_v0 = vld [vmem:[%s4486_s12 + $0xfd0] sm:$0xff]  ;;  %v2980_v8 = vpack.c.bf16 %v1549_v61, %v1547_v60  ;;  %v3266_v54 = vpack.c.bf16 %v2510_v53, %v2509_v52 }
 0x1ff   : > { %v2495_v61 = vld [vmem:[%s5085_s28 + $0x70] sm:$0xff] }
 0x200   : > { %2961 = vmatpush1.bf16.msra.mxu1 %v2960_v11  ;;  %v3236_v11 = vpack.c.bf16 %v1805_v0, %v1803_v63  ;;  %v2496_v63 = vld [vmem:[%s5085_s28 + $0x78] sm:$0xff]  ;;  %v1815_v0 = vsub.s32 0, %v4484_v4 }
 0x201   : > { %3217 = vmatpush1.bf16.msra.mxu0 %v3216_v12  ;;  %2963 = vmatprep.subr.bf16.mxu1 %v2962_v13  ;;  %v2982_v12 = vpack.c.bf16 %v1554_v6, %v1552_v1  ;;  %v1551_v13 = vld [vmem:[%s4486_s12 + $0x7e0] sm:$0xff]  ;;  %v1819_v6 = vsub.s32 1, %v4484_v4 }
 0x202   : > { %3219 = vmatprep.subr.bf16.mxu0 %v3218_v62  ;;  %v1809_v62 = vld [vmem:[%s4486_s12 + $0xff0] sm:$0xff]  ;;  %v2984_v18 = vpack.c.bf16 %v1553_v14, %v1551_v13  ;;  %v1811_v1 = vld [vmem:[%s1287_s7] sm:$0x3] }
 0x203   : > { %v3240_v20 = vpack.c.bf16 %v1809_v62, %v1807_v15  ;;  %v1816_v34 = vrot.slane %v1811_v1, %v1815_v0  ;;  %v1820_v7 = vrot.slane %v1811_v1, %v1819_v6  ;;  %v2688_v4 = vld [vmem:[%s5173_s4] ss:$0 sm:$0xff] (!%p2687_p10) }
 0x204   : > { %2965 = vmatpush1.bf16.msra.mxu1 %v2964_v45  ;;  %v2481_v45 = vld [vmem:[%s5085_s28] sm:$0xff] }
 0x205   : > { %3221 = vmatpush1.bf16.msra.mxu0 %v3220_v23  ;;  %2967 = vmatprep.subr.bf16.mxu1 %v2966_v24  ;;  %v2482_v23 = vld [vmem:[%s5085_s28 + $0x8] sm:$0xff]  ;;  %v2499_v24 = vld [vmem:[%s5085_s28 + $0x90] sm:$0xff] }
 0x206   : > { %3223 = vmatprep.subr.bf16.mxu0 %v3222_v28  ;;  %v3244_v26 = vpack.c.bf16 %v2482_v23, %v2481_v45  ;;  %v3246_v27 = vpack.c.bf16 %v2500_v25, %v2499_v24  ;;  %v2483_v28 = vld [vmem:[%s5085_s28 + $0x10] sm:$0xff] }
 0x207   : > { %v3248_v32 = vpack.c.bf16 %v2484_v30, %v2483_v28 }
 0x208   : > { %2969 = vmatpush1.bf16.msra.mxu1 %v2968_v35  ;;  %v2485_v35 = vld [vmem:[%s5085_s28 + $0x20] sm:$0xff] }
 0x209   : > { %3225 = vmatpush1.bf16.msra.mxu0 %v3224_v36  ;;  %2971 = vmatprep.subr.bf16.mxu1 %v2970_v37  ;;  %v2486_v36 = vld [vmem:[%s5085_s28 + $0x28] sm:$0xff]  ;;  %v2503_v37 = vld [vmem:[%s5085_s28 + $0xb0] sm:$0xff] }
 0x20a   : > { %3227 = vmatprep.subr.bf16.mxu0 %v3226_v2  ;;  %v3252_v38 = vpack.c.bf16 %v2486_v36, %v2485_v35  ;;  %v2505_v2 = vld [vmem:[%s5085_s28 + $0xc0] sm:$0xff] }
 0x20b   : > { %v3258_v41 = vpack.c.bf16 %v2506_v9, %v2505_v2 }
 0x20c   : > { %2973 = vmatpush1.bf16.msra.mxu1 %v2972_v10  ;;  %v2507_v10 = vld [vmem:[%s5085_s28 + $0xd0] sm:$0xff] }
 0x20d   : > { %3229 = vmatpush1.bf16.msra.mxu0 %v3228_v46  ;;  %2975 = vmatprep.subr.bf16.mxu1 %v2974_v47  ;;  %v2508_v46 = vld [vmem:[%s5085_s28 + $0xd8] sm:$0xff]  ;;  %v3260_v47 = vpack.c.bf16 %v2490_v44, %v2489_v43 }
 0x20e   : > { %3231 = vmatprep.subr.bf16.mxu0 %v3230_v51  ;;  %v3262_v48 = vpack.c.bf16 %v2508_v46, %v2507_v10  ;;  %v3264_v51 = vpack.c.bf16 %v2492_v50, %v2491_v49 }
 0x210   : > { %2977 = vmatpush1.bf16.msra.mxu1 %v2976_v57  ;;  %v3268_v57 = vpack.c.bf16 %v2494_v56, %v2493_v55 }
 0x211   : > { %3233 = vmatpush1.bf16.msra.mxu0 %v3232_v58  ;;  %2979 = vmatprep.subr.bf16.mxu1 %v2978_v59  ;;  %v2511_v58 = vld [vmem:[%s5085_s28 + $0xf0] sm:$0xff]  ;;  %v2512_v59 = vld [vmem:[%s5085_s28 + $0xf8] sm:$0xff] }
 0x212   : > { %3235 = vmatprep.subr.bf16.mxu0 %v3234_v29  ;;  %v3270_v60 = vpack.c.bf16 %v2512_v59, %v2511_v58  ;;  %v3272_v29 = vpack.c.bf16 %v2496_v63, %v2495_v61 }
 0x214   : > { %2981 = vmatpush1.bf16.msra.mxu1 %v2980_v8 }
 0x215   : > { %3237 = vmatpush1.bf16.msra.mxu0 %v3236_v11  ;;  %2983 = vmatprep.subr.bf16.mxu1 %v2982_v12 }
 0x216   : > { %3239 = vmatprep.subr.bf16.mxu0 %v3238_v42 }
 0x218   : > { %2985 = vmatpush1.bf16.msra.mxu1 %v2984_v18 }
 0x219   : > { %3241 = vmatpush1.bf16.msra.mxu0 %v3240_v20  ;;  %3243 = vmatprep.subr.bf16.mxu1 %v3242_v21 }
 0x21b   : > { %2189 = vmatmul.mubr.f32.vlgmr.msra.gmra.mrb[0].mxu1 %v4947_v5  ;;  %v3254_v5 = vpack.c.bf16 %v2504_v3, %v2503_v37 }
 0x21c   : > { %2473 = vmatmul.mubr.f32.vlgmr.msra.gmra.mrb[0].mxu0 %v4952_v22  ;;  %3245 = vmatpush3.bf16.msra.mxu1 %v3244_v26  ;;  %v2488_v22 = vld [vmem:[%s5085_s28 + $0x38] sm:$0xff] }
 0x21d   : > { %3247 = vmatprep.subr.bf16.mxu1 %v3246_v27  ;;  %v3256_v40 = vpack.c.bf16 %v2488_v22, %v2487_v39 }
 0x220   : > { %3249 = vmatpush3.bf16.msra.mxu1 %v3248_v32 }
 0x221   : > { %3251 = vmatprep.subr.bf16.mxu1 %v3250_v33 }
 0x224   : > { %3253 = vmatpush3.bf16.msra.mxu1 %v3252_v38 }
 0x225   : > { %3255 = vmatprep.subr.bf16.mxu1 %v3254_v5 }
 0x228   : > { %3257 = vmatpush3.bf16.msra.mxu1 %v3256_v40 }
 0x229   : > { %3259 = vmatprep.subr.bf16.mxu1 %v3258_v41 }
 0x22c   : > { %3261 = vmatpush3.bf16.msra.mxu1 %v3260_v47 }
 0x22d   : > { %3263 = vmatprep.subr.bf16.mxu1 %v3262_v48 }
 0x230   : > { %3265 = vmatpush3.bf16.msra.mxu1 %v3264_v51 }
 0x231   : > { %3267 = vmatprep.subr.bf16.mxu1 %v3266_v54 }
 0x234   : > { %3269 = vmatpush3.bf16.msra.mxu1 %v3268_v57 }
 0x235   : > { %3271 = vmatprep.subr.bf16.mxu1 %v3270_v60 }
 0x238   : > { %3273 = vmatpush3.bf16.msra.mxu1 %v3272_v29 }
 0x2ee   : > { %v2190_v8 = vpop.f32.mrb[0].mxu1 }
 0x2ef   : > { %v3274_v11 = vadd.f32 %v2190_v8, %v1816_v34  ;;  %v2474_v12 = vpop.f32.mrb[0].mxu0  ;;  %v2192_v13 = vpop.f32.mrb[1].mxu1 }
 0x2f0   : > { %v3276_v14 = vadd.f32 %v2192_v13, %v1820_v7  ;;  %v2476_v15 = vpop.f32.mrb[1].mxu0 }
 0x2f1   : > { %v3275_v42 = vadd.f32 %v3274_v11, %v2474_v12 }
 0x2f2   : > { %v3277_v62 = vadd.f32 %v3276_v14, %v2476_v15 }
 0x2f3   : > { %v2479_v17 = vmax.f32 %v3275_v42, 0.0 }
 0x2f4   : > { %v2480_v16 = vmax.f32 %v3277_v62, 0.0 }
 0x2f6   : > { %2577 = vmatprep.mubr.f32.mxu1 %v2480_v16 }
 0x2f7   : > { %2578 = vmatmul.mubr.f32.vlgmr.msra.gmra.mrb[2].mxu1 %v2479_v17 }
 0x3c6   : > { %2586 = sbr.rel (%p2687_p10) target bundleno = 977 (0x3d1), region = 67 }
 0x3ca   : > { %v2727_v18 = vpop.f32.mrb[2].mxu1 }
 0x3cb   : > { %v2728_v20 = vpop.f32.mrb[3].mxu1 }
 0x3cc   : > { %v2729_v21 = vadd.f32 %v2728_v20, %v2727_v18 }
 0x3ce   : > { %v2594_v45 = vadd.f32 %v2729_v21, %v2688_v4 }
 0x3d0   : > { %2595 = vst [vmem:[#allocation3] sm:$0x3] %v2594_v45 }
 0x3d1 PF: > { %p2689_p11 = scmp.eq.s32.totalorder %s3428_s21, 0 }
 0x3d3   : > { %2599 = sbr.rel (%p2689_p11) target bundleno = 987 (0x3db), region = 71 }
 0x3d7   : > { %v2600_v23 = vld [vmem:[#allocation3] sm:$0x3] (!%p2689_p11) }
 0x3d8   : > { %v2601_v24 = vadd.f32 (!%p2689_p11), %v2729_v21, %v2600_v23 }
 0x3da   : > { %2602 = vst [vmem:[#allocation3] sm:$0x3] %v2601_v24 }
 0x3db PF: > { %p3294_p12 = scmp.eq.s32.totalorder %s3428_s21, 1  ;;  %s3381_s10 = smov [#allocation3]  }
 0x3dc   : > { %s2610_s11 = sshll.u32 %s3381_s10, 4  ;;  %s2611_s11 = int_to_ptr.vmem [resolvable:$true] %s2610_s11 }
 0x3dd   : > { %s3326_s12 = scalar_lea.vmem %s2611_s11, 32  ;;  %p3333_p2 = scmp.lt.s32.totalorder %s2611_s11, %s2611_s11 }
 0x3de   : > { %p3327_p13 = scmp.ne.s32.totalorder %s2611_s11, %s3326_s12  ;;  %p3334_p3 = scmp.lt.s32.totalorder %s3326_s12, %s3326_s12 }
 0x3e0   : > { %p3328_p0 = pnand %p3327_p13, %p3294_p12  ;;  %p3335_p4 = por %p3334_p3, %p3333_p2 }
 0x3e2   : > { %p3329_p1 = pneg %p3328_p0 }
 0x3e4   : > { %p3336_p5 = pnand %p3335_p4, %p3329_p1 }
 0x3e6   : > { %3339 = shalt.err (!%p3336_p5)
}
 0x3e7   : > { %s3340_s15 = scalar_lea.hbm %s5174_s5, 32 }
 0x3e8   : > { %p3341_p6 = scmp.ne.s32.totalorder %s5174_s5, %s3340_s15  ;;  %p3346_p9 = scmp.lt.u32.totalorder %s3340_s15, %s5174_s5 }
 0x3ea   : > { %p3342_p7 = pnand %p3341_p6, %p3294_p12 }
 0x3ec   : > { %p3343_p8 = pneg %p3342_p7 }
 0x3ee   : > { %p3348_p10 = pnand %p3346_p9, %p3343_p8 }
 0x3f0   : > { %3351 = shalt.err (!%p3348_p10)
}
 0x3f1   : > { %3291 = dma.vmem_to_hbm [thread:$0]  (%p3294_p12), %s2611_s11, 32, %s5174_s5, [#allocation4]  }
 0x3f2   : > { %3365 = dma.done.wait (%p3294_p12), [#allocation4], 32  }
 0x3f3   : > { %3367 = vsyncadd (%p3294_p12), [#allocation4], 4294967264 }
 0x3f4 PF: > { %p13_p11 = scmp.ge.s32.totalorder %s3431_s22, 4   ;;  %s5176_s18 = smov %s3374_s19 }
 0x3f5   : > { %s5177_s19 = smov %s3440_s25  ;;  %s5178_s20 = smov %s3431_s22 }
 0x3f6   :  { %15 = sbr.rel (!%p13_p11) target bundleno = 2 (0x2), region = 109 }
 0x3fd   :  { %2623 = vsyncpa [#allocation4], 1 }
 0x3fe   :  { %2625 = vsyncpa [#allocation4 + $0x1], 1 }

// kernel: simple_cnn_forward.2
= control target key start
LH: loop header
LB: loop body
LE: loop exit
PB: predicated region body
PF: predicated region fallthrough
CT: control target
= control target key end

     0   :  { %s8835_s18 = smov 0   ;;  %s10518_s0 = inlined_call_operand.vmem [shape: f32[2048,27], index: 0, kind: input, shape index: {}]   ;;  %s10519_s1 = inlined_call_operand.vmem [shape: f32[27,16], index: 1, kind: input, shape index: {}]   ;;  %s10520_s2 = inlined_call_operand.vmem [shape: f32[1,16], index: 2, kind: input, shape index: {}]   ;;  %s10521_s3 = inlined_call_operand.vmem [shape: f32[9,16,32], index: 3, kind: input, shape index: {}]   ;;  %s10522_s4 = inlined_call_operand.vmem [shape: f32[1,32], index: 4, kind: input, shape index: {}]   ;;  %s10523_s5 = inlined_call_operand.vmem [shape: f32[128,32], index: 5, kind: output, shape index: {}]  }
   0x1 LB: > { %s6592_s19 = sadd.s32 4294967295, %s8801_s18   ;;  %p6596_p0 = scmp.ge.s32.totalorder %s8801_s18, 1  ;;  %s8801_s18 = sphi %s8835_s18, %s15_s18  }
   0x2   : > { %p188_p1 = scmp.lt.s32.totalorder %s8801_s18, 3 }
   0x4   : > { %p189_p2 = pnand %p6596_p0, %p188_p1 }
   0x6   : > { %192 = sbr.rel (%p189_p2) target bundleno = 872 (0x368), region = 40 }
   0xd   : > { %v228_v0 = vld [vmem:[%s10519_s1] sm:$0xff]  ;;  %v229_v1 = vld [vmem:[%s10519_s1 + $0x8] sm:$0xff]  ;;  %v230_v2 = vld [vmem:[%s10519_s1 + $0x10] sm:$0xff]  ;;  %vm361_vm0 = vcmask 1042432   ;;  %s6597_s26 = sshll.u32 %s6592_s19, 7  ;;  %vm8803_vm1 = vmmov 1  }
   0xe   : > { %v8345_v3 = vpack.c.bf16 %v229_v1, %v228_v0  ;;  %v231_v4 = vld [vmem:[%s10519_s1 + $0x18] sm:$0x7]  ;;  %p217_p3 = scmp.lt.s32.totalorder %s6597_s26, 255  ;;  %vm8857_vm2 = vmpackc.low %vm361_vm0, %vm8803_vm1  ;;  %vm264_vm3 = vcmask 220160   ;;  %vm1816_vm4 = vcmask 130048   ;;  %vm1818_vm5 = vcmask 123904  }
   0xf   : > { %v8349_v5 = vpack.c.bf16 %v231_v4, %v230_v2  ;;  %s6599_s25 = sshll.u32 %s6592_s19, 3  ;;  %vm6527_vm6 = vcmask 261120  }
  0x10   : > { %8346 = vmatprep.subr.bf16.mxu0 %v8345_v3  ;;  %8356 = vmatprep.subr.bf16.mxu1 %v8345_v3  ;;  %s10618_s26 = smov (!%p217_p3, %s6597_s26), 255  ;;  %p223_p4 = scmp.lt.s32.totalorder %s6599_s25, 15 }
  0x11   : > { %8348 = vmatpush3.bf16.msra.mxu0 %v8345_v3  ;;  %8358 = vmatpush3.bf16.msra.mxu1 %v8345_v3  ;;  %s6598_s29 = sshll.u32 %s10618_s26, 3 }
  0x12   : > { %8351 = vmatprep.subr.msk.bf16.mxu0 %vm8857_vm2, %v8349_v5  ;;  %8361 = vmatprep.subr.msk.bf16.mxu1 %vm8857_vm2, %v8349_v5  ;;  %s8868_s7 = scalar_lea.vmem %s10518_s0, %s6598_s29  ;;  %s10620_s25 = smov (!%p223_p4, %s6599_s25), 15 }
  0x13   : > { %v232_v7 = vld [vmem:[%s8868_s7] sm:$0xff]  ;;  %v233_v9 = vld [vmem:[%s8868_s7 + $0x8] sm:$0xff]  ;;  %v234_v11 = vld [vmem:[%s8868_s7 + $0x10] sm:$0xff]  ;;  %s6600_s19 = sshll.u32 %s10620_s25, 3 }
  0x14   : > { %v590_v8 = vld [vmem:[%s8868_s7 + $0x100] sm:$0xff]  ;;  %v591_v10 = vld [vmem:[%s8868_s7 + $0x108] sm:$0xff]  ;;  %7553 = vmatprep.mubr.msk.f32.mxu0 %vm264_vm3, %v232_v7  ;;  %v592_v12 = vld [vmem:[%s8868_s7 + $0x110] sm:$0xff]  ;;  %s10497_s30 = scalar_lea.vmem %s10523_s5, %s6600_s19 }
  0x15   : > { %8354 = vmatpush3.bf16.msk.msra.mxu0 %vm8857_vm2, %v8349_v5  ;;  %8364 = vmatpush3.bf16.msk.msra.mxu1 %vm8857_vm2, %v8349_v5  ;;  %v235_v13 = vld [vmem:[%s8868_s7 + $0x18] sm:$0xff]  ;;  %v236_v15 = vld [vmem:[%s8868_s7 + $0x20] sm:$0xff]  ;;  %v237_v17 = vld [vmem:[%s8868_s7 + $0x28] sm:$0xff] }
  0x16   : > { %7609 = vmatprep.mubr.msk.f32.mxu1 %vm264_vm3, %v590_v8  ;;  %8366 = vmatprep.subr.bf16.mxu0 %v8345_v3  ;;  %v593_v14 = vld [vmem:[%s8868_s7 + $0x118] sm:$0xff]  ;;  %v594_v16 = vld [vmem:[%s8868_s7 + $0x120] sm:$0xff]  ;;  %v595_v18 = vld [vmem:[%s8868_s7 + $0x128] sm:$0xff] }
  0x17   : > { %8376 = vmatprep.subr.bf16.mxu1 %v8345_v3  ;;  %v238_v19 = vld [vmem:[%s8868_s7 + $0x30] sm:$0xff]  ;;  %v239_v21 = vld [vmem:[%s8868_s7 + $0x38] sm:$0xff]  ;;  %v240_v23 = vld [vmem:[%s8868_s7 + $0x40] sm:$0xff] }
  0x18   : > { %7554 = vmatmul.mubr.msk.f32.vlgmr.msra.gmra.mrb[0].mxu0 %vm264_vm3, %v233_v9  ;;  %7610 = vmatmul.mubr.msk.f32.vlgmr.msra.gmra.mrb[0].mxu1 %vm264_vm3, %v591_v10  ;;  %v596_v20 = vld [vmem:[%s8868_s7 + $0x130] sm:$0xff]  ;;  %v597_v22 = vld [vmem:[%s8868_s7 + $0x138] sm:$0xff]  ;;  %v598_v24 = vld [vmem:[%s8868_s7 + $0x140] sm:$0xff] }
  0x19   : > { %8368 = vmatpush3.bf16.msra.mxu0 %v8345_v3  ;;  %7556 = vmatprep.mubr.msk.f32.mxu0 %vm264_vm3, %v234_v11  ;;  %v241_v25 = vld [vmem:[%s8868_s7 + $0x48] sm:$0xff]  ;;  %v242_v27 = vld [vmem:[%s8868_s7 + $0x50] sm:$0xff]  ;;  %v243_v29 = vld [vmem:[%s8868_s7 + $0x58] sm:$0xff] }
  0x1a   : > { %7612 = vmatprep.mubr.msk.f32.mxu1 %vm264_vm3, %v592_v12  ;;  %8378 = vmatpush3.bf16.msra.mxu1 %v8345_v3  ;;  %v599_v26 = vld [vmem:[%s8868_s7 + $0x148] sm:$0xff]  ;;  %v600_v28 = vld [vmem:[%s8868_s7 + $0x150] sm:$0xff]  ;;  %v601_v30 = vld [vmem:[%s8868_s7 + $0x158] sm:$0xff] }
  0x1b   : > { %8371 = vmatprep.subr.msk.bf16.mxu0 %vm8857_vm2, %v8349_v5  ;;  %8381 = vmatprep.subr.msk.bf16.mxu1 %vm8857_vm2, %v8349_v5  ;;  %v244_v31 = vld [vmem:[%s8868_s7 + $0x60] sm:$0xff]  ;;  %v245_v33 = vld [vmem:[%s8868_s7 + $0x68] sm:$0xff]  ;;  %v246_v35 = vld [vmem:[%s8868_s7 + $0x70] sm:$0xff] }
  0x1c   : > { %7557 = vmatmul.mubr.msk.f32.gmra.mrb[2].mxu0 %vm264_vm3, %v235_v13  ;;  %7613 = vmatmul.mubr.msk.f32.gmra.mrb[2].mxu1 %vm264_vm3, %v593_v14  ;;  %v602_v32 = vld [vmem:[%s8868_s7 + $0x160] sm:$0xff]  ;;  %v603_v34 = vld [vmem:[%s8868_s7 + $0x168] sm:$0xff]  ;;  %v604_v36 = vld [vmem:[%s8868_s7 + $0x170] sm:$0xff] }
  0x1d   : > { %7559 = vmatprep.mubr.msk.f32.mxu0 %vm264_vm3, %v236_v15  ;;  %7615 = vmatprep.mubr.msk.f32.mxu1 %vm264_vm3, %v594_v16  ;;  %v247_v37 = vld [vmem:[%s8868_s7 + $0x78] sm:$0xff]  ;;  %v248_v39 = vld [vmem:[%s8868_s7 + $0x80] sm:$0xff]  ;;  %v249_v41 = vld [vmem:[%s8868_s7 + $0x88] sm:$0xff] }
  0x1e   : > { %8374 = vmatpush3.bf16.msk.msra.mxu0 %vm8857_vm2, %v8349_v5  ;;  %8384 = vmatpush3.bf16.msk.msra.mxu1 %vm8857_vm2, %v8349_v5  ;;  %v605_v38 = vld [vmem:[%s8868_s7 + $0x178] sm:$0xff]  ;;  %v606_v40 = vld [vmem:[%s8868_s7 + $0x180] sm:$0xff]  ;;  %v607_v42 = vld [vmem:[%s8868_s7 + $0x188] sm:$0xff] }
  0x1f   : > { %v250_v43 = vld [vmem:[%s8868_s7 + $0x90] sm:$0xff]  ;;  %v251_v45 = vld [vmem:[%s8868_s7 + $0x98] sm:$0xff]  ;;  %v252_v47 = vld [vmem:[%s8868_s7 + $0xa0] sm:$0xff] }
  0x20   : > { %7560 = vmatmul.mubr.msk.f32.gmra.mrb[4].mxu0 %vm264_vm3, %v237_v17  ;;  %7616 = vmatmul.mubr.msk.f32.gmra.mrb[4].mxu1 %vm264_vm3, %v595_v18  ;;  %v608_v44 = vld [vmem:[%s8868_s7 + $0x190] sm:$0xff]  ;;  %v609_v46 = vld [vmem:[%s8868_s7 + $0x198] sm:$0xff]  ;;  %v610_v48 = vld [vmem:[%s8868_s7 + $0x1a0] sm:$0xff] }
  0x21   : > { %7562 = vmatprep.mubr.msk.f32.mxu0 %vm264_vm3, %v238_v19  ;;  %7618 = vmatprep.mubr.msk.f32.mxu1 %vm264_vm3, %v596_v20  ;;  %v253_v49 = vld [vmem:[%s8868_s7 + $0xa8] sm:$0xff]  ;;  %v254_v51 = vld [vmem:[%s8868_s7 + $0xb0] sm:$0xff]  ;;  %v255_v53 = vld [vmem:[%s8868_s7 + $0xb8] sm:$0xff] }
  0x22   : > { %v611_v50 = vld [vmem:[%s8868_s7 + $0x1a8] sm:$0xff]  ;;  %v612_v52 = vld [vmem:[%s8868_s7 + $0x1b0] sm:$0xff]  ;;  %v613_v54 = vld [vmem:[%s8868_s7 + $0x1b8] sm:$0xff] }
  0x23   : > { %v256_v55 = vld [vmem:[%s8868_s7 + $0xc0] sm:$0xff]  ;;  %v257_v57 = vld [vmem:[%s8868_s7 + $0xc8] sm:$0xff]  ;;  %v258_v59 = vld [vmem:[%s8868_s7 + $0xd0] sm:$0xff] }
  0x24   : > { %7563 = vmatmul.mubr.msk.f32.gmra.mrb[6].mxu0 %vm264_vm3, %v239_v21  ;;  %7619 = vmatmul.mubr.msk.f32.gmra.mrb[6].mxu1 %vm264_vm3, %v597_v22  ;;  %v614_v56 = vld [vmem:[%s8868_s7 + $0x1c0] sm:$0xff]  ;;  %v615_v58 = vld [vmem:[%s8868_s7 + $0x1c8] sm:$0xff]  ;;  %v616_v60 = vld [vmem:[%s8868_s7 + $0x1d0] sm:$0xff] }
  0x25   : > { %7565 = vmatprep.mubr.msk.f32.mxu0 %vm264_vm3, %v240_v23  ;;  %7621 = vmatprep.mubr.msk.f32.mxu1 %vm264_vm3, %v598_v24  ;;  %v259_v61 = vld [vmem:[%s8868_s7 + $0xd8] sm:$0xff]  ;;  %v260_v63 = vld [vmem:[%s8868_s7 + $0xe0] sm:$0xff]  ;;  %v261_v1 = vld [vmem:[%s8868_s7 + $0xe8] sm:$0xff] }
  0x26   : > { %v617_v62 = vld [vmem:[%s8868_s7 + $0x1d8] sm:$0xff]  ;;  %v618_v0 = vld [vmem:[%s8868_s7 + $0x1e0] sm:$0xff]  ;;  %v619_v2 = vld [vmem:[%s8868_s7 + $0x1e8] sm:$0xff] }
  0x27   : > { %v262_v3 = vld [vmem:[%s8868_s7 + $0xf0] sm:$0xff]  ;;  %v263_v5 = vld [vmem:[%s8868_s7 + $0xf8] sm:$0xff]  ;;  %v975_v7 = vld [vmem:[%s8868_s7 + $0x200] sm:$0xff] }
  0x28   : > { %7566 = vmatmul.mubr.msk.f32.gmra.mrb[8].mxu0 %vm264_vm3, %v241_v25  ;;  %7622 = vmatmul.mubr.msk.f32.gmra.mrb[8].mxu1 %vm264_vm3, %v599_v26  ;;  %v620_v4 = vld [vmem:[%s8868_s7 + $0x1f0] sm:$0xff]  ;;  %v621_v6 = vld [vmem:[%s8868_s7 + $0x1f8] sm:$0xff]  ;;  %v1360_v8 = vld [vmem:[%s8868_s7 + $0x300] sm:$0xff] }
  0x29   : > { %7568 = vmatprep.mubr.msk.f32.mxu0 %vm264_vm3, %v242_v27  ;;  %7624 = vmatprep.mubr.msk.f32.mxu1 %vm264_vm3, %v600_v28  ;;  %v976_v9 = vld [vmem:[%s8868_s7 + $0x208] sm:$0xff]  ;;  %v977_v11 = vld [vmem:[%s8868_s7 + $0x210] sm:$0xff]  ;;  %v978_v13 = vld [vmem:[%s8868_s7 + $0x218] sm:$0xff] }
  0x2a   : > { %v1361_v10 = vld [vmem:[%s8868_s7 + $0x308] sm:$0xff]  ;;  %v1362_v12 = vld [vmem:[%s8868_s7 + $0x310] sm:$0xff]  ;;  %v1363_v14 = vld [vmem:[%s8868_s7 + $0x318] sm:$0xff] }
  0x2b   : > { %v979_v15 = vld [vmem:[%s8868_s7 + $0x220] sm:$0xff]  ;;  %v980_v17 = vld [vmem:[%s8868_s7 + $0x228] sm:$0xff]  ;;  %v981_v19 = vld [vmem:[%s8868_s7 + $0x230] sm:$0xff] }
  0x2c   : > { %7569 = vmatmul.mubr.msk.f32.gmra.mrb[10].mxu0 %vm264_vm3, %v243_v29  ;;  %7625 = vmatmul.mubr.msk.f32.gmra.mrb[10].mxu1 %vm264_vm3, %v601_v30  ;;  %v1364_v16 = vld [vmem:[%s8868_s7 + $0x320] sm:$0xff]  ;;  %v1365_v18 = vld [vmem:[%s8868_s7 + $0x328] sm:$0xff]  ;;  %v1366_v20 = vld [vmem:[%s8868_s7 + $0x330] sm:$0xff] }
  0x2d   : > { %7571 = vmatprep.mubr.msk.f32.mxu0 %vm264_vm3, %v244_v31  ;;  %7627 = vmatprep.mubr.msk.f32.mxu1 %vm264_vm3, %v602_v32  ;;  %v982_v21 = vld [vmem:[%s8868_s7 + $0x238] sm:$0xff]  ;;  %v983_v23 = vld [vmem:[%s8868_s7 + $0x240] sm:$0xff]  ;;  %v984_v25 = vld [vmem:[%s8868_s7 + $0x248] sm:$0xff] }
  0x2e   : > { %v1367_v22 = vld [vmem:[%s8868_s7 + $0x338] sm:$0xff]  ;;  %v1368_v24 = vld [vmem:[%s8868_s7 + $0x340] sm:$0xff]  ;;  %v1369_v26 = vld [vmem:[%s8868_s7 + $0x348] sm:$0xff] }
  0x2f   : > { %v985_v27 = vld [vmem:[%s8868_s7 + $0x250] sm:$0xff]  ;;  %v986_v29 = vld [vmem:[%s8868_s7 + $0x258] sm:$0xff]  ;;  %v987_v31 = vld [vmem:[%s8868_s7 + $0x260] sm:$0xff] }
  0x30   : > { %7572 = vmatmul.mubr.msk.f32.gmra.mrb[12].mxu0 %vm264_vm3, %v245_v33  ;;  %7628 = vmatmul.mubr.msk.f32.gmra.mrb[12].mxu1 %vm264_vm3, %v603_v34  ;;  %v1370_v28 = vld [vmem:[%s8868_s7 + $0x350] sm:$0xff]  ;;  %v1371_v30 = vld [vmem:[%s8868_s7 + $0x358] sm:$0xff]  ;;  %v1372_v32 = vld [vmem:[%s8868_s7 + $0x360] sm:$0xff] }
  0x31   : > { %7574 = vmatprep.mubr.msk.f32.mxu0 %vm264_vm3, %v246_v35  ;;  %7630 = vmatprep.mubr.msk.f32.mxu1 %vm264_vm3, %v604_v36  ;;  %v988_v33 = vld [vmem:[%s8868_s7 + $0x268] sm:$0xff]  ;;  %v989_v35 = vld [vmem:[%s8868_s7 + $0x270] sm:$0xff] }
  0x32   : > { %v1373_v34 = vld [vmem:[%s8868_s7 + $0x368] sm:$0xff]  ;;  %v1374_v36 = vld [vmem:[%s8868_s7 + $0x370] sm:$0xff] }
  0x34   : > { %7575 = vmatmul.mubr.msk.f32.gmra.mrb[14].mxu0 %vm264_vm3, %v247_v37  ;;  %7631 = vmatmul.mubr.msk.f32.gmra.mrb[14].mxu1 %vm264_vm3, %v605_v38  ;;  %v990_v37 = vld [vmem:[%s8868_s7 + $0x278] sm:$0xff] }
  0x35   : > { %7577 = vmatprep.mubr.msk.f32.mxu0 %vm264_vm3, %v248_v39  ;;  %7633 = vmatprep.mubr.msk.f32.mxu1 %vm264_vm3, %v606_v40  ;;  %v1375_v38 = vld [vmem:[%s8868_s7 + $0x378] sm:$0xff]  ;;  %v991_v39 = vld [vmem:[%s8868_s7 + $0x280] sm:$0xff] }
  0x36   : > { %v1376_v40 = vld [vmem:[%s8868_s7 + $0x380] sm:$0xff] }
  0x38   : > { %7578 = vmatmul.mubr.msk.f32.gmra.mrb[16].mxu0 %vm264_vm3, %v249_v41  ;;  %7634 = vmatmul.mubr.msk.f32.gmra.mrb[16].mxu1 %vm264_vm3, %v607_v42  ;;  %v992_v41 = vld [vmem:[%s8868_s7 + $0x288] sm:$0xff] }
  0x39   : > { %7580 = vmatprep.mubr.msk.f32.mxu0 %vm264_vm3, %v250_v43  ;;  %7636 = vmatprep.mubr.msk.f32.mxu1 %vm264_vm3, %v608_v44  ;;  %v1377_v42 = vld [vmem:[%s8868_s7 + $0x388] sm:$0xff]  ;;  %v993_v43 = vld [vmem:[%s8868_s7 + $0x290] sm:$0xff] }
  0x3a   : > { %v1378_v44 = vld [vmem:[%s8868_s7 + $0x390] sm:$0xff] }
  0x3c   : > { %7581 = vmatmul.mubr.msk.f32.gmra.mrb[18].mxu0 %vm264_vm3, %v251_v45  ;;  %7637 = vmatmul.mubr.msk.f32.gmra.mrb[18].mxu1 %vm264_vm3, %v609_v46  ;;  %v994_v45 = vld [vmem:[%s8868_s7 + $0x298] sm:$0xff] }
  0x3d   : > { %7583 = vmatprep.mubr.msk.f32.mxu0 %vm264_vm3, %v252_v47  ;;  %7639 = vmatprep.mubr.msk.f32.mxu1 %vm264_vm3, %v610_v48  ;;  %v1379_v46 = vld [vmem:[%s8868_s7 + $0x398] sm:$0xff]  ;;  %v995_v47 = vld [vmem:[%s8868_s7 + $0x2a0] sm:$0xff] }
  0x3e   : > { %v1380_v48 = vld [vmem:[%s8868_s7 + $0x3a0] sm:$0xff] }
  0x40   : > { %7584 = vmatmul.mubr.msk.f32.gmra.mrb[20].mxu0 %vm264_vm3, %v253_v49  ;;  %7640 = vmatmul.mubr.msk.f32.gmra.mrb[20].mxu1 %vm264_vm3, %v611_v50  ;;  %v996_v49 = vld [vmem:[%s8868_s7 + $0x2a8] sm:$0xff] }
  0x41   : > { %7586 = vmatprep.mubr.msk.f32.mxu0 %vm264_vm3, %v254_v51  ;;  %7642 = vmatprep.mubr.msk.f32.mxu1 %vm264_vm3, %v612_v52  ;;  %v1381_v50 = vld [vmem:[%s8868_s7 + $0x3a8] sm:$0xff]  ;;  %v997_v51 = vld [vmem:[%s8868_s7 + $0x2b0] sm:$0xff] }
  0x42   : > { %v1382_v52 = vld [vmem:[%s8868_s7 + $0x3b0] sm:$0xff] }
  0x44   : > { %7587 = vmatmul.mubr.msk.f32.gmra.mrb[22].mxu0 %vm264_vm3, %v255_v53  ;;  %7643 = vmatmul.mubr.msk.f32.gmra.mrb[22].mxu1 %vm264_vm3, %v613_v54  ;;  %v998_v53 = vld [vmem:[%s8868_s7 + $0x2b8] sm:$0xff] }
  0x45   : > { %7589 = vmatprep.mubr.msk.f32.mxu0 %vm264_vm3, %v256_v55  ;;  %7645 = vmatprep.mubr.msk.f32.mxu1 %vm264_vm3, %v614_v56  ;;  %v1383_v54 = vld [vmem:[%s8868_s7 + $0x3b8] sm:$0xff]  ;;  %v999_v55 = vld [vmem:[%s8868_s7 + $0x2c0] sm:$0xff] }
  0x46   : > { %v1384_v56 = vld [vmem:[%s8868_s7 + $0x3c0] sm:$0xff] }
  0x48   : > { %7590 = vmatmul.mubr.msk.f32.gmra.mrb[24].mxu0 %vm264_vm3, %v257_v57  ;;  %7646 = vmatmul.mubr.msk.f32.gmra.mrb[24].mxu1 %vm264_vm3, %v615_v58  ;;  %v1000_v57 = vld [vmem:[%s8868_s7 + $0x2c8] sm:$0xff] }
  0x49   : > { %7592 = vmatprep.mubr.msk.f32.mxu0 %vm264_vm3, %v258_v59  ;;  %7648 = vmatprep.mubr.msk.f32.mxu1 %vm264_vm3, %v616_v60  ;;  %v1385_v58 = vld [vmem:[%s8868_s7 + $0x3c8] sm:$0xff]  ;;  %v1001_v59 = vld [vmem:[%s8868_s7 + $0x2d0] sm:$0xff] }
  0x4a   : > { %v1386_v60 = vld [vmem:[%s8868_s7 + $0x3d0] sm:$0xff] }
  0x4c   : > { %7593 = vmatmul.mubr.msk.f32.gmra.mrb[26].mxu0 %vm264_vm3, %v259_v61  ;;  %7649 = vmatmul.mubr.msk.f32.gmra.mrb[26].mxu1 %vm264_vm3, %v617_v62  ;;  %v1002_v61 = vld [vmem:[%s8868_s7 + $0x2d8] sm:$0xff] }
  0x4d   : > { %7595 = vmatprep.mubr.msk.f32.mxu0 %vm264_vm3, %v260_v63  ;;  %7651 = vmatprep.mubr.msk.f32.mxu1 %vm264_vm3, %v618_v0  ;;  %v1387_v62 = vld [vmem:[%s8868_s7 + $0x3d8] sm:$0xff]  ;;  %v1003_v63 = vld [vmem:[%s8868_s7 + $0x2e0] sm:$0xff] }
  0x4e   : > { %v1388_v0 = vld [vmem:[%s8868_s7 + $0x3e0] sm:$0xff] }
  0x50   : > { %7596 = vmatmul.mubr.msk.f32.gmra.mrb[28].mxu0 %vm264_vm3, %v261_v1  ;;  %7652 = vmatmul.mubr.msk.f32.gmra.mrb[28].mxu1 %vm264_vm3, %v619_v2  ;;  %v1004_v1 = vld [vmem:[%s8868_s7 + $0x2e8] sm:$0xff] }
  0x51   : > { %7598 = vmatprep.mubr.msk.f32.mxu0 %vm264_vm3, %v262_v3  ;;  %7654 = vmatprep.mubr.msk.f32.mxu1 %vm264_vm3, %v620_v4  ;;  %v1389_v2 = vld [vmem:[%s8868_s7 + $0x3e8] sm:$0xff]  ;;  %v1005_v3 = vld [vmem:[%s8868_s7 + $0x2f0] sm:$0xff] }
  0x52   : > { %v1390_v4 = vld [vmem:[%s8868_s7 + $0x3f0] sm:$0xff] }
  0x54   : > { %7599 = vmatmul.mubr.msk.f32.gmra.mrb[30].mxu0 %vm264_vm3, %v263_v5  ;;  %7655 = vmatmul.mubr.msk.f32.gmra.mrb[30].mxu1 %vm264_vm3, %v621_v6  ;;  %v1006_v5 = vld [vmem:[%s8868_s7 + $0x2f8] sm:$0xff] }
  0x55   : > { %7665 = vmatprep.mubr.msk.f32.mxu0 %vm264_vm3, %v975_v7  ;;  %7721 = vmatprep.mubr.msk.f32.mxu1 %vm264_vm3, %v1360_v8  ;;  %v1391_v6 = vld [vmem:[%s8868_s7 + $0x3f8] sm:$0xff]  ;;  %v8804_v7 = vmov 0.0   ;;  %v6734_v8 = vld [vmem:[%s10521_s3 + $0x10] sm:$0xff] }
  0x56   : > { %1822 = vst.msk [vmem:[#allocation2 + $0x20] sm:$0xff] %vm1816_vm4, %v8804_v7  ;;  %1820 = vst.msk [vmem:[#allocation2 + $0x10] sm:$0xff] %vm1816_vm4, %v8804_v7 }
  0x57   : > { %1823 = vst.msk [vmem:[#allocation2 + $0x28] sm:$0x3] %vm1818_vm5, %v8804_v7  ;;  %1821 = vst.msk [vmem:[#allocation2 + $0x18] sm:$0x3] %vm1818_vm5, %v8804_v7 }
  0x58   : > { %7666 = vmatmul.mubr.msk.f32.vlgmr.msra.gmra.mrb[32].mxu0 %vm264_vm3, %v976_v9  ;;  %7722 = vmatmul.mubr.msk.f32.vlgmr.msra.gmra.mrb[32].mxu1 %vm264_vm3, %v1361_v10  ;;  %1824 = vst.msk [vmem:[#allocation2 + $0x30] sm:$0xff] %vm1816_vm4, %v8804_v7  ;;  %1826 = vst.msk [vmem:[#allocation2 + $0x40] sm:$0xff] %vm1816_vm4, %v8804_v7  ;;  %v6735_v9 = vld [vmem:[%s10521_s3 + $0x18] sm:$0xff] }
  0x59   : > { %7668 = vmatprep.mubr.msk.f32.mxu0 %vm264_vm3, %v977_v11  ;;  %7724 = vmatprep.mubr.msk.f32.mxu1 %vm264_vm3, %v1362_v12  ;;  %1825 = vst.msk [vmem:[#allocation2 + $0x38] sm:$0x3] %vm1818_vm5, %v8804_v7  ;;  %1827 = vst.msk [vmem:[#allocation2 + $0x48] sm:$0x3] %vm1818_vm5, %v8804_v7  ;;  %v9288_v10 = vpack.c.bf16 %v6735_v9, %v6734_v8  ;;  %v1934_v12 = vld [vmem:[%s10521_s3] sm:$0xff] }
  0x5a   : > { %1828 = vst.msk [vmem:[#allocation2 + $0x50] sm:$0xff] %vm1816_vm4, %v8804_v7  ;;  %1830 = vst.msk [vmem:[#allocation2 + $0x60] sm:$0xff] %vm1816_vm4, %v8804_v7  ;;  %v9513_v8 = vld [vmem:[%s10520_s2] ss:$0 sm:$0xff] }
  0x5b   : > { %1829 = vst.msk [vmem:[#allocation2 + $0x58] sm:$0x3] %vm1818_vm5, %v8804_v7  ;;  %1831 = vst.msk [vmem:[#allocation2 + $0x68] sm:$0x3] %vm1818_vm5, %v8804_v7  ;;  %8386 = vmatprep.subr.bf16.mxu0 %v9288_v10  ;;  %8394 = vmatprep.subr.bf16.mxu1 %v9288_v10 }
  0x5c   : > { %7669 = vmatmul.mubr.msk.f32.gmra.mrb[34].mxu0 %vm264_vm3, %v978_v13  ;;  %7725 = vmatmul.mubr.msk.f32.gmra.mrb[34].mxu1 %vm264_vm3, %v1363_v14  ;;  %1832 = vst.msk [vmem:[#allocation2 + $0x70] sm:$0xff] %vm1816_vm4, %v8804_v7  ;;  %1834 = vst.msk [vmem:[#allocation2 + $0x80] sm:$0xff] %vm1816_vm4, %v8804_v7  ;;  %v1935_v13 = vld [vmem:[%s10521_s3 + $0x8] sm:$0xff] }
  0x5d   : > { %7671 = vmatprep.mubr.msk.f32.mxu0 %vm264_vm3, %v979_v15  ;;  %7727 = vmatprep.mubr.msk.f32.mxu1 %vm264_vm3, %v1364_v16  ;;  %1833 = vst.msk [vmem:[#allocation2 + $0x78] sm:$0x3] %vm1818_vm5, %v8804_v7  ;;  %1835 = vst.msk [vmem:[#allocation2 + $0x88] sm:$0x3] %vm1818_vm5, %v8804_v7  ;;  %v9304_v14 = vpack.c.bf16 %v1935_v13, %v1934_v12 }
  0x5e   : > { %1836 = vst.msk [vmem:[#allocation2 + $0x90] sm:$0xff] %vm1816_vm4, %v8804_v7  ;;  %1840 = vst.msk [vmem:[#allocation2 + $0xb0] sm:$0xff] %vm1816_vm4, %v8804_v7  ;;  %8388 = vmatpush3.bf16.msra.mxu0 %v9288_v10  ;;  %8396 = vmatpush3.bf16.msra.mxu1 %v9288_v10 }
  0x5f   : > { %1837 = vst.msk [vmem:[#allocation2 + $0x98] sm:$0x3] %vm1818_vm5, %v8804_v7  ;;  %1841 = vst.msk [vmem:[#allocation2 + $0xb8] sm:$0x3] %vm1818_vm5, %v8804_v7  ;;  %8390 = vmatprep.subr.bf16.mxu0 %v9304_v14  ;;  %8398 = vmatprep.subr.bf16.mxu1 %v9304_v14 }
  0x60   : > { %7672 = vmatmul.mubr.msk.f32.gmra.mrb[36].mxu0 %vm264_vm3, %v980_v17  ;;  %7728 = vmatmul.mubr.msk.f32.gmra.mrb[36].mxu1 %vm264_vm3, %v1365_v18  ;;  %1842 = vst.msk [vmem:[#allocation2 + $0xc0] sm:$0xff] %vm1816_vm4, %v8804_v7  ;;  %1844 = vst.msk [vmem:[#allocation2 + $0xd0] sm:$0xff] %vm1816_vm4, %v8804_v7 }
  0x61   : > { %7674 = vmatprep.mubr.msk.f32.mxu0 %vm264_vm3, %v981_v19  ;;  %7730 = vmatprep.mubr.msk.f32.mxu1 %vm264_vm3, %v1366_v20  ;;  %1843 = vst.msk [vmem:[#allocation2 + $0xc8] sm:$0x3] %vm1818_vm5, %v8804_v7  ;;  %1845 = vst.msk [vmem:[#allocation2 + $0xd8] sm:$0x3] %vm1818_vm5, %v8804_v7 }
  0x62   : > { %1846 = vst.msk [vmem:[#allocation2 + $0xe0] sm:$0xff] %vm1816_vm4, %v8804_v7  ;;  %1848 = vst.msk [vmem:[#allocation2 + $0xf0] sm:$0xff] %vm1816_vm4, %v8804_v7 }
  0x63   : > { %1847 = vst.msk [vmem:[#allocation2 + $0xe8] sm:$0x3] %vm1818_vm5, %v8804_v7  ;;  %1849 = vst.msk [vmem:[#allocation2 + $0xf8] sm:$0x3] %vm1818_vm5, %v8804_v7 }
  0x64   : > { %7675 = vmatmul.mubr.msk.f32.gmra.mrb[38].mxu0 %vm264_vm3, %v982_v21  ;;  %7731 = vmatmul.mubr.msk.f32.gmra.mrb[38].mxu1 %vm264_vm3, %v1367_v22  ;;  %1850 = vst.msk [vmem:[#allocation2 + $0x100] sm:$0xff] %vm1816_vm4, %v8804_v7  ;;  %1852 = vst.msk [vmem:[#allocation2 + $0x110] sm:$0xff] %vm1816_vm4, %v8804_v7 }
  0x65   : > { %7677 = vmatprep.mubr.msk.f32.mxu0 %vm264_vm3, %v983_v23  ;;  %7733 = vmatprep.mubr.msk.f32.mxu1 %vm264_vm3, %v1368_v24  ;;  %1851 = vst.msk [vmem:[#allocation2 + $0x108] sm:$0x3] %vm1818_vm5, %v8804_v7  ;;  %1853 = vst.msk [vmem:[#allocation2 + $0x118] sm:$0x3] %vm1818_vm5, %v8804_v7 }
  0x66   : > { %1854 = vst.msk [vmem:[#allocation2 + $0x120] sm:$0xff] %vm1816_vm4, %v8804_v7  ;;  %1856 = vst.msk [vmem:[#allocation2 + $0x130] sm:$0xff] %vm1816_vm4, %v8804_v7 }
  0x67   : > { %1855 = vst.msk [vmem:[#allocation2 + $0x128] sm:$0x3] %vm1818_vm5, %v8804_v7  ;;  %1857 = vst.msk [vmem:[#allocation2 + $0x138] sm:$0x3] %vm1818_vm5, %v8804_v7 }
  0x68   : > { %7678 = vmatmul.mubr.msk.f32.gmra.mrb[40].mxu0 %vm264_vm3, %v984_v25  ;;  %7734 = vmatmul.mubr.msk.f32.gmra.mrb[40].mxu1 %vm264_vm3, %v1369_v26  ;;  %1858 = vst.msk [vmem:[#allocation2 + $0x140] sm:$0xff] %vm1816_vm4, %v8804_v7  ;;  %1860 = vst.msk [vmem:[#allocation2 + $0x150] sm:$0xff] %vm1816_vm4, %v8804_v7 }
  0x69   : > { %7680 = vmatprep.mubr.msk.f32.mxu0 %vm264_vm3, %v985_v27  ;;  %7736 = vmatprep.mubr.msk.f32.mxu1 %vm264_vm3, %v1370_v28  ;;  %1859 = vst.msk [vmem:[#allocation2 + $0x148] sm:$0x3] %vm1818_vm5, %v8804_v7  ;;  %1861 = vst.msk [vmem:[#allocation2 + $0x158] sm:$0x3] %vm1818_vm5, %v8804_v7 }
  0x6a   : > { %1862 = vst.msk [vmem:[#allocation2 + $0x160] sm:$0xff] %vm1816_vm4, %v8804_v7  ;;  %1864 = vst.msk [vmem:[#allocation2 + $0x170] sm:$0xff] %vm1816_vm4, %v8804_v7 }
  0x6b   : > { %1863 = vst.msk [vmem:[#allocation2 + $0x168] sm:$0x3] %vm1818_vm5, %v8804_v7  ;;  %1865 = vst.msk [vmem:[#allocation2 + $0x178] sm:$0x3] %vm1818_vm5, %v8804_v7 }
  0x6c   : > { %7681 = vmatmul.mubr.msk.f32.gmra.mrb[42].mxu0 %vm264_vm3, %v986_v29  ;;  %7737 = vmatmul.mubr.msk.f32.gmra.mrb[42].mxu1 %vm264_vm3, %v1371_v30  ;;  %1866 = vst.msk [vmem:[#allocation2 + $0x180] sm:$0xff] %vm1816_vm4, %v8804_v7  ;;  %1868 = vst.msk [vmem:[#allocation2 + $0x190] sm:$0xff] %vm1816_vm4, %v8804_v7 }
  0x6d   : > { %7683 = vmatprep.mubr.msk.f32.mxu0 %vm264_vm3, %v987_v31  ;;  %7739 = vmatprep.mubr.msk.f32.mxu1 %vm264_vm3, %v1372_v32  ;;  %1867 = vst.msk [vmem:[#allocation2 + $0x188] sm:$0x3] %vm1818_vm5, %v8804_v7  ;;  %1869 = vst.msk [vmem:[#allocation2 + $0x198] sm:$0x3] %vm1818_vm5, %v8804_v7 }
  0x6e   : > { %1870 = vst.msk [vmem:[#allocation2 + $0x1a0] sm:$0xff] %vm1816_vm4, %v8804_v7  ;;  %1872 = vst.msk [vmem:[#allocation2 + $0x1b0] sm:$0xff] %vm1816_vm4, %v8804_v7 }
  0x6f   : > { %1871 = vst.msk [vmem:[#allocation2 + $0x1a8] sm:$0x3] %vm1818_vm5, %v8804_v7  ;;  %1873 = vst.msk [vmem:[#allocation2 + $0x1b8] sm:$0x3] %vm1818_vm5, %v8804_v7 }
  0x70   : > { %7684 = vmatmul.mubr.msk.f32.gmra.mrb[44].mxu0 %vm264_vm3, %v988_v33  ;;  %7740 = vmatmul.mubr.msk.f32.gmra.mrb[44].mxu1 %vm264_vm3, %v1373_v34  ;;  %1874 = vst.msk [vmem:[#allocation2 + $0x1c0] sm:$0xff] %vm1816_vm4, %v8804_v7  ;;  %1878 = vst.msk [vmem:[#allocation2 + $0x1e0] sm:$0xff] %vm1816_vm4, %v8804_v7  ;;  %v9294_v11 = vld [vmem:[#allocation2 + $0x141] sm:$0xff] }
  0x71   : > { %7686 = vmatprep.mubr.msk.f32.mxu0 %vm264_vm3, %v989_v35  ;;  %7742 = vmatprep.mubr.msk.f32.mxu1 %vm264_vm3, %v1374_v36  ;;  %1875 = vst.msk [vmem:[#allocation2 + $0x1c8] sm:$0x3] %vm1818_vm5, %v8804_v7  ;;  %1879 = vst.msk [vmem:[#allocation2 + $0x1e8] sm:$0x3] %vm1818_vm5, %v8804_v7 }
  0x72   : > { %1880 = vst.msk [vmem:[#allocation2 + $0x1f0] sm:$0xff] %vm1816_vm4, %v8804_v7  ;;  %1882 = vst.msk [vmem:[#allocation2 + $0x200] sm:$0xff] %vm1816_vm4, %v8804_v7 }
  0x73   : > { %1881 = vst.msk [vmem:[#allocation2 + $0x1f8] sm:$0x3] %vm1818_vm5, %v8804_v7  ;;  %1883 = vst.msk [vmem:[#allocation2 + $0x208] sm:$0x3] %vm1818_vm5, %v8804_v7 }
  0x74   : > { %7687 = vmatmul.mubr.msk.f32.gmra.mrb[46].mxu0 %vm264_vm3, %v990_v37  ;;  %7743 = vmatmul.mubr.msk.f32.gmra.mrb[46].mxu1 %vm264_vm3, %v1375_v38  ;;  %1884 = vst.msk [vmem:[#allocation2 + $0x210] sm:$0xff] %vm1816_vm4, %v8804_v7  ;;  %1886 = vst.msk [vmem:[#allocation2 + $0x220] sm:$0xff] %vm1816_vm4, %v8804_v7 }
  0x75   : > { %7689 = vmatprep.mubr.msk.f32.mxu0 %vm264_vm3, %v991_v39  ;;  %7745 = vmatprep.mubr.msk.f32.mxu1 %vm264_vm3, %v1376_v40  ;;  %1885 = vst.msk [vmem:[#allocation2 + $0x218] sm:$0x3] %vm1818_vm5, %v8804_v7  ;;  %1887 = vst.msk [vmem:[#allocation2 + $0x228] sm:$0x3] %vm1818_vm5, %v8804_v7 }
  0x76   : > { %1888 = vst.msk [vmem:[#allocation2 + $0x230] sm:$0xff] %vm1816_vm4, %v8804_v7  ;;  %1890 = vst.msk [vmem:[#allocation2 + $0x240] sm:$0xff] %vm1816_vm4, %v8804_v7 }
  0x77   : > { %1889 = vst.msk [vmem:[#allocation2 + $0x238] sm:$0x3] %vm1818_vm5, %v8804_v7  ;;  %1891 = vst.msk [vmem:[#allocation2 + $0x248] sm:$0x3] %vm1818_vm5, %v8804_v7 }
  0x78   : > { %7690 = vmatmul.mubr.msk.f32.gmra.mrb[48].mxu0 %vm264_vm3, %v992_v41  ;;  %7746 = vmatmul.mubr.msk.f32.gmra.mrb[48].mxu1 %vm264_vm3, %v1377_v42  ;;  %1892 = vst.msk [vmem:[#allocation2 + $0x250] sm:$0xff] %vm1816_vm4, %v8804_v7  ;;  %1894 = vst.msk [vmem:[#allocation2 + $0x260] sm:$0xff] %vm1816_vm4, %v8804_v7  ;;  %v9312_v17 = vld [vmem:[#allocation2 + $0x1e1] sm:$0xff] }
  0x79   : > { %7692 = vmatprep.mubr.msk.f32.mxu0 %vm264_vm3, %v993_v43  ;;  %7748 = vmatprep.mubr.msk.f32.mxu1 %vm264_vm3, %v1378_v44  ;;  %1893 = vst.msk [vmem:[#allocation2 + $0x258] sm:$0x3] %vm1818_vm5, %v8804_v7  ;;  %1895 = vst.msk [vmem:[#allocation2 + $0x268] sm:$0x3] %vm1818_vm5, %v8804_v7 }
  0x7a   : > { %10547 = vst [vmem:[#allocation3_spill] sm:$0xff] %v9288_v10  ;;  %10548 = vst [vmem:[#allocation4_spill] sm:$0xff] %v9294_v11 }
  0x7b   : > { %10549 = vst [vmem:[#allocation5_spill] sm:$0xff] %v9304_v14  ;;  %10550 = vst [vmem:[#allocation6_spill] sm:$0xff] %v9312_v17 }
  0x7c   : > { %7693 = vmatmul.mubr.msk.f32.gmra.mrb[50].mxu0 %vm264_vm3, %v994_v45  ;;  %7749 = vmatmul.mubr.msk.f32.gmra.mrb[50].mxu1 %vm264_vm3, %v1379_v46 }
  0x7d   : > { %7695 = vmatprep.mubr.msk.f32.mxu0 %vm264_vm3, %v995_v47  ;;  %7751 = vmatprep.mubr.msk.f32.mxu1 %vm264_vm3, %v1380_v48 }
  0x80   : > { %7696 = vmatmul.mubr.msk.f32.gmra.mrb[52].mxu0 %vm264_vm3, %v996_v49  ;;  %7752 = vmatmul.mubr.msk.f32.gmra.mrb[52].mxu1 %vm264_vm3, %v1381_v50 }
  0x81   : > { %7698 = vmatprep.mubr.msk.f32.mxu0 %vm264_vm3, %v997_v51  ;;  %7754 = vmatprep.mubr.msk.f32.mxu1 %vm264_vm3, %v1382_v52 }
  0x84   : > { %7699 = vmatmul.mubr.msk.f32.gmra.mrb[54].mxu0 %vm264_vm3, %v998_v53  ;;  %7755 = vmatmul.mubr.msk.f32.gmra.mrb[54].mxu1 %vm264_vm3, %v1383_v54 }
  0x85   : > { %7701 = vmatprep.mubr.msk.f32.mxu0 %vm264_vm3, %v999_v55  ;;  %7757 = vmatprep.mubr.msk.f32.mxu1 %vm264_vm3, %v1384_v56 }
  0x88   : > { %7702 = vmatmul.mubr.msk.f32.gmra.mrb[56].mxu0 %vm264_vm3, %v1000_v57  ;;  %7758 = vmatmul.mubr.msk.f32.gmra.mrb[56].mxu1 %vm264_vm3, %v1385_v58 }
  0x89   : > { %7704 = vmatprep.mubr.msk.f32.mxu0 %vm264_vm3, %v1001_v59  ;;  %7760 = vmatprep.mubr.msk.f32.mxu1 %vm264_vm3, %v1386_v60 }
  0x8c   : > { %7705 = vmatmul.mubr.msk.f32.gmra.mrb[58].mxu0 %vm264_vm3, %v1002_v61  ;;  %7761 = vmatmul.mubr.msk.f32.gmra.mrb[58].mxu1 %vm264_vm3, %v1387_v62 }
  0x8d   : > { %7707 = vmatprep.mubr.msk.f32.mxu0 %vm264_vm3, %v1003_v63  ;;  %7763 = vmatprep.mubr.msk.f32.mxu1 %vm264_vm3, %v1388_v0 }
  0x90   : > { %7708 = vmatmul.mubr.msk.f32.gmra.mrb[60].mxu0 %vm264_vm3, %v1004_v1  ;;  %7764 = vmatmul.mubr.msk.f32.gmra.mrb[60].mxu1 %vm264_vm3, %v1389_v2 }
  0x91   : > { %7710 = vmatprep.mubr.msk.f32.mxu0 %vm264_vm3, %v1005_v3  ;;  %7766 = vmatprep.mubr.msk.f32.mxu1 %vm264_vm3, %v1390_v4 }
  0x94   : > { %7711 = vmatmul.mubr.msk.f32.gmra.mrb[62].mxu0 %vm264_vm3, %v1006_v5  ;;  %7767 = vmatmul.mubr.msk.f32.gmra.mrb[62].mxu1 %vm264_vm3, %v1391_v6 }
  0x95   : > { %7773 = vmatprep.mubr.msk.f32.mxu0 %vm1816_vm4, %v9294_v11  ;;  %7805 = vmatprep.mubr.msk.f32.mxu1 %vm1816_vm4, %v9312_v17 }
  0xeb   : > { %v9308_v15 = vpop.f32.mrb[0].mxu0  ;;  %v9310_v16 = vpop.f32.mrb[0].mxu1 }
  0xec   : > { %v9316_v19 = vpop.f32.mrb[1].mxu0  ;;  %v9318_v20 = vpop.f32.mrb[1].mxu1  ;;  %v10566_v14 = vmax.f32 %v9308_v15, %v9310_v16 }
  0xef   : > { %v9324_v22 = vpop.f32.mrb[2].mxu0  ;;  %v9326_v23 = vpop.f32.mrb[2].mxu1 }
  0xf0   : > { %v9330_v25 = vpop.f32.mrb[3].mxu0  ;;  %v9332_v26 = vpop.f32.mrb[3].mxu1 }
  0xf3   : > { %v9336_v28 = vpop.f32.mrb[4].mxu0  ;;  %v9338_v29 = vpop.f32.mrb[4].mxu1 }
  0xf4   : > { %v9342_v31 = vpop.f32.mrb[5].mxu0  ;;  %v9344_v32 = vpop.f32.mrb[5].mxu1 }
  0xf7   : > { %v9348_v34 = vpop.f32.mrb[6].mxu0  ;;  %v9350_v35 = vpop.f32.mrb[6].mxu1 }
  0xf8   : > { %v9354_v37 = vpop.f32.mrb[7].mxu0  ;;  %v9356_v38 = vpop.f32.mrb[7].mxu1 }
  0xfb   : > { %v9360_v40 = vpop.f32.mrb[8].mxu0  ;;  %v9362_v41 = vpop.f32.mrb[8].mxu1 }
  0xfc   : > { %v9366_v43 = vpop.f32.mrb[9].mxu0  ;;  %v9368_v44 = vpop.f32.mrb[9].mxu1 }
  0xff   : > { %v9372_v46 = vpop.f32.mrb[10].mxu0  ;;  %v9374_v47 = vpop.f32.mrb[10].mxu1 }
 0x100   : > { %v9378_v49 = vpop.f32.mrb[11].mxu0  ;;  %v9380_v50 = vpop.f32.mrb[11].mxu1 }
 0x103   : > { %v9384_v52 = vpop.f32.mrb[12].mxu0  ;;  %v9386_v53 = vpop.f32.mrb[12].mxu1 }
 0x104   : > { %v9390_v55 = vpop.f32.mrb[13].mxu0  ;;  %v9392_v56 = vpop.f32.mrb[13].mxu1 }
 0x107   : > { %v9396_v58 = vpop.f32.mrb[14].mxu0  ;;  %v9398_v59 = vpop.f32.mrb[14].mxu1 }
 0x108   : > { %v9402_v61 = vpop.f32.mrb[15].mxu0  ;;  %v9404_v62 = vpop.f32.mrb[15].mxu1 }
 0x10b   : > { %v9408_v0 = vpop.f32.mrb[16].mxu0  ;;  %v9410_v1 = vpop.f32.mrb[16].mxu1 }
 0x10c   : > { %v9414_v3 = vpop.f32.mrb[17].mxu0  ;;  %v9416_v4 = vpop.f32.mrb[17].mxu1 }
 0x10f   : > { %v9420_v6 = vpop.f32.mrb[18].mxu0  ;;  %v9422_v7 = vpop.f32.mrb[18].mxu1 }
 0x110   : > { %v9426_v9 = vpop.f32.mrb[19].mxu0  ;;  %v9428_v12 = vpop.f32.mrb[19].mxu1 }
 0x113   : > { %v9432_v2 = vpop.f32.mrb[20].mxu0  ;;  %v9434_v63 = vpop.f32.mrb[20].mxu1 }
 0x114   : > { %v9438_v60 = vpop.f32.mrb[21].mxu0  ;;  %v9440_v57 = vpop.f32.mrb[21].mxu1 }
 0x117   : > { %v9444_v54 = vpop.f32.mrb[22].mxu0  ;;  %v9446_v51 = vpop.f32.mrb[22].mxu1 }
 0x118   : > { %v9450_v48 = vpop.f32.mrb[23].mxu0  ;;  %v9452_v45 = vpop.f32.mrb[23].mxu1 }
 0x11b   : > { %v9456_v42 = vpop.f32.mrb[24].mxu0  ;;  %v9458_v39 = vpop.f32.mrb[24].mxu1 }
 0x11c   : > { %10551 = vst [vmem:[#allocation7_spill] sm:$0xff] %v9458_v39  ;;  %v9462_v36 = vpop.f32.mrb[25].mxu0  ;;  %v9464_v33 = vpop.f32.mrb[25].mxu1 }
 0x11d   : > { %10552 = vst [vmem:[#allocation8_spill] sm:$0xff] %v9462_v36  ;;  %10553 = vst [vmem:[#allocation9_spill] sm:$0xff] %v9464_v33  ;;  %v10567_v33 = vmax.f32 %v9316_v19, %v9318_v20 }
 0x11f   : > { %v9468_v30 = vpop.f32.mrb[26].mxu0  ;;  %v9470_v27 = vpop.f32.mrb[26].mxu1 }
 0x120   : > { %10554 = vst [vmem:[#allocation10_spill] sm:$0xff] %v9468_v30  ;;  %10555 = vst [vmem:[#allocation11_spill] sm:$0xff] %v9470_v27  ;;  %v9474_v24 = vpop.f32.mrb[27].mxu0  ;;  %v9476_v21 = vpop.f32.mrb[27].mxu1 }
 0x121   : > { %10556 = vst [vmem:[#allocation12_spill] sm:$0xff] %v9474_v24  ;;  %10557 = vst [vmem:[#allocation13_spill] sm:$0xff] %v9476_v21 }
 0x123   : > { %v9480_v18 = vpop.f32.mrb[28].mxu0  ;;  %v9482_v17 = vpop.f32.mrb[28].mxu1 }
 0x124   : > { %10558 = vst [vmem:[#allocation14_spill] sm:$0xff] %v9480_v18  ;;  %10559 = vst [vmem:[#allocation15_spill] sm:$0xff] %v9482_v17  ;;  %v9486_v11 = vpop.f32.mrb[29].mxu0  ;;  %v9488_v10 = vpop.f32.mrb[29].mxu1 }
 0x125   : > { %10560 = vst [vmem:[#allocation16_spill] sm:$0xff] %v9486_v11  ;;  %10561 = vst [vmem:[#allocation17_spill] sm:$0xff] %v9488_v10 }
 0x127   : > { %v9492_v27 = vpop.f32.mrb[30].mxu0  ;;  %v9494_v30 = vpop.f32.mrb[30].mxu1 }
 0x128   : > { %10562 = vst [vmem:[#allocation18_spill] sm:$0xff] %v9492_v27  ;;  %10563 = vst [vmem:[#allocation19_spill] sm:$0xff] %v9494_v30  ;;  %v9498_v21 = vpop.f32.mrb[31].mxu0  ;;  %v9500_v24 = vpop.f32.mrb[31].mxu1 }
 0x129   : > { %10564 = vst [vmem:[#allocation20_spill] sm:$0xff] %v9498_v21  ;;  %10565 = vst [vmem:[#allocation21_spill] sm:$0xff] %v9500_v24 }
 0x12b   : > { %v7667_v17 = vpop.f32.mrb[32].mxu0  ;;  %v7723_v18 = vpop.f32.mrb[32].mxu1 }
 0x12c   : > { %v1329_v5 = vmax.f32 %v10566_v14, %v7667_v17  ;;  %v1169_v10 = vpop.f32.mrb[33].mxu0  ;;  %v1554_v11 = vpop.f32.mrb[33].mxu1  ;;  %v10568_v14 = vmax.f32 %v9324_v22, %v9326_v23  ;;  %v10570_v22 = vmax.f32 %v9336_v28, %v9338_v29  ;;  %v10572_v29 = vmax.f32 %v9348_v34, %v9350_v35 }
 0x12d   : > { %v1328_v36 = vmax.f32 %v10567_v33, %v1169_v10  ;;  %v10569_v10 = vmax.f32 %v9330_v25, %v9332_v26  ;;  %v10574_v35 = vmax.f32 %v9360_v40, %v9362_v41  ;;  %v10576_v41 = vmax.f32 %v9372_v46, %v9374_v47 }
 0x12e   : > { %v1714_v30 = vmax.f32 %v1329_v5, %v7723_v18  ;;  %v10578_v47 = vmax.f32 %v9384_v52, %v9386_v53  ;;  %v10580_v53 = vmax.f32 %v9396_v58, %v9398_v59  ;;  %v10582_v59 = vmax.f32 %v9408_v0, %v9410_v1 }
 0x12f   : > { %v1713_v27 = vmax.f32 %v1328_v36, %v1554_v11  ;;  %v7670_v13 = vpop.f32.mrb[34].mxu0  ;;  %v7726_v24 = vpop.f32.mrb[34].mxu1  ;;  %v10584_v1 = vmax.f32 %v9420_v6, %v9422_v7  ;;  %v10586_v7 = vmax.f32 %v9432_v2, %v9434_v63  ;;  %v10588_v2 = vmax.f32 %v9444_v54, %v9446_v51  ;;  %v10590_v54 = vld [vmem:[#allocation7_spill] sm:$0xff] }
 0x130   : > { %v1753_v21 = vadd.f32 %v9513_v8, %v1714_v30  ;;  %v1331_v15 = vmax.f32 %v10568_v14, %v7670_v13  ;;  %v1179_v16 = vpop.f32.mrb[35].mxu0  ;;  %v1564_v17 = vpop.f32.mrb[35].mxu1 }
 0x131   : > { %v1752_v19 = vadd.f32 %v9513_v8, %v1713_v27  ;;  %v1330_v20 = vmax.f32 %v10569_v10, %v1179_v16 }
 0x132   : > { %v1785_v33 = vmax.f32 %v1753_v21, 0.0  ;;  %v1716_v39 = vmax.f32 %v1331_v15, %v7726_v24  ;;  %v10571_v21 = vmax.f32 %v9342_v31, %v9344_v32  ;;  %v10573_v32 = vmax.f32 %v9354_v37, %v9356_v38 }
 0x133   : > { %v1784_v18 = vmax.f32 %v1752_v19, 0.0  ;;  %v1715_v11 = vmax.f32 %v1330_v20, %v1564_v17  ;;  %v7673_v36 = vpop.f32.mrb[36].mxu0  ;;  %v7729_v5 = vpop.f32.mrb[36].mxu1  ;;  %v10575_v38 = vmax.f32 %v9366_v43, %v9368_v44  ;;  %v10577_v44 = vmax.f32 %v9378_v49, %v9380_v50 }
 0x134   : > { %1900 = vst.msk [vmem:[#allocation2 + $0x21] sm:$0xff] %vm1816_vm4, %v1785_v33  ;;  %v1755_v30 = vadd.f32 %v9513_v8, %v1716_v39  ;;  %v1333_v23 = vmax.f32 %v10570_v22, %v7673_v36  ;;  %v1189_v13 = vpop.f32.mrb[37].mxu0  ;;  %v1574_v27 = vpop.f32.mrb[37].mxu1  ;;  %v10579_v50 = vmax.f32 %v9390_v55, %v9392_v56  ;;  %v10581_v56 = vmax.f32 %v9402_v61, %v9404_v62 }
 0x135   : > { %1899 = vst.msk [vmem:[#allocation2 + $0x11] sm:$0xff] %vm1816_vm4, %v1784_v18  ;;  %v1754_v25 = vadd.f32 %v9513_v8, %v1715_v11  ;;  %v1332_v24 = vmax.f32 %v10571_v21, %v1189_v13  ;;  %v10583_v62 = vmax.f32 %v9414_v3, %v9416_v4  ;;  %v10585_v4 = vmax.f32 %v9426_v9, %v9428_v12 }
 0x136   : > { %v1787_v26 = vmax.f32 %v1755_v30, 0.0  ;;  %v1718_v14 = vmax.f32 %v1333_v23, %v7729_v5  ;;  %v10587_v12 = vmax.f32 %v9438_v60, %v9440_v57  ;;  %v10589_v60 = vmax.f32 %v9450_v48, %v9452_v45  ;;  %v10592_v48 = vld [vmem:[#allocation8_spill] sm:$0xff] }
 0x137   : > { %v1786_v15 = vmax.f32 %v1754_v25, 0.0  ;;  %v1717_v16 = vmax.f32 %v1332_v24, %v1574_v27  ;;  %v7676_v17 = vpop.f32.mrb[38].mxu0  ;;  %v7732_v39 = vpop.f32.mrb[38].mxu1 }
 0x138   : > { %1902 = vst.msk [vmem:[#allocation2 + $0x41] sm:$0xff] %vm1816_vm4, %v1787_v26  ;;  %v1757_v28 = vadd.f32 %v9513_v8, %v1718_v14  ;;  %v1335_v19 = vmax.f32 %v10572_v29, %v7676_v17  ;;  %v1199_v10 = vpop.f32.mrb[39].mxu0  ;;  %v1584_v20 = vpop.f32.mrb[39].mxu1 }
 0x139   : > { %1901 = vst.msk [vmem:[#allocation2 + $0x31] sm:$0xff] %vm1816_vm4, %v1786_v15  ;;  %v1756_v31 = vadd.f32 %v9513_v8, %v1717_v16  ;;  %v1334_v33 = vmax.f32 %v10573_v32, %v1199_v10 }
 0x13a   : > { %v1789_v18 = vmax.f32 %v1757_v28, 0.0  ;;  %v1720_v11 = vmax.f32 %v1335_v19, %v7732_v39 }
 0x13b   : > { %v1788_v36 = vmax.f32 %v1756_v31, 0.0  ;;  %v1719_v5 = vmax.f32 %v1334_v33, %v1584_v20  ;;  %v7679_v30 = vpop.f32.mrb[40].mxu0  ;;  %v7735_v22 = vpop.f32.mrb[40].mxu1 }
 0x13c   : > { %1904 = vst.msk [vmem:[#allocation2 + $0x61] sm:$0xff] %vm1816_vm4, %v1789_v18  ;;  %v1759_v34 = vadd.f32 %v9513_v8, %v1720_v11  ;;  %v1337_v23 = vmax.f32 %v10574_v35, %v7679_v30  ;;  %v1209_v13 = vpop.f32.mrb[41].mxu0  ;;  %v1594_v27 = vpop.f32.mrb[41].mxu1 }
 0x13d   : > { %1903 = vst.msk [vmem:[#allocation2 + $0x51] sm:$0xff] %vm1816_vm4, %v1788_v36  ;;  %v1758_v37 = vadd.f32 %v9513_v8, %v1719_v5  ;;  %v1336_v25 = vmax.f32 %v10575_v38, %v1209_v13 }
 0x13e   : > { %v1791_v21 = vmax.f32 %v1759_v34, 0.0  ;;  %v1722_v24 = vmax.f32 %v1337_v23, %v7735_v22 }
 0x13f   : > { %v1790_v26 = vmax.f32 %v1758_v37, 0.0  ;;  %v1721_v14 = vmax.f32 %v1336_v25, %v1594_v27  ;;  %v7682_v15 = vpop.f32.mrb[42].mxu0  ;;  %v7738_v16 = vpop.f32.mrb[42].mxu1 }
 0x140   : > { %1906 = vst.msk [vmem:[#allocation2 + $0x81] sm:$0xff] %vm1816_vm4, %v1791_v21  ;;  %v1761_v40 = vadd.f32 %v9513_v8, %v1722_v24  ;;  %v1339_v17 = vmax.f32 %v10576_v41, %v7682_v15  ;;  %v1219_v39 = vpop.f32.mrb[43].mxu0  ;;  %v1604_v28 = vpop.f32.mrb[43].mxu1 }
 0x141   : > { %1905 = vst.msk [vmem:[#allocation2 + $0x71] sm:$0xff] %vm1816_vm4, %v1790_v26  ;;  %v1760_v43 = vadd.f32 %v9513_v8, %v1721_v14  ;;  %v1338_v29 = vmax.f32 %v10577_v44, %v1219_v39 }
 0x142   : > { %v1793_v19 = vmax.f32 %v1761_v40, 0.0  ;;  %v1724_v10 = vmax.f32 %v1339_v17, %v7738_v16 }
 0x143   : > { %v1792_v20 = vmax.f32 %v1760_v43, 0.0  ;;  %v1723_v31 = vmax.f32 %v1338_v29, %v1604_v28  ;;  %v7685_v32 = vpop.f32.mrb[44].mxu0  ;;  %v7741_v33 = vpop.f32.mrb[44].mxu1 }
 0x144   : > { %1909 = vst.msk [vmem:[#allocation2 + $0xc1] sm:$0xff] %vm1816_vm4, %v1793_v19  ;;  %v1763_v46 = vadd.f32 %v9513_v8, %v1724_v10  ;;  %v1341_v18 = vmax.f32 %v10578_v47, %v7685_v32  ;;  %v1229_v11 = vpop.f32.mrb[45].mxu0  ;;  %v1614_v36 = vpop.f32.mrb[45].mxu1 }
 0x145   : > { %1908 = vst.msk [vmem:[#allocation2 + $0xb1] sm:$0xff] %vm1816_vm4, %v1792_v20  ;;  %v1762_v49 = vadd.f32 %v9513_v8, %v1723_v31  ;;  %v1340_v5 = vmax.f32 %v10579_v50, %v1229_v11 }
 0x146   : > { %v1795_v30 = vmax.f32 %v1763_v46, 0.0  ;;  %v1726_v22 = vmax.f32 %v1341_v18, %v7741_v33 }
 0x147   : > { %v1794_v34 = vmax.f32 %v1762_v49, 0.0  ;;  %v1725_v35 = vmax.f32 %v1340_v5, %v1614_v36  ;;  %v7688_v23 = vpop.f32.mrb[46].mxu0  ;;  %v7744_v13 = vpop.f32.mrb[46].mxu1 }
 0x148   : > { %1911 = vst.msk [vmem:[#allocation2 + $0xe1] sm:$0xff] %vm1816_vm4, %v1795_v30  ;;  %v1765_v52 = vadd.f32 %v9513_v8, %v1726_v22  ;;  %v1343_v27 = vmax.f32 %v10580_v53, %v7688_v23  ;;  %v1239_v37 = vpop.f32.mrb[47].mxu0  ;;  %v1624_v38 = vpop.f32.mrb[47].mxu1 }
 0x149   : > { %1910 = vst.msk [vmem:[#allocation2 + $0xd1] sm:$0xff] %vm1816_vm4, %v1794_v34  ;;  %v1764_v55 = vadd.f32 %v9513_v8, %v1725_v35  ;;  %v1342_v25 = vmax.f32 %v10581_v56, %v1239_v37 }
 0x14a   : > { %v1797_v21 = vmax.f32 %v1765_v52, 0.0  ;;  %v1728_v24 = vmax.f32 %v1343_v27, %v7744_v13 }
 0x14b   : > { %v1796_v26 = vmax.f32 %v1764_v55, 0.0  ;;  %v1727_v14 = vmax.f32 %v1342_v25, %v1624_v38  ;;  %v7691_v15 = vpop.f32.mrb[48].mxu0  ;;  %v7747_v16 = vpop.f32.mrb[48].mxu1 }
 0x14c   : > { %1913 = vst.msk [vmem:[#allocation2 + $0x101] sm:$0xff] %vm1816_vm4, %v1797_v21  ;;  %v1767_v58 = vadd.f32 %v9513_v8, %v1728_v24  ;;  %v1345_v40 = vmax.f32 %v10582_v59, %v7691_v15  ;;  %v1249_v41 = vpop.f32.mrb[49].mxu0  ;;  %v1634_v17 = vpop.f32.mrb[49].mxu1  ;;  %v10591_v15 = vmax.f32 %v9456_v42, %v10590_v54  ;;  %v10610_v54 = vld [vmem:[#allocation19_spill] sm:$0xff] }
 0x14d   : > { %1912 = vst.msk [vmem:[#allocation2 + $0xf1] sm:$0xff] %vm1816_vm4, %v1796_v26  ;;  %v1766_v61 = vadd.f32 %v9513_v8, %v1727_v14  ;;  %v1344_v39 = vmax.f32 %v10583_v62, %v1249_v41  ;;  %v10593_v41 = vld [vmem:[#allocation9_spill] sm:$0xff] }
 0x14e   : > { %v1799_v28 = vmax.f32 %v1767_v58, 0.0  ;;  %v1730_v43 = vmax.f32 %v1345_v40, %v7747_v16 }
 0x14f   : > { %v1798_v44 = vmax.f32 %v1766_v61, 0.0  ;;  %v1729_v29 = vmax.f32 %v1344_v39, %v1634_v17  ;;  %v7694_v19 = vpop.f32.mrb[50].mxu0  ;;  %v7750_v10 = vpop.f32.mrb[50].mxu1  ;;  %v10594_v17 = vmax.f32 %v10592_v48, %v10593_v41  ;;  %v10612_v41 = vld [vmem:[#allocation20_spill] sm:$0xff] }
 0x150   : > { %1915 = vst.msk [vmem:[#allocation2 + $0x121] sm:$0xff] %vm1816_vm4, %v1799_v28  ;;  %v1769_v0 = vadd.f32 %v9513_v8, %v1730_v43  ;;  %v1347_v20 = vmax.f32 %v10584_v1, %v7694_v19  ;;  %v1259_v31 = vpop.f32.mrb[51].mxu0  ;;  %v1644_v32 = vpop.f32.mrb[51].mxu1  ;;  %v10595_v28 = vld [vmem:[#allocation5_spill] sm:$0xff]  ;;  %v10597_v1 = vld [vmem:[#allocation10_spill] sm:$0xff] }
 0x151   : > { %1914 = vst.msk [vmem:[#allocation2 + $0x111] sm:$0xff] %vm1816_vm4, %v1798_v44  ;;  %v1768_v3 = vadd.f32 %v9513_v8, %v1729_v29  ;;  %v1346_v33 = vmax.f32 %v10585_v4, %v1259_v31 }
 0x152   : > { %v1801_v46 = vmax.f32 %v1769_v0, 0.0  ;;  %v1732_v47 = vmax.f32 %v1347_v20, %v7750_v10  ;;  %v10596_v10 = vld [vmem:[#allocation3_spill] sm:$0xff] }
 0x153   : > { %v1800_v18 = vmax.f32 %v1768_v3, 0.0  ;;  %v1731_v11 = vmax.f32 %v1346_v33, %v1644_v32  ;;  %v7697_v36 = vpop.f32.mrb[52].mxu0  ;;  %v7753_v49 = vpop.f32.mrb[52].mxu1  ;;  %v10598_v20 = vld [vmem:[#allocation11_spill] sm:$0xff] }
 0x154   : > { %1918 = vst.msk [vmem:[#allocation2 + $0x161] sm:$0xff] %vm1816_vm4, %v1801_v46  ;;  %v1771_v6 = vadd.f32 %v9513_v8, %v1732_v47  ;;  %v1349_v50 = vmax.f32 %v10586_v7, %v7697_v36  ;;  %v1269_v5 = vpop.f32.mrb[53].mxu0  ;;  %v1654_v30 = vpop.f32.mrb[53].mxu1  ;;  %v10599_v31 = vmax.f32 %v10597_v1, %v10598_v20  ;;  %v10600_v47 = vld [vmem:[#allocation12_spill] sm:$0xff] }
 0x155   : > { %1917 = vst.msk [vmem:[#allocation2 + $0x151] sm:$0xff] %vm1816_vm4, %v1800_v18  ;;  %v1770_v9 = vadd.f32 %v9513_v8, %v1731_v11  ;;  %v1348_v22 = vmax.f32 %v10587_v12, %v1269_v5  ;;  %v10601_v18 = vld [vmem:[#allocation13_spill] sm:$0xff] }
 0x156   : > { %v1803_v34 = vmax.f32 %v1771_v6, 0.0  ;;  %v1734_v35 = vmax.f32 %v1349_v50, %v7753_v49  ;;  %v10602_v11 = vmax.f32 %v10600_v47, %v10601_v18 }
 0x157   : > { %v1802_v23 = vmax.f32 %v1770_v9, 0.0  ;;  %v1733_v13 = vmax.f32 %v1348_v22, %v1654_v30  ;;  %v7700_v52 = vpop.f32.mrb[54].mxu0  ;;  %v7756_v53 = vpop.f32.mrb[54].mxu1  ;;  %v10603_v22 = vld [vmem:[#allocation14_spill] sm:$0xff] }
 0x158   : > { %1920 = vst.msk [vmem:[#allocation2 + $0x181] sm:$0xff] %vm1816_vm4, %v1803_v34  ;;  %v1773_v63 = vadd.f32 %v9513_v8, %v1734_v35  ;;  %v1351_v27 = vmax.f32 %v10588_v2, %v7700_v52  ;;  %v1279_v37 = vpop.f32.mrb[55].mxu0  ;;  %v1664_v38 = vpop.f32.mrb[55].mxu1  ;;  %v10604_v34 = vld [vmem:[#allocation15_spill] sm:$0xff]  ;;  %v10606_v2 = vld [vmem:[#allocation16_spill] sm:$0xff] }
 0x159   : > { %1919 = vst.msk [vmem:[#allocation2 + $0x171] sm:$0xff] %vm1816_vm4, %v1802_v23  ;;  %v1772_v57 = vadd.f32 %v9513_v8, %v1733_v13  ;;  %v1350_v55 = vmax.f32 %v10589_v60, %v1279_v37  ;;  %v10605_v35 = vmax.f32 %v10603_v22, %v10604_v34  ;;  %v10615_v22 = vld [vmem:[#allocation4_spill] sm:$0xff] }
 0x15a   : > { %v1805_v56 = vmax.f32 %v1773_v63, 0.0  ;;  %v1736_v25 = vmax.f32 %v1351_v27, %v7756_v53  ;;  %v10607_v27 = vld [vmem:[#allocation17_spill] sm:$0xff]  ;;  %v9772_v34 = vld [vmem:[#allocation2 + $0x21] sm:$0xff] }
 0x15b   : > { %v1804_v21 = vmax.f32 %v1772_v57, 0.0  ;;  %v1735_v24 = vmax.f32 %v1350_v55, %v1664_v38  ;;  %v7703_v26 = vpop.f32.mrb[56].mxu0  ;;  %v7759_v14 = vpop.f32.mrb[56].mxu1  ;;  %v9637_v62 = vld [vmem:[#allocation2 + $0x161] sm:$0xff]  ;;  %v10608_v37 = vmax.f32 %v10606_v2, %v10607_v27  ;;  %v9820_v27 = vld [vmem:[#allocation2 + $0xb0] sm:$0xff] }
 0x15c   : > { %1922 = vst.msk [vmem:[#allocation2 + $0x1a1] sm:$0xff] %vm1816_vm4, %v1805_v56  ;;  %v1775_v51 = vadd.f32 %v9513_v8, %v1736_v25  ;;  %v1353_v16 = vmax.f32 %v10591_v15, %v7703_v26  ;;  %v1289_v58 = vpop.f32.mrb[57].mxu0  ;;  %v9628_v59 = vld [vmem:[#allocation2 + $0x151] sm:$0xff]  ;;  %v1674_v40 = vpop.f32.mrb[57].mxu1  ;;  %v1937_v26 = vld [vmem:[#allocation2 + $0x1e0] sm:$0xff] }
 0x15d   : > { %1921 = vst.msk [vmem:[#allocation2 + $0x191] sm:$0xff] %vm1816_vm4, %v1804_v21  ;;  %v1774_v45 = vadd.f32 %v9513_v8, %v1735_v24  ;;  %v1352_v61 = vmax.f32 %v10594_v17, %v1289_v58  ;;  %7774 = vmatmul.mubr.msk.f32.vlgmr.msra.gmra.mrb[64].mxu0 %vm1816_vm4, %v9628_v59  ;;  %v10613_v17 = vld [vmem:[#allocation21_spill] sm:$0xff]  ;;  %v9814_v2 = vld [vmem:[#allocation2 + $0x81] sm:$0xff] }
 0x15e   : > { %v1807_v39 = vmax.f32 %v1775_v51, 0.0  ;;  %v1738_v42 = vmax.f32 %v1353_v16, %v7759_v14  ;;  %7776 = vmatprep.mubr.msk.f32.mxu0 %vm1816_vm4, %v9637_v62  ;;  %8392 = vmatpush3.bf16.msra.mxu0 %v10595_v28  ;;  %v10609_v51 = vld [vmem:[#allocation18_spill] sm:$0xff] }
 0x15f   : > { %v1806_v43 = vmax.f32 %v1774_v45, 0.0  ;;  %v1737_v44 = vmax.f32 %v1352_v61, %v1674_v40  ;;  %v7706_v29 = vpop.f32.mrb[58].mxu0  ;;  %v7762_v19 = vpop.f32.mrb[58].mxu1  ;;  %8402 = vmatprep.subr.bf16.mxu0 %v10596_v10  ;;  %v9657_v49 = vld [vmem:[#allocation2 + $0x181] sm:$0xff]  ;;  %v10611_v15 = vmax.f32 %v10609_v51, %v10610_v54  ;;  %v10614_v61 = vmax.f32 %v10612_v41, %v10613_v17  ;;  %v9872_v51 = vld [vmem:[#allocation2 + $0x110] sm:$0xff] }
 0x160   : > { %1924 = vst.msk [vmem:[#allocation2 + $0x1c1] sm:$0xff] %vm1816_vm4, %v1807_v39  ;;  %v1777_v0 = vadd.f32 %v9513_v8, %v1738_v42  ;;  %v1355_v32 = vmax.f32 %v10599_v31, %v7706_v29  ;;  %v1299_v3 = vpop.f32.mrb[59].mxu0  ;;  %v9648_v4 = vld [vmem:[#allocation2 + $0x171] sm:$0xff]  ;;  %v1684_v33 = vpop.f32.mrb[59].mxu1  ;;  %v3089_v17 = vld [vmem:[#allocation2 + $0x142] sm:$0xff] }
 0x161   : > { %1923 = vst.msk [vmem:[#allocation2 + $0x1b1] sm:$0xff] %vm1816_vm4, %v1806_v43  ;;  %v1776_v46 = vadd.f32 %v9513_v8, %v1737_v44  ;;  %v1354_v36 = vmax.f32 %v10602_v11, %v1299_v3  ;;  %7777 = vmatmul.mubr.msk.f32.gmra.mrb[66].mxu0 %vm1816_vm4, %v9648_v4  ;;  %v9874_v54 = vld [vmem:[#allocation2 + $0x111] sm:$0xff] }
 0x162   : > { %v1809_v6 = vmax.f32 %v1777_v0, 0.0  ;;  %v1740_v7 = vmax.f32 %v1355_v32, %v7762_v19  ;;  %7779 = vmatprep.mubr.msk.f32.mxu0 %vm1816_vm4, %v9657_v49 }
 0x163   : > { %v1808_v50 = vmax.f32 %v1776_v46, 0.0  ;;  %v1739_v5 = vmax.f32 %v1354_v36, %v1684_v33  ;;  %v7709_v30 = vpop.f32.mrb[60].mxu0  ;;  %v7765_v9 = vpop.f32.mrb[60].mxu1  ;;  %v9675_v57 = vld [vmem:[#allocation2 + $0x1a1] sm:$0xff] }
 0x164   : > { %1927 = vst.msk [vmem:[#allocation2 + $0x201] sm:$0xff] %vm1816_vm4, %v1809_v6  ;;  %v1779_v12 = vadd.f32 %v9513_v8, %v1740_v7  ;;  %v1357_v23 = vmax.f32 %v10605_v35, %v7709_v30  ;;  %v1309_v13 = vpop.f32.mrb[61].mxu0  ;;  %v9666_v52 = vld [vmem:[#allocation2 + $0x191] sm:$0xff]  ;;  %v1694_v53 = vpop.f32.mrb[61].mxu1 }
 0x165   : > { %1926 = vst.msk [vmem:[#allocation2 + $0x1f1] sm:$0xff] %vm1816_vm4, %v1808_v50  ;;  %v1778_v63 = vadd.f32 %v9513_v8, %v1739_v5  ;;  %v1356_v38 = vmax.f32 %v10608_v37, %v1309_v13  ;;  %7780 = vmatmul.mubr.msk.f32.gmra.mrb[68].mxu0 %vm1816_vm4, %v9666_v52  ;;  %v9760_v30 = vld [vmem:[#allocation2 + $0x11] sm:$0xff]  ;;  %v9788_v13 = vld [vmem:[#allocation2 + $0x41] sm:$0xff] }
 0x166   : > { %v1811_v60 = vmax.f32 %v1779_v12, 0.0  ;;  %v1742_v55 = vmax.f32 %v1357_v23, %v7765_v9  ;;  %7782 = vmatprep.mubr.msk.f32.mxu0 %vm1816_vm4, %v9675_v57  ;;  %v6800_v9 = vld [vmem:[%s10521_s3 + $0x20] sm:$0xff]  ;;  %v6801_v12 = vld [vmem:[%s10521_s3 + $0x28] sm:$0xff]  ;;  %v9780_v23 = vld [vmem:[#allocation2 + $0x31] sm:$0xff] }
 0x167   : > { %v1810_v56 = vmax.f32 %v1778_v63, 0.0  ;;  %v1741_v25 = vmax.f32 %v1356_v38, %v1694_v53  ;;  %v7712_v21 = vpop.f32.mrb[62].mxu0  ;;  %v7768_v24 = vpop.f32.mrb[62].mxu1  ;;  %v9774_v35 = vpack.c.bf16 %v6801_v12, %v6800_v9  ;;  %v9796_v53 = vld [vmem:[#allocation2 + $0x51] sm:$0xff]  ;;  %v9828_v38 = vld [vmem:[#allocation2 + $0xc0] sm:$0xff] }
 0x168   : > { %1929 = vst.msk [vmem:[#allocation2 + $0x221] sm:$0xff] %vm1816_vm4, %v1811_v60  ;;  %v1781_v14 = vadd.f32 %v9513_v8, %v1742_v55  ;;  %v1359_v16 = vmax.f32 %v10611_v15, %v7712_v21  ;;  %v1319_v58 = vpop.f32.mrb[63].mxu0  ;;  %v9684_v40 = vld [vmem:[#allocation2 + $0x1b1] sm:$0xff]  ;;  %v1704_v45 = vpop.f32.mrb[63].mxu1  ;;  %v9830_v60 = vld [vmem:[#allocation2 + $0xc1] sm:$0xff] }
 0x169   : > { %1928 = vst.msk [vmem:[#allocation2 + $0x211] sm:$0xff] %vm1816_vm4, %v1810_v56  ;;  %v1780_v48 = vadd.f32 %v9513_v8, %v1741_v25  ;;  %v1358_v39 = vmax.f32 %v10614_v61, %v1319_v58  ;;  %7783 = vmatmul.mubr.msk.f32.gmra.mrb[70].mxu0 %vm1816_vm4, %v9684_v40  ;;  %v9808_v63 = vld [vmem:[#allocation2 + $0x71] sm:$0xff]  ;;  %v9846_v25 = vld [vmem:[#allocation2 + $0xe0] sm:$0xff] }
 0x16a   : > { %v1813_v42 = vmax.f32 %v1781_v14, 0.0  ;;  %v1744_v43 = vmax.f32 %v1359_v16, %v7768_v24  ;;  %7789 = vmatprep.mubr.msk.f32.mxu0 %vm1816_vm4, %v1937_v26  ;;  %v9822_v37 = vld [vmem:[#allocation2 + $0xb1] sm:$0xff]  ;;  %v9848_v21 = vld [vmem:[#allocation2 + $0xe1] sm:$0xff] }
 0x16b   : > { %v1812_v44 = vmax.f32 %v1780_v48, 0.0  ;;  %v1743_v29 = vmax.f32 %v1358_v39, %v1704_v45  ;;  %v9706_v31 = vld [vmem:[#allocation2 + $0x200] sm:$0xff]  ;;  %v9836_v55 = vld [vmem:[#allocation2 + $0xd0] sm:$0xff]  ;;  %v6835_v45 = vld [vmem:[%s10521_s3 + $0x38] sm:$0xff] }
 0x16c   : > { %1931 = vst.msk [vmem:[#allocation2 + $0x241] sm:$0xff] %vm1816_vm4, %v1813_v42  ;;  %v1783_v19 = vadd.f32 %v9513_v8, %v1744_v43  ;;  %v9696_v0 = vld [vmem:[#allocation2 + $0x1f0] sm:$0xff]  ;;  %v9708_v32 = vld [vmem:[#allocation2 + $0x201] sm:$0xff]  ;;  %v10616_v48 = vld [vmem:[#allocation6_spill] sm:$0xff] }
 0x16d   : > { %v9698_v1 = vld [vmem:[#allocation2 + $0x1f1] sm:$0xff]  ;;  %1930 = vst.msk [vmem:[#allocation2 + $0x231] sm:$0xff] %vm1816_vm4, %v1812_v44  ;;  %v1782_v20 = vadd.f32 %v9513_v8, %v1743_v29  ;;  %7790 = vmatmul.mubr.msk.f32.vlgmr.msra.gmra.mrb[64].mxu0 %vm1816_vm4, %v9696_v0  ;;  %v9866_v14 = vld [vmem:[#allocation2 + $0x101] sm:$0xff] }
 0x16e   : > { %7806 = vmatmul.mubr.msk.f32.vlgmr.msra.gmra.mrb[64].mxu1 %vm1816_vm4, %v9698_v1  ;;  %v1815_v3 = vmax.f32 %v1783_v19, 0.0  ;;  %7792 = vmatprep.mubr.msk.f32.mxu0 %vm1816_vm4, %v9706_v31  ;;  %v9838_v56 = vld [vmem:[#allocation2 + $0xd1] sm:$0xff]  ;;  %v9880_v15 = vld [vmem:[#allocation2 + $0x120] sm:$0xff] }
 0x16f   : > { %7808 = vmatprep.mubr.msk.f32.mxu1 %vm1816_vm4, %v9708_v32  ;;  %v1814_v33 = vmax.f32 %v1782_v20, 0.0  ;;  %8400 = vmatpush3.bf16.msra.mxu1 %v10595_v28  ;;  %v9728_v47 = vld [vmem:[#allocation2 + $0x220] sm:$0xff]  ;;  %v9856_v24 = vld [vmem:[#allocation2 + $0xf0] sm:$0xff] }
 0x170   : > { %8404 = vmatpush3.bf16.msra.mxu0 %v10596_v10  ;;  %1933 = vst.msk [vmem:[#allocation2 + $0x261] sm:$0xff] %vm1816_vm4, %v1815_v3  ;;  %v9717_v8 = vld [vmem:[#allocation2 + $0x210] sm:$0xff]  ;;  %8410 = vmatprep.subr.bf16.mxu1 %v10596_v10  ;;  %v9730_v18 = vld [vmem:[#allocation2 + $0x221] sm:$0xff] }
 0x171   : > { %v9719_v46 = vld [vmem:[#allocation2 + $0x211] sm:$0xff]  ;;  %8406 = vmatprep.subr.bf16.mxu0 %v10595_v28  ;;  %1932 = vst.msk [vmem:[#allocation2 + $0x251] sm:$0xff] %vm1816_vm4, %v1814_v33  ;;  %7793 = vmatmul.mubr.msk.f32.gmra.mrb[66].mxu0 %vm1816_vm4, %v9717_v8  ;;  %v9882_v16 = vld [vmem:[#allocation2 + $0x121] sm:$0xff] }
 0x172   : > { %7809 = vmatmul.mubr.msk.f32.gmra.mrb[66].mxu1 %vm1816_vm4, %v9719_v46  ;;  %7795 = vmatprep.mubr.msk.f32.mxu0 %vm1816_vm4, %v9728_v47  ;;  %v9858_v26 = vld [vmem:[#allocation2 + $0xf1] sm:$0xff]  ;;  %v9941_v39 = vld [vmem:[#allocation2 + $0x162] sm:$0xff] }
 0x173   : > { %7811 = vmatprep.mubr.msk.f32.mxu1 %vm1816_vm4, %v9730_v18  ;;  %v9744_v6 = vld [vmem:[#allocation2 + $0x240] sm:$0xff]  ;;  %v6834_v58 = vld [vmem:[%s10521_s3 + $0x30] sm:$0xff]  ;;  %v6869_v33 = vld [vmem:[%s10521_s3 + $0x48] sm:$0xff] }
 0x174   : > { %v9736_v11 = vld [vmem:[#allocation2 + $0x230] sm:$0xff]  ;;  %v9746_v7 = vld [vmem:[#allocation2 + $0x241] sm:$0xff]  ;;  %v9898_v41 = vpack.c.bf16 %v6835_v45, %v6834_v58 }
 0x175   : > { %v9738_v36 = vld [vmem:[#allocation2 + $0x231] sm:$0xff]  ;;  %7796 = vmatmul.mubr.msk.f32.gmra.mrb[68].mxu0 %vm1816_vm4, %v9736_v11  ;;  %v9957_v43 = vld [vmem:[#allocation2 + $0x182] sm:$0xff] }
 0x176   : > { %7812 = vmatmul.mubr.msk.f32.gmra.mrb[68].mxu1 %vm1816_vm4, %v9738_v36  ;;  %7798 = vmatprep.mubr.msk.f32.mxu0 %vm1816_vm4, %v9744_v6  ;;  %v9935_v61 = vld [vmem:[#allocation2 + $0x152] sm:$0xff]  ;;  %v9969_v29 = vld [vmem:[#allocation2 + $0x1a2] sm:$0xff] }
 0x177   : > { %7814 = vmatprep.mubr.msk.f32.mxu1 %vm1816_vm4, %v9746_v7  ;;  %v9949_v42 = vld [vmem:[#allocation2 + $0x172] sm:$0xff]  ;;  %v6868_v3 = vld [vmem:[%s10521_s3 + $0x40] sm:$0xff] }
 0x178   : > { %v9752_v50 = vld [vmem:[#allocation2 + $0x250] sm:$0xff]  ;;  %v9993_v9 = vld [vmem:[#allocation2 + $0x22] sm:$0xff]  ;;  %v9995_v12 = vpack.c.bf16 %v6869_v33, %v6868_v3  ;;  %v6903_v3 = vld [vmem:[%s10521_s3 + $0x58] sm:$0xff] }
 0x179   : > { %v9754_v5 = vld [vmem:[#allocation2 + $0x251] sm:$0xff]  ;;  %7799 = vmatmul.mubr.msk.f32.gmra.mrb[70].mxu0 %vm1816_vm4, %v9752_v50  ;;  %v10023_v58 = vld [vmem:[#allocation2 + $0x62] sm:$0xff] }
 0x17a   : > { %7815 = vmatmul.mubr.msk.f32.gmra.mrb[70].mxu1 %vm1816_vm4, %v9754_v5  ;;  %7837 = vmatprep.mubr.msk.f32.mxu0 %vm1816_vm4, %v9760_v30  ;;  %v9963_v44 = vld [vmem:[#allocation2 + $0x192] sm:$0xff] }
 0x17b   : > { %7821 = vmatprep.mubr.msk.f32.mxu1 %vm1816_vm4, %v10615_v22  ;;  %v9975_v19 = vld [vmem:[#allocation2 + $0x1b2] sm:$0xff] }
 0x17c   : > { %v9981_v20 = vld [vmem:[#allocation2 + $0x12] sm:$0xff] }
 0x17d   : > { %7838 = vmatmul.mubr.msk.f32.vlgmr.msra.gmra.mrb[72].mxu0 %vm1816_vm4, %v9772_v34  ;;  %v10001_v22 = vld [vmem:[#allocation2 + $0x32] sm:$0xff] }
 0x17e   : > { %7822 = vmatmul.mubr.msk.f32.vlgmr.msra.gmra.mrb[64].mxu1 %vm1816_vm4, %v9628_v59  ;;  %7840 = vmatprep.mubr.msk.f32.mxu0 %vm1816_vm4, %v9780_v23  ;;  %v10029_v45 = vld [vmem:[#allocation2 + $0x72] sm:$0xff] }
 0x17f   : > { %7824 = vmatprep.mubr.msk.f32.mxu1 %vm1816_vm4, %v9637_v62  ;;  %8412 = vmatpush3.bf16.msra.mxu1 %v10596_v10  ;;  %v9802_v10 = vld [vmem:[#allocation2 + $0x61] sm:$0xff] }
 0x180   : > { %8408 = vmatpush3.bf16.msra.mxu0 %v10595_v28  ;;  %8414 = vmatprep.subr.bf16.mxu1 %v10595_v28 }
 0x181   : > { %8418 = vmatprep.subr.bf16.mxu0 %v9774_v35  ;;  %7841 = vmatmul.mubr.msk.f32.gmra.mrb[74].mxu0 %vm1816_vm4, %v9788_v13 }
 0x182   : > { %7825 = vmatmul.mubr.msk.f32.gmra.mrb[66].mxu1 %vm1816_vm4, %v9648_v4  ;;  %7843 = vmatprep.mubr.msk.f32.mxu0 %vm1816_vm4, %v9796_v53 }
 0x183   : > { %7827 = vmatprep.mubr.msk.f32.mxu1 %vm1816_vm4, %v9657_v49 }
 0x185   : > { %7844 = vmatmul.mubr.msk.f32.gmra.mrb[76].mxu0 %vm1816_vm4, %v9802_v10 }
 0x186   : > { %7828 = vmatmul.mubr.msk.f32.gmra.mrb[68].mxu1 %vm1816_vm4, %v9666_v52  ;;  %7846 = vmatprep.mubr.msk.f32.mxu0 %vm1816_vm4, %v9808_v63 }
 0x187   : > { %7830 = vmatprep.mubr.msk.f32.mxu1 %vm1816_vm4, %v9675_v57 }
 0x189   : > { %7847 = vmatmul.mubr.msk.f32.gmra.mrb[78].mxu0 %vm1816_vm4, %v9814_v2 }
 0x18a   : > { %7831 = vmatmul.mubr.msk.f32.gmra.mrb[70].mxu1 %vm1816_vm4, %v9684_v40  ;;  %7853 = vmatprep.mubr.msk.f32.mxu0 %vm1816_vm4, %v9820_v27 }
 0x18b   : > { %7869 = vmatprep.mubr.msk.f32.mxu1 %vm1816_vm4, %v9822_v37 }
 0x18d   : > { %7854 = vmatmul.mubr.msk.f32.vlgmr.msra.gmra.mrb[72].mxu0 %vm1816_vm4, %v9828_v38 }
 0x18e   : > { %7870 = vmatmul.mubr.msk.f32.vlgmr.msra.gmra.mrb[72].mxu1 %vm1816_vm4, %v9830_v60  ;;  %7856 = vmatprep.mubr.msk.f32.mxu0 %vm1816_vm4, %v9836_v55 }
 0x18f   : > { %7872 = vmatprep.mubr.msk.f32.mxu1 %vm1816_vm4, %v9838_v56  ;;  %8416 = vmatpush3.bf16.msra.mxu1 %v10595_v28  ;;  %v9864_v28 = vld [vmem:[#allocation2 + $0x100] sm:$0xff] }
 0x190   : > { %8420 = vmatpush3.bf16.msra.mxu0 %v9774_v35  ;;  %8422 = vmatprep.subr.bf16.mxu1 %v9774_v35 }
 0x191   : > { %8426 = vmatprep.subr.bf16.mxu0 %v9774_v35  ;;  %7857 = vmatmul.mubr.msk.f32.gmra.mrb[74].mxu0 %vm1816_vm4, %v9846_v25 }
 0x192   : > { %7873 = vmatmul.mubr.msk.f32.gmra.mrb[74].mxu1 %vm1816_vm4, %v9848_v21  ;;  %7859 = vmatprep.mubr.msk.f32.mxu0 %vm1816_vm4, %v9856_v24 }
 0x193   : > { %7875 = vmatprep.mubr.msk.f32.mxu1 %vm1816_vm4, %v9858_v26 }
 0x195   : > { %7860 = vmatmul.mubr.msk.f32.gmra.mrb[76].mxu0 %vm1816_vm4, %v9864_v28 }
 0x196   : > { %7876 = vmatmul.mubr.msk.f32.gmra.mrb[76].mxu1 %vm1816_vm4, %v9866_v14  ;;  %7862 = vmatprep.mubr.msk.f32.mxu0 %vm1816_vm4, %v9872_v51 }
 0x197   : > { %7878 = vmatprep.mubr.msk.f32.mxu1 %vm1816_vm4, %v9874_v54 }
 0x199   : > { %7863 = vmatmul.mubr.msk.f32.gmra.mrb[78].mxu0 %vm1816_vm4, %v9880_v15 }
 0x19a   : > { %7879 = vmatmul.mubr.msk.f32.gmra.mrb[78].mxu1 %vm1816_vm4, %v9882_v16  ;;  %7901 = vmatprep.mubr.msk.f32.mxu0 %vm1816_vm4, %v10616_v48  ;;  %v10035_v48 = vld [vmem:[#allocation2 + $0x82] sm:$0xff] }
 0x19b   : > { %7885 = vmatprep.mubr.msk.f32.mxu1 %vm1816_vm4, %v9760_v30 }
 0x19d   : > { %7902 = vmatmul.mubr.msk.f32.vlgmr.msra.gmra.mrb[64].mxu0 %vm1816_vm4, %v9698_v1 }
 0x19e   : > { %7886 = vmatmul.mubr.msk.f32.vlgmr.msra.gmra.mrb[72].mxu1 %vm1816_vm4, %v9772_v34  ;;  %7904 = vmatprep.mubr.msk.f32.mxu0 %vm1816_vm4, %v9708_v32 }
 0x19f   : > { %7888 = vmatprep.mubr.msk.f32.mxu1 %vm1816_vm4, %v9780_v23  ;;  %8424 = vmatpush3.bf16.msra.mxu1 %v9774_v35 }
 0x1a0   : > { %8428 = vmatpush3.bf16.msra.mxu0 %v9774_v35  ;;  %8430 = vmatprep.subr.bf16.mxu1 %v9774_v35 }
 0x1a1   : > { %8434 = vmatprep.subr.bf16.mxu0 %v9898_v41  ;;  %7905 = vmatmul.mubr.msk.f32.gmra.mrb[66].mxu0 %vm1816_vm4, %v9719_v46 }
 0x1a2   : > { %7889 = vmatmul.mubr.msk.f32.gmra.mrb[74].mxu1 %vm1816_vm4, %v9788_v13  ;;  %7907 = vmatprep.mubr.msk.f32.mxu0 %vm1816_vm4, %v9730_v18 }
 0x1a3   : > { %7891 = vmatprep.mubr.msk.f32.mxu1 %vm1816_vm4, %v9796_v53 }
 0x1a5   : > { %7908 = vmatmul.mubr.msk.f32.gmra.mrb[68].mxu0 %vm1816_vm4, %v9738_v36 }
 0x1a6   : > { %7892 = vmatmul.mubr.msk.f32.gmra.mrb[76].mxu1 %vm1816_vm4, %v9802_v10  ;;  %7910 = vmatprep.mubr.msk.f32.mxu0 %vm1816_vm4, %v9746_v7 }
 0x1a7   : > { %7894 = vmatprep.mubr.msk.f32.mxu1 %vm1816_vm4, %v9808_v63 }
 0x1a9   : > { %7911 = vmatmul.mubr.msk.f32.gmra.mrb[70].mxu0 %vm1816_vm4, %v9754_v5 }
 0x1aa   : > { %7895 = vmatmul.mubr.msk.f32.gmra.mrb[78].mxu1 %vm1816_vm4, %v9814_v2  ;;  %7933 = vmatprep.mubr.msk.f32.mxu0 %vm1816_vm4, %v9822_v37 }
 0x1ab   : > { %7917 = vmatprep.mubr.msk.f32.mxu1 %vm1816_vm4, %v3089_v17  ;;  %v6902_v17 = vld [vmem:[%s10521_s3 + $0x50] sm:$0xff] }
 0x1ac   : > { %v10089_v33 = vpack.c.bf16 %v6903_v3, %v6902_v17  ;;  %v6937_v17 = vld [vmem:[%s10521_s3 + $0x68] sm:$0xff] }
 0x1ad   : > { %7934 = vmatmul.mubr.msk.f32.vlgmr.msra.gmra.mrb[72].mxu0 %vm1816_vm4, %v9830_v60 }
 0x1ae   : > { %7918 = vmatmul.mubr.msk.f32.vlgmr.msra.gmra.mrb[64].mxu1 %vm1816_vm4, %v9935_v61  ;;  %7936 = vmatprep.mubr.msk.f32.mxu0 %vm1816_vm4, %v9838_v56 }
 0x1af   : > { %7920 = vmatprep.mubr.msk.f32.mxu1 %vm1816_vm4, %v9941_v39  ;;  %8432 = vmatpush3.bf16.msra.mxu1 %v9774_v35  ;;  %v10009_v35 = vld [vmem:[#allocation2 + $0x42] sm:$0xff] }
 0x1b0   : > { %8436 = vmatpush3.bf16.msra.mxu0 %v9898_v41  ;;  %8438 = vmatprep.subr.bf16.mxu1 %v9898_v41 }
 0x1b1   : > { %8442 = vmatprep.subr.bf16.mxu0 %v9898_v41  ;;  %7937 = vmatmul.mubr.msk.f32.gmra.mrb[74].mxu0 %vm1816_vm4, %v9848_v21 }
 0x1b2   : > { %7921 = vmatmul.mubr.msk.f32.gmra.mrb[66].mxu1 %vm1816_vm4, %v9949_v42  ;;  %7939 = vmatprep.mubr.msk.f32.mxu0 %vm1816_vm4, %v9858_v26 }
 0x1b3   : > { %7923 = vmatprep.mubr.msk.f32.mxu1 %vm1816_vm4, %v9957_v43 }
 0x1b5   : > { %7940 = vmatmul.mubr.msk.f32.gmra.mrb[76].mxu0 %vm1816_vm4, %v9866_v14 }
 0x1b6   : > { %7924 = vmatmul.mubr.msk.f32.gmra.mrb[68].mxu1 %vm1816_vm4, %v9963_v44  ;;  %7942 = vmatprep.mubr.msk.f32.mxu0 %vm1816_vm4, %v9874_v54 }
 0x1b7   : > { %7926 = vmatprep.mubr.msk.f32.mxu1 %vm1816_vm4, %v9969_v29 }
 0x1b9   : > { %7943 = vmatmul.mubr.msk.f32.gmra.mrb[78].mxu0 %vm1816_vm4, %v9882_v16 }
 0x1ba   : > { %7927 = vmatmul.mubr.msk.f32.gmra.mrb[70].mxu1 %vm1816_vm4, %v9975_v19  ;;  %7965 = vmatprep.mubr.msk.f32.mxu0 %vm1816_vm4, %v9820_v27  ;;  %v10017_v27 = vld [vmem:[#allocation2 + $0x52] sm:$0xff] }
 0x1bb   : > { %7949 = vmatprep.mubr.msk.f32.mxu1 %vm1816_vm4, %v9981_v20 }
 0x1bd   : > { %7966 = vmatmul.mubr.msk.f32.vlgmr.msra.gmra.mrb[64].mxu0 %vm1816_vm4, %v9828_v38 }
 0x1be   : > { %7950 = vmatmul.mubr.msk.f32.vlgmr.msra.gmra.mrb[72].mxu1 %vm1816_vm4, %v9993_v9  ;;  %7968 = vmatprep.mubr.msk.f32.mxu0 %vm1816_vm4, %v9836_v55 }
 0x1bf   : > { %7952 = vmatprep.mubr.msk.f32.mxu1 %vm1816_vm4, %v10001_v22  ;;  %8440 = vmatpush3.bf16.msra.mxu1 %v9898_v41 }
 0x1c0   : > { %8444 = vmatpush3.bf16.msra.mxu0 %v9898_v41  ;;  %8446 = vmatprep.subr.bf16.mxu1 %v9898_v41 }
 0x1c1   : > { %8450 = vmatprep.subr.bf16.mxu0 %v9995_v12  ;;  %7969 = vmatmul.mubr.msk.f32.gmra.mrb[66].mxu0 %vm1816_vm4, %v9846_v25 }
 0x1c2   : > { %7953 = vmatmul.mubr.msk.f32.gmra.mrb[74].mxu1 %vm1816_vm4, %v10009_v35  ;;  %7971 = vmatprep.mubr.msk.f32.mxu0 %vm1816_vm4, %v9856_v24 }
 0x1c3   : > { %7955 = vmatprep.mubr.msk.f32.mxu1 %vm1816_vm4, %v10017_v27 }
 0x1c5   : > { %7972 = vmatmul.mubr.msk.f32.gmra.mrb[68].mxu0 %vm1816_vm4, %v9864_v28 }
 0x1c6   : > { %7956 = vmatmul.mubr.msk.f32.gmra.mrb[76].mxu1 %vm1816_vm4, %v10023_v58  ;;  %7974 = vmatprep.mubr.msk.f32.mxu0 %vm1816_vm4, %v9872_v51 }
 0x1c7   : > { %7958 = vmatprep.mubr.msk.f32.mxu1 %vm1816_vm4, %v10029_v45 }
 0x1c9   : > { %7975 = vmatmul.mubr.msk.f32.gmra.mrb[70].mxu0 %vm1816_vm4, %v9880_v15 }
 0x1ca   : > { %7959 = vmatmul.mubr.msk.f32.gmra.mrb[78].mxu1 %vm1816_vm4, %v10035_v48  ;;  %7997 = vmatprep.mubr.msk.f32.mxu0 %vm1816_vm4, %v9696_v0 }
 0x1cb   : > { %7981 = vmatprep.mubr.msk.f32.mxu1 %vm1816_vm4, %v9760_v30 }
 0x1cd   : > { %7998 = vmatmul.mubr.msk.f32.vlgmr.msra.gmra.mrb[72].mxu0 %vm1816_vm4, %v9706_v31 }
 0x1ce   : > { %7982 = vmatmul.mubr.msk.f32.vlgmr.msra.gmra.mrb[64].mxu1 %vm1816_vm4, %v9772_v34  ;;  %8000 = vmatprep.mubr.msk.f32.mxu0 %vm1816_vm4, %v9717_v8 }
 0x1cf   : > { %7984 = vmatprep.mubr.msk.f32.mxu1 %vm1816_vm4, %v9780_v23  ;;  %8448 = vmatpush3.bf16.msra.mxu1 %v9898_v41  ;;  %v10073_v41 = vld [vmem:[#allocation2 + $0x260] sm:$0xff] }
 0x1d0   : > { %8452 = vmatpush3.bf16.msra.mxu0 %v9995_v12  ;;  %8454 = vmatprep.subr.bf16.mxu1 %v9995_v12 }
 0x1d1   : > { %8458 = vmatprep.subr.bf16.mxu0 %v9995_v12  ;;  %8001 = vmatmul.mubr.msk.f32.gmra.mrb[74].mxu0 %vm1816_vm4, %v9728_v47 }
 0x1d2   : > { %7985 = vmatmul.mubr.msk.f32.gmra.mrb[66].mxu1 %vm1816_vm4, %v9788_v13  ;;  %8003 = vmatprep.mubr.msk.f32.mxu0 %vm1816_vm4, %v9736_v11 }
 0x1d3   : > { %7987 = vmatprep.mubr.msk.f32.mxu1 %vm1816_vm4, %v9796_v53 }
 0x1d5   : > { %8004 = vmatmul.mubr.msk.f32.gmra.mrb[76].mxu0 %vm1816_vm4, %v9744_v6 }
 0x1d6   : > { %7988 = vmatmul.mubr.msk.f32.gmra.mrb[68].mxu1 %vm1816_vm4, %v9802_v10  ;;  %8006 = vmatprep.mubr.msk.f32.mxu0 %vm1816_vm4, %v9752_v50 }
 0x1d7   : > { %7990 = vmatprep.mubr.msk.f32.mxu1 %vm1816_vm4, %v9808_v63 }
 0x1d9   : > { %8007 = vmatmul.mubr.msk.f32.gmra.mrb[78].mxu0 %vm1816_vm4, %v10073_v41 }
 0x1da   : > { %7991 = vmatmul.mubr.msk.f32.gmra.mrb[70].mxu1 %vm1816_vm4, %v9814_v2  ;;  %8029 = vmatprep.mubr.msk.f32.mxu0 %vm1816_vm4, %v9760_v30  ;;  %v10119_v30 = vld [vmem:[#allocation2 + $0x1c1] sm:$0xff] }
 0x1db   : > { %8013 = vmatprep.mubr.msk.f32.mxu1 %vm1816_vm4, %v9628_v59 }
 0x1dd   : > { %8030 = vmatmul.mubr.msk.f32.vlgmr.msra.gmra.mrb[64].mxu0 %vm1816_vm4, %v9772_v34 }
 0x1de   : > { %8014 = vmatmul.mubr.msk.f32.vlgmr.msra.gmra.mrb[72].mxu1 %vm1816_vm4, %v9637_v62  ;;  %8032 = vmatprep.mubr.msk.f32.mxu0 %vm1816_vm4, %v9780_v23 }
 0x1df   : > { %8016 = vmatprep.mubr.msk.f32.mxu1 %vm1816_vm4, %v9648_v4  ;;  %8456 = vmatpush3.bf16.msra.mxu1 %v9995_v12 }
 0x1e0   : > { %8460 = vmatpush3.bf16.msra.mxu0 %v9995_v12  ;;  %8462 = vmatprep.subr.bf16.mxu1 %v9995_v12 }
 0x1e1   : > { %8466 = vmatprep.subr.bf16.mxu0 %v10089_v33  ;;  %8033 = vmatmul.mubr.msk.f32.gmra.mrb[66].mxu0 %vm1816_vm4, %v9788_v13 }
 0x1e2   : > { %8017 = vmatmul.mubr.msk.f32.gmra.mrb[74].mxu1 %vm1816_vm4, %v9657_v49  ;;  %8035 = vmatprep.mubr.msk.f32.mxu0 %vm1816_vm4, %v9796_v53 }
 0x1e3   : > { %8019 = vmatprep.mubr.msk.f32.mxu1 %vm1816_vm4, %v9666_v52 }
 0x1e5   : > { %8036 = vmatmul.mubr.msk.f32.gmra.mrb[68].mxu0 %vm1816_vm4, %v9802_v10 }
 0x1e6   : > { %8020 = vmatmul.mubr.msk.f32.gmra.mrb[76].mxu1 %vm1816_vm4, %v9675_v57  ;;  %8038 = vmatprep.mubr.msk.f32.mxu0 %vm1816_vm4, %v9808_v63 }
 0x1e7   : > { %8022 = vmatprep.mubr.msk.f32.mxu1 %vm1816_vm4, %v9684_v40 }
 0x1e9   : > { %8039 = vmatmul.mubr.msk.f32.gmra.mrb[70].mxu0 %vm1816_vm4, %v9814_v2 }
 0x1ea   : > { %8023 = vmatmul.mubr.msk.f32.gmra.mrb[78].mxu1 %vm1816_vm4, %v10119_v30  ;;  %8061 = vmatprep.mubr.msk.f32.mxu0 %vm1816_vm4, %v9628_v59 }
 0x1eb   : > { %8045 = vmatprep.mubr.msk.f32.mxu1 %vm1816_vm4, %v9822_v37 }
 0x1ed   : > { %8062 = vmatmul.mubr.msk.f32.vlgmr.msra.gmra.mrb[72].mxu0 %vm1816_vm4, %v9637_v62 }
 0x1ee   : > { %8046 = vmatmul.mubr.msk.f32.vlgmr.msra.gmra.mrb[64].mxu1 %vm1816_vm4, %v9830_v60  ;;  %8064 = vmatprep.mubr.msk.f32.mxu0 %vm1816_vm4, %v9648_v4 }
 0x1ef   : > { %8048 = vmatprep.mubr.msk.f32.mxu1 %vm1816_vm4, %v9838_v56  ;;  %8464 = vmatpush3.bf16.msra.mxu1 %v9995_v12  ;;  %v6936_v12 = vld [vmem:[%s10521_s3 + $0x60] sm:$0xff] }
 0x1f0   : > { %8468 = vmatpush3.bf16.msra.mxu0 %v10089_v33  ;;  %8470 = vmatprep.subr.bf16.mxu1 %v10089_v33  ;;  %v10171_v3 = vpack.c.bf16 %v6937_v17, %v6936_v12 }
 0x1f1   : > { %8474 = vmatprep.subr.bf16.mxu0 %v10089_v33  ;;  %8065 = vmatmul.mubr.msk.f32.gmra.mrb[74].mxu0 %vm1816_vm4, %v9657_v49 }
 0x1f2   : > { %8049 = vmatmul.mubr.msk.f32.gmra.mrb[66].mxu1 %vm1816_vm4, %v9848_v21  ;;  %8067 = vmatprep.mubr.msk.f32.mxu0 %vm1816_vm4, %v9666_v52 }
 0x1f3   : > { %8051 = vmatprep.mubr.msk.f32.mxu1 %vm1816_vm4, %v9858_v26 }
 0x1f5   : > { %8068 = vmatmul.mubr.msk.f32.gmra.mrb[76].mxu0 %vm1816_vm4, %v9675_v57 }
 0x1f6   : > { %8052 = vmatmul.mubr.msk.f32.gmra.mrb[68].mxu1 %vm1816_vm4, %v9866_v14  ;;  %8070 = vmatprep.mubr.msk.f32.mxu0 %vm1816_vm4, %v9684_v40 }
 0x1f7   : > { %8054 = vmatprep.mubr.msk.f32.mxu1 %vm1816_vm4, %v9874_v54 }
 0x1f9   : > { %8071 = vmatmul.mubr.msk.f32.gmra.mrb[78].mxu0 %vm1816_vm4, %v10119_v30 }
 0x1fa   : > { %8055 = vmatmul.mubr.msk.f32.gmra.mrb[70].mxu1 %vm1816_vm4, %v9882_v16  ;;  %8093 = vmatprep.mubr.msk.f32.mxu0 %vm1816_vm4, %v9822_v37  ;;  %v10201_v37 = vld [vmem:[#allocation2 + $0x261] sm:$0xff] }
 0x1fb   : > { %8077 = vmatprep.mubr.msk.f32.mxu1 %vm1816_vm4, %v9698_v1 }
 0x1fd   : > { %8094 = vmatmul.mubr.msk.f32.vlgmr.msra.gmra.mrb[64].mxu0 %vm1816_vm4, %v9830_v60 }
 0x1fe   : > { %8078 = vmatmul.mubr.msk.f32.vlgmr.msra.gmra.mrb[72].mxu1 %vm1816_vm4, %v9708_v32  ;;  %8096 = vmatprep.mubr.msk.f32.mxu0 %vm1816_vm4, %v9838_v56 }
 0x1ff   : > { %8080 = vmatprep.mubr.msk.f32.mxu1 %vm1816_vm4, %v9719_v46  ;;  %8472 = vmatpush3.bf16.msra.mxu1 %v10089_v33 }
 0x200   : > { %8476 = vmatpush3.bf16.msra.mxu0 %v10089_v33  ;;  %8478 = vmatprep.subr.bf16.mxu1 %v10089_v33 }
 0x201   : > { %8482 = vmatprep.subr.bf16.mxu0 %v10171_v3  ;;  %8097 = vmatmul.mubr.msk.f32.gmra.mrb[66].mxu0 %vm1816_vm4, %v9848_v21 }
 0x202   : > { %8081 = vmatmul.mubr.msk.f32.gmra.mrb[74].mxu1 %vm1816_vm4, %v9730_v18  ;;  %8099 = vmatprep.mubr.msk.f32.mxu0 %vm1816_vm4, %v9858_v26 }
 0x203   : > { %8083 = vmatprep.mubr.msk.f32.mxu1 %vm1816_vm4, %v9738_v36 }
 0x205   : > { %8100 = vmatmul.mubr.msk.f32.gmra.mrb[68].mxu0 %vm1816_vm4, %v9866_v14 }
 0x206   : > { %8084 = vmatmul.mubr.msk.f32.gmra.mrb[76].mxu1 %vm1816_vm4, %v9746_v7  ;;  %8102 = vmatprep.mubr.msk.f32.mxu0 %vm1816_vm4, %v9874_v54 }
 0x207   : > { %8086 = vmatprep.mubr.msk.f32.mxu1 %vm1816_vm4, %v9754_v5 }
 0x209   : > { %8103 = vmatmul.mubr.msk.f32.gmra.mrb[70].mxu0 %vm1816_vm4, %v9882_v16 }
 0x20a   : > { %8087 = vmatmul.mubr.msk.f32.gmra.mrb[78].mxu1 %vm1816_vm4, %v10201_v37  ;;  %8125 = vmatprep.mubr.msk.f32.mxu0 %vm1816_vm4, %v9698_v1 }
 0x20b   : > { %8109 = vmatprep.mubr.msk.f32.mxu1 %vm1816_vm4, %v9981_v20  ;;  %v6970_v20 = vld [vmem:[%s10521_s3 + $0x70] sm:$0xff] }
 0x20d   : > { %8126 = vmatmul.mubr.msk.f32.vlgmr.msra.gmra.mrb[72].mxu0 %vm1816_vm4, %v9708_v32 }
 0x20e   : > { %8110 = vmatmul.mubr.msk.f32.vlgmr.msra.gmra.mrb[64].mxu1 %vm1816_vm4, %v9993_v9  ;;  %8128 = vmatprep.mubr.msk.f32.mxu0 %vm1816_vm4, %v9719_v46 }
 0x20f   : > { %8112 = vmatprep.mubr.msk.f32.mxu1 %vm1816_vm4, %v10001_v22  ;;  %8480 = vmatpush3.bf16.msra.mxu1 %v10089_v33  ;;  %v6971_v33 = vld [vmem:[%s10521_s3 + $0x78] sm:$0xff] }
 0x210   : > { %8484 = vmatpush3.bf16.msra.mxu0 %v10171_v3  ;;  %8486 = vmatprep.subr.bf16.mxu1 %v10171_v3  ;;  %v10253_v12 = vpack.c.bf16 %v6971_v33, %v6970_v20 }
 0x211   : > { %8490 = vmatprep.subr.bf16.mxu0 %v10171_v3  ;;  %8129 = vmatmul.mubr.msk.f32.gmra.mrb[74].mxu0 %vm1816_vm4, %v9730_v18 }
 0x212   : > { %8113 = vmatmul.mubr.msk.f32.gmra.mrb[66].mxu1 %vm1816_vm4, %v10009_v35  ;;  %8131 = vmatprep.mubr.msk.f32.mxu0 %vm1816_vm4, %v9738_v36 }
 0x213   : > { %8115 = vmatprep.mubr.msk.f32.mxu1 %vm1816_vm4, %v10017_v27 }
 0x215   : > { %8132 = vmatmul.mubr.msk.f32.gmra.mrb[76].mxu0 %vm1816_vm4, %v9746_v7 }
 0x216   : > { %8116 = vmatmul.mubr.msk.f32.gmra.mrb[68].mxu1 %vm1816_vm4, %v10023_v58  ;;  %8134 = vmatprep.mubr.msk.f32.mxu0 %vm1816_vm4, %v9754_v5 }
 0x217   : > { %8118 = vmatprep.mubr.msk.f32.mxu1 %vm1816_vm4, %v10029_v45 }
 0x219   : > { %8135 = vmatmul.mubr.msk.f32.gmra.mrb[78].mxu0 %vm1816_vm4, %v10201_v37 }
 0x21a   : > { %8119 = vmatmul.mubr.msk.f32.gmra.mrb[70].mxu1 %vm1816_vm4, %v10035_v48  ;;  %8157 = vmatprep.mubr.msk.f32.mxu0 %vm1816_vm4, %v9696_v0  ;;  %v10283_v0 = vld [vmem:[#allocation2 + $0x1c2] sm:$0xff] }
 0x21b   : > { %8141 = vmatprep.mubr.msk.f32.mxu1 %vm1816_vm4, %v9935_v61 }
 0x21d   : > { %8158 = vmatmul.mubr.msk.f32.vlgmr.msra.gmra.mrb[64].mxu0 %vm1816_vm4, %v9706_v31  ;;  %v5222_v31 = vld [vmem:[#allocation2 + $0x130] sm:$0xff] }
 0x21e   : > { %8142 = vmatmul.mubr.msk.f32.vlgmr.msra.gmra.mrb[72].mxu1 %vm1816_vm4, %v9941_v39  ;;  %8160 = vmatprep.mubr.msk.f32.mxu0 %vm1816_vm4, %v9717_v8  ;;  %v7004_v8 = vld [vmem:[%s10521_s3 + $0x80] sm:$0xff] }
 0x21f   : > { %8144 = vmatprep.mubr.msk.f32.mxu1 %vm1816_vm4, %v9949_v42  ;;  %8488 = vmatpush3.bf16.msra.mxu1 %v10171_v3 }
 0x220   : > { %8492 = vmatpush3.bf16.msra.mxu0 %v10171_v3  ;;  %8494 = vmatprep.subr.bf16.mxu1 %v10171_v3 }
 0x221   : > { %8498 = vmatprep.subr.bf16.mxu0 %v10253_v12  ;;  %8161 = vmatmul.mubr.msk.f32.gmra.mrb[66].mxu0 %vm1816_vm4, %v9728_v47  ;;  %v7005_v47 = vld [vmem:[%s10521_s3 + $0x88] sm:$0xff] }
 0x222   : > { %8145 = vmatmul.mubr.msk.f32.gmra.mrb[74].mxu1 %vm1816_vm4, %v9957_v43  ;;  %8163 = vmatprep.mubr.msk.f32.mxu0 %vm1816_vm4, %v9736_v11  ;;  %v10334_v11 = vpack.c.bf16 %v7005_v47, %v7004_v8 }
 0x223   : > { %8147 = vmatprep.mubr.msk.f32.mxu1 %vm1816_vm4, %v9963_v44 }
 0x225   : > { %8164 = vmatmul.mubr.msk.f32.gmra.mrb[68].mxu0 %vm1816_vm4, %v9744_v6 }
 0x226   : > { %8148 = vmatmul.mubr.msk.f32.gmra.mrb[76].mxu1 %vm1816_vm4, %v9969_v29  ;;  %8166 = vmatprep.mubr.msk.f32.mxu0 %vm1816_vm4, %v9752_v50 }
 0x227   : > { %8150 = vmatprep.mubr.msk.f32.mxu1 %vm1816_vm4, %v9975_v19 }
 0x229   : > { %8167 = vmatmul.mubr.msk.f32.gmra.mrb[70].mxu0 %vm1816_vm4, %v10073_v41 }
 0x22a   : > { %8151 = vmatmul.mubr.msk.f32.gmra.mrb[78].mxu1 %vm1816_vm4, %v10283_v0  ;;  %8189 = vmatprep.mubr.msk.f32.mxu0 %vm1816_vm4, %v9828_v38 }
 0x22b   : > { %8173 = vmatprep.mubr.msk.f32.mxu1 %vm1816_vm4, %v9628_v59 }
 0x22d   : > { %8190 = vmatmul.mubr.msk.f32.vlgmr.msra.gmra.mrb[72].mxu0 %vm1816_vm4, %v9836_v55 }
 0x22e   : > { %8174 = vmatmul.mubr.msk.f32.vlgmr.msra.gmra.mrb[64].mxu1 %vm1816_vm4, %v9637_v62  ;;  %8192 = vmatprep.mubr.msk.f32.mxu0 %vm1816_vm4, %v9846_v25 }
 0x22f   : > { %8176 = vmatprep.mubr.msk.f32.mxu1 %vm1816_vm4, %v9648_v4  ;;  %8496 = vmatpush3.bf16.msra.mxu1 %v10171_v3 }
 0x230   : > { %8500 = vmatpush3.bf16.msra.mxu0 %v10253_v12  ;;  %8502 = vmatprep.subr.bf16.mxu1 %v10253_v12 }
 0x231   : > { %8506 = vmatprep.subr.bf16.mxu0 %v10253_v12  ;;  %8193 = vmatmul.mubr.msk.f32.gmra.mrb[74].mxu0 %vm1816_vm4, %v9856_v24 }
 0x232   : > { %8177 = vmatmul.mubr.msk.f32.gmra.mrb[66].mxu1 %vm1816_vm4, %v9657_v49  ;;  %8195 = vmatprep.mubr.msk.f32.mxu0 %vm1816_vm4, %v9864_v28 }
 0x233   : > { %8179 = vmatprep.mubr.msk.f32.mxu1 %vm1816_vm4, %v9666_v52 }
 0x235   : > { %8196 = vmatmul.mubr.msk.f32.gmra.mrb[76].mxu0 %vm1816_vm4, %v9872_v51 }
 0x236   : > { %8180 = vmatmul.mubr.msk.f32.gmra.mrb[68].mxu1 %vm1816_vm4, %v9675_v57  ;;  %8198 = vmatprep.mubr.msk.f32.mxu0 %vm1816_vm4, %v9880_v15 }
 0x237   : > { %8182 = vmatprep.mubr.msk.f32.mxu1 %vm1816_vm4, %v9684_v40 }
 0x239   : > { %8199 = vmatmul.mubr.msk.f32.gmra.mrb[78].mxu0 %vm1816_vm4, %v5222_v31 }
 0x23a   : > { %8183 = vmatmul.mubr.msk.f32.gmra.mrb[70].mxu1 %vm1816_vm4, %v10119_v30  ;;  %8221 = vmatprep.mubr.msk.f32.mxu0 %vm1816_vm4, %v9628_v59  ;;  %v5368_v59 = vld [vmem:[#allocation2 + $0x91] sm:$0xff] }
 0x23b   : > { %8205 = vmatprep.mubr.msk.f32.mxu1 %vm1816_vm4, %v9772_v34 }
 0x23d   : > { %8222 = vmatmul.mubr.msk.f32.vlgmr.msra.gmra.mrb[64].mxu0 %vm1816_vm4, %v9637_v62  ;;  %v5855_v62 = vld [vmem:[#allocation2 + $0x131] sm:$0xff] }
 0x23e   : > { %8206 = vmatmul.mubr.msk.f32.vlgmr.msra.gmra.mrb[72].mxu1 %vm1816_vm4, %v9780_v23  ;;  %8224 = vmatprep.mubr.msk.f32.mxu0 %vm1816_vm4, %v9648_v4  ;;  %v6342_v4 = vld [vmem:[#allocation2 + $0x92] sm:$0xff] }
 0x23f   : > { %8208 = vmatprep.mubr.msk.f32.mxu1 %vm1816_vm4, %v9788_v13  ;;  %8504 = vmatpush3.bf16.msra.mxu1 %v10253_v12 }
 0x240   : > { %8508 = vmatpush3.bf16.msra.mxu0 %v10253_v12  ;;  %8510 = vmatprep.subr.bf16.mxu1 %v10253_v12 }
 0x241   : > { %8514 = vmatprep.subr.bf16.mxu0 %v10334_v11  ;;  %8225 = vmatmul.mubr.msk.f32.gmra.mrb[66].mxu0 %vm1816_vm4, %v9657_v49 }
 0x242   : > { %8209 = vmatmul.mubr.msk.f32.gmra.mrb[74].mxu1 %vm1816_vm4, %v9796_v53  ;;  %8227 = vmatprep.mubr.msk.f32.mxu0 %vm1816_vm4, %v9666_v52 }
 0x243   : > { %8211 = vmatprep.mubr.msk.f32.mxu1 %vm1816_vm4, %v9802_v10 }
 0x245   : > { %8228 = vmatmul.mubr.msk.f32.gmra.mrb[68].mxu0 %vm1816_vm4, %v9675_v57 }
 0x246   : > { %8212 = vmatmul.mubr.msk.f32.gmra.mrb[76].mxu1 %vm1816_vm4, %v9808_v63  ;;  %8230 = vmatprep.mubr.msk.f32.mxu0 %vm1816_vm4, %v9684_v40 }
 0x247   : > { %8214 = vmatprep.mubr.msk.f32.mxu1 %vm1816_vm4, %v9814_v2 }
 0x249   : > { %8231 = vmatmul.mubr.msk.f32.gmra.mrb[70].mxu0 %vm1816_vm4, %v10119_v30 }
 0x24a   : > { %8215 = vmatmul.mubr.msk.f32.gmra.mrb[78].mxu1 %vm1816_vm4, %v5368_v59  ;;  %8253 = vmatprep.mubr.msk.f32.mxu0 %vm1816_vm4, %v9772_v34 }
 0x24b   : > { %8237 = vmatprep.mubr.msk.f32.mxu1 %vm1816_vm4, %v9698_v1 }
 0x24d   : > { %8254 = vmatmul.mubr.msk.f32.vlgmr.msra.gmra.mrb[72].mxu0 %vm1816_vm4, %v9780_v23 }
 0x24e   : > { %8238 = vmatmul.mubr.msk.f32.vlgmr.msra.gmra.mrb[64].mxu1 %vm1816_vm4, %v9708_v32  ;;  %8256 = vmatprep.mubr.msk.f32.mxu0 %vm1816_vm4, %v9788_v13 }
 0x24f   : > { %8240 = vmatprep.mubr.msk.f32.mxu1 %vm1816_vm4, %v9719_v46  ;;  %8512 = vmatpush3.bf16.msra.mxu1 %v10253_v12 }
 0x250   : > { %8516 = vmatpush3.bf16.msra.mxu0 %v10334_v11  ;;  %8518 = vmatprep.subr.bf16.mxu1 %v10334_v11 }
 0x251   : > { %8522 = vmatprep.subr.bf16.mxu0 %v10334_v11  ;;  %8257 = vmatmul.mubr.msk.f32.gmra.mrb[74].mxu0 %vm1816_vm4, %v9796_v53 }
 0x252   : > { %8241 = vmatmul.mubr.msk.f32.gmra.mrb[66].mxu1 %vm1816_vm4, %v9730_v18  ;;  %8259 = vmatprep.mubr.msk.f32.mxu0 %vm1816_vm4, %v9802_v10 }
 0x253   : > { %8243 = vmatprep.mubr.msk.f32.mxu1 %vm1816_vm4, %v9738_v36 }
 0x255   : > { %8260 = vmatmul.mubr.msk.f32.gmra.mrb[76].mxu0 %vm1816_vm4, %v9808_v63 }
 0x256   : > { %8244 = vmatmul.mubr.msk.f32.gmra.mrb[68].mxu1 %vm1816_vm4, %v9746_v7  ;;  %8262 = vmatprep.mubr.msk.f32.mxu0 %vm1816_vm4, %v9814_v2 }
 0x257   : > { %8246 = vmatprep.mubr.msk.f32.mxu1 %vm1816_vm4, %v9754_v5 }
 0x259   : > { %8263 = vmatmul.mubr.msk.f32.gmra.mrb[78].mxu0 %vm1816_vm4, %v5368_v59 }
 0x25a   : > { %8247 = vmatmul.mubr.msk.f32.gmra.mrb[70].mxu1 %vm1816_vm4, %v10201_v37  ;;  %8285 = vmatprep.mubr.msk.f32.mxu0 %vm1816_vm4, %v9698_v1 }
 0x25b   : > { %8269 = vmatprep.mubr.msk.f32.mxu1 %vm1816_vm4, %v9830_v60 }
 0x25d   : > { %8286 = vmatmul.mubr.msk.f32.vlgmr.msra.gmra.mrb[64].mxu0 %vm1816_vm4, %v9708_v32 }
 0x25e   : > { %8270 = vmatmul.mubr.msk.f32.vlgmr.msra.gmra.mrb[72].mxu1 %vm1816_vm4, %v9838_v56  ;;  %8288 = vmatprep.mubr.msk.f32.mxu0 %vm1816_vm4, %v9719_v46 }
 0x25f   : > { %8272 = vmatprep.mubr.msk.f32.mxu1 %vm1816_vm4, %v9848_v21  ;;  %8520 = vmatpush3.bf16.msra.mxu1 %v10334_v11 }
 0x260   : > { %8524 = vmatpush3.bf16.msra.mxu0 %v10334_v11  ;;  %8526 = vmatprep.subr.bf16.mxu1 %v10334_v11 }
 0x261   : > { %8289 = vmatmul.mubr.msk.f32.gmra.mrb[66].mxu0 %vm1816_vm4, %v9730_v18 }
 0x262   : > { %8273 = vmatmul.mubr.msk.f32.gmra.mrb[74].mxu1 %vm1816_vm4, %v9858_v26  ;;  %8291 = vmatprep.mubr.msk.f32.mxu0 %vm1816_vm4, %v9738_v36 }
 0x263   : > { %8275 = vmatprep.mubr.msk.f32.mxu1 %vm1816_vm4, %v9866_v14 }
 0x265   : > { %8292 = vmatmul.mubr.msk.f32.gmra.mrb[68].mxu0 %vm1816_vm4, %v9746_v7 }
 0x266   : > { %8276 = vmatmul.mubr.msk.f32.gmra.mrb[76].mxu1 %vm1816_vm4, %v9874_v54  ;;  %8294 = vmatprep.mubr.msk.f32.mxu0 %vm1816_vm4, %v9754_v5 }
 0x267   : > { %8278 = vmatprep.mubr.msk.f32.mxu1 %vm1816_vm4, %v9882_v16 }
 0x269   : > { %8295 = vmatmul.mubr.msk.f32.gmra.mrb[70].mxu0 %vm1816_vm4, %v10201_v37 }
 0x26a   : > { %8279 = vmatmul.mubr.msk.f32.gmra.mrb[78].mxu1 %vm1816_vm4, %v5855_v62  ;;  %8317 = vmatprep.mubr.msk.f32.mxu0 %vm1816_vm4, %v9830_v60 }
 0x26b   : > { %8301 = vmatprep.mubr.msk.f32.mxu1 %vm1816_vm4, %v9935_v61 }
 0x26d   : > { %8318 = vmatmul.mubr.msk.f32.vlgmr.msra.gmra.mrb[72].mxu0 %vm1816_vm4, %v9838_v56 }
 0x26e   : > { %8302 = vmatmul.mubr.msk.f32.vlgmr.msra.gmra.mrb[64].mxu1 %vm1816_vm4, %v9941_v39  ;;  %8320 = vmatprep.mubr.msk.f32.mxu0 %vm1816_vm4, %v9848_v21  ;;  %v7038_v39 = vld [vmem:[%s10522_s4] ss:$0 sm:$0xff] }
 0x26f   : > { %8304 = vmatprep.mubr.msk.f32.mxu1 %vm1816_vm4, %v9949_v42  ;;  %8528 = vmatpush3.bf16.msra.mxu1 %v10334_v11 }
 0x271   : > { %8321 = vmatmul.mubr.msk.f32.gmra.mrb[74].mxu0 %vm1816_vm4, %v9858_v26 }
 0x272   : > { %8305 = vmatmul.mubr.msk.f32.gmra.mrb[66].mxu1 %vm1816_vm4, %v9957_v43  ;;  %8323 = vmatprep.mubr.msk.f32.mxu0 %vm1816_vm4, %v9866_v14 }
 0x273   : > { %8307 = vmatprep.mubr.msk.f32.mxu1 %vm1816_vm4, %v9963_v44 }
 0x275   : > { %8324 = vmatmul.mubr.msk.f32.gmra.mrb[76].mxu0 %vm1816_vm4, %v9874_v54 }
 0x276   : > { %8308 = vmatmul.mubr.msk.f32.gmra.mrb[68].mxu1 %vm1816_vm4, %v9969_v29  ;;  %8326 = vmatprep.mubr.msk.f32.mxu0 %vm1816_vm4, %v9882_v16 }
 0x277   : > { %8310 = vmatprep.mubr.msk.f32.mxu1 %vm1816_vm4, %v9975_v19 }
 0x279   : > { %8327 = vmatmul.mubr.msk.f32.gmra.mrb[78].mxu0 %vm1816_vm4, %v5855_v62 }
 0x27a   : > { %8311 = vmatmul.mubr.msk.f32.gmra.mrb[70].mxu1 %vm1816_vm4, %v10283_v0 }
 0x27b   : > { %8333 = vmatprep.mubr.msk.f32.mxu1 %vm1816_vm4, %v9993_v9 }
 0x27e   : > { %8334 = vmatmul.mubr.msk.f32.vlgmr.msra.gmra.mrb[72].mxu1 %vm1816_vm4, %v10001_v22 }
 0x27f   : > { %8336 = vmatprep.mubr.msk.f32.mxu1 %vm1816_vm4, %v10009_v35 }
 0x282   : > { %8337 = vmatmul.mubr.msk.f32.gmra.mrb[74].mxu1 %vm1816_vm4, %v10017_v27 }
 0x283   : > { %8339 = vmatprep.mubr.msk.f32.mxu1 %vm1816_vm4, %v10023_v58 }
 0x286   : > { %8340 = vmatmul.mubr.msk.f32.gmra.mrb[76].mxu1 %vm1816_vm4, %v10029_v45 }
 0x287   : > { %8342 = vmatprep.mubr.msk.f32.mxu1 %vm1816_vm4, %v10035_v48 }
 0x28a   : > { %8343 = vmatmul.mubr.msk.f32.gmra.mrb[78].mxu1 %vm1816_vm4, %v6342_v4 }
 0x330   : > { %v8287_v49 = vpop.f32.mrb[64].mxu0 }
 0x331   : > { %v6062_v52 = vpop.f32.mrb[65].mxu0 }
 0x334   : > { %v8290_v57 = vpop.f32.mrb[66].mxu0 }
 0x335   : > { %v6072_v40 = vpop.f32.mrb[67].mxu0 }
 0x338   : > { %v8293_v1 = vpop.f32.mrb[68].mxu0 }
 0x339   : > { %v6082_v32 = vpop.f32.mrb[69].mxu0 }
 0x33c   : > { %v10483_v46 = vpop.f32.mrb[70].mxu0 }
 0x33d   : > { %v10485_v18 = vpop.f32.mrb[71].mxu0 }
 0x340   : > { %v8319_v6 = vpop.f32.mrb[72].mxu0 }
 0x341   : > { %v8303_v36 = vpop.f32.mrb[64].mxu1  ;;  %v6288_v5 = vpop.f32.mrb[73].mxu0 }
 0x342   : > { %v6481_v7 = vmax.f32 %v8287_v49, %v8303_v36  ;;  %v6175_v50 = vpop.f32.mrb[65].mxu1 }
 0x343   : > { %v6480_v34 = vmax.f32 %v6062_v52, %v6175_v50 }
 0x344   : > { %v8322_v13 = vpop.f32.mrb[74].mxu0 }
 0x345   : > { %v8306_v23 = vpop.f32.mrb[66].mxu1  ;;  %v6298_v63 = vpop.f32.mrb[75].mxu0 }
 0x346   : > { %v6483_v53 = vmax.f32 %v8290_v57, %v8306_v23  ;;  %v6185_v10 = vpop.f32.mrb[67].mxu1 }
 0x347   : > { %v6482_v2 = vmax.f32 %v6072_v40, %v6185_v10 }
 0x348   : > { %v8325_v60 = vpop.f32.mrb[76].mxu0 }
 0x349   : > { %v8309_v38 = vpop.f32.mrb[68].mxu1  ;;  %v6308_v25 = vpop.f32.mrb[77].mxu0 }
 0x34a   : > { %v6485_v55 = vmax.f32 %v8293_v1, %v8309_v38  ;;  %v6195_v56 = vpop.f32.mrb[69].mxu1 }
 0x34b   : > { %v6484_v21 = vmax.f32 %v6082_v32, %v6195_v56 }
 0x34c   : > { %v8328_v26 = vpop.f32.mrb[78].mxu0 }
 0x34d   : > { %v8312_v24 = vpop.f32.mrb[70].mxu1  ;;  %v6318_v51 = vpop.f32.mrb[79].mxu0 }
 0x34e   : > { %v6487_v28 = vmax.f32 %v10483_v46, %v8312_v24  ;;  %v6205_v14 = vpop.f32.mrb[71].mxu1 }
 0x34f   : > { %v6486_v54 = vmax.f32 %v10485_v18, %v6205_v14 }
 0x351   : > { %v8335_v15 = vpop.f32.mrb[72].mxu1 }
 0x352   : > { %v6489_v16 = vmax.f32 %v8319_v6, %v8335_v15  ;;  %v6433_v61 = vpop.f32.mrb[73].mxu1 }
 0x353   : > { %v6488_v42 = vmax.f32 %v6288_v5, %v6433_v61 }
 0x354   : > { %v6497_v43 = vmax.f32 %v6481_v7, %v6489_v16 }
 0x355   : > { %v6496_v44 = vmax.f32 %v6480_v34, %v6488_v42  ;;  %v8338_v29 = vpop.f32.mrb[74].mxu1 }
 0x356   : > { %v6512_v19 = vadd.f32 %v7038_v39, %v6497_v43  ;;  %v6491_v9 = vmax.f32 %v8322_v13, %v8338_v29  ;;  %v6443_v22 = vpop.f32.mrb[75].mxu1 }
 0x357   : > { %v6511_v35 = vadd.f32 %v7038_v39, %v6496_v44  ;;  %v6490_v27 = vmax.f32 %v6298_v63, %v6443_v22 }
 0x358   : > { %v6520_v58 = vmax.f32 %v6512_v19, 0.0  ;;  %v6499_v45 = vmax.f32 %v6483_v53, %v6491_v9 }
 0x359   : > { %v6519_v48 = vmax.f32 %v6511_v35, 0.0  ;;  %v6498_v41 = vmax.f32 %v6482_v2, %v6490_v27  ;;  %v8341_v30 = vpop.f32.mrb[76].mxu1 }
 0x35a   : > { %6529 = vst.msk [vmem:[%s10497_s30 + $0x8] sm:$0xff] %vm6527_vm6, %v6520_v58  ;;  %v6514_v17 = vadd.f32 %v7038_v39, %v6499_v45  ;;  %v6493_v3 = vmax.f32 %v8325_v60, %v8341_v30  ;;  %v6453_v37 = vpop.f32.mrb[77].mxu1 }
 0x35b   : > { %6528 = vst.msk [vmem:[%s10497_s30] sm:$0xff] %vm6527_vm6, %v6519_v48  ;;  %v6513_v20 = vadd.f32 %v7038_v39, %v6498_v41  ;;  %v6492_v33 = vmax.f32 %v6308_v25, %v6453_v37 }
 0x35c   : > { %v6522_v12 = vmax.f32 %v6514_v17, 0.0  ;;  %v6501_v0 = vmax.f32 %v6485_v55, %v6493_v3 }
 0x35d   : > { %v6521_v31 = vmax.f32 %v6513_v20, 0.0  ;;  %v6500_v8 = vmax.f32 %v6484_v21, %v6492_v33  ;;  %v8344_v47 = vpop.f32.mrb[78].mxu1 }
 0x35e   : > { %6531 = vst.msk [vmem:[%s10497_s30 + $0x18] sm:$0xff] %vm6527_vm6, %v6522_v12  ;;  %v6516_v11 = vadd.f32 %v7038_v39, %v6501_v0  ;;  %v6495_v59 = vmax.f32 %v8328_v26, %v8344_v47  ;;  %v6463_v62 = vpop.f32.mrb[79].mxu1 }
 0x35f   : > { %6530 = vst.msk [vmem:[%s10497_s30 + $0x10] sm:$0xff] %vm6527_vm6, %v6521_v31  ;;  %v6515_v4 = vadd.f32 %v7038_v39, %v6500_v8  ;;  %v6494_v49 = vmax.f32 %v6318_v51, %v6463_v62 }
 0x360   : > { %v6524_v52 = vmax.f32 %v6516_v11, 0.0  ;;  %v6503_v57 = vmax.f32 %v6487_v28, %v6495_v59 }
 0x361   : > { %v6523_v40 = vmax.f32 %v6515_v4, 0.0  ;;  %v6502_v1 = vmax.f32 %v6486_v54, %v6494_v49 }
 0x362   : > { %6533 = vst.msk [vmem:[%s10497_s30 + $0x28] sm:$0xff] %vm6527_vm6, %v6524_v52  ;;  %v6518_v32 = vadd.f32 %v7038_v39, %v6503_v57 }
 0x363   : > { %6532 = vst.msk [vmem:[%s10497_s30 + $0x20] sm:$0xff] %vm6527_vm6, %v6523_v40  ;;  %v6517_v46 = vadd.f32 %v7038_v39, %v6502_v1 }
 0x364   : > { %v6526_v18 = vmax.f32 %v6518_v32, 0.0 }
 0x365   : > { %v6525_v36 = vmax.f32 %v6517_v46, 0.0 }
 0x366   : > { %6535 = vst.msk [vmem:[%s10497_s30 + $0x38] sm:$0xff] %vm6527_vm6, %v6526_v18 }
 0x367   : > { %6534 = vst.msk [vmem:[%s10497_s30 + $0x30] sm:$0xff] %vm6527_vm6, %v6525_v36 }
 0x368 PF: > { %s15_s18 = sadd.s32 1, %s8801_s18  }
 0x369   : > { %p12_p5 = scmp.ge.s32.totalorder %s15_s18, 4  }
 0x36b   :  { %14 = sbr.rel (!%p12_p5) target bundleno = 1 (0x1), region = 86 }

</bundles_post_ra>
